<compile_context>
chip_gen: v7x
topology: tpu7x:2x2x1
jax: 0.10.0
libtpu: 0.0.40
codegen_flags: <defaults>
</compile_context>

<pallas_src>
import numpy as np
import jax
import jax.numpy as jnp
from jax.experimental import pallas as pl
from jax.experimental.pallas import tpu as pltpu

GRID_SIZE = 10
MAX_RECTS = 5
SIZE_GRID = GRID_SIZE * GRID_SIZE           # 100
RECT_IN = MAX_RECTS * 2 + 3                 # 13
HID = 256 * 2                               # 512
C1, C2 = 16, 32
CONV_FLAT = C2 * SIZE_GRID                  # 3200

PAD_W = GRID_SIZE + 2                       # 12  (1-padded image / conv1-output width)
WIN = PAD_W * C1                            # 192 (one padded conv1 row, flattened on lanes)
W1_K = 3 * PAD_W                            # 36
W1_N = GRID_SIZE * C1                       # 160
W2_K = 3 * PAD_W * C1                       # 576
W2_N = GRID_SIZE * C2                       # 320

NCHUNK = 5                                  # chunks of the streamed head layer-1 weight
ROWS_PER_CHUNK = GRID_SIZE // NCHUNK        # 2 conv2 output rows per chunk
CHUNK = ROWS_PER_CHUNK * W2_N               # 640 feature columns per chunk
HEAD_PAD = 128                              # lane-dense padded head output width


# ----------------------------------------------------------------------------
# The fused kernel.  grid = (head, chunk); head is "parallel" (v7x megacore),
# chunk is "arbitrary" (streams + accumulates the fused head layer-1 matmul).
# ----------------------------------------------------------------------------
def _policy_kernel(grid_ref, rects_ref,
                   w1t_ref, b1t_ref, w2t_ref, b2t_ref,
                   re1w_ref, re1b_ref, re2w_ref, re2b_ref, re3w_ref, re3b_ref,
                   h1g_ref, h1r_ref, h1b_ref,
                   w2h_ref, b2h_ref, w3h_ref, b3h_ref,
                   out_ref,
                   img_scr, h1win_scr, acc_scr):
    bf16 = jnp.bfloat16
    f32 = jnp.float32
    c = pl.program_id(1)

    @pl.when(c == 0)
    def _init():
        # ---- 1-padded input image, flattened on lanes: img[(hi)*12 + wi] ----
        img_scr[...] = jnp.zeros_like(img_scr)
        for r in range(GRID_SIZE):
            img_scr[:, (r + 1) * PAD_W + 1:(r + 1) * PAD_W + 1 + GRID_SIZE] = (
                grid_ref[:, r * GRID_SIZE:(r + 1) * GRID_SIZE].astype(bf16))

        # ---- conv1: 10 row matmuls (B,36)x(36,160) against a Toeplitz weight.
        # h1win_scr[h2] holds the 3x12x16 window of the zero-padded conv1 output
        # that conv2 output row h2 needs (ring positions stay zero).
        h1win_scr[...] = jnp.zeros_like(h1win_scr)
        for h in range(GRID_SIZE):
            lhs = img_scr[:, h * PAD_W:h * PAD_W + W1_K]
            row = jnp.dot(lhs, w1t_ref[...], preferred_element_type=f32)
            row = jnp.maximum(row + b1t_ref[...], 0.0).astype(bf16)      # (B, 160)
            for h2 in range(max(0, h - 1), min(GRID_SIZE, h + 2)):
                off = (h + 1 - h2) * WIN + C1
                h1win_scr[h2, :, off:off + W1_N] = row

        # ---- rect encoder + rect/bias contribution of the fused head layer 1 ----
        r1 = jnp.maximum(jnp.dot(rects_ref[...].astype(bf16), re1w_ref[...],
                                 preferred_element_type=f32) + re1b_ref[...], 0.0)
        r2 = jnp.maximum(jnp.dot(r1.astype(bf16), re2w_ref[...],
                                 preferred_element_type=f32) + re2b_ref[...], 0.0)
        rf = jnp.maximum(jnp.dot(r2.astype(bf16), re3w_ref[...],
                                 preferred_element_type=f32) + re3b_ref[...], 0.0)
        acc_scr[...] = (jnp.dot(rf.astype(bf16), h1r_ref[0],
                                preferred_element_type=f32) + h1b_ref[0])

    # ---- conv2 rows needed by this chunk, immediately consumed by the streamed
    #      chunk of the fused head layer-1 matmul (overlaps next chunk's weight DMA).
    acc = acc_scr[...]
    for t in range(ROWS_PER_CHUNK):
        lhs = h1win_scr[ROWS_PER_CHUNK * c + t]                           # (B, 576) bf16
        row = jnp.dot(lhs, w2t_ref[...], preferred_element_type=f32)
        row = jnp.maximum(row + b2t_ref[...], 0.0).astype(bf16)          # (B, 320)
        acc = acc + jnp.dot(row, h1g_ref[t * W2_N:(t + 1) * W2_N, :],
                            preferred_element_type=f32)
    acc_scr[...] = acc

    # ---- finalize this head: ReLU + layer 2 + layer 3, lane-dense (B, 128) store ----
    @pl.when(c == pl.num_programs(1) - 1)
    def _fin():
        h = jnp.maximum(acc_scr[...], 0.0)
        z = jnp.maximum(jnp.dot(h.astype(bf16), w2h_ref[0],
                                preferred_element_type=f32) + b2h_ref[0], 0.0)
        out_ref[0] = (jnp.dot(z.astype(bf16), w3h_ref[0],
                              preferred_element_type=f32) + b3h_ref[0])


def policy_net_forward(kp, grid_nchw, rects_info):
    B = grid_nchw.shape[0]
    grid_flat = grid_nchw.reshape(B, SIZE_GRID).astype(jnp.float32)
    rects = rects_info.astype(jnp.float32)

    resident = lambda h, c: (0, 0)
    per_head = lambda h, c: (h, 0, 0)

    out = pl.pallas_call(
        _policy_kernel,
        out_shape=jax.ShapeDtypeStruct((2, B, HEAD_PAD), jnp.float32),
        grid_spec=pltpu.PrefetchScalarGridSpec(
            num_scalar_prefetch=0,
            grid=(2, NCHUNK),
            in_specs=[
                pl.BlockSpec((B, SIZE_GRID), resident),         # grid image
                pl.BlockSpec((B, RECT_IN), resident),           # rects
                pl.BlockSpec((W1_K, W1_N), resident),           # conv1 Toeplitz
                pl.BlockSpec((1, W1_N), resident),
                pl.BlockSpec((W2_K, W2_N), resident),           # conv2 Toeplitz
                pl.BlockSpec((1, W2_N), resident),
                pl.BlockSpec((RECT_IN, HID), resident),         # rect encoder
                pl.BlockSpec((1, HID), resident),
                pl.BlockSpec((HID, HID), resident),
                pl.BlockSpec((1, HID), resident),
                pl.BlockSpec((HID, 64), resident),
                pl.BlockSpec((1, 64), resident),
                pl.BlockSpec((CHUNK, HID), lambda h, c: (c, h)),  # streamed h1g_w chunk
                pl.BlockSpec((1, 64, HID), per_head),           # h1r (rect part of layer 1)
                pl.BlockSpec((1, 1, HID), per_head),            # layer-1 bias
                pl.BlockSpec((1, HID, HID), per_head),          # head layer 2
                pl.BlockSpec((1, 1, HID), per_head),
                pl.BlockSpec((1, HID, HEAD_PAD), per_head),     # head layer 3 (padded)
                pl.BlockSpec((1, 1, HEAD_PAD), per_head),
            ],
            out_specs=pl.BlockSpec((1, B, HEAD_PAD), per_head),
            scratch_shapes=[
                pltpu.VMEM((B, PAD_W * PAD_W), jnp.bfloat16),       # padded image
                pltpu.VMEM((GRID_SIZE, B, W2_K), jnp.bfloat16),     # conv1 output windows
                pltpu.VMEM((B, HID), jnp.float32),                  # head layer-1 accumulator
            ],
        ),
        compiler_params=pltpu.CompilerParams(
            dimension_semantics=("parallel", "arbitrary"),
            vmem_limit_bytes=32 * 1024 * 1024),
    )(grid_flat, rects,
      kp["w1t"], kp["b1t"], kp["w2t"], kp["b2t"],
      kp["re1_w"], kp["re1_b"], kp["re2_w"], kp["re2_b"], kp["re3_w"], kp["re3_b"],
      kp["h1g_w"], kp["h1r_w"], kp["h1_b"],
      kp["w2h"], kp["b2h"], kp["w3h"], kp["b3h"])

    logits_box = out[0, :, :MAX_RECTS]
    logits_place = out[1, :, :SIZE_GRID]
    return logits_box, logits_place


# ----------------------------------------------------------------------------
# Parameters: synthetic init in the original (PyTorch-like) layout, then a
# one-time "prepare" step (Toeplitz expansion, head fusion, permutation, bf16).
# ----------------------------------------------------------------------------
def init_params(key):
    def dense_init(k, fan_in, fan_out):
        kw, kb = jax.random.split(k)
        s = 1.0 / np.sqrt(fan_in)
        w = jax.random.uniform(kw, (fan_in, fan_out), jnp.float32, -s, s)
        b = jax.random.uniform(kb, (fan_out,), jnp.float32, -s, s)
        return w, b

    keys = jax.random.split(key, 13)
    p = {}
    s1 = 1.0 / np.sqrt(1 * 9)
    p["conv1_w"] = jax.random.uniform(keys[0], (3, 3, 1, C1), jnp.float32, -s1, s1)
    p["conv1_b"] = jax.random.uniform(keys[1], (C1,), jnp.float32, -s1, s1)
    s2 = 1.0 / np.sqrt(C1 * 9)
    p["conv2_w"] = jax.random.uniform(keys[2], (3, 3, C1, C2), jnp.float32, -s2, s2)
    p["conv2_b"] = jax.random.uniform(keys[3], (C2,), jnp.float32, -s2, s2)
    p["re1_w"], p["re1_b"] = dense_init(keys[4], RECT_IN, HID)
    p["re2_w"], p["re2_b"] = dense_init(keys[5], HID, HID)
    p["re3_w"], p["re3_b"] = dense_init(keys[6], HID, 64)
    p["sb1_w"], p["sb1_b"] = dense_init(keys[7], CONV_FLAT + 64, HID)
    p["sb2_w"], p["sb2_b"] = dense_init(keys[8], HID, HID)
    p["sb3_w"], p["sb3_b"] = dense_init(keys[9], HID, MAX_RECTS)
    p["pb1_w"], p["pb1_b"] = dense_init(keys[10], CONV_FLAT + 64, HID)
    p["pb2_w"], p["pb2_b"] = dense_init(keys[11], HID, HID)
    p["pb3_w"], p["pb3_b"] = dense_init(keys[12], HID, SIZE_GRID)
    return p


def prepare_params(p):
    bf16 = jnp.bfloat16
    f32 = jnp.float32
    kp = {}

    # conv1 as a per-output-row matmul: lhs = 3 padded image rows (36 lanes),
    # rhs[dh*12 + (w+dw), w*16 + c] = w1[dh, dw, 0, c]
    w1 = np.asarray(p["conv1_w"], np.float32)
    W1 = np.zeros((W1_K, W1_N), np.float32)
    for dh in range(3):
        for dw in range(3):
            for w in range(GRID_SIZE):
                W1[dh * PAD_W + (w + dw), w * C1:(w + 1) * C1] += w1[dh, dw, 0, :]
    kp["w1t"] = jnp.asarray(W1, bf16)
    kp["b1t"] = jnp.tile(p["conv1_b"].astype(f32), GRID_SIZE).reshape(1, W1_N)

    # conv2 as a per-output-row matmul: lhs = 3 padded conv1 rows (576 lanes),
    # rhs[dh*192 + wp*16 + c1, w*32 + c2] = w2[dh, wp - w, c1, c2]
    w2 = np.asarray(p["conv2_w"], np.float32)
    W2 = np.zeros((W2_K, W2_N), np.float32)
    for dh in range(3):
        for dw in range(3):
            for w in range(GRID_SIZE):
                wp = w + dw
                W2[dh * WIN + wp * C1: dh * WIN + (wp + 1) * C1,
                   w * C2:(w + 1) * C2] += w2[dh, dw, :, :]
    kp["w2t"] = jnp.asarray(W2, bf16)
    kp["b2t"] = jnp.tile(p["conv2_b"].astype(f32), GRID_SIZE).reshape(1, W2_N)

    for name in ("re1", "re2", "re3"):
        kp[name + "_w"] = p[name + "_w"].astype(bf16)
        kp[name + "_b"] = p[name + "_b"].reshape(1, -1).astype(f32)

    # Absorb the PyTorch CHW flatten into the head layer-1 weight rows: rows are
    # re-ordered from (c, h, w) to (h, w, c), matching the kernel's conv2 feature order.
    def perm(wg):
        out = wg.shape[1]
        return jnp.transpose(wg.reshape(C2, GRID_SIZE, GRID_SIZE, out),
                             (1, 2, 0, 3)).reshape(CONV_FLAT, out)

    kp["h1g_w"] = jnp.concatenate([perm(p["sb1_w"][:CONV_FLAT]),
                                   perm(p["pb1_w"][:CONV_FLAT])], axis=1).astype(bf16)
    kp["h1r_w"] = jnp.stack([p["sb1_w"][CONV_FLAT:],
                             p["pb1_w"][CONV_FLAT:]]).astype(bf16)          # (2, 64, 512)
    kp["h1_b"] = jnp.stack([p["sb1_b"], p["pb1_b"]]).reshape(2, 1, HID).astype(f32)

    kp["w2h"] = jnp.stack([p["sb2_w"], p["pb2_w"]]).astype(bf16)            # (2, 512, 512)
    kp["b2h"] = jnp.stack([p["sb2_b"], p["pb2_b"]]).reshape(2, 1, HID).astype(f32)

    def pad_cols(w, b):
        return (jnp.pad(w, ((0, 0), (0, HEAD_PAD - w.shape[1]))),
                jnp.pad(b, (0, HEAD_PAD - b.shape[0])))
    sb3w, sb3b = pad_cols(p["sb3_w"], p["sb3_b"])
    pb3w, pb3b = pad_cols(p["pb3_w"], p["pb3_b"])
    kp["w3h"] = jnp.stack([sb3w, pb3w]).astype(bf16)                        # (2, 512, 128)
    kp["b3h"] = jnp.stack([sb3b, pb3b]).reshape(2, 1, HEAD_PAD).astype(f32)
    return kp


# ----------------------------------------------------------------------------
# Plain-JAX reference (same bf16 weight/activation policy) for a numerical check
# ----------------------------------------------------------------------------
def reference_forward(p, grid_nchw, rects_info):
    f32 = jnp.float32
    q = lambda w: w.astype(jnp.bfloat16).astype(f32)
    a = lambda x: x.astype(jnp.bfloat16).astype(f32)

    def conv(x, w, b):
        y = jax.lax.conv_general_dilated(a(x), q(w), (1, 1), "SAME",
                                         dimension_numbers=("NHWC", "HWIO", "NHWC"))
        return jnp.maximum(y + b.reshape(1, 1, 1, -1), 0.0)

    def lin(x, w, b, relu=True):
        y = jnp.dot(a(x), q(w)) + b
        return jnp.maximum(y, 0.0) if relu else y

    B = grid_nchw.shape[0]
    x = jnp.transpose(grid_nchw, (0, 2, 3, 1)).astype(f32)
    h1 = conv(x, p["conv1_w"], p["conv1_b"])
    h2 = conv(h1, p["conv2_w"], p["conv2_b"])
    grid_feat = jnp.transpose(h2, (0, 3, 1, 2)).reshape(B, CONV_FLAT)   # CHW flatten

    r = lin(rects_info.astype(f32), p["re1_w"], p["re1_b"])
    r = lin(r, p["re2_w"], p["re2_b"])
    rf = lin(r, p["re3_w"], p["re3_b"])

    xcat = jnp.concatenate([grid_feat, rf], axis=1)
    sb = lin(xcat, p["sb1_w"], p["sb1_b"])
    sb = lin(sb, p["sb2_w"], p["sb2_b"])
    box = lin(sb, p["sb3_w"], p["sb3_b"], relu=False)
    pb = lin(xcat, p["pb1_w"], p["pb1_b"])
    pb = lin(pb, p["pb2_w"], p["pb2_b"])
    place = lin(pb, p["pb3_w"], p["pb3_b"], relu=False)
    return box, place


if __name__ == "__main__":
    key = jax.random.PRNGKey(0)
    k_param, k_grid, k_rect = jax.random.split(key, 3)

    params = init_params(k_param)
    kparams = prepare_params(params)           # one-time permute / fuse / bf16 cast

    B = 2
    grid_in = jax.random.uniform(k_grid, (B, 1, GRID_SIZE, GRID_SIZE), jnp.float32)
    rects_info = jax.random.uniform(k_rect, (B, RECT_IN), jnp.float32)

    fwd = jax.jit(policy_net_forward)
    logits_box, logits_place = fwd(kparams, grid_in, rects_info)
    jax.block_until_ready((logits_box, logits_place))

    assert logits_box.shape == (B, MAX_RECTS)
    assert logits_place.shape == (B, SIZE_GRID)

    # correctness check against a plain-JAX reference with the same bf16 policy
    ref_box, ref_place = jax.jit(reference_forward)(params, grid_in, rects_info)
    np.testing.assert_allclose(np.asarray(logits_box), np.asarray(ref_box),
                               atol=2e-2, rtol=2e-2)
    np.testing.assert_allclose(np.asarray(logits_place), np.asarray(ref_place),
                               atol=2e-2, rtol=2e-2)

    print("KERNEL_OK")
</pallas_src>

<mosaic_0001>
module attributes {stable_mosaic.version = 11 : i64} {
  func.func @_policy_kernel(%arg0: i32, %arg1: i32, %arg2: memref<2x100xf32, #tpu.memory_space<vmem>>, %arg3: memref<2x13xf32, #tpu.memory_space<vmem>>, %arg4: memref<36x160xbf16, #tpu.memory_space<vmem>>, %arg5: memref<1x160xf32, #tpu.memory_space<vmem>>, %arg6: memref<576x320xbf16, #tpu.memory_space<vmem>>, %arg7: memref<1x320xf32, #tpu.memory_space<vmem>>, %arg8: memref<13x512xbf16, #tpu.memory_space<vmem>>, %arg9: memref<1x512xf32, #tpu.memory_space<vmem>>, %arg10: memref<512x512xbf16, #tpu.memory_space<vmem>>, %arg11: memref<1x512xf32, #tpu.memory_space<vmem>>, %arg12: memref<512x64xbf16, #tpu.memory_space<vmem>>, %arg13: memref<1x64xf32, #tpu.memory_space<vmem>>, %arg14: memref<640x512xbf16, #tpu.memory_space<vmem>>, %arg15: memref<1x64x512xbf16, #tpu.memory_space<vmem>>, %arg16: memref<1x1x512xf32, #tpu.memory_space<vmem>>, %arg17: memref<1x512x512xbf16, #tpu.memory_space<vmem>>, %arg18: memref<1x1x512xf32, #tpu.memory_space<vmem>>, %arg19: memref<1x512x128xbf16, #tpu.memory_space<vmem>>, %arg20: memref<1x1x128xf32, #tpu.memory_space<vmem>>, %arg21: memref<1x2x128xf32, #tpu.memory_space<vmem>>, %arg22: memref<2x144xbf16, #tpu.memory_space<vmem>>, %arg23: memref<10x2x576xbf16, #tpu.memory_space<vmem>>, %arg24: memref<2x512xf32, #tpu.memory_space<vmem>>) attributes {dimension_semantics = [#tpu.dimension_semantics<parallel>, #tpu.dimension_semantics<arbitrary>], iteration_bounds = array<i64: 2, 5>, scalar_prefetch = 0 : i64, scratch_operands = 3 : i64, tpu.core_type = #tpu.core_type<tc>, window_params = [{pipeline_mode = #tpu.pipeline_mode<synchronous>, transform_indices = @transform_0, window_bounds = array<i64: 2, 100>}, {pipeline_mode = #tpu.pipeline_mode<synchronous>, transform_indices = @transform_1, window_bounds = array<i64: 2, 13>}, {pipeline_mode = #tpu.pipeline_mode<synchronous>, transform_indices = @transform_2, window_bounds = array<i64: 36, 160>}, {pipeline_mode = #tpu.pipeline_mode<synchronous>, transform_indices = @transform_3, window_bounds = array<i64: 1, 160>}, {pipeline_mode = #tpu.pipeline_mode<synchronous>, transform_indices = @transform_4, window_bounds = array<i64: 576, 320>}, {pipeline_mode = #tpu.pipeline_mode<synchronous>, transform_indices = @transform_5, window_bounds = array<i64: 1, 320>}, {pipeline_mode = #tpu.pipeline_mode<synchronous>, transform_indices = @transform_6, window_bounds = array<i64: 13, 512>}, {pipeline_mode = #tpu.pipeline_mode<synchronous>, transform_indices = @transform_7, window_bounds = array<i64: 1, 512>}, {pipeline_mode = #tpu.pipeline_mode<synchronous>, transform_indices = @transform_8, window_bounds = array<i64: 512, 512>}, {pipeline_mode = #tpu.pipeline_mode<synchronous>, transform_indices = @transform_9, window_bounds = array<i64: 1, 512>}, {pipeline_mode = #tpu.pipeline_mode<synchronous>, transform_indices = @transform_10, window_bounds = array<i64: 512, 64>}, {pipeline_mode = #tpu.pipeline_mode<synchronous>, transform_indices = @transform_11, window_bounds = array<i64: 1, 64>}, {transform_indices = @transform_12, window_bounds = array<i64: 640, 512>}, {transform_indices = @transform_13, window_bounds = array<i64: 1, 64, 512>}, {transform_indices = @transform_14, window_bounds = array<i64: 1, 1, 512>}, {transform_indices = @transform_15, window_bounds = array<i64: 1, 512, 512>}, {transform_indices = @transform_16, window_bounds = array<i64: 1, 1, 512>}, {transform_indices = @transform_17, window_bounds = array<i64: 1, 512, 128>}, {transform_indices = @transform_18, window_bounds = array<i64: 1, 1, 128>}, {transform_indices = @transform_19, window_bounds = array<i64: 1, 2, 128>}]} {
    %c0_i32 = arith.constant 0 : i32
    %0 = arith.cmpi eq, %arg1, %c0_i32 : i32
    %1 = arith.extui %0 : i1 to i32
    %c0_i32_0 = arith.constant 0 : i32
    %2 = arith.cmpi ne, %1, %c0_i32_0 : i32
    scf.if %2 {
      %cst_27 = arith.constant 0.000000e+00 : bf16
      %40 = vector.broadcast %cst_27 : bf16 to vector<2x144xbf16>
      %c0_28 = arith.constant 0 : index
      %c0_29 = arith.constant 0 : index
      %41 = vector.load %arg22[%c0_28, %c0_29] : memref<2x144xbf16, #tpu.memory_space<vmem>>, vector<2x144xbf16>
      tpu.vector_store %arg22[%c0_28, %c0_29], %40 {strides = array<i32>} : memref<2x144xbf16, #tpu.memory_space<vmem>>, vector<2x144xbf16>,
      %c0_30 = arith.constant 0 : index
      %c0_31 = arith.constant 0 : index
      %42 = vector.load %arg2[%c0_30, %c0_31] : memref<2x100xf32, #tpu.memory_space<vmem>>, vector<2x10xf32>
      %43 = arith.truncf %42 : vector<2x10xf32> to vector<2x10xbf16>
      %c0_32 = arith.constant 0 : index
      %c13 = arith.constant 13 : index
      %44 = vector.load %arg22[%c0_32, %c13] : memref<2x144xbf16, #tpu.memory_space<vmem>>, vector<2x10xbf16>
      tpu.vector_store %arg22[%c0_32, %c13], %43 {strides = array<i32>} : memref<2x144xbf16, #tpu.memory_space<vmem>>, vector<2x10xbf16>,
      %c0_33 = arith.constant 0 : index
      %c10 = arith.constant 10 : index
      %45 = vector.load %arg2[%c0_33, %c10] : memref<2x100xf32, #tpu.memory_space<vmem>>, vector<2x10xf32>
      %46 = arith.truncf %45 : vector<2x10xf32> to vector<2x10xbf16>
      %c0_34 = arith.constant 0 : index
      %c25 = arith.constant 25 : index
      %47 = vector.load %arg22[%c0_34, %c25] : memref<2x144xbf16, #tpu.memory_space<vmem>>, vector<2x10xbf16>
      tpu.vector_store %arg22[%c0_34, %c25], %46 {strides = array<i32>} : memref<2x144xbf16, #tpu.memory_space<vmem>>, vector<2x10xbf16>,
      %c0_35 = arith.constant 0 : index
      %c20 = arith.constant 20 : index
      %48 = vector.load %arg2[%c0_35, %c20] : memref<2x100xf32, #tpu.memory_space<vmem>>, vector<2x10xf32>
      %49 = arith.truncf %48 : vector<2x10xf32> to vector<2x10xbf16>
      %c0_36 = arith.constant 0 : index
      %c37 = arith.constant 37 : index
      %50 = vector.load %arg22[%c0_36, %c37] : memref<2x144xbf16, #tpu.memory_space<vmem>>, vector<2x10xbf16>
      tpu.vector_store %arg22[%c0_36, %c37], %49 {strides = array<i32>} : memref<2x144xbf16, #tpu.memory_space<vmem>>, vector<2x10xbf16>,
      %c0_37 = arith.constant 0 : index
      %c30 = arith.constant 30 : index
      %51 = vector.load %arg2[%c0_37, %c30] : memref<2x100xf32, #tpu.memory_space<vmem>>, vector<2x10xf32>
      %52 = arith.truncf %51 : vector<2x10xf32> to vector<2x10xbf16>
      %c0_38 = arith.constant 0 : index
      %c49 = arith.constant 49 : index
      %53 = vector.load %arg22[%c0_38, %c49] : memref<2x144xbf16, #tpu.memory_space<vmem>>, vector<2x10xbf16>
      tpu.vector_store %arg22[%c0_38, %c49], %52 {strides = array<i32>} : memref<2x144xbf16, #tpu.memory_space<vmem>>, vector<2x10xbf16>,
      %c0_39 = arith.constant 0 : index
      %c40 = arith.constant 40 : index
      %54 = vector.load %arg2[%c0_39, %c40] : memref<2x100xf32, #tpu.memory_space<vmem>>, vector<2x10xf32>
      %55 = arith.truncf %54 : vector<2x10xf32> to vector<2x10xbf16>
      %c0_40 = arith.constant 0 : index
      %c61 = arith.constant 61 : index
      %56 = vector.load %arg22[%c0_40, %c61] : memref<2x144xbf16, #tpu.memory_space<vmem>>, vector<2x10xbf16>
      tpu.vector_store %arg22[%c0_40, %c61], %55 {strides = array<i32>} : memref<2x144xbf16, #tpu.memory_space<vmem>>, vector<2x10xbf16>,
      %c0_41 = arith.constant 0 : index
      %c50 = arith.constant 50 : index
      %57 = vector.load %arg2[%c0_41, %c50] : memref<2x100xf32, #tpu.memory_space<vmem>>, vector<2x10xf32>
      %58 = arith.truncf %57 : vector<2x10xf32> to vector<2x10xbf16>
      %c0_42 = arith.constant 0 : index
      %c73 = arith.constant 73 : index
      %59 = vector.load %arg22[%c0_42, %c73] : memref<2x144xbf16, #tpu.memory_space<vmem>>, vector<2x10xbf16>
      tpu.vector_store %arg22[%c0_42, %c73], %58 {strides = array<i32>} : memref<2x144xbf16, #tpu.memory_space<vmem>>, vector<2x10xbf16>,
      %c0_43 = arith.constant 0 : index
      %c60 = arith.constant 60 : index
      %60 = vector.load %arg2[%c0_43, %c60] : memref<2x100xf32, #tpu.memory_space<vmem>>, vector<2x10xf32>
      %61 = arith.truncf %60 : vector<2x10xf32> to vector<2x10xbf16>
      %c0_44 = arith.constant 0 : index
      %c85 = arith.constant 85 : index
      %62 = vector.load %arg22[%c0_44, %c85] : memref<2x144xbf16, #tpu.memory_space<vmem>>, vector<2x10xbf16>
      tpu.vector_store %arg22[%c0_44, %c85], %61 {strides = array<i32>} : memref<2x144xbf16, #tpu.memory_space<vmem>>, vector<2x10xbf16>,
      %c0_45 = arith.constant 0 : index
      %c70 = arith.constant 70 : index
      %63 = vector.load %arg2[%c0_45, %c70] : memref<2x100xf32, #tpu.memory_space<vmem>>, vector<2x10xf32>
      %64 = arith.truncf %63 : vector<2x10xf32> to vector<2x10xbf16>
      %c0_46 = arith.constant 0 : index
      %c97 = arith.constant 97 : index
      %65 = vector.load %arg22[%c0_46, %c97] : memref<2x144xbf16, #tpu.memory_space<vmem>>, vector<2x10xbf16>
      tpu.vector_store %arg22[%c0_46, %c97], %64 {strides = array<i32>} : memref<2x144xbf16, #tpu.memory_space<vmem>>, vector<2x10xbf16>,
      %c0_47 = arith.constant 0 : index
      %c80 = arith.constant 80 : index
      %66 = vector.load %arg2[%c0_47, %c80] : memref<2x100xf32, #tpu.memory_space<vmem>>, vector<2x10xf32>
      %67 = arith.truncf %66 : vector<2x10xf32> to vector<2x10xbf16>
      %c0_48 = arith.constant 0 : index
      %c109 = arith.constant 109 : index
      %68 = vector.load %arg22[%c0_48, %c109] : memref<2x144xbf16, #tpu.memory_space<vmem>>, vector<2x10xbf16>
      tpu.vector_store %arg22[%c0_48, %c109], %67 {strides = array<i32>} : memref<2x144xbf16, #tpu.memory_space<vmem>>, vector<2x10xbf16>,
      %c0_49 = arith.constant 0 : index
      %c90 = arith.constant 90 : index
      %69 = vector.load %arg2[%c0_49, %c90] : memref<2x100xf32, #tpu.memory_space<vmem>>, vector<2x10xf32>
      %70 = arith.truncf %69 : vector<2x10xf32> to vector<2x10xbf16>
      %c0_50 = arith.constant 0 : index
      %c121 = arith.constant 121 : index
      %71 = vector.load %arg22[%c0_50, %c121] : memref<2x144xbf16, #tpu.memory_space<vmem>>, vector<2x10xbf16>
      tpu.vector_store %arg22[%c0_50, %c121], %70 {strides = array<i32>} : memref<2x144xbf16, #tpu.memory_space<vmem>>, vector<2x10xbf16>,
      %cst_51 = arith.constant 0.000000e+00 : bf16
      %72 = vector.broadcast %cst_51 : bf16 to vector<10x2x576xbf16>
      %c0_52 = arith.constant 0 : index
      %c0_53 = arith.constant 0 : index
      %c0_54 = arith.constant 0 : index
      %73 = vector.load %arg23[%c0_52, %c0_53, %c0_54] : memref<10x2x576xbf16, #tpu.memory_space<vmem>>, vector<10x2x576xbf16>
      tpu.vector_store %arg23[%c0_52, %c0_53, %c0_54], %72 {strides = array<i32>} : memref<10x2x576xbf16, #tpu.memory_space<vmem>>, vector<10x2x576xbf16>,
      %c0_55 = arith.constant 0 : index
      %c0_56 = arith.constant 0 : index
      %74 = vector.load %arg22[%c0_55, %c0_56] : memref<2x144xbf16, #tpu.memory_space<vmem>>, vector<2x36xbf16>
      %c0_57 = arith.constant 0 : index
      %c0_58 = arith.constant 0 : index
      %75 = vector.load %arg4[%c0_57, %c0_58] : memref<36x160xbf16, #tpu.memory_space<vmem>>, vector<36x160xbf16>
      %cst_59 = arith.constant dense<0.000000e+00> : vector<2x160xf32>
      %76 = tpu.matmul %74, %75, %cst_59 {dimension_numbers = #tpu.dot_dimension_numbers<[1], [0], [0], [1], [0, 0, 1, 1], [], []>} : vector<2x36xbf16>, vector<36x160xbf16>, vector<2x160xf32> -> vector<2x160xf32>
      %c0_60 = arith.constant 0 : index
      %c0_61 = arith.constant 0 : index
      %77 = vector.load %arg5[%c0_60, %c0_61] : memref<1x160xf32, #tpu.memory_space<vmem>>, vector<1x160xf32>
      %78 = vector.broadcast %77 : vector<1x160xf32> to vector<2x160xf32>
      %79 = arith.addf %76, %78 : vector<2x160xf32>
      %cst_62 = arith.constant 0.000000e+00 : f32
      %80 = vector.broadcast %cst_62 : f32 to vector<2x160xf32>
      %81 = arith.maximumf %79, %80 : vector<2x160xf32>
      %82 = arith.truncf %81 : vector<2x160xf32> to vector<2x160xbf16>
      %c0_63 = arith.constant 0 : index
      %c0_64 = arith.constant 0 : index
      %c208 = arith.constant 208 : index
      %83 = vector.load %arg23[%c0_63, %c0_64, %c208] : memref<10x2x576xbf16, #tpu.memory_space<vmem>>, vector<1x2x160xbf16>
      %84 = vector.shape_cast %83 : vector<1x2x160xbf16> to vector<2x160xbf16>
      %85 = vector.shape_cast %82 : vector<2x160xbf16> to vector<1x2x160xbf16>
      tpu.vector_store %arg23[%c0_63, %c0_64, %c208], %85 {strides = array<i32>} : memref<10x2x576xbf16, #tpu.memory_space<vmem>>, vector<1x2x160xbf16>,
      %c1 = arith.constant 1 : index
      %c0_65 = arith.constant 0 : index
      %c16 = arith.constant 16 : index
      %86 = vector.load %arg23[%c1, %c0_65, %c16] : memref<10x2x576xbf16, #tpu.memory_space<vmem>>, vector<1x2x160xbf16>
      %87 = vector.shape_cast %86 : vector<1x2x160xbf16> to vector<2x160xbf16>
      %88 = vector.shape_cast %82 : vector<2x160xbf16> to vector<1x2x160xbf16>
      tpu.vector_store %arg23[%c1, %c0_65, %c16], %88 {strides = array<i32>} : memref<10x2x576xbf16, #tpu.memory_space<vmem>>, vector<1x2x160xbf16>,
      %c0_66 = arith.constant 0 : index
      %c12 = arith.constant 12 : index
      %89 = vector.load %arg22[%c0_66, %c12] : memref<2x144xbf16, #tpu.memory_space<vmem>>, vector<2x36xbf16>
      %c0_67 = arith.constant 0 : index
      %c0_68 = arith.constant 0 : index
      %90 = vector.load %arg4[%c0_67, %c0_68] : memref<36x160xbf16, #tpu.memory_space<vmem>>, vector<36x160xbf16>
      %cst_69 = arith.constant dense<0.000000e+00> : vector<2x160xf32>
      %91 = tpu.matmul %89, %90, %cst_69 {dimension_numbers = #tpu.dot_dimension_numbers<[1], [0], [0], [1], [0, 0, 1, 1], [], []>} : vector<2x36xbf16>, vector<36x160xbf16>, vector<2x160xf32> -> vector<2x160xf32>
      %c0_70 = arith.constant 0 : index
      %c0_71 = arith.constant 0 : index
      %92 = vector.load %arg5[%c0_70, %c0_71] : memref<1x160xf32, #tpu.memory_space<vmem>>, vector<1x160xf32>
      %93 = vector.broadcast %92 : vector<1x160xf32> to vector<2x160xf32>
      %94 = arith.addf %91, %93 : vector<2x160xf32>
      %cst_72 = arith.constant 0.000000e+00 : f32
      %95 = vector.broadcast %cst_72 : f32 to vector<2x160xf32>
      %96 = arith.maximumf %94, %95 : vector<2x160xf32>
      %97 = arith.truncf %96 : vector<2x160xf32> to vector<2x160xbf16>
      %c0_73 = arith.constant 0 : index
      %c0_74 = arith.constant 0 : index
      %c400 = arith.constant 400 : index
      %98 = vector.load %arg23[%c0_73, %c0_74, %c400] : memref<10x2x576xbf16, #tpu.memory_space<vmem>>, vector<1x2x160xbf16>
      %99 = vector.shape_cast %98 : vector<1x2x160xbf16> to vector<2x160xbf16>
      %100 = vector.shape_cast %97 : vector<2x160xbf16> to vector<1x2x160xbf16>
      tpu.vector_store %arg23[%c0_73, %c0_74, %c400], %100 {strides = array<i32>} : memref<10x2x576xbf16, #tpu.memory_space<vmem>>, vector<1x2x160xbf16>,
      %c1_75 = arith.constant 1 : index
      %c0_76 = arith.constant 0 : index
      %c208_77 = arith.constant 208 : index
      %101 = vector.load %arg23[%c1_75, %c0_76, %c208_77] : memref<10x2x576xbf16, #tpu.memory_space<vmem>>, vector<1x2x160xbf16>
      %102 = vector.shape_cast %101 : vector<1x2x160xbf16> to vector<2x160xbf16>
      %103 = vector.shape_cast %97 : vector<2x160xbf16> to vector<1x2x160xbf16>
      tpu.vector_store %arg23[%c1_75, %c0_76, %c208_77], %103 {strides = array<i32>} : memref<10x2x576xbf16, #tpu.memory_space<vmem>>, vector<1x2x160xbf16>,
      %c2 = arith.constant 2 : index
      %c0_78 = arith.constant 0 : index
      %c16_79 = arith.constant 16 : index
      %104 = vector.load %arg23[%c2, %c0_78, %c16_79] : memref<10x2x576xbf16, #tpu.memory_space<vmem>>, vector<1x2x160xbf16>
      %105 = vector.shape_cast %104 : vector<1x2x160xbf16> to vector<2x160xbf16>
      %106 = vector.shape_cast %97 : vector<2x160xbf16> to vector<1x2x160xbf16>
      tpu.vector_store %arg23[%c2, %c0_78, %c16_79], %106 {strides = array<i32>} : memref<10x2x576xbf16, #tpu.memory_space<vmem>>, vector<1x2x160xbf16>,
      %c0_80 = arith.constant 0 : index
      %c24 = arith.constant 24 : index
      %107 = vector.load %arg22[%c0_80, %c24] : memref<2x144xbf16, #tpu.memory_space<vmem>>, vector<2x36xbf16>
      %c0_81 = arith.constant 0 : index
      %c0_82 = arith.constant 0 : index
      %108 = vector.load %arg4[%c0_81, %c0_82] : memref<36x160xbf16, #tpu.memory_space<vmem>>, vector<36x160xbf16>
      %cst_83 = arith.constant dense<0.000000e+00> : vector<2x160xf32>
      %109 = tpu.matmul %107, %108, %cst_83 {dimension_numbers = #tpu.dot_dimension_numbers<[1], [0], [0], [1], [0, 0, 1, 1], [], []>} : vector<2x36xbf16>, vector<36x160xbf16>, vector<2x160xf32> -> vector<2x160xf32>
      %c0_84 = arith.constant 0 : index
      %c0_85 = arith.constant 0 : index
      %110 = vector.load %arg5[%c0_84, %c0_85] : memref<1x160xf32, #tpu.memory_space<vmem>>, vector<1x160xf32>
      %111 = vector.broadcast %110 : vector<1x160xf32> to vector<2x160xf32>
      %112 = arith.addf %109, %111 : vector<2x160xf32>
      %cst_86 = arith.constant 0.000000e+00 : f32
      %113 = vector.broadcast %cst_86 : f32 to vector<2x160xf32>
      %114 = arith.maximumf %112, %113 : vector<2x160xf32>
      %115 = arith.truncf %114 : vector<2x160xf32> to vector<2x160xbf16>
      %c1_87 = arith.constant 1 : index
      %c0_88 = arith.constant 0 : index
      %c400_89 = arith.constant 400 : index
      %116 = vector.load %arg23[%c1_87, %c0_88, %c400_89] : memref<10x2x576xbf16, #tpu.memory_space<vmem>>, vector<1x2x160xbf16>
      %117 = vector.shape_cast %116 : vector<1x2x160xbf16> to vector<2x160xbf16>
      %118 = vector.shape_cast %115 : vector<2x160xbf16> to vector<1x2x160xbf16>
      tpu.vector_store %arg23[%c1_87, %c0_88, %c400_89], %118 {strides = array<i32>} : memref<10x2x576xbf16, #tpu.memory_space<vmem>>, vector<1x2x160xbf16>,
      %c2_90 = arith.constant 2 : index
      %c0_91 = arith.constant 0 : index
      %c208_92 = arith.constant 208 : index
      %119 = vector.load %arg23[%c2_90, %c0_91, %c208_92] : memref<10x2x576xbf16, #tpu.memory_space<vmem>>, vector<1x2x160xbf16>
      %120 = vector.shape_cast %119 : vector<1x2x160xbf16> to vector<2x160xbf16>
      %121 = vector.shape_cast %115 : vector<2x160xbf16> to vector<1x2x160xbf16>
      tpu.vector_store %arg23[%c2_90, %c0_91, %c208_92], %121 {strides = array<i32>} : memref<10x2x576xbf16, #tpu.memory_space<vmem>>, vector<1x2x160xbf16>,
      %c3 = arith.constant 3 : index
      %c0_93 = arith.constant 0 : index
      %c16_94 = arith.constant 16 : index
      %122 = vector.load %arg23[%c3, %c0_93, %c16_94] : memref<10x2x576xbf16, #tpu.memory_space<vmem>>, vector<1x2x160xbf16>
      %123 = vector.shape_cast %122 : vector<1x2x160xbf16> to vector<2x160xbf16>
      %124 = vector.shape_cast %115 : vector<2x160xbf16> to vector<1x2x160xbf16>
      tpu.vector_store %arg23[%c3, %c0_93, %c16_94], %124 {strides = array<i32>} : memref<10x2x576xbf16, #tpu.memory_space<vmem>>, vector<1x2x160xbf16>,
      %c0_95 = arith.constant 0 : index
      %c36 = arith.constant 36 : index
      %125 = vector.load %arg22[%c0_95, %c36] : memref<2x144xbf16, #tpu.memory_space<vmem>>, vector<2x36xbf16>
      %c0_96 = arith.constant 0 : index
      %c0_97 = arith.constant 0 : index
      %126 = vector.load %arg4[%c0_96, %c0_97] : memref<36x160xbf16, #tpu.memory_space<vmem>>, vector<36x160xbf16>
      %cst_98 = arith.constant dense<0.000000e+00> : vector<2x160xf32>
      %127 = tpu.matmul %125, %126, %cst_98 {dimension_numbers = #tpu.dot_dimension_numbers<[1], [0], [0], [1], [0, 0, 1, 1], [], []>} : vector<2x36xbf16>, vector<36x160xbf16>, vector<2x160xf32> -> vector<2x160xf32>
      %c0_99 = arith.constant 0 : index
      %c0_100 = arith.constant 0 : index
      %128 = vector.load %arg5[%c0_99, %c0_100] : memref<1x160xf32, #tpu.memory_space<vmem>>, vector<1x160xf32>
      %129 = vector.broadcast %128 : vector<1x160xf32> to vector<2x160xf32>
      %130 = arith.addf %127, %129 : vector<2x160xf32>
      %cst_101 = arith.constant 0.000000e+00 : f32
      %131 = vector.broadcast %cst_101 : f32 to vector<2x160xf32>
      %132 = arith.maximumf %130, %131 : vector<2x160xf32>
      %133 = arith.truncf %132 : vector<2x160xf32> to vector<2x160xbf16>
      %c2_102 = arith.constant 2 : index
      %c0_103 = arith.constant 0 : index
      %c400_104 = arith.constant 400 : index
      %134 = vector.load %arg23[%c2_102, %c0_103, %c400_104] : memref<10x2x576xbf16, #tpu.memory_space<vmem>>, vector<1x2x160xbf16>
      %135 = vector.shape_cast %134 : vector<1x2x160xbf16> to vector<2x160xbf16>
      %136 = vector.shape_cast %133 : vector<2x160xbf16> to vector<1x2x160xbf16>
      tpu.vector_store %arg23[%c2_102, %c0_103, %c400_104], %136 {strides = array<i32>} : memref<10x2x576xbf16, #tpu.memory_space<vmem>>, vector<1x2x160xbf16>,
      %c3_105 = arith.constant 3 : index
      %c0_106 = arith.constant 0 : index
      %c208_107 = arith.constant 208 : index
      %137 = vector.load %arg23[%c3_105, %c0_106, %c208_107] : memref<10x2x576xbf16, #tpu.memory_space<vmem>>, vector<1x2x160xbf16>
      %138 = vector.shape_cast %137 : vector<1x2x160xbf16> to vector<2x160xbf16>
      %139 = vector.shape_cast %133 : vector<2x160xbf16> to vector<1x2x160xbf16>
      tpu.vector_store %arg23[%c3_105, %c0_106, %c208_107], %139 {strides = array<i32>} : memref<10x2x576xbf16, #tpu.memory_space<vmem>>, vector<1x2x160xbf16>,
      %c4 = arith.constant 4 : index
      %c0_108 = arith.constant 0 : index
      %c16_109 = arith.constant 16 : index
      %140 = vector.load %arg23[%c4, %c0_108, %c16_109] : memref<10x2x576xbf16, #tpu.memory_space<vmem>>, vector<1x2x160xbf16>
      %141 = vector.shape_cast %140 : vector<1x2x160xbf16> to vector<2x160xbf16>
      %142 = vector.shape_cast %133 : vector<2x160xbf16> to vector<1x2x160xbf16>
      tpu.vector_store %arg23[%c4, %c0_108, %c16_109], %142 {strides = array<i32>} : memref<10x2x576xbf16, #tpu.memory_space<vmem>>, vector<1x2x160xbf16>,
      %c0_110 = arith.constant 0 : index
      %c48 = arith.constant 48 : index
      %143 = vector.load %arg22[%c0_110, %c48] : memref<2x144xbf16, #tpu.memory_space<vmem>>, vector<2x36xbf16>
      %c0_111 = arith.constant 0 : index
      %c0_112 = arith.constant 0 : index
      %144 = vector.load %arg4[%c0_111, %c0_112] : memref<36x160xbf16, #tpu.memory_space<vmem>>, vector<36x160xbf16>
      %cst_113 = arith.constant dense<0.000000e+00> : vector<2x160xf32>
      %145 = tpu.matmul %143, %144, %cst_113 {dimension_numbers = #tpu.dot_dimension_numbers<[1], [0], [0], [1], [0, 0, 1, 1], [], []>} : vector<2x36xbf16>, vector<36x160xbf16>, vector<2x160xf32> -> vector<2x160xf32>
      %c0_114 = arith.constant 0 : index
      %c0_115 = arith.constant 0 : index
      %146 = vector.load %arg5[%c0_114, %c0_115] : memref<1x160xf32, #tpu.memory_space<vmem>>, vector<1x160xf32>
      %147 = vector.broadcast %146 : vector<1x160xf32> to vector<2x160xf32>
      %148 = arith.addf %145, %147 : vector<2x160xf32>
      %cst_116 = arith.constant 0.000000e+00 : f32
      %149 = vector.broadcast %cst_116 : f32 to vector<2x160xf32>
      %150 = arith.maximumf %148, %149 : vector<2x160xf32>
      %151 = arith.truncf %150 : vector<2x160xf32> to vector<2x160xbf16>
      %c3_117 = arith.constant 3 : index
      %c0_118 = arith.constant 0 : index
      %c400_119 = arith.constant 400 : index
      %152 = vector.load %arg23[%c3_117, %c0_118, %c400_119] : memref<10x2x576xbf16, #tpu.memory_space<vmem>>, vector<1x2x160xbf16>
      %153 = vector.shape_cast %152 : vector<1x2x160xbf16> to vector<2x160xbf16>
      %154 = vector.shape_cast %151 : vector<2x160xbf16> to vector<1x2x160xbf16>
      tpu.vector_store %arg23[%c3_117, %c0_118, %c400_119], %154 {strides = array<i32>} : memref<10x2x576xbf16, #tpu.memory_space<vmem>>, vector<1x2x160xbf16>,
      %c4_120 = arith.constant 4 : index
      %c0_121 = arith.constant 0 : index
      %c208_122 = arith.constant 208 : index
      %155 = vector.load %arg23[%c4_120, %c0_121, %c208_122] : memref<10x2x576xbf16, #tpu.memory_space<vmem>>, vector<1x2x160xbf16>
      %156 = vector.shape_cast %155 : vector<1x2x160xbf16> to vector<2x160xbf16>
      %157 = vector.shape_cast %151 : vector<2x160xbf16> to vector<1x2x160xbf16>
      tpu.vector_store %arg23[%c4_120, %c0_121, %c208_122], %157 {strides = array<i32>} : memref<10x2x576xbf16, #tpu.memory_space<vmem>>, vector<1x2x160xbf16>,
      %c5 = arith.constant 5 : index
      %c0_123 = arith.constant 0 : index
      %c16_124 = arith.constant 16 : index
      %158 = vector.load %arg23[%c5, %c0_123, %c16_124] : memref<10x2x576xbf16, #tpu.memory_space<vmem>>, vector<1x2x160xbf16>
      %159 = vector.shape_cast %158 : vector<1x2x160xbf16> to vector<2x160xbf16>
      %160 = vector.shape_cast %151 : vector<2x160xbf16> to vector<1x2x160xbf16>
      tpu.vector_store %arg23[%c5, %c0_123, %c16_124], %160 {strides = array<i32>} : memref<10x2x576xbf16, #tpu.memory_space<vmem>>, vector<1x2x160xbf16>,
      %c0_125 = arith.constant 0 : index
      %c60_126 = arith.constant 60 : index
      %161 = vector.load %arg22[%c0_125, %c60_126] : memref<2x144xbf16, #tpu.memory_space<vmem>>, vector<2x36xbf16>
      %c0_127 = arith.constant 0 : index
      %c0_128 = arith.constant 0 : index
      %162 = vector.load %arg4[%c0_127, %c0_128] : memref<36x160xbf16, #tpu.memory_space<vmem>>, vector<36x160xbf16>
      %cst_129 = arith.constant dense<0.000000e+00> : vector<2x160xf32>
      %163 = tpu.matmul %161, %162, %cst_129 {dimension_numbers = #tpu.dot_dimension_numbers<[1], [0], [0], [1], [0, 0, 1, 1], [], []>} : vector<2x36xbf16>, vector<36x160xbf16>, vector<2x160xf32> -> vector<2x160xf32>
      %c0_130 = arith.constant 0 : index
      %c0_131 = arith.constant 0 : index
      %164 = vector.load %arg5[%c0_130, %c0_131] : memref<1x160xf32, #tpu.memory_space<vmem>>, vector<1x160xf32>
      %165 = vector.broadcast %164 : vector<1x160xf32> to vector<2x160xf32>
      %166 = arith.addf %163, %165 : vector<2x160xf32>
      %cst_132 = arith.constant 0.000000e+00 : f32
      %167 = vector.broadcast %cst_132 : f32 to vector<2x160xf32>
      %168 = arith.maximumf %166, %167 : vector<2x160xf32>
      %169 = arith.truncf %168 : vector<2x160xf32> to vector<2x160xbf16>
      %c4_133 = arith.constant 4 : index
      %c0_134 = arith.constant 0 : index
      %c400_135 = arith.constant 400 : index
      %170 = vector.load %arg23[%c4_133, %c0_134, %c400_135] : memref<10x2x576xbf16, #tpu.memory_space<vmem>>, vector<1x2x160xbf16>
      %171 = vector.shape_cast %170 : vector<1x2x160xbf16> to vector<2x160xbf16>
      %172 = vector.shape_cast %169 : vector<2x160xbf16> to vector<1x2x160xbf16>
      tpu.vector_store %arg23[%c4_133, %c0_134, %c400_135], %172 {strides = array<i32>} : memref<10x2x576xbf16, #tpu.memory_space<vmem>>, vector<1x2x160xbf16>,
      %c5_136 = arith.constant 5 : index
      %c0_137 = arith.constant 0 : index
      %c208_138 = arith.constant 208 : index
      %173 = vector.load %arg23[%c5_136, %c0_137, %c208_138] : memref<10x2x576xbf16, #tpu.memory_space<vmem>>, vector<1x2x160xbf16>
      %174 = vector.shape_cast %173 : vector<1x2x160xbf16> to vector<2x160xbf16>
      %175 = vector.shape_cast %169 : vector<2x160xbf16> to vector<1x2x160xbf16>
      tpu.vector_store %arg23[%c5_136, %c0_137, %c208_138], %175 {strides = array<i32>} : memref<10x2x576xbf16, #tpu.memory_space<vmem>>, vector<1x2x160xbf16>,
      %c6 = arith.constant 6 : index
      %c0_139 = arith.constant 0 : index
      %c16_140 = arith.constant 16 : index
      %176 = vector.load %arg23[%c6, %c0_139, %c16_140] : memref<10x2x576xbf16, #tpu.memory_space<vmem>>, vector<1x2x160xbf16>
      %177 = vector.shape_cast %176 : vector<1x2x160xbf16> to vector<2x160xbf16>
      %178 = vector.shape_cast %169 : vector<2x160xbf16> to vector<1x2x160xbf16>
      tpu.vector_store %arg23[%c6, %c0_139, %c16_140], %178 {strides = array<i32>} : memref<10x2x576xbf16, #tpu.memory_space<vmem>>, vector<1x2x160xbf16>,
      %c0_141 = arith.constant 0 : index
      %c72 = arith.constant 72 : index
      %179 = vector.load %arg22[%c0_141, %c72] : memref<2x144xbf16, #tpu.memory_space<vmem>>, vector<2x36xbf16>
      %c0_142 = arith.constant 0 : index
      %c0_143 = arith.constant 0 : index
      %180 = vector.load %arg4[%c0_142, %c0_143] : memref<36x160xbf16, #tpu.memory_space<vmem>>, vector<36x160xbf16>
      %cst_144 = arith.constant dense<0.000000e+00> : vector<2x160xf32>
      %181 = tpu.matmul %179, %180, %cst_144 {dimension_numbers = #tpu.dot_dimension_numbers<[1], [0], [0], [1], [0, 0, 1, 1], [], []>} : vector<2x36xbf16>, vector<36x160xbf16>, vector<2x160xf32> -> vector<2x160xf32>
      %c0_145 = arith.constant 0 : index
      %c0_146 = arith.constant 0 : index
      %182 = vector.load %arg5[%c0_145, %c0_146] : memref<1x160xf32, #tpu.memory_space<vmem>>, vector<1x160xf32>
      %183 = vector.broadcast %182 : vector<1x160xf32> to vector<2x160xf32>
      %184 = arith.addf %181, %183 : vector<2x160xf32>
      %cst_147 = arith.constant 0.000000e+00 : f32
      %185 = vector.broadcast %cst_147 : f32 to vector<2x160xf32>
      %186 = arith.maximumf %184, %185 : vector<2x160xf32>
      %187 = arith.truncf %186 : vector<2x160xf32> to vector<2x160xbf16>
      %c5_148 = arith.constant 5 : index
      %c0_149 = arith.constant 0 : index
      %c400_150 = arith.constant 400 : index
      %188 = vector.load %arg23[%c5_148, %c0_149, %c400_150] : memref<10x2x576xbf16, #tpu.memory_space<vmem>>, vector<1x2x160xbf16>
      %189 = vector.shape_cast %188 : vector<1x2x160xbf16> to vector<2x160xbf16>
      %190 = vector.shape_cast %187 : vector<2x160xbf16> to vector<1x2x160xbf16>
      tpu.vector_store %arg23[%c5_148, %c0_149, %c400_150], %190 {strides = array<i32>} : memref<10x2x576xbf16, #tpu.memory_space<vmem>>, vector<1x2x160xbf16>,
      %c6_151 = arith.constant 6 : index
      %c0_152 = arith.constant 0 : index
      %c208_153 = arith.constant 208 : index
      %191 = vector.load %arg23[%c6_151, %c0_152, %c208_153] : memref<10x2x576xbf16, #tpu.memory_space<vmem>>, vector<1x2x160xbf16>
      %192 = vector.shape_cast %191 : vector<1x2x160xbf16> to vector<2x160xbf16>
      %193 = vector.shape_cast %187 : vector<2x160xbf16> to vector<1x2x160xbf16>
      tpu.vector_store %arg23[%c6_151, %c0_152, %c208_153], %193 {strides = array<i32>} : memref<10x2x576xbf16, #tpu.memory_space<vmem>>, vector<1x2x160xbf16>,
      %c7 = arith.constant 7 : index
      %c0_154 = arith.constant 0 : index
      %c16_155 = arith.constant 16 : index
      %194 = vector.load %arg23[%c7, %c0_154, %c16_155] : memref<10x2x576xbf16, #tpu.memory_space<vmem>>, vector<1x2x160xbf16>
      %195 = vector.shape_cast %194 : vector<1x2x160xbf16> to vector<2x160xbf16>
      %196 = vector.shape_cast %187 : vector<2x160xbf16> to vector<1x2x160xbf16>
      tpu.vector_store %arg23[%c7, %c0_154, %c16_155], %196 {strides = array<i32>} : memref<10x2x576xbf16, #tpu.memory_space<vmem>>, vector<1x2x160xbf16>,
      %c0_156 = arith.constant 0 : index
      %c84 = arith.constant 84 : index
      %197 = vector.load %arg22[%c0_156, %c84] : memref<2x144xbf16, #tpu.memory_space<vmem>>, vector<2x36xbf16>
      %c0_157 = arith.constant 0 : index
      %c0_158 = arith.constant 0 : index
      %198 = vector.load %arg4[%c0_157, %c0_158] : memref<36x160xbf16, #tpu.memory_space<vmem>>, vector<36x160xbf16>
      %cst_159 = arith.constant dense<0.000000e+00> : vector<2x160xf32>
      %199 = tpu.matmul %197, %198, %cst_159 {dimension_numbers = #tpu.dot_dimension_numbers<[1], [0], [0], [1], [0, 0, 1, 1], [], []>} : vector<2x36xbf16>, vector<36x160xbf16>, vector<2x160xf32> -> vector<2x160xf32>
      %c0_160 = arith.constant 0 : index
      %c0_161 = arith.constant 0 : index
      %200 = vector.load %arg5[%c0_160, %c0_161] : memref<1x160xf32, #tpu.memory_space<vmem>>, vector<1x160xf32>
      %201 = vector.broadcast %200 : vector<1x160xf32> to vector<2x160xf32>
      %202 = arith.addf %199, %201 : vector<2x160xf32>
      %cst_162 = arith.constant 0.000000e+00 : f32
      %203 = vector.broadcast %cst_162 : f32 to vector<2x160xf32>
      %204 = arith.maximumf %202, %203 : vector<2x160xf32>
      %205 = arith.truncf %204 : vector<2x160xf32> to vector<2x160xbf16>
      %c6_163 = arith.constant 6 : index
      %c0_164 = arith.constant 0 : index
      %c400_165 = arith.constant 400 : index
      %206 = vector.load %arg23[%c6_163, %c0_164, %c400_165] : memref<10x2x576xbf16, #tpu.memory_space<vmem>>, vector<1x2x160xbf16>
      %207 = vector.shape_cast %206 : vector<1x2x160xbf16> to vector<2x160xbf16>
      %208 = vector.shape_cast %205 : vector<2x160xbf16> to vector<1x2x160xbf16>
      tpu.vector_store %arg23[%c6_163, %c0_164, %c400_165], %208 {strides = array<i32>} : memref<10x2x576xbf16, #tpu.memory_space<vmem>>, vector<1x2x160xbf16>,
      %c7_166 = arith.constant 7 : index
      %c0_167 = arith.constant 0 : index
      %c208_168 = arith.constant 208 : index
      %209 = vector.load %arg23[%c7_166, %c0_167, %c208_168] : memref<10x2x576xbf16, #tpu.memory_space<vmem>>, vector<1x2x160xbf16>
      %210 = vector.shape_cast %209 : vector<1x2x160xbf16> to vector<2x160xbf16>
      %211 = vector.shape_cast %205 : vector<2x160xbf16> to vector<1x2x160xbf16>
      tpu.vector_store %arg23[%c7_166, %c0_167, %c208_168], %211 {strides = array<i32>} : memref<10x2x576xbf16, #tpu.memory_space<vmem>>, vector<1x2x160xbf16>,
      %c8 = arith.constant 8 : index
      %c0_169 = arith.constant 0 : index
      %c16_170 = arith.constant 16 : index
      %212 = vector.load %arg23[%c8, %c0_169, %c16_170] : memref<10x2x576xbf16, #tpu.memory_space<vmem>>, vector<1x2x160xbf16>
      %213 = vector.shape_cast %212 : vector<1x2x160xbf16> to vector<2x160xbf16>
      %214 = vector.shape_cast %205 : vector<2x160xbf16> to vector<1x2x160xbf16>
      tpu.vector_store %arg23[%c8, %c0_169, %c16_170], %214 {strides = array<i32>} : memref<10x2x576xbf16, #tpu.memory_space<vmem>>, vector<1x2x160xbf16>,
      %c0_171 = arith.constant 0 : index
      %c96 = arith.constant 96 : index
      %215 = vector.load %arg22[%c0_171, %c96] : memref<2x144xbf16, #tpu.memory_space<vmem>>, vector<2x36xbf16>
      %c0_172 = arith.constant 0 : index
      %c0_173 = arith.constant 0 : index
      %216 = vector.load %arg4[%c0_172, %c0_173] : memref<36x160xbf16, #tpu.memory_space<vmem>>, vector<36x160xbf16>
      %cst_174 = arith.constant dense<0.000000e+00> : vector<2x160xf32>
      %217 = tpu.matmul %215, %216, %cst_174 {dimension_numbers = #tpu.dot_dimension_numbers<[1], [0], [0], [1], [0, 0, 1, 1], [], []>} : vector<2x36xbf16>, vector<36x160xbf16>, vector<2x160xf32> -> vector<2x160xf32>
      %c0_175 = arith.constant 0 : index
      %c0_176 = arith.constant 0 : index
      %218 = vector.load %arg5[%c0_175, %c0_176] : memref<1x160xf32, #tpu.memory_space<vmem>>, vector<1x160xf32>
      %219 = vector.broadcast %218 : vector<1x160xf32> to vector<2x160xf32>
      %220 = arith.addf %217, %219 : vector<2x160xf32>
      %cst_177 = arith.constant 0.000000e+00 : f32
      %221 = vector.broadcast %cst_177 : f32 to vector<2x160xf32>
      %222 = arith.maximumf %220, %221 : vector<2x160xf32>
      %223 = arith.truncf %222 : vector<2x160xf32> to vector<2x160xbf16>
      %c7_178 = arith.constant 7 : index
      %c0_179 = arith.constant 0 : index
      %c400_180 = arith.constant 400 : index
      %224 = vector.load %arg23[%c7_178, %c0_179, %c400_180] : memref<10x2x576xbf16, #tpu.memory_space<vmem>>, vector<1x2x160xbf16>
      %225 = vector.shape_cast %224 : vector<1x2x160xbf16> to vector<2x160xbf16>
      %226 = vector.shape_cast %223 : vector<2x160xbf16> to vector<1x2x160xbf16>
      tpu.vector_store %arg23[%c7_178, %c0_179, %c400_180], %226 {strides = array<i32>} : memref<10x2x576xbf16, #tpu.memory_space<vmem>>, vector<1x2x160xbf16>,
      %c8_181 = arith.constant 8 : index
      %c0_182 = arith.constant 0 : index
      %c208_183 = arith.constant 208 : index
      %227 = vector.load %arg23[%c8_181, %c0_182, %c208_183] : memref<10x2x576xbf16, #tpu.memory_space<vmem>>, vector<1x2x160xbf16>
      %228 = vector.shape_cast %227 : vector<1x2x160xbf16> to vector<2x160xbf16>
      %229 = vector.shape_cast %223 : vector<2x160xbf16> to vector<1x2x160xbf16>
      tpu.vector_store %arg23[%c8_181, %c0_182, %c208_183], %229 {strides = array<i32>} : memref<10x2x576xbf16, #tpu.memory_space<vmem>>, vector<1x2x160xbf16>,
      %c9 = arith.constant 9 : index
      %c0_184 = arith.constant 0 : index
      %c16_185 = arith.constant 16 : index
      %230 = vector.load %arg23[%c9, %c0_184, %c16_185] : memref<10x2x576xbf16, #tpu.memory_space<vmem>>, vector<1x2x160xbf16>
      %231 = vector.shape_cast %230 : vector<1x2x160xbf16> to vector<2x160xbf16>
      %232 = vector.shape_cast %223 : vector<2x160xbf16> to vector<1x2x160xbf16>
      tpu.vector_store %arg23[%c9, %c0_184, %c16_185], %232 {strides = array<i32>} : memref<10x2x576xbf16, #tpu.memory_space<vmem>>, vector<1x2x160xbf16>,
      %c0_186 = arith.constant 0 : index
      %c108 = arith.constant 108 : index
      %233 = vector.load %arg22[%c0_186, %c108] : memref<2x144xbf16, #tpu.memory_space<vmem>>, vector<2x36xbf16>
      %c0_187 = arith.constant 0 : index
      %c0_188 = arith.constant 0 : index
      %234 = vector.load %arg4[%c0_187, %c0_188] : memref<36x160xbf16, #tpu.memory_space<vmem>>, vector<36x160xbf16>
      %cst_189 = arith.constant dense<0.000000e+00> : vector<2x160xf32>
      %235 = tpu.matmul %233, %234, %cst_189 {dimension_numbers = #tpu.dot_dimension_numbers<[1], [0], [0], [1], [0, 0, 1, 1], [], []>} : vector<2x36xbf16>, vector<36x160xbf16>, vector<2x160xf32> -> vector<2x160xf32>
      %c0_190 = arith.constant 0 : index
      %c0_191 = arith.constant 0 : index
      %236 = vector.load %arg5[%c0_190, %c0_191] : memref<1x160xf32, #tpu.memory_space<vmem>>, vector<1x160xf32>
      %237 = vector.broadcast %236 : vector<1x160xf32> to vector<2x160xf32>
      %238 = arith.addf %235, %237 : vector<2x160xf32>
      %cst_192 = arith.constant 0.000000e+00 : f32
      %239 = vector.broadcast %cst_192 : f32 to vector<2x160xf32>
      %240 = arith.maximumf %238, %239 : vector<2x160xf32>
      %241 = arith.truncf %240 : vector<2x160xf32> to vector<2x160xbf16>
      %c8_193 = arith.constant 8 : index
      %c0_194 = arith.constant 0 : index
      %c400_195 = arith.constant 400 : index
      %242 = vector.load %arg23[%c8_193, %c0_194, %c400_195] : memref<10x2x576xbf16, #tpu.memory_space<vmem>>, vector<1x2x160xbf16>
      %243 = vector.shape_cast %242 : vector<1x2x160xbf16> to vector<2x160xbf16>
      %244 = vector.shape_cast %241 : vector<2x160xbf16> to vector<1x2x160xbf16>
      tpu.vector_store %arg23[%c8_193, %c0_194, %c400_195], %244 {strides = array<i32>} : memref<10x2x576xbf16, #tpu.memory_space<vmem>>, vector<1x2x160xbf16>,
      %c9_196 = arith.constant 9 : index
      %c0_197 = arith.constant 0 : index
      %c208_198 = arith.constant 208 : index
      %245 = vector.load %arg23[%c9_196, %c0_197, %c208_198] : memref<10x2x576xbf16, #tpu.memory_space<vmem>>, vector<1x2x160xbf16>
      %246 = vector.shape_cast %245 : vector<1x2x160xbf16> to vector<2x160xbf16>
      %247 = vector.shape_cast %241 : vector<2x160xbf16> to vector<1x2x160xbf16>
      tpu.vector_store %arg23[%c9_196, %c0_197, %c208_198], %247 {strides = array<i32>} : memref<10x2x576xbf16, #tpu.memory_space<vmem>>, vector<1x2x160xbf16>,
      %c0_199 = arith.constant 0 : index
      %c0_200 = arith.constant 0 : index
      %248 = vector.load %arg3[%c0_199, %c0_200] : memref<2x13xf32, #tpu.memory_space<vmem>>, vector<2x13xf32>
      %249 = arith.truncf %248 : vector<2x13xf32> to vector<2x13xbf16>
      %c0_201 = arith.constant 0 : index
      %c0_202 = arith.constant 0 : index
      %250 = vector.load %arg8[%c0_201, %c0_202] : memref<13x512xbf16, #tpu.memory_space<vmem>>, vector<13x512xbf16>
      %cst_203 = arith.constant dense<0.000000e+00> : vector<2x512xf32>
      %251 = tpu.matmul %249, %250, %cst_203 {dimension_numbers = #tpu.dot_dimension_numbers<[1], [0], [0], [1], [0, 0, 1, 1], [], []>} : vector<2x13xbf16>, vector<13x512xbf16>, vector<2x512xf32> -> vector<2x512xf32>
      %c0_204 = arith.constant 0 : index
      %c0_205 = arith.constant 0 : index
      %252 = vector.load %arg9[%c0_204, %c0_205] : memref<1x512xf32, #tpu.memory_space<vmem>>, vector<1x512xf32>
      %253 = vector.broadcast %252 : vector<1x512xf32> to vector<2x512xf32>
      %254 = arith.addf %251, %253 : vector<2x512xf32>
      %cst_206 = arith.constant 0.000000e+00 : f32
      %255 = vector.broadcast %cst_206 : f32 to vector<2x512xf32>
      %256 = arith.maximumf %254, %255 : vector<2x512xf32>
      %257 = arith.truncf %256 : vector<2x512xf32> to vector<2x512xbf16>
      %c0_207 = arith.constant 0 : index
      %c0_208 = arith.constant 0 : index
      %258 = vector.load %arg10[%c0_207, %c0_208] : memref<512x512xbf16, #tpu.memory_space<vmem>>, vector<512x512xbf16>
      %cst_209 = arith.constant dense<0.000000e+00> : vector<2x512xf32>
      %259 = tpu.matmul %257, %258, %cst_209 {dimension_numbers = #tpu.dot_dimension_numbers<[1], [0], [0], [1], [0, 0, 1, 1], [], []>} : vector<2x512xbf16>, vector<512x512xbf16>, vector<2x512xf32> -> vector<2x512xf32>
      %c0_210 = arith.constant 0 : index
      %c0_211 = arith.constant 0 : index
      %260 = vector.load %arg11[%c0_210, %c0_211] : memref<1x512xf32, #tpu.memory_space<vmem>>, vector<1x512xf32>
      %261 = vector.broadcast %260 : vector<1x512xf32> to vector<2x512xf32>
      %262 = arith.addf %259, %261 : vector<2x512xf32>
      %cst_212 = arith.constant 0.000000e+00 : f32
      %263 = vector.broadcast %cst_212 : f32 to vector<2x512xf32>
      %264 = arith.maximumf %262, %263 : vector<2x512xf32>
      %265 = arith.truncf %264 : vector<2x512xf32> to vector<2x512xbf16>
      %c0_213 = arith.constant 0 : index
      %c0_214 = arith.constant 0 : index
      %266 = vector.load %arg12[%c0_213, %c0_214] : memref<512x64xbf16, #tpu.memory_space<vmem>>, vector<512x64xbf16>
      %cst_215 = arith.constant dense<0.000000e+00> : vector<2x64xf32>
      %267 = tpu.matmul %265, %266, %cst_215 {dimension_numbers = #tpu.dot_dimension_numbers<[1], [0], [0], [1], [0, 0, 1, 1], [], []>} : vector<2x512xbf16>, vector<512x64xbf16>, vector<2x64xf32> -> vector<2x64xf32>
      %c0_216 = arith.constant 0 : index
      %c0_217 = arith.constant 0 : index
      %268 = vector.load %arg13[%c0_216, %c0_217] : memref<1x64xf32, #tpu.memory_space<vmem>>, vector<1x64xf32>
      %269 = vector.broadcast %268 : vector<1x64xf32> to vector<2x64xf32>
      %270 = arith.addf %267, %269 : vector<2x64xf32>
      %cst_218 = arith.constant 0.000000e+00 : f32
      %271 = vector.broadcast %cst_218 : f32 to vector<2x64xf32>
      %272 = arith.maximumf %270, %271 : vector<2x64xf32>
      %273 = arith.truncf %272 : vector<2x64xf32> to vector<2x64xbf16>
      %c0_219 = arith.constant 0 : index
      %c0_220 = arith.constant 0 : index
      %c0_221 = arith.constant 0 : index
      %274 = vector.load %arg15[%c0_219, %c0_220, %c0_221] : memref<1x64x512xbf16, #tpu.memory_space<vmem>>, vector<1x64x512xbf16>
      %275 = vector.shape_cast %274 : vector<1x64x512xbf16> to vector<64x512xbf16>
      %cst_222 = arith.constant dense<0.000000e+00> : vector<2x512xf32>
      %276 = tpu.matmul %273, %275, %cst_222 {dimension_numbers = #tpu.dot_dimension_numbers<[1], [0], [0], [1], [0, 0, 1, 1], [], []>} : vector<2x64xbf16>, vector<64x512xbf16>, vector<2x512xf32> -> vector<2x512xf32>
      %c0_223 = arith.constant 0 : index
      %c0_224 = arith.constant 0 : index
      %c0_225 = arith.constant 0 : index
      %277 = vector.load %arg16[%c0_223, %c0_224, %c0_225] : memref<1x1x512xf32, #tpu.memory_space<vmem>>, vector<1x1x512xf32>
      %278 = vector.shape_cast %277 : vector<1x1x512xf32> to vector<1x512xf32>
      %279 = vector.broadcast %278 : vector<1x512xf32> to vector<2x512xf32>
      %280 = arith.addf %276, %279 : vector<2x512xf32>
      %c0_226 = arith.constant 0 : index
      %c0_227 = arith.constant 0 : index
      %281 = vector.load %arg24[%c0_226, %c0_227] : memref<2x512xf32, #tpu.memory_space<vmem>>, vector<2x512xf32>
      tpu.vector_store %arg24[%c0_226, %c0_227], %280 {strides = array<i32>} : memref<2x512xf32, #tpu.memory_space<vmem>>, vector<2x512xf32>,
    } else {
    }
    %c0 = arith.constant 0 : index
    %c0_1 = arith.constant 0 : index
    %3 = vector.load %arg24[%c0, %c0_1] : memref<2x512xf32, #tpu.memory_space<vmem>>, vector<2x512xf32>
    %c2_i32 = arith.constant 2 : i32
    %4 = arith.muli %c2_i32, %arg1 : i32
    %c0_i32_2 = arith.constant 0 : i32
    %5 = arith.addi %4, %c0_i32_2 : i32
    %6 = arith.index_cast %5 : i32 to index
    %c0_3 = arith.constant 0 : index
    %c0_4 = arith.constant 0 : index
    %7 = vector.load %arg23[%6, %c0_3, %c0_4] : memref<10x2x576xbf16, #tpu.memory_space<vmem>>, vector<1x2x576xbf16>
    %8 = vector.shape_cast %7 : vector<1x2x576xbf16> to vector<2x576xbf16>
    %c0_5 = arith.constant 0 : index
    %c0_6 = arith.constant 0 : index
    %9 = vector.load %arg6[%c0_5, %c0_6] : memref<576x320xbf16, #tpu.memory_space<vmem>>, vector<576x320xbf16>
    %cst = arith.constant dense<0.000000e+00> : vector<2x320xf32>
    %10 = tpu.matmul %8, %9, %cst {dimension_numbers = #tpu.dot_dimension_numbers<[1], [0], [0], [1], [0, 0, 1, 1], [], []>} : vector<2x576xbf16>, vector<576x320xbf16>, vector<2x320xf32> -> vector<2x320xf32>
    %c0_7 = arith.constant 0 : index
    %c0_8 = arith.constant 0 : index
    %11 = vector.load %arg7[%c0_7, %c0_8] : memref<1x320xf32, #tpu.memory_space<vmem>>, vector<1x320xf32>
    %12 = vector.broadcast %11 : vector<1x320xf32> to vector<2x320xf32>
    %13 = arith.addf %10, %12 : vector<2x320xf32>
    %cst_9 = arith.constant 0.000000e+00 : f32
    %14 = vector.broadcast %cst_9 : f32 to vector<2x320xf32>
    %15 = arith.maximumf %13, %14 : vector<2x320xf32>
    %16 = arith.truncf %15 : vector<2x320xf32> to vector<2x320xbf16>
    %c0_10 = arith.constant 0 : index
    %c0_11 = arith.constant 0 : index
    %17 = vector.load %arg14[%c0_10, %c0_11] : memref<640x512xbf16, #tpu.memory_space<vmem>>, vector<320x512xbf16>
    %cst_12 = arith.constant dense<0.000000e+00> : vector<2x512xf32>
    %18 = tpu.matmul %16, %17, %cst_12 {dimension_numbers = #tpu.dot_dimension_numbers<[1], [0], [0], [1], [0, 0, 1, 1], [], []>} : vector<2x320xbf16>, vector<320x512xbf16>, vector<2x512xf32> -> vector<2x512xf32>
    %19 = arith.addf %3, %18 : vector<2x512xf32>
    %c2_i32_13 = arith.constant 2 : i32
    %20 = arith.muli %c2_i32_13, %arg1 : i32
    %c1_i32 = arith.constant 1 : i32
    %21 = arith.addi %20, %c1_i32 : i32
    %22 = arith.index_cast %21 : i32 to index
    %c0_14 = arith.constant 0 : index
    %c0_15 = arith.constant 0 : index
    %23 = vector.load %arg23[%22, %c0_14, %c0_15] : memref<10x2x576xbf16, #tpu.memory_space<vmem>>, vector<1x2x576xbf16>
    %24 = vector.shape_cast %23 : vector<1x2x576xbf16> to vector<2x576xbf16>
    %c0_16 = arith.constant 0 : index
    %c0_17 = arith.constant 0 : index
    %25 = vector.load %arg6[%c0_16, %c0_17] : memref<576x320xbf16, #tpu.memory_space<vmem>>, vector<576x320xbf16>
    %cst_18 = arith.constant dense<0.000000e+00> : vector<2x320xf32>
    %26 = tpu.matmul %24, %25, %cst_18 {dimension_numbers = #tpu.dot_dimension_numbers<[1], [0], [0], [1], [0, 0, 1, 1], [], []>} : vector<2x576xbf16>, vector<576x320xbf16>, vector<2x320xf32> -> vector<2x320xf32>
    %c0_19 = arith.constant 0 : index
    %c0_20 = arith.constant 0 : index
    %27 = vector.load %arg7[%c0_19, %c0_20] : memref<1x320xf32, #tpu.memory_space<vmem>>, vector<1x320xf32>
    %28 = vector.broadcast %27 : vector<1x320xf32> to vector<2x320xf32>
    %29 = arith.addf %26, %28 : vector<2x320xf32>
    %cst_21 = arith.constant 0.000000e+00 : f32
    %30 = vector.broadcast %cst_21 : f32 to vector<2x320xf32>
    %31 = arith.maximumf %29, %30 : vector<2x320xf32>
    %32 = arith.truncf %31 : vector<2x320xf32> to vector<2x320xbf16>
    %c320 = arith.constant 320 : index
    %c0_22 = arith.constant 0 : index
    %33 = vector.load %arg14[%c320, %c0_22] : memref<640x512xbf16, #tpu.memory_space<vmem>>, vector<320x512xbf16>
    %cst_23 = arith.constant dense<0.000000e+00> : vector<2x512xf32>
    %34 = tpu.matmul %32, %33, %cst_23 {dimension_numbers = #tpu.dot_dimension_numbers<[1], [0], [0], [1], [0, 0, 1, 1], [], []>} : vector<2x320xbf16>, vector<320x512xbf16>, vector<2x512xf32> -> vector<2x512xf32>
    %35 = arith.addf %19, %34 : vector<2x512xf32>
    %c0_24 = arith.constant 0 : index
    %c0_25 = arith.constant 0 : index
    %36 = vector.load %arg24[%c0_24, %c0_25] : memref<2x512xf32, #tpu.memory_space<vmem>>, vector<2x512xf32>
    tpu.vector_store %arg24[%c0_24, %c0_25], %35 {strides = array<i32>} : memref<2x512xf32, #tpu.memory_space<vmem>>, vector<2x512xf32>,
    %c4_i32 = arith.constant 4 : i32
    %37 = arith.cmpi eq, %arg1, %c4_i32 : i32
    %38 = arith.extui %37 : i1 to i32
    %c0_i32_26 = arith.constant 0 : i32
    %39 = arith.cmpi ne, %38, %c0_i32_26 : i32
    scf.if %39 {
      %c0_27 = arith.constant 0 : index
      %c0_28 = arith.constant 0 : index
      %40 = vector.load %arg24[%c0_27, %c0_28] : memref<2x512xf32, #tpu.memory_space<vmem>>, vector<2x512xf32>
      %cst_29 = arith.constant 0.000000e+00 : f32
      %41 = vector.broadcast %cst_29 : f32 to vector<2x512xf32>
      %42 = arith.maximumf %40, %41 : vector<2x512xf32>
      %43 = arith.truncf %42 : vector<2x512xf32> to vector<2x512xbf16>
      %c0_30 = arith.constant 0 : index
      %c0_31 = arith.constant 0 : index
      %c0_32 = arith.constant 0 : index
      %44 = vector.load %arg17[%c0_30, %c0_31, %c0_32] : memref<1x512x512xbf16, #tpu.memory_space<vmem>>, vector<1x512x512xbf16>
      %45 = vector.shape_cast %44 : vector<1x512x512xbf16> to vector<512x512xbf16>
      %cst_33 = arith.constant dense<0.000000e+00> : vector<2x512xf32>
      %46 = tpu.matmul %43, %45, %cst_33 {dimension_numbers = #tpu.dot_dimension_numbers<[1], [0], [0], [1], [0, 0, 1, 1], [], []>} : vector<2x512xbf16>, vector<512x512xbf16>, vector<2x512xf32> -> vector<2x512xf32>
      %c0_34 = arith.constant 0 : index
      %c0_35 = arith.constant 0 : index
      %c0_36 = arith.constant 0 : index
      %47 = vector.load %arg18[%c0_34, %c0_35, %c0_36] : memref<1x1x512xf32, #tpu.memory_space<vmem>>, vector<1x1x512xf32>
      %48 = vector.shape_cast %47 : vector<1x1x512xf32> to vector<1x512xf32>
      %49 = vector.broadcast %48 : vector<1x512xf32> to vector<2x512xf32>
      %50 = arith.addf %46, %49 : vector<2x512xf32>
      %cst_37 = arith.constant 0.000000e+00 : f32
      %51 = vector.broadcast %cst_37 : f32 to vector<2x512xf32>
      %52 = arith.maximumf %50, %51 : vector<2x512xf32>
      %53 = arith.truncf %52 : vector<2x512xf32> to vector<2x512xbf16>
      %c0_38 = arith.constant 0 : index
      %c0_39 = arith.constant 0 : index
      %c0_40 = arith.constant 0 : index
      %54 = vector.load %arg19[%c0_38, %c0_39, %c0_40] : memref<1x512x128xbf16, #tpu.memory_space<vmem>>, vector<1x512x128xbf16>
      %55 = vector.shape_cast %54 : vector<1x512x128xbf16> to vector<512x128xbf16>
      %cst_41 = arith.constant dense<0.000000e+00> : vector<2x128xf32>
      %56 = tpu.matmul %53, %55, %cst_41 {dimension_numbers = #tpu.dot_dimension_numbers<[1], [0], [0], [1], [0, 0, 1, 1], [], []>} : vector<2x512xbf16>, vector<512x128xbf16>, vector<2x128xf32> -> vector<2x128xf32>
      %c0_42 = arith.constant 0 : index
      %c0_43 = arith.constant 0 : index
      %c0_44 = arith.constant 0 : index
      %57 = vector.load %arg20[%c0_42, %c0_43, %c0_44] : memref<1x1x128xf32, #tpu.memory_space<vmem>>, vector<1x1x128xf32>
      %58 = vector.shape_cast %57 : vector<1x1x128xf32> to vector<1x128xf32>
      %59 = vector.broadcast %58 : vector<1x128xf32> to vector<2x128xf32>
      %60 = arith.addf %56, %59 : vector<2x128xf32>
      %c0_45 = arith.constant 0 : index
      %c0_46 = arith.constant 0 : index
      %c0_47 = arith.constant 0 : index
      %61 = vector.load %arg21[%c0_45, %c0_46, %c0_47] : memref<1x2x128xf32, #tpu.memory_space<vmem>>, vector<1x2x128xf32>
      %62 = vector.shape_cast %61 : vector<1x2x128xf32> to vector<2x128xf32>
      %63 = vector.shape_cast %60 : vector<2x128xf32> to vector<1x2x128xf32>
      tpu.vector_store %arg21[%c0_45, %c0_46, %c0_47], %63 {strides = array<i32>} : memref<1x2x128xf32, #tpu.memory_space<vmem>>, vector<1x2x128xf32>,
    } else {
    }
    return
  }
  func.func @transform_0(%arg0: i32, %arg1: i32) -> (i32, i32) {
    %c0_i32 = arith.constant 0 : i32
    %c0_i32_0 = arith.constant 0 : i32
    %c0_i32_1 = arith.constant 0 : i32
    return %c0_i32, %c0_i32_0 : i32, i32
  }
  func.func @transform_1(%arg0: i32, %arg1: i32) -> (i32, i32) {
    %c0_i32 = arith.constant 0 : i32
    %c0_i32_0 = arith.constant 0 : i32
    %c0_i32_1 = arith.constant 0 : i32
    return %c0_i32, %c0_i32_0 : i32, i32
  }
  func.func @transform_2(%arg0: i32, %arg1: i32) -> (i32, i32) {
    %c0_i32 = arith.constant 0 : i32
    %c0_i32_0 = arith.constant 0 : i32
    %c0_i32_1 = arith.constant 0 : i32
    return %c0_i32, %c0_i32_0 : i32, i32
  }
  func.func @transform_3(%arg0: i32, %arg1: i32) -> (i32, i32) {
    %c0_i32 = arith.constant 0 : i32
    %c0_i32_0 = arith.constant 0 : i32
    %c0_i32_1 = arith.constant 0 : i32
    return %c0_i32, %c0_i32_0 : i32, i32
  }
  func.func @transform_4(%arg0: i32, %arg1: i32) -> (i32, i32) {
    %c0_i32 = arith.constant 0 : i32
    %c0_i32_0 = arith.constant 0 : i32
    %c0_i32_1 = arith.constant 0 : i32
    return %c0_i32, %c0_i32_0 : i32, i32
  }
  func.func @transform_5(%arg0: i32, %arg1: i32) -> (i32, i32) {
    %c0_i32 = arith.constant 0 : i32
    %c0_i32_0 = arith.constant 0 : i32
    %c0_i32_1 = arith.constant 0 : i32
    return %c0_i32, %c0_i32_0 : i32, i32
  }
  func.func @transform_6(%arg0: i32, %arg1: i32) -> (i32, i32) {
    %c0_i32 = arith.constant 0 : i32
    %c0_i32_0 = arith.constant 0 : i32
    %c0_i32_1 = arith.constant 0 : i32
    return %c0_i32, %c0_i32_0 : i32, i32
  }
  func.func @transform_7(%arg0: i32, %arg1: i32) -> (i32, i32) {
    %c0_i32 = arith.constant 0 : i32
    %c0_i32_0 = arith.constant 0 : i32
    %c0_i32_1 = arith.constant 0 : i32
    return %c0_i32, %c0_i32_0 : i32, i32
  }
  func.func @transform_8(%arg0: i32, %arg1: i32) -> (i32, i32) {
    %c0_i32 = arith.constant 0 : i32
    %c0_i32_0 = arith.constant 0 : i32
    %c0_i32_1 = arith.constant 0 : i32
    return %c0_i32, %c0_i32_0 : i32, i32
  }
  func.func @transform_9(%arg0: i32, %arg1: i32) -> (i32, i32) {
    %c0_i32 = arith.constant 0 : i32
    %c0_i32_0 = arith.constant 0 : i32
    %c0_i32_1 = arith.constant 0 : i32
    return %c0_i32, %c0_i32_0 : i32, i32
  }
  func.func @transform_10(%arg0: i32, %arg1: i32) -> (i32, i32) {
    %c0_i32 = arith.constant 0 : i32
    %c0_i32_0 = arith.constant 0 : i32
    %c0_i32_1 = arith.constant 0 : i32
    return %c0_i32, %c0_i32_0 : i32, i32
  }
  func.func @transform_11(%arg0: i32, %arg1: i32) -> (i32, i32) {
    %c0_i32 = arith.constant 0 : i32
    %c0_i32_0 = arith.constant 0 : i32
    %c0_i32_1 = arith.constant 0 : i32
    return %c0_i32, %c0_i32_0 : i32, i32
  }
  func.func @transform_12(%arg0: i32, %arg1: i32) -> (i32, i32) {
    %c0_i32 = arith.constant 0 : i32
    return %arg1, %arg0 : i32, i32
  }
  func.func @transform_13(%arg0: i32, %arg1: i32) -> (i32, i32, i32) {
    %c0_i32 = arith.constant 0 : i32
    %c0_i32_0 = arith.constant 0 : i32
    %c0_i32_1 = arith.constant 0 : i32
    return %arg0, %c0_i32, %c0_i32_0 : i32, i32, i32
  }
  func.func @transform_14(%arg0: i32, %arg1: i32) -> (i32, i32, i32) {
    %c0_i32 = arith.constant 0 : i32
    %c0_i32_0 = arith.constant 0 : i32
    %c0_i32_1 = arith.constant 0 : i32
    return %arg0, %c0_i32, %c0_i32_0 : i32, i32, i32
  }
  func.func @transform_15(%arg0: i32, %arg1: i32) -> (i32, i32, i32) {
    %c0_i32 = arith.constant 0 : i32
    %c0_i32_0 = arith.constant 0 : i32
    %c0_i32_1 = arith.constant 0 : i32
    return %arg0, %c0_i32, %c0_i32_0 : i32, i32, i32
  }
  func.func @transform_16(%arg0: i32, %arg1: i32) -> (i32, i32, i32) {
    %c0_i32 = arith.constant 0 : i32
    %c0_i32_0 = arith.constant 0 : i32
    %c0_i32_1 = arith.constant 0 : i32
    return %arg0, %c0_i32, %c0_i32_0 : i32, i32, i32
  }
  func.func @transform_17(%arg0: i32, %arg1: i32) -> (i32, i32, i32) {
    %c0_i32 = arith.constant 0 : i32
    %c0_i32_0 = arith.constant 0 : i32
    %c0_i32_1 = arith.constant 0 : i32
    return %arg0, %c0_i32, %c0_i32_0 : i32, i32, i32
  }
  func.func @transform_18(%arg0: i32, %arg1: i32) -> (i32, i32, i32) {
    %c0_i32 = arith.constant 0 : i32
    %c0_i32_0 = arith.constant 0 : i32
    %c0_i32_1 = arith.constant 0 : i32
    return %arg0, %c0_i32, %c0_i32_0 : i32, i32, i32
  }
  func.func @transform_19(%arg0: i32, %arg1: i32) -> (i32, i32, i32) {
    %c0_i32 = arith.constant 0 : i32
    %c0_i32_0 = arith.constant 0 : i32
    %c0_i32_1 = arith.constant 0 : i32
    return %arg0, %c0_i32, %c0_i32_0 : i32, i32, i32
  }
}

</mosaic_0001>

<bundles_post_ra>
// kernel: policy_net_forward.1
= control target key start
LH: loop header
LB: loop body
LE: loop exit
PB: predicated region body
PF: predicated region fallthrough
CT: control target
= control target key end

     0   :  { %s14046_s0 = inlined_call_operand.vmem [shape: f32[2,100], index: 0, kind: input, shape index: {}]   ;;  %s14047_s1 = inlined_call_operand.hbm [shape: f32[2,13], index: 1, kind: input, shape index: {}]   ;;  %s14048_s2 = inlined_call_operand.hbm [shape: bf16[36,160], index: 2, kind: input, shape index: {}]   ;;  %s14049_s3 = inlined_call_operand.hbm [shape: f32[1,160], index: 3, kind: input, shape index: {}]   ;;  %s14050_s4 = inlined_call_operand.vmem [shape: bf16[576,320], index: 4, kind: input, shape index: {}]   ;;  %s14051_s5 = inlined_call_operand.hbm [shape: f32[1,320], index: 5, kind: input, shape index: {}]   ;;  %s14052_s6 = inlined_call_operand.hbm [shape: bf16[13,512], index: 6, kind: input, shape index: {}]   ;;  %s14053_s7 = inlined_call_operand.hbm [shape: f32[1,512], index: 7, kind: input, shape index: {}]   ;;  %s14054_s8 = inlined_call_operand.hbm [shape: bf16[512,512], index: 8, kind: input, shape index: {}]   ;;  %s14055_s9 = inlined_call_operand.hbm [shape: f32[1,512], index: 9, kind: input, shape index: {}]   ;;  %s14056_s10 = inlined_call_operand.vmem [shape: bf16[512,64], index: 10, kind: input, shape index: {}]   ;;  %s14057_s11 = inlined_call_operand.hbm [shape: f32[1,64], index: 11, kind: input, shape index: {}]   ;;  %s14058_s12 = inlined_call_operand.hbm [shape: bf16[3200,1024], index: 12, kind: input, shape index: {}]   ;;  %s14059_s13 = inlined_call_operand.hbm [shape: bf16[2,64,512], index: 13, kind: input, shape index: {}]   ;;  %s14060_s14 = inlined_call_operand.hbm [shape: f32[2,1,512], index: 14, kind: input, shape index: {}]   ;;  %s14061_s15 = inlined_call_operand.hbm [shape: bf16[2,512,512], index: 15, kind: input, shape index: {}]   ;;  %s14062_s16 = inlined_call_operand.hbm [shape: f32[2,1,512], index: 16, kind: input, shape index: {}]   ;;  %s14063_s17 = inlined_call_operand.hbm [shape: bf16[2,512,128], index: 17, kind: input, shape index: {}]   ;;  %s14064_s18 = inlined_call_operand.hbm [shape: f32[2,1,128], index: 18, kind: input, shape index: {}]   ;;  %s14065_s19 = inlined_call_operand.vmem [shape: f32[2,2,128], index: 19, kind: output, shape index: {}]  }
   0x1   :  { %14122 = sst [smem:[#allocation48_spill]] %s14046_s0 }
   0x2   :  { %14123 = sst [smem:[#allocation49_spill]] %s14047_s1 }
   0x3   :  { %14124 = sst [smem:[#allocation50_spill]] %s14048_s2 }
   0x4   :  { %14125 = sst [smem:[#allocation51_spill]] %s14049_s3 }
   0x5   :  { %14126 = sst [smem:[#allocation52_spill]] %s14050_s4 }
   0x6   :  { %14127 = sst [smem:[#allocation53_spill]] %s14051_s5 }
   0x7   :  { %14128 = sst [smem:[#allocation54_spill]] %s14052_s6 }
   0x8   :  { %14129 = sst [smem:[#allocation55_spill]] %s14053_s7 }
   0x9   :  { %14130 = sst [smem:[#allocation56_spill]] %s14054_s8 }
   0xa   :  { %14131 = sst [smem:[#allocation57_spill]] %s14055_s9 }
   0xb   :  { %14132 = sst [smem:[#allocation58_spill]] %s14056_s10 }
   0xc   :  { %14133 = sst [smem:[#allocation59_spill]] %s14057_s11 }
   0xd   :  { %14134 = sst [smem:[#allocation60_spill]] %s14058_s12 }
   0xe   :  { %14135 = sst [smem:[#allocation61_spill]] %s14059_s13 }
   0xf   :  { %14136 = sst [smem:[#allocation62_spill]] %s14060_s14 }
  0x10   :  { %14137 = sst [smem:[#allocation63_spill]] %s14061_s15 }
  0x11   :  { %14138 = sst [smem:[#allocation64_spill]] %s14062_s16 }
  0x12   :  { %14139 = sst [smem:[#allocation65_spill]] %s14063_s17 }
  0x13   :  { %14140 = sst [smem:[#allocation66_spill]] %s14064_s18 }
  0x14   :  { %14141 = sst [smem:[#allocation67_spill]] %s14065_s19 }
  0x15   :  { %24 = vsyncpa [#allocation6], 0 }
  0x16   :  { %25 = vsyncpa [#allocation8], 0 }
  0x17   :  { %26 = vsyncpa [#allocation11], 0 }
  0x18   :  { %27 = vsyncpa [#allocation14], 0 }
  0x19   :  { %28 = vsyncpa [#allocation17], 0 }
  0x1a   :  { %29 = vsyncpa [#allocation20], 0 }
  0x1b   :  { %31 = vsyncpa [#allocation20 + $0x1], 0 }
  0x1c   :  { %32 = vsyncpa [#allocation23], 0 }
  0x1d   :  { %34 = vsyncpa [#allocation23 + $0x1], 0 }
  0x1e   :  { %35 = vsyncpa [#allocation26], 0 }
  0x1f   :  { %37 = vsyncpa [#allocation26 + $0x1], 0 }
  0x20   :  { %38 = vsyncpa [#allocation29], 0 }
  0x21   :  { %40 = vsyncpa [#allocation29 + $0x1], 0  ;;  %s11727_s0 = smov 0   ;;  %s11729_s30 = smov 0  }
  0x22   :  { %s11731_s20 = smov 0   ;;  %s11733_s21 = smov 0  }
  0x23   :  { %s11735_s1 = smov 0   ;;  %s11737_s22 = smov 0  }
  0x24   :  { %s11739_s2 = smov 0   ;;  %s11741_s23 = smov 0  }
  0x25   :  { %s11743_s24 = smov 0   ;;  %s11745_s25 = smov 0  }
  0x26   :  { %s11747_s3 = smov 0  }
  0x27 LB: > { %14142 = sst [smem:[#allocation40_spill]] %s11553_s22  ;;  %s11575_s26 = smov [#allocation7]   ;;  %s11573_s3 = sphi %s11747_s3, %s46_s3   ;;  %s11569_s25 = sphi %s11745_s25, %s14229_s25   ;;  %s11565_s24 = sphi %s11743_s24, %s14228_s24   ;;  %s11561_s23 = sphi %s11741_s23, %s14227_s23   ;;  %s11557_s2 = sphi %s11739_s2, %s14219_s2   ;;  %s11553_s22 = sphi %s11737_s22, %s14218_s22   ;;  %s11549_s1 = sphi %s11735_s1, %s14226_s1   ;;  %s11545_s21 = sphi %s11733_s21, %s14225_s21   ;;  %s11541_s20 = sphi %s11731_s20, %s14224_s20   ;;  %s11537_s30 = sphi %s11729_s30, %s14223_s30   ;;  %s11533_s0 = sphi %s11727_s0, %s14222_s0  }
  0x28   : > { %14143 = sst [smem:[#allocation41_spill]] %s11557_s2  ;;  %s551_s27 = sshll.u32 %s11575_s26, 4  ;;  %s11791_s27 = int_to_ptr.vmem [resolvable:$true] %s551_s27 }
  0x29   : > { %14144 = sst [smem:[#allocation42_spill]] %s11561_s23  ;;  %s14073_s28 = sadd.s32 4294967295, %s11573_s3  }
  0x2a   : > { %14145 = sst [smem:[#allocation43_spill]] %s11565_s24  ;;  %p8703_p0 = scmp.ge.s32.totalorder %s11573_s3, 1 }
  0x2b   : > { %p11786_p1 = scmp.eq.s32.totalorder %s14073_s28, 0  ;;  %p525_p2 = scmp.lt.s32.totalorder %s11573_s3, 11 }
  0x2c   : > { %s11576_s10 = smov [#allocation10]   ;;  %s11577_s28 = smov [#allocation13]  }
  0x2d   : > { %s14146_s29 = scalar_select %p11786_p1, 1, 0 }
  0x2e   : > { %p11793_p3 = pnand %p8703_p0, %p525_p2  ;;  %s579_s26 = sshll.u32 %s11576_s10, 4  ;;  %s11805_s26 = int_to_ptr.vmem [resolvable:$true] %s579_s26 }
  0x2f   : > { %s603_s19 = sshll.u32 %s11577_s28, 4  ;;  %s14150_s17 = sld [smem:[#allocation50_spill]]  ;;  %s11807_s19 = int_to_ptr.vmem [resolvable:$true] %s603_s19 }
  0x30   : > { %s14147_s4 = scalar_select %p11793_p3, 1, 0 }
  0x31   : > { %p9807_p4 = pneg %p11793_p3 }
  0x32   : > { %14148 = sst [smem:[#allocation44_spill]] %s14147_s4 }
  0x33   : > { %p11801_p5 = pnand %p9807_p4, %p11786_p1 }
  0x35   : > { %s14149_s2 = scalar_select %p11801_p5, 1, 0 }
  0x36   : > { %s10985_s15 = scalar_lea.hbm %s14150_s17, 640  ;;  %p11817_p7 = pneg %p11801_p5 }
  0x37   : > { %p10986_p6 = scmp.ne.s32.totalorder %s14150_s17, %s10985_s15  ;;  %p10992_p10 = scmp.lt.u32.totalorder %s10985_s15, %s14150_s17 }
  0x38   : > { %s14151_s10 = scalar_select %p11817_p7, 1, 0 }
  0x39   : > { %p10988_p8 = pnand %p11817_p7, %p10986_p6 }
  0x3b   : > { %p10989_p9 = pneg %p10988_p8 }
  0x3d   : > { %p10994_p11 = pnand %p10992_p10, %p10989_p9 }
  0x3f   : > { %10997 = shalt.err (!%p10994_p11)
}
  0x40   : > { %s10998_s4 = scalar_lea.vmem %s11791_s27, 640  ;;  %p11006_p2 = scmp.lt.s32.totalorder %s11791_s27, %s11791_s27 }
  0x41   : > { %p10999_p12 = scmp.ne.s32.totalorder %s11791_s27, %s10998_s4  ;;  %p11007_p4 = scmp.lt.s32.totalorder %s10998_s4, %s10998_s4 }
  0x43   : > { %p11001_p13 = pnand %p10999_p12, %p11817_p7  ;;  %p11008_p6 = por %p11007_p4, %p11006_p2 }
  0x45   : > { %p11002_p0 = pneg %p11001_p13 }
  0x47   : > { %p11009_p8 = pnand %p11008_p6, %p11002_p0 }
  0x49   : > { %11012 = shalt.err (!%p11009_p8)
}
  0x4a   : > { %s11578_s13 = smov 128   ;;  %s11579_s11 = smov 8  }
  0x4b   : > { %9813 = dma.hbm_to_vmem [thread:$0]  (!%p11801_p5), %s14150_s17, 640, %s11791_s27, [#allocation8], %s11578_s13, %s11578_s13, %s11579_s11  }
  0x4c   : > { %s14152_s5 = sld [smem:[#allocation53_spill]] }
  0x52   : > { %s11013_s8 = scalar_lea.hbm %s14152_s5, 48 }
  0x53   : > { %p11014_p9 = scmp.ne.s32.totalorder %s14152_s5, %s11013_s8  ;;  %p11020_p12 = scmp.lt.u32.totalorder %s11013_s8, %s14152_s5 }
  0x55   : > { %p11016_p10 = pnand %p11014_p9, %p11817_p7 }
  0x57   : > { %p11017_p11 = pneg %p11016_p10 }
  0x59   : > { %p11022_p13 = pnand %p11020_p12, %p11017_p11 }
  0x5b   : > { %11025 = shalt.err (!%p11022_p13)
}
  0x5c   : > { %s11026_s27 = scalar_lea.vmem %s11805_s26, 48  ;;  %s11033_s6 = scalar_lea.vmem %s11805_s26, 64 }
  0x5d   : > { %p11027_p0 = scmp.ne.s32.totalorder %s11805_s26, %s11026_s27  ;;  %p11034_p6 = scmp.lt.s32.totalorder %s11805_s26, %s11805_s26 }
  0x5e   : > { %p11035_p8 = scmp.lt.s32.totalorder %s11033_s6, %s11026_s27 }
  0x5f   : > { %p11029_p2 = pnand %p11027_p0, %p11817_p7 }
  0x60   : > { %p11036_p9 = por %p11035_p8, %p11034_p6 }
  0x61   : > { %p11030_p4 = pneg %p11029_p2 }
  0x63   : > { %p11037_p10 = pnand %p11036_p9, %p11030_p4 }
  0x65   : > { %11040 = shalt.err (!%p11037_p10)
}
  0x66   : > { %9819 = dma.hbm_to_vmem [thread:$0]  (!%p11801_p5), %s14152_s5, 48, %s11805_s26, [#allocation11]  }
  0x67   : > { %s14153_s7 = sld [smem:[#allocation55_spill]] }
  0x6d   : > { %s11041_s11 = scalar_lea.hbm %s14153_s7, 64 }
  0x6e   : > { %p11042_p11 = scmp.ne.s32.totalorder %s14153_s7, %s11041_s11  ;;  %p11048_p0 = scmp.lt.u32.totalorder %s11041_s11, %s14153_s7 }
  0x70   : > { %p11044_p12 = pnand %p11042_p11, %p11817_p7 }
  0x72   : > { %p11045_p13 = pneg %p11044_p12 }
  0x74   : > { %p11050_p2 = pnand %p11048_p0, %p11045_p13 }
  0x76   : > { %11053 = shalt.err (!%p11050_p2)
}
  0x77   : > { %s11054_s26 = scalar_lea.vmem %s11807_s19, 64  ;;  %p11062_p9 = scmp.lt.s32.totalorder %s11807_s19, %s11807_s19 }
  0x78   : > { %p11055_p4 = scmp.ne.s32.totalorder %s11807_s19, %s11054_s26  ;;  %p11063_p10 = scmp.lt.s32.totalorder %s11054_s26, %s11054_s26 }
  0x7a   : > { %p11057_p6 = pnand %p11055_p4, %p11817_p7  ;;  %p11064_p11 = por %p11063_p10, %p11062_p9 }
  0x7c   : > { %p11058_p8 = pneg %p11057_p6 }
  0x7e   : > { %p11065_p12 = pnand %p11064_p11, %p11058_p8 }
  0x80   : > { %11068 = shalt.err (!%p11065_p12)
}
  0x81   : > { %9825 = dma.hbm_to_vmem [thread:$0]  (!%p11801_p5), %s14153_s7, 64, %s11807_s19, [#allocation14]  }
  0x82   : > { %s11580_s6 = smov [#allocation16]   ;;  %s14154_s9 = sld [smem:[#allocation57_spill]] }
  0x83   : > { %s627_s8 = sshll.u32 %s11580_s6, 4  ;;  %s628_s8 = int_to_ptr.vmem [resolvable:$true] %s627_s8 }
  0x88   : > { %s11069_s13 = scalar_lea.hbm %s14154_s9, 64 }
  0x89   : > { %p11070_p13 = scmp.ne.s32.totalorder %s14154_s9, %s11069_s13  ;;  %p11076_p4 = scmp.lt.u32.totalorder %s11069_s13, %s14154_s9 }
  0x8b   : > { %p11072_p0 = pnand %p11070_p13, %p11817_p7 }
  0x8d   : > { %p11073_p2 = pneg %p11072_p0 }
  0x8f   : > { %p11078_p6 = pnand %p11076_p4, %p11073_p2 }
  0x91   : > { %11081 = shalt.err (!%p11078_p6)
}
  0x92   : > { %s11082_s19 = scalar_lea.vmem %s628_s8, 64  ;;  %p11090_p11 = scmp.lt.s32.totalorder %s628_s8, %s628_s8 }
  0x93   : > { %p11083_p8 = scmp.ne.s32.totalorder %s628_s8, %s11082_s19  ;;  %p11091_p12 = scmp.lt.s32.totalorder %s11082_s19, %s11082_s19 }
  0x95   : > { %p11085_p9 = pnand %p11083_p8, %p11817_p7  ;;  %p11092_p3 = por %p11091_p12, %p11090_p11 }
  0x97   : > { %p11086_p10 = pneg %p11085_p9 }
  0x99   : > { %p11093_p1 = pnand %p11092_p3, %p11086_p10 }
  0x9b   : > { %11096 = shalt.err (!%p11093_p1)
}
  0x9c   : > { %9831 = dma.hbm_to_vmem [thread:$0]  (!%p11801_p5), %s14154_s9, 64, %s628_s8, [#allocation17]  }
  0x9d   : > { %s55_s4 = sadd.s32 1, %s11565_s24  ;;  %s58_s27 = sadd.s32 1, %s11569_s25 }
  0x9e   : > { %p56_p1 = scmp.ge.s32.totalorder %s55_s4, 5  ;;  %s319_s6 = sadd.s32 1, %s11553_s22 }
  0x9f   : > { %p326_p3 = scmp.ne.s32.totalorder %s11553_s22, %s11549_s1  ;;  %p14091_p13 = scmp.eq.s32.totalorder %s11573_s3, 0 }
  0xa0   : > { %s14231_s4 = smov (%p56_p1, %s55_s4), 0  ;;  %s14233_s27 = smov (!%p56_p1, %s58_s27), %s11569_s25 }
  0xa1   : > { %14155 = sst [smem:[#allocation45_spill]] %s14231_s4  ;;  %s314_s14 = ssub.s32 %s11565_s24, %s14231_s4 }
  0xa2   : > { %p11916_p0 = por %p14091_p13, %p326_p3  ;;  %p60_p2 = scmp.ge.s32.totalorder %s14233_s27, 2 }
  0xa3   : > { %p332_p4 = scmp.ne.s32.totalorder %s11549_s1, %s11545_s21  ;;  %p14158_p6 = scmp.ne.s32.totalorder %s14146_s29, 0 }
  0xa4   : > { %s14235_s27 = smov (%p60_p2, %s14233_s27), 0  ;;  %p14090_p9 = scmp.lt.s32.totalorder %s11573_s3, 10 }
  0xa5   : > { %14157 = sst [smem:[#allocation46_spill]] %s14235_s27  ;;  %p11926_p8 = por %p14158_p6, %p332_p4 }
  0xa6   : > { %s11933_s13 = ssub.s32 %s11569_s25, %s14235_s27  ;;  %s11936_s11 = sand.u32 1, %s11573_s3  }
  0xa7   : > { %s14159_s16 = scalar_select %p11926_p8, 1, 0 }
  0xa8   : > { %s316_s15 = sor.u32 %s11933_s13, %s314_s14  ;;  %s654_s21 = sand.u32 1, %s11553_s22  }
  0xa9   : > { %p317_p11 = scmp.eq.s32.totalorder %s316_s15, 0  ;;  %s8714_s18 = sshll.u32 %s11569_s25, 2 }
  0xaa   : > { %s9755_s19 = smul.u32 1280, %s654_s21  ;;  %p11949_p12 = pnand %p14090_p9, %p11916_p0 }
  0xab   : > { %s11943_s23 = scalar_select %p317_p11, %s11553_s22, %s319_s6  }
  0xac   : > { %s9479_s26 = smul.u32 640, %s11565_s24  ;;  %s656_s7 = scalar_lea.vmem [#allocation19], %s9755_s19 }
  0xad   : > { %14160 = sst [smem:[#allocation47_spill]] %s11943_s23  ;;  %s666_s9 = sshll.u32 %s656_s7, 4  ;;  %s11954_s9 = int_to_ptr.vmem [resolvable:$true] %s666_s9 }
  0xae   : > { %s663_s5 = sadd.s32 %s9479_s26, %s8714_s18  ;;  %s14162_s12 = sld [smem:[#allocation60_spill]] }
  0xaf   : > { %s8716_s14 = sshll.u32 %s663_s5, 6  ;;  %s14097_s8 = scalar_lea.sflag [#allocation20], %s11936_s11 }
  0xb0   : > { %p11099_p3 = pneg %p11949_p12 }
  0xb4   : > { %s11959_s6 = scalar_lea.hbm %s14162_s12, %s8716_s14  ;;  %s11102_s18 = scalar_lea.hbm %s14162_s12, 204800 }
  0xb5   : > { %s11097_s21 = scalar_lea.hbm %s11959_s6, 20480  ;;  %p11103_p4 = scmp.lt.u32.totalorder %s11959_s6, %s14162_s12 }
  0xb6   : > { %p11098_p1 = scmp.ne.s32.totalorder %s11959_s6, %s11097_s21  ;;  %p11104_p11 = scmp.lt.u32.totalorder %s11102_s18, %s11097_s21 }
  0xb7   : > { %p11106_p13 = scmp.lt.u32.totalorder %s11097_s21, %s11959_s6 }
  0xb8   : > { %p11100_p0 = pnand %p11099_p3, %p11098_p1  ;;  %p11105_p9 = por %p11104_p11, %p11103_p4 }
  0xba   : > { %p11101_p2 = pneg %p11100_p0  ;;  %p11107_p10 = por %p11106_p13, %p11105_p9 }
  0xbc   : > { %p11108_p8 = pnand %p11107_p10, %p11101_p2 }
  0xbe   : > { %11111 = shalt.err (!%p11108_p8)
}
  0xbf   : > { %s11112_s26 = scalar_lea.vmem %s11954_s9, 20480  ;;  %s11581_s14 = smov [#allocation19]  }
  0xc0   : > { %p11113_p1 = scmp.ne.s32.totalorder %s11954_s9, %s11112_s26  ;;  %s11117_s15 = sshll.u32 %s11581_s14, 4  ;;  %s11118_s15 = int_to_ptr.vmem [resolvable:$false] %s11117_s15 }
  0xc1   : > { %s11119_s5 = scalar_lea.vmem %s11118_s15, 40960  ;;  %p11120_p7 = scmp.lt.s32.totalorder %s11954_s9, %s11118_s15 }
  0xc2   : > { %p11115_p0 = pnand %p11113_p1, %p11099_p3  ;;  %p11121_p4 = scmp.lt.s32.totalorder %s11119_s5, %s11112_s26 }
  0xc4   : > { %p11116_p5 = pneg %p11115_p0  ;;  %p11122_p11 = por %p11121_p4, %p11120_p7 }
  0xc6   : > { %p11123_p13 = pnand %p11122_p11, %p11116_p5 }
  0xc8   : > { %11126 = shalt.err (!%p11123_p13)
}
  0xc9   : > { %s11582_s21 = smov 512   ;;  %s14098_s7 = smov 256  }
  0xca   : > { %s14100_s18 = smov 16   ;;  %s345_s17 = sadd.s32 1, %s11541_s20 }
  0xcb   : > { %9838 = dma.hbm_to_vmem [thread:$0]  (!%p11949_p12), %s11959_s6, 20480, %s11954_s9, %s14097_s8, %s11582_s21, %s14098_s7, %s14100_s18  }
  0xcc   : > { %p14163_p5 = scmp.eq.s32.totalorder %s11933_s13, 0  ;;  %p352_p7 = scmp.ne.s32.totalorder %s11541_s20, %s11537_s30 }
  0xcd   : > { %p358_p8 = scmp.ne.s32.totalorder %s11537_s30, %s11533_s0  ;;  %s12002_s26 = sand.u32 1, %s11541_s20  }
  0xce   : > { %s11995_s19 = scalar_select %p14163_p5, %s11541_s20, %s345_s17  }
  0xcf   : > { %p14164_p9 = scmp.eq.s32.totalorder %s11573_s3, 0  ;;  %p12008_p3 = por %p358_p8, %p14158_p6 }
  0xd0   : > { %s14103_s14 = sshll.u32 %s12002_s26, 2  ;;  %s14102_s15 = sshll.u32 %s11569_s25, 6 }
  0xd1   : > { %p354_p10 = por %p352_p7, %p14164_p9  ;;  %p14166_p12 = scmp.lt.s32.totalorder %s11573_s3, 10 }
  0xd2   : > { %s14165_s28 = scalar_select %p12008_p3, 1, 0 }
  0xd3   : > { %p12016_p2 = pnand %p14166_p12, %p354_p10  ;;  %s14168_s6 = sld [smem:[#allocation62_spill]] }
  0xd4   : > { %s701_s21 = scalar_lea.vmem [#allocation22], %s14103_s14 }
  0xd5   : > { %s14167_s9 = scalar_select %p12016_p2, 1, 0 }
  0xd6   : > { %s709_s17 = sshll.u32 %s701_s21, 4  ;;  %p12036_p1 = pneg %p12016_p2  ;;  %s12029_s17 = int_to_ptr.vmem [resolvable:$true] %s709_s17 }
  0xd8   : > { %s14169_s18 = scalar_select %p12036_p1, 1, 0 }
  0xd9   : > { %s12025_s5 = scalar_lea.hbm %s14168_s6, %s14102_s15  ;;  %s11132_s15 = scalar_lea.hbm %s14168_s6, 128 }
  0xda   : > { %s11127_s7 = scalar_lea.hbm %s12025_s5, 64  ;;  %p11133_p11 = scmp.lt.u32.totalorder %s12025_s5, %s14168_s6 }
  0xdb   : > { %p11128_p6 = scmp.ne.s32.totalorder %s12025_s5, %s11127_s7  ;;  %p11134_p13 = scmp.lt.u32.totalorder %s11132_s15, %s11127_s7 }
  0xdc   : > { %p11136_p7 = scmp.lt.u32.totalorder %s11127_s7, %s12025_s5 }
  0xdd   : > { %p11130_p0 = pnand %p12036_p1, %p11128_p6  ;;  %p11135_p5 = por %p11134_p13, %p11133_p11 }
  0xdf   : > { %p11131_p4 = pneg %p11130_p0  ;;  %p11137_p8 = por %p11136_p7, %p11135_p5 }
  0xe1   : > { %p11138_p9 = pnand %p11137_p8, %p11131_p4 }
  0xe3   : > { %11141 = shalt.err (!%p11138_p9)
}
  0xe4   : > { %s11142_s8 = scalar_lea.vmem %s12029_s17, 64  ;;  %s11585_s0 = smov [#allocation22]  }
  0xe5   : > { %p11143_p10 = scmp.ne.s32.totalorder %s12029_s17, %s11142_s8  ;;  %s11147_s13 = sshll.u32 %s11585_s0, 4  ;;  %s11148_s13 = int_to_ptr.vmem [resolvable:$false] %s11147_s13 }
  0xe6   : > { %s11149_s14 = scalar_lea.vmem %s11148_s13, 128  ;;  %p11150_p0 = scmp.lt.s32.totalorder %s12029_s17, %s11148_s13 }
  0xe7   : > { %p11145_p12 = pnand %p11143_p10, %p12036_p1  ;;  %p11151_p3 = scmp.lt.s32.totalorder %s11149_s14, %s11142_s8 }
  0xe9   : > { %p11146_p6 = pneg %p11145_p12  ;;  %p11152_p11 = por %p11151_p3, %p11150_p0 }
  0xeb   : > { %p11153_p13 = pnand %p11152_p11, %p11146_p6 }
  0xed   : > { %11156 = shalt.err (!%p11153_p13)
}
  0xee   : > { %s14170_s7 = scalar_lea.sflag [#allocation23], %s11936_s11  ;;  %s14171_s15 = sshll.u32 %s11569_s25, 6 }
  0xef   : > { %9844 = dma.hbm_to_vmem [thread:$0]  (!%p12016_p2), %s12025_s5, 64, %s12029_s17, %s14170_s7  }
  0xf0   : > { %s14172_s6 = sld [smem:[#allocation64_spill]]  ;;  %s14173_s8 = sshll.u32 %s12002_s26, 2 }
  0xf1   : > { %s741_s14 = scalar_lea.vmem [#allocation25], %s14173_s8  ;;  %s14114_s27 = scalar_lea.sflag [#allocation26], %s11936_s11 }
  0xf2   : > { %s749_s12 = sshll.u32 %s741_s14, 4  ;;  %s750_s12 = int_to_ptr.vmem [resolvable:$true] %s749_s12 }
  0xf6   : > { %s12066_s13 = scalar_lea.hbm %s14172_s6, %s14171_s15  ;;  %s11162_s7 = scalar_lea.hbm %s14172_s6, 128 }
  0xf7   : > { %s11157_s4 = scalar_lea.hbm %s12066_s13, 64  ;;  %p11163_p7 = scmp.lt.u32.totalorder %s12066_s13, %s14172_s6 }
  0xf8   : > { %p11158_p3 = scmp.ne.s32.totalorder %s12066_s13, %s11157_s4  ;;  %p11164_p8 = scmp.lt.u32.totalorder %s11162_s7, %s11157_s4 }
  0xf9   : > { %p11166_p10 = scmp.lt.u32.totalorder %s11157_s4, %s12066_s13 }
  0xfa   : > { %p11160_p4 = pnand %p11158_p3, %p12036_p1  ;;  %p11165_p9 = por %p11164_p8, %p11163_p7 }
  0xfc   : > { %p11161_p5 = pneg %p11160_p4  ;;  %p11167_p12 = por %p11166_p10, %p11165_p9 }
  0xfe   : > { %p11168_p6 = pnand %p11167_p12, %p11161_p5 }
 0x100   : > { %11171 = shalt.err (!%p11168_p6)
}
 0x101   : > { %s11172_s0 = scalar_lea.vmem %s750_s12, 64  ;;  %s11586_s8 = smov [#allocation25]  }
 0x102   : > { %p11173_p0 = scmp.ne.s32.totalorder %s750_s12, %s11172_s0  ;;  %s11177_s14 = sshll.u32 %s11586_s8, 4  ;;  %s11178_s14 = int_to_ptr.vmem [resolvable:$false] %s11177_s14 }
 0x103   : > { %s11179_s5 = scalar_lea.vmem %s11178_s14, 128  ;;  %p11180_p3 = scmp.lt.s32.totalorder %s750_s12, %s11178_s14 }
 0x104   : > { %p11175_p11 = pnand %p11173_p0, %p12036_p1  ;;  %p11181_p4 = scmp.lt.s32.totalorder %s11179_s5, %s11172_s0 }
 0x106   : > { %p11176_p13 = pneg %p11175_p11  ;;  %p11182_p2 = por %p11181_p4, %p11180_p3 }
 0x108   : > { %p11183_p7 = pnand %p11182_p2, %p11176_p13 }
 0x10a   : > { %11186 = shalt.err (!%p11183_p7)
}
 0x10b   : > { %p14174_p8 = scmp.ne.s32.totalorder %s14167_s9, 0  ;;  %s11587_s4 = smov [#allocation5]  }
 0x10c   : > { %s541_s17 = sshll.u32 %s11587_s4, 4  ;;  %s11588_s7 = smov [#allocation9]   ;;  %s542_s17 = int_to_ptr.vmem [resolvable:$true] %s541_s17 }
 0x10d   : > { %9850 = dma.hbm_to_vmem [thread:$0]  (!%p14174_p8), %s12066_s13, 64, %s750_s12, %s14114_s27  }
 0x10e   : > { %s565_s15 = sshll.u32 %s11588_s7, 4  ;;  %s14175_s6 = sld [smem:[#allocation49_spill]]  ;;  %s566_s15 = int_to_ptr.vmem [resolvable:$true] %s565_s15 }
 0x10f   : > { %p14176_p5 = scmp.ne.s32.totalorder %s14151_s10, 0 }
 0x114   : > { %s11187_s14 = scalar_lea.hbm %s14175_s6, 32 }
 0x115   : > { %p11188_p2 = scmp.ne.s32.totalorder %s14175_s6, %s11187_s14  ;;  %p11194_p12 = scmp.lt.u32.totalorder %s11187_s14, %s14175_s6 }
 0x117   : > { %p11190_p9 = pnand %p11188_p2, %p14176_p5 }
 0x119   : > { %p11191_p10 = pneg %p11190_p9 }
 0x11b   : > { %p11196_p6 = pnand %p11194_p12, %p11191_p10 }
 0x11d   : > { %11199 = shalt.err (!%p11196_p6)
}
 0x11e   : > { %s11200_s12 = scalar_lea.vmem %s542_s17, 32  ;;  %p11208_p3 = scmp.lt.s32.totalorder %s542_s17, %s542_s17 }
 0x11f   : > { %p11201_p0 = scmp.ne.s32.totalorder %s542_s17, %s11200_s12  ;;  %p11209_p4 = scmp.lt.s32.totalorder %s11200_s12, %s11200_s12 }
 0x121   : > { %p11203_p11 = pnand %p11201_p0, %p14176_p5  ;;  %p11210_p7 = por %p11209_p4, %p11208_p3 }
 0x123   : > { %p11204_p13 = pneg %p11203_p11 }
 0x125   : > { %p11211_p8 = pnand %p11210_p7, %p11204_p13 }
 0x127   : > { %11214 = shalt.err (!%p11211_p8)
}
 0x128   : > { %p14177_p2 = scmp.ne.s32.totalorder %s14149_s2, 0  ;;  %s14178_s7 = sld [smem:[#allocation51_spill]] }
 0x12a   : > { %9810 = dma.hbm_to_vmem [thread:$0]  (!%p14177_p2), %s14175_s6, 32, %s542_s17, [#allocation6]  }
 0x12e   : > { %s11215_s21 = scalar_lea.hbm %s14178_s7, 32 }
 0x12f   : > { %p11216_p9 = scmp.ne.s32.totalorder %s14178_s7, %s11215_s21  ;;  %p11222_p8 = scmp.lt.u32.totalorder %s11215_s21, %s14178_s7 }
 0x131   : > { %p11218_p10 = pnand %p11216_p9, %p14176_p5 }
 0x133   : > { %p11219_p12 = pneg %p11218_p10 }
 0x135   : > { %p11224_p6 = pnand %p11222_p8, %p11219_p12 }
 0x137   : > { %11227 = shalt.err (!%p11224_p6)
}
 0x138   : > { %s11228_s12 = scalar_lea.vmem %s566_s15, 32  ;;  %p11236_p3 = scmp.lt.s32.totalorder %s566_s15, %s566_s15 }
 0x139   : > { %p11229_p0 = scmp.ne.s32.totalorder %s566_s15, %s11228_s12  ;;  %p11237_p4 = scmp.lt.s32.totalorder %s11228_s12, %s11228_s12 }
 0x13b   : > { %p11231_p11 = pnand %p11229_p0, %p14176_p5  ;;  %p11238_p7 = por %p11237_p4, %p11236_p3 }
 0x13d   : > { %p11232_p13 = pneg %p11231_p11 }
 0x13f   : > { %p11239_p1 = pnand %p11238_p7, %p11232_p13 }
 0x141   : > { %11242 = shalt.err (!%p11239_p1)
}
 0x142   : > { %9816 = dma.hbm_to_vmem [thread:$0]  (!%p14177_p2), %s14178_s7, 32, %s566_s15, [#allocation8]  }
 0x143   : > { %s11589_s4 = smov [#allocation12]   ;;  %s11590_s23 = smov [#allocation15]  }
 0x144   : > { %s589_s24 = sshll.u32 %s11589_s4, 4  ;;  %s613_s21 = sshll.u32 %s11590_s23, 4  ;;  %s590_s24 = int_to_ptr.vmem [resolvable:$true] %s589_s24  ;;  %s614_s21 = int_to_ptr.vmem [resolvable:$true] %s613_s21 }
 0x145   : > { %s14179_s0 = sld [smem:[#allocation54_spill]] }
 0x14b   : > { %s14180_s5 = smov %s14179_s0  ;;  %s11243_s27 = scalar_lea.hbm %s14179_s0, 512 }
 0x14c   : > { %p11244_p1 = scmp.ne.s32.totalorder %s14180_s5, %s11243_s27  ;;  %p11250_p12 = scmp.lt.u32.totalorder %s11243_s27, %s14180_s5 }
 0x14e   : > { %p11246_p9 = pnand %p11244_p1, %p14176_p5 }
 0x150   : > { %p11247_p10 = pneg %p11246_p9 }
 0x152   : > { %p11252_p8 = pnand %p11250_p12, %p11247_p10 }
 0x154   : > { %11255 = shalt.err (!%p11252_p8)
}
 0x155   : > { %s11256_s15 = scalar_lea.vmem %s590_s24, 512  ;;  %p11264_p13 = scmp.lt.s32.totalorder %s590_s24, %s590_s24 }
 0x156   : > { %p11257_p6 = scmp.ne.s32.totalorder %s590_s24, %s11256_s15  ;;  %p11265_p3 = scmp.lt.s32.totalorder %s11256_s15, %s11256_s15 }
 0x158   : > { %p11259_p0 = pnand %p11257_p6, %p14176_p5  ;;  %p11266_p4 = por %p11265_p3, %p11264_p13 }
 0x15a   : > { %p11260_p11 = pneg %p11259_p0 }
 0x15c   : > { %p11267_p7 = pnand %p11266_p4, %p11260_p11 }
 0x15e   : > { %11270 = shalt.err (!%p11267_p7)
}
 0x15f   : > { %s14181_s6 = smov 16   ;;  %s14182_s13 = smov 256  }
 0x160   : > { %9822 = dma.hbm_to_vmem [thread:$0]  (!%p14177_p2), %s14180_s5, 512, %s590_s24, [#allocation11], %s14182_s13, %s14182_s13, %s14181_s6  }
 0x161   : > { %s14183_s8 = sld [smem:[#allocation56_spill]] }
 0x167   : > { %s11271_s14 = scalar_lea.hbm %s14183_s8, 16384 }
 0x168   : > { %p11272_p1 = scmp.ne.s32.totalorder %s14183_s8, %s11271_s14  ;;  %p11278_p12 = scmp.lt.u32.totalorder %s11271_s14, %s14183_s8 }
 0x16a   : > { %p11274_p9 = pnand %p11272_p1, %p14176_p5 }
 0x16c   : > { %p11275_p10 = pneg %p11274_p9 }
 0x16e   : > { %p11280_p8 = pnand %p11278_p12, %p11275_p10 }
 0x170   : > { %11283 = shalt.err (!%p11280_p8)
}
 0x171   : > { %s11284_s22 = scalar_lea.vmem %s614_s21, 16384  ;;  %p11292_p13 = scmp.lt.s32.totalorder %s614_s21, %s614_s21 }
 0x172   : > { %p11285_p6 = scmp.ne.s32.totalorder %s614_s21, %s11284_s22  ;;  %p11293_p3 = scmp.lt.s32.totalorder %s11284_s22, %s11284_s22 }
 0x174   : > { %p11287_p0 = pnand %p11285_p6, %p14176_p5  ;;  %p11294_p4 = por %p11293_p3, %p11292_p13 }
 0x176   : > { %p11288_p11 = pneg %p11287_p0 }
 0x178   : > { %p11295_p7 = pnand %p11294_p4, %p11288_p11 }
 0x17a   : > { %11298 = shalt.err (!%p11295_p7)
}
 0x17b   : > { %9828 = dma.hbm_to_vmem [thread:$0]  (!%p14177_p2), %s14183_s8, 16384, %s614_s21, [#allocation14], %s14182_s13, %s14182_s13, %s14181_s6  }
 0x17c   : > { %s11591_s4 = smov [#allocation18]   ;;  %s8717_s14 = sshll.u32 %s12002_s26, 7 }
 0x17d   : > { %s641_s23 = sshll.u32 %s11591_s4, 4  ;;  %s14184_s17 = sld [smem:[#allocation59_spill]]  ;;  %s642_s23 = int_to_ptr.vmem [resolvable:$true] %s641_s23 }
 0x183   : > { %s11299_s15 = scalar_lea.hbm %s14184_s17, 16 }
 0x184   : > { %p11300_p1 = scmp.ne.s32.totalorder %s14184_s17, %s11299_s15  ;;  %p11306_p12 = scmp.lt.u32.totalorder %s11299_s15, %s14184_s17 }
 0x186   : > { %p11302_p9 = pnand %p11300_p1, %p14176_p5 }
 0x188   : > { %p11303_p10 = pneg %p11302_p9 }
 0x18a   : > { %p11308_p8 = pnand %p11306_p12, %p11303_p10 }
 0x18c   : > { %11311 = shalt.err (!%p11308_p8)
}
 0x18d   : > { %s11312_s21 = scalar_lea.vmem %s642_s23, 16  ;;  %s11319_s27 = scalar_lea.vmem %s642_s23, 32 }
 0x18e   : > { %p11313_p6 = scmp.ne.s32.totalorder %s642_s23, %s11312_s21  ;;  %p11320_p13 = scmp.lt.s32.totalorder %s642_s23, %s642_s23 }
 0x18f   : > { %p11321_p3 = scmp.lt.s32.totalorder %s11319_s27, %s11312_s21 }
 0x190   : > { %p11315_p0 = pnand %p11313_p6, %p14176_p5 }
 0x191   : > { %p11322_p4 = por %p11321_p3, %p11320_p13 }
 0x192   : > { %p11316_p11 = pneg %p11315_p0 }
 0x194   : > { %p11323_p7 = pnand %p11322_p4, %p11316_p11 }
 0x196   : > { %11326 = shalt.err (!%p11323_p7)
}
 0x197   : > { %9834 = dma.hbm_to_vmem [thread:$0]  (!%p14177_p2), %s14184_s17, 16, %s642_s23, [#allocation17]  }
 0x198   : > { %s9480_s7 = sshll.u32 %s11569_s25, 11  ;;  %s680_s0 = scalar_lea.vmem [#allocation21], %s8717_s14 }
 0x199   : > { %s687_s12 = sshll.u32 %s680_s0, 4  ;;  %s14185_s22 = sld [smem:[#allocation61_spill]]  ;;  %s12193_s12 = int_to_ptr.vmem [resolvable:$true] %s687_s12 }
 0x19a   : > { %p14187_p1 = scmp.ne.s32.totalorder %s14169_s18, 0 }
 0x19f   : > { %s14186_s8 = smov %s14185_s22  ;;  %s12191_s24 = scalar_lea.hbm %s14185_s22, %s9480_s7 }
 0x1a0   : > { %s11327_s2 = scalar_lea.hbm %s12191_s24, 2048  ;;  %s11332_s14 = scalar_lea.hbm %s14186_s8, 4096 }
 0x1a1   : > { %p11328_p5 = scmp.ne.s32.totalorder %s12191_s24, %s11327_s2  ;;  %p11333_p2 = scmp.lt.u32.totalorder %s12191_s24, %s14186_s8 }
 0x1a2   : > { %p11334_p12 = scmp.lt.u32.totalorder %s11332_s14, %s11327_s2  ;;  %p11336_p6 = scmp.lt.u32.totalorder %s11327_s2, %s12191_s24 }
 0x1a3   : > { %p11330_p9 = pnand %p11328_p5, %p14187_p1 }
 0x1a4   : > { %p11335_p8 = por %p11334_p12, %p11333_p2 }
 0x1a5   : > { %p11331_p10 = pneg %p11330_p9 }
 0x1a6   : > { %p11337_p0 = por %p11336_p6, %p11335_p8 }
 0x1a8   : > { %p11338_p11 = pnand %p11337_p0, %p11331_p10 }
 0x1aa   : > { %11341 = shalt.err (!%p11338_p11)
}
 0x1ab   : > { %s11342_s4 = scalar_lea.vmem %s12193_s12, 2048  ;;  %s11592_s7 = smov [#allocation21]  }
 0x1ac   : > { %p11343_p13 = scmp.ne.s32.totalorder %s12193_s12, %s11342_s4  ;;  %s11347_s0 = sshll.u32 %s11592_s7, 4  ;;  %s11348_s0 = int_to_ptr.vmem [resolvable:$false] %s11347_s0 }
 0x1ad   : > { %s11349_s10 = scalar_lea.vmem %s11348_s0, 4096  ;;  %p11350_p7 = scmp.lt.s32.totalorder %s12193_s12, %s11348_s0 }
 0x1ae   : > { %p11345_p3 = pnand %p11343_p13, %p14187_p1  ;;  %p11351_p5 = scmp.lt.s32.totalorder %s11349_s10, %s11342_s4 }
 0x1b0   : > { %p11346_p4 = pneg %p11345_p3  ;;  %p11352_p9 = por %p11351_p5, %p11350_p7 }
 0x1b2   : > { %p11353_p2 = pnand %p11352_p9, %p11346_p4 }
 0x1b4   : > { %11356 = shalt.err (!%p11353_p2)
}
 0x1b5   : > { %p14188_p10 = scmp.ne.s32.totalorder %s14167_s9, 0  ;;  %s14189_s15 = scalar_lea.sflag [#allocation20], %s11936_s11 }
 0x1b6   : > { %s8723_s22 = sshll.u32 %s12002_s26, 10  ;;  %s9482_s2 = sshll.u32 %s11569_s25, 14 }
 0x1b7   : > { %9841 = dma.hbm_to_vmem [thread:$0]  (!%p14188_p10), %s12191_s24, 2048, %s12193_s12, %s14189_s15, %s14182_s13, %s14182_s13, %s14181_s6  }
 0x1b8   : > { %s14190_s14 = sld [smem:[#allocation63_spill]]  ;;  %s720_s5 = scalar_lea.vmem [#allocation24], %s8723_s22 }
 0x1b9   : > { %s727_s4 = sshll.u32 %s720_s5, 4  ;;  %s8729_s7 = sshll.u32 %s12002_s26, 8  ;;  %s12229_s4 = int_to_ptr.vmem [resolvable:$true] %s727_s4 }
 0x1be   : > { %s12226_s27 = scalar_lea.hbm %s14190_s14, %s9482_s2  ;;  %s11362_s10 = scalar_lea.hbm %s14190_s14, 32768 }
 0x1bf   : > { %s11357_s0 = scalar_lea.hbm %s12226_s27, 16384  ;;  %p11363_p0 = scmp.lt.u32.totalorder %s12226_s27, %s14190_s14 }
 0x1c0   : > { %p11358_p12 = scmp.ne.s32.totalorder %s12226_s27, %s11357_s0  ;;  %p11364_p11 = scmp.lt.u32.totalorder %s11362_s10, %s11357_s0 }
 0x1c1   : > { %p11366_p3 = scmp.lt.u32.totalorder %s11357_s0, %s12226_s27 }
 0x1c2   : > { %p11360_p8 = pnand %p11358_p12, %p14187_p1  ;;  %p11365_p13 = por %p11364_p11, %p11363_p0 }
 0x1c4   : > { %p11361_p6 = pneg %p11360_p8  ;;  %p11367_p4 = por %p11366_p3, %p11365_p13 }
 0x1c6   : > { %p11368_p7 = pnand %p11367_p4, %p11361_p6 }
 0x1c8   : > { %11371 = shalt.err (!%p11368_p7)
}
 0x1c9   : > { %s11372_s22 = scalar_lea.vmem %s12229_s4, 16384  ;;  %s11593_s23 = smov [#allocation24]  }
 0x1ca   : > { %p11373_p5 = scmp.ne.s32.totalorder %s12229_s4, %s11372_s22  ;;  %s11377_s21 = sshll.u32 %s11593_s23, 4  ;;  %s11378_s21 = int_to_ptr.vmem [resolvable:$false] %s11377_s21 }
 0x1cb   : > { %s11379_s5 = scalar_lea.vmem %s11378_s21, 32768  ;;  %p11380_p12 = scmp.lt.s32.totalorder %s12229_s4, %s11378_s21 }
 0x1cc   : > { %p11375_p9 = pnand %p11373_p5, %p14187_p1  ;;  %p11381_p8 = scmp.lt.s32.totalorder %s11379_s5, %s11372_s22 }
 0x1ce   : > { %p11376_p2 = pneg %p11375_p9  ;;  %p11382_p0 = por %p11381_p8, %p11380_p12 }
 0x1d0   : > { %p11383_p11 = pnand %p11382_p0, %p11376_p2 }
 0x1d2   : > { %11386 = shalt.err (!%p11383_p11)
}
 0x1d3   : > { %s14191_s0 = scalar_lea.sflag [#allocation23], %s11936_s11  ;;  %s9484_s12 = sshll.u32 %s11569_s25, 12 }
 0x1d4   : > { %9847 = dma.hbm_to_vmem [thread:$0]  (!%p14188_p10), %s12226_s27, 16384, %s12229_s4, %s14191_s0, %s14182_s13, %s14182_s13, %s14181_s6  }
 0x1d5   : > { %s760_s24 = scalar_lea.vmem [#allocation27], %s8729_s7  ;;  %s14192_s22 = sld [smem:[#allocation65_spill]] }
 0x1d6   : > { %s767_s10 = sshll.u32 %s760_s24, 4  ;;  %s12265_s10 = int_to_ptr.vmem [resolvable:$true] %s767_s10 }
 0x1db   : > { %s14193_s5 = smov %s14192_s22  ;;  %s12263_s23 = scalar_lea.hbm %s14192_s22, %s9484_s12 }
 0x1dc   : > { %s11387_s21 = scalar_lea.hbm %s12263_s23, 4096  ;;  %s11392_s27 = scalar_lea.hbm %s14193_s5, 8192 }
 0x1dd   : > { %p11388_p6 = scmp.ne.s32.totalorder %s12263_s23, %s11387_s21  ;;  %p11393_p4 = scmp.lt.u32.totalorder %s12263_s23, %s14193_s5 }
 0x1de   : > { %p11394_p7 = scmp.lt.u32.totalorder %s11392_s27, %s11387_s21  ;;  %p11396_p9 = scmp.lt.u32.totalorder %s11387_s21, %s12263_s23 }
 0x1df   : > { %p11390_p13 = pnand %p11388_p6, %p14187_p1 }
 0x1e0   : > { %p11395_p5 = por %p11394_p7, %p11393_p4 }
 0x1e1   : > { %p11391_p3 = pneg %p11390_p13 }
 0x1e2   : > { %p11397_p2 = por %p11396_p9, %p11395_p5 }
 0x1e4   : > { %p11398_p12 = pnand %p11397_p2, %p11391_p3 }
 0x1e6   : > { %11401 = shalt.err (!%p11398_p12)
}
 0x1e7   : > { %s11402_s0 = scalar_lea.vmem %s12265_s10, 4096  ;;  %s11594_s12 = smov [#allocation27]  }
 0x1e8   : > { %p11403_p8 = scmp.ne.s32.totalorder %s12265_s10, %s11402_s0  ;;  %s11407_s24 = sshll.u32 %s11594_s12, 4  ;;  %s11408_s24 = int_to_ptr.vmem [resolvable:$false] %s11407_s24 }
 0x1e9   : > { %s11409_s15 = scalar_lea.vmem %s11408_s24, 8192  ;;  %p11410_p6 = scmp.lt.s32.totalorder %s12265_s10, %s11408_s24 }
 0x1ea   : > { %p11405_p0 = pnand %p11403_p8, %p14187_p1  ;;  %p11411_p13 = scmp.lt.s32.totalorder %s11409_s15, %s11402_s0 }
 0x1ec   : > { %p11406_p11 = pneg %p11405_p0  ;;  %p11412_p4 = por %p11411_p13, %p11410_p6 }
 0x1ee   : > { %p11413_p7 = pnand %p11412_p4, %p11406_p11 }
 0x1f0   : > { %11416 = shalt.err (!%p11413_p7)
}
 0x1f1   : > { %s11595_s2 = smov 64   ;;  %s11596_s22 = smov 4  }
 0x1f2   : > { %s14194_s21 = scalar_lea.sflag [#allocation26], %s11936_s11  ;;  %s8732_s6 = sshll.u32 %s11569_s25, 4 }
 0x1f3   : > { %9853 = dma.hbm_to_vmem [thread:$0]  (!%p14188_p10), %s12263_s23, 4096, %s12265_s10, %s14194_s21, %s11595_s2, %s11595_s2, %s11596_s22  }
 0x1f4   : > { %s780_s13 = scalar_lea.vmem [#allocation28], %s12002_s26  ;;  %s14195_s0 = sld [smem:[#allocation66_spill]] }
 0x1f5   : > { %s787_s27 = sshll.u32 %s780_s13, 4  ;;  %s778_s15 = scalar_lea.sflag [#allocation29], %s12002_s26  ;;  %s788_s27 = int_to_ptr.vmem [resolvable:$true] %s787_s27 }
 0x1fa   : > { %s14196_s12 = smov %s14195_s0  ;;  %s12295_s24 = scalar_lea.hbm %s14195_s0, %s8732_s6 }
 0x1fb   : > { %s11417_s5 = scalar_lea.hbm %s12295_s24, 16  ;;  %s11422_s23 = scalar_lea.hbm %s14196_s12, 32 }
 0x1fc   : > { %p11418_p3 = scmp.ne.s32.totalorder %s12295_s24, %s11417_s5  ;;  %p11423_p2 = scmp.lt.u32.totalorder %s12295_s24, %s14196_s12 }
 0x1fd   : > { %p11424_p12 = scmp.lt.u32.totalorder %s11422_s23, %s11417_s5  ;;  %p11426_p0 = scmp.lt.u32.totalorder %s11417_s5, %s12295_s24 }
 0x1fe   : > { %p11420_p5 = pnand %p11418_p3, %p14187_p1 }
 0x1ff   : > { %p11425_p8 = por %p11424_p12, %p11423_p2 }
 0x200   : > { %p11421_p9 = pneg %p11420_p5 }
 0x201   : > { %p11427_p11 = por %p11426_p0, %p11425_p8 }
 0x203   : > { %p11428_p6 = pnand %p11427_p11, %p11421_p9 }
 0x205   : > { %11431 = shalt.err (!%p11428_p6)
}
 0x206   : > { %s11432_s26 = scalar_lea.vmem %s788_s27, 16  ;;  %s11597_s21 = smov [#allocation28]  }
 0x207   : > { %p11433_p13 = scmp.ne.s32.totalorder %s788_s27, %s11432_s26  ;;  %s11437_s6 = sshll.u32 %s11597_s21, 4  ;;  %s11438_s6 = int_to_ptr.vmem [resolvable:$false] %s11437_s6 }
 0x208   : > { %s11439_s13 = scalar_lea.vmem %s11438_s6, 32  ;;  %p11440_p3 = scmp.lt.s32.totalorder %s788_s27, %s11438_s6 }
 0x209   : > { %p11435_p4 = pnand %p11433_p13, %p14187_p1  ;;  %p11441_p5 = scmp.lt.s32.totalorder %s11439_s13, %s11432_s26 }
 0x20b   : > { %p11436_p7 = pneg %p11435_p4  ;;  %p11442_p10 = por %p11441_p5, %p11440_p3 }
 0x20d   : > { %p11443_p2 = pnand %p11442_p10, %p11436_p7 }
 0x20f   : > { %11446 = shalt.err (!%p11443_p2)
}
 0x210   : > { %p14197_p12 = scmp.ne.s32.totalorder %s14167_s9, 0  ;;  %s14198_s5 = sld [smem:[#allocation44_spill]] }
 0x212   : > { %9856 = dma.hbm_to_vmem [thread:$0]  (!%p14197_p12), %s12295_s24, 16, %s788_s27, %s778_s15  }
 0x216   : > { %p14199_p9 = scmp.ne.s32.totalorder %s14198_s5, 0 }
 0x217   : > { %p14200_p8 = scmp.ne.s32.totalorder (!%p14199_p9), %s14146_s29, 0 }
 0x218   : > { %796 = sbr.rel (%p14199_p9) target bundleno = 3353 (0xd19), region = 96 }
 0x21f   : > { %11492 = dma.done.wait (%p14200_p8), [#allocation6], 32  }
 0x220   : > { %11494 = vsyncadd (%p14200_p8), [#allocation6], 4294967264 }
 0x221   : > { %11496 = dma.done.wait (%p14200_p8), [#allocation8], 672  }
 0x222   : > { %11498 = vsyncadd (%p14200_p8), [#allocation8], 4294966624 }
 0x223   : > { %11500 = dma.done.wait (%p14200_p8), [#allocation11], 560  }
 0x224   : > { %11502 = vsyncadd (%p14200_p8), [#allocation11], 4294966736 }
 0x225   : > { %11504 = dma.done.wait (%p14200_p8), [#allocation14], 16448  }
 0x226   : > { %11506 = vsyncadd (%p14200_p8), [#allocation14], 4294950848 }
 0x227   : > { %11508 = dma.done.wait (%p14200_p8), [#allocation17], 80  }
 0x228   : > { %11510 = vsyncadd (%p14200_p8), [#allocation17], 4294967216  ;;  %s14201_s18 = sadd.s32 4294967295, %s11573_s3   ;;  %s836_s27 = sand.u32 1, %s11549_s1  }
 0x229   : > { %s834_s9 = sand.u32 1, %s14201_s18   ;;  %s9756_s4 = smul.u32 1280, %s836_s27 }
 0x22a   : > { %s835_s7 = scalar_lea.sflag [#allocation20], %s834_s9  ;;  %p14202_p1 = scmp.ne.s32.totalorder %s14159_s16, 0 }
 0x22b   : > { %s12340_s0 = scalar_lea.vmem [#allocation19], %s9756_s4 }
 0x22c   : > { %11512 = dma.done.wait (%p14202_p1), %s835_s7, 20480  }
 0x22d   : > { %11514 = vsyncadd (%p14202_p1), %s835_s7, 4294946816  ;;  %s12347_s24 = sand.u32 1, %s11537_s30   ;;  %p14203_p10 = scmp.ne.s32.totalorder %s14165_s28, 0 }
 0x22e   : > { %s8743_s29 = sshll.u32 %s12347_s24, 7 }
 0x22f   : > { %s12350_s15 = scalar_lea.vmem [#allocation21], %s8743_s29 }
 0x230   : > { %11516 = dma.done.wait (%p14203_p10), %s835_s7, 2048  }
 0x231   : > { %11518 = vsyncadd (%p14203_p10), %s835_s7, 4294965248  ;;  %s8744_s11 = sshll.u32 %s12347_s24, 2  ;;  %s853_s10 = scalar_lea.sflag [#allocation23], %s834_s9 }
 0x232   : > { %s12357_s23 = scalar_lea.vmem [#allocation22], %s8744_s11 }
 0x233   : > { %11520 = dma.done.wait (%p14203_p10), %s853_s10, 16448  }
 0x234   : > { %11522 = vsyncadd (%p14203_p10), %s853_s10, 4294950848  ;;  %s8745_s16 = sshll.u32 %s12347_s24, 10  ;;  %s871_s22 = scalar_lea.sflag [#allocation26], %s834_s9 }
 0x235   : > { %s12364_s2 = scalar_lea.vmem [#allocation24], %s8745_s16  ;;  %s12366_s26 = scalar_lea.vmem [#allocation25], %s8744_s11 }
 0x236   : > { %11524 = dma.done.wait (%p14203_p10), %s871_s22, 4160  }
 0x237   : > { %11526 = vsyncadd (%p14203_p10), %s871_s22, 4294963136  ;;  %s8747_s21 = sshll.u32 %s12347_s24, 8  ;;  %s889_s13 = scalar_lea.sflag [#allocation29], %s12347_s24 }
 0x238   : > { %s12373_s6 = scalar_lea.vmem [#allocation27], %s8747_s21 }
 0x239   : > { %11528 = dma.done.wait (%p14203_p10), %s889_s13, 16  }
 0x23a   : > { %11530 = vsyncadd (%p14203_p10), %s889_s13, 4294967280  ;;  %s14204_s18 = sld [smem:[#allocation42_spill]]  ;;  %s14205_s7 = sld [smem:[#allocation67_spill]] }
 0x23b   : > { %s14206_s11 = sld [smem:[#allocation41_spill]] }
 0x240   : > { %p976_p0 = scmp.lt.s32.totalorder %s14204_s18, 1 }
 0x241   : > { %p8749_p11 = scmp.ne.s32.totalorder %s14206_s11, 0 }
 0x242   : > { %s14237_s18 = smov (!%p976_p0, %s14204_s18), 1  ;;  %v995_v0 = vlaneseq (!%p8749_p11)  ;;  %s14207_s22 = sld [smem:[#allocation48_spill]] (!%p8749_p11)  ;;  %v11598_v2 = vmov (!%p8749_p11), 1966171168   ;;  %vm1214_vm0 = vcmask (!%p8749_p11), 1041409   ;;  %vm1216_vm1 = vcmask (!%p8749_p11), 1042434  }
 0x243   : > { %s8748_s9 = sshll.u32 %s14237_s18, 1  ;;  %984 = sbr.rel (%p8749_p11) target bundleno = 1844 (0x734), region = 164  ;;  %v993_v3 = vunpack.c.l.s4 (!%p8749_p11), %v11598_v2  ;;  %v12435_v31 = vld [vmem:[#allocation7 + $0x4] ss:$8 sps:$4 sm:$0xff] (!%p8749_p11)   ;;  %vm985_vm2 = vcmask (!%p8749_p11), 1040384   ;;  %vm1218_vm3 = vcmask (!%p8749_p11), 1043459  }
 0x244   : > { %s12386_s29 = scalar_lea.vmem %s14205_s7, %s8748_s9  ;;  %v12398_v6 = vshrl.u32 (!%p8749_p11), %v995_v0, 7  ;;  %s11599_s4 = smov (!%p8749_p11), 17   ;;  %v12440_v35 = vld [vmem:[#allocation7] ss:$8 sps:$4 sm:$0xff] (!%p8749_p11)   ;;  %vm986_vm4 = vcmask (!%p8749_p11), 123905   ;;  %vm1215_vm5 = vmor (!%p8749_p11), %vm1214_vm0, %vm985_vm2  ;;  %1286 = vmatprep.subr.bf16.mxu0 (!%p8749_p11), %v12435_v31  ;;  %1438 = vmatprep.subr.bf16.mxu1 (!%p8749_p11), %v12435_v31  ;;  %vm1220_vm6 = vcmask (!%p8749_p11), 520196  }
 0x245   : > { %v994_v9 = vunpack.c.0.s8 (!%p8749_p11), %v993_v3  ;;  %s11600_s7 = smov (!%p8749_p11), 13   ;;  %vm987_vm7 = vmor (!%p8749_p11), %vm986_vm4, %vm985_vm2  ;;  %1287 = vmatpush1.bf16.msra.mxu0 (!%p8749_p11), %v12440_v35  ;;  %v11601_v36 = vmov (!%p8749_p11), 0   ;;  %v12454_v40 = vld [vmem:[#allocation7 + $0x14] ss:$8 sps:$4 sm:$0xff] (!%p8749_p11)   ;;  %1439 = vmatpush1.bf16.msra.mxu1 (!%p8749_p11), %v12440_v35  ;;  %s11602_s11 = smov (!%p8749_p11), 19   ;;  %vm1279_vm11 = vcmask (!%p8749_p11), 1041408  }
 0x246   : > { %1318 = vmatprep.mubr.bf16.mxu0 (!%p8749_p11), %v11601_v36  ;;  %988 = vst.msk [vmem:[#allocation2] sm:$0x3] (!%p8749_p11), %vm987_vm7, %v11601_v36  ;;  %vm1217_vm8 = vmor (!%p8749_p11), %vm1216_vm1, %vm1215_vm5  ;;  %1470 = vmatprep.mubr.bf16.mxu1 (!%p8749_p11), %v11601_v36  ;;  %s11603_s10 = smov (!%p8749_p11), 15   ;;  %v12462_v44 = vld [vmem:[#allocation7 + $0x10] ss:$8 sps:$4 sm:$0xff] (!%p8749_p11)   ;;  %s11604_s16 = smov (!%p8749_p11), 23  }
 0x247   : > { %v12410_v15 = vsub.s32 (!%p8749_p11), %v994_v9, %v12398_v6  ;;  %vm1219_vm9 = vmor (!%p8749_p11), %vm1218_vm3, %vm1217_vm8  ;;  %1288 = vmatprep.subr.bf16.mxu0 (!%p8749_p11), %v12454_v40  ;;  %v1237_v45 = vld [vmem:[#allocation7 + $0x20] sm:$0x33] (!%p8749_p11)  ;;  %1440 = vmatprep.subr.bf16.mxu1 (!%p8749_p11), %v12454_v40  ;;  %s11606_s28 = smov (!%p8749_p11), 31   ;;  %s11607_s21 = smov (!%p8749_p11), 25   ;;  %vm1009_vm12 = vcmask (!%p8749_p11), 180328   ;;  %vm1031_vm13 = vcmask (!%p8749_p11), 278728  }
 0x248   : > { %s14208_s5 = smov (!%p8749_p11), %s14207_s22  ;;  %v1033_v1 = vld [vmem:[%s14207_s22] sm:$0x3] (!%p8749_p11)  ;;  %vm1221_vm10 = vmor (!%p8749_p11), %vm1220_vm6, %vm1219_vm9  ;;  %v8755_v46 = vcombine.high (!%p8749_p11), %v1237_v45, %v1237_v45  ;;  %v8754_v47 = vcombine.low (!%p8749_p11), %v1237_v45, %v1237_v45  ;;  %s11605_s22 = smov (!%p8749_p11), 21   ;;  %vm1053_vm14 = vcmask (!%p8749_p11), 377128   ;;  %vm1075_vm15 = vcmask (!%p8749_p11), 475528  }
 0x249   : > { %v989_v4 = vld [vmem:[%s14208_s5] sm:$0x3] (!%p8749_p11)  ;;  %v1034_v7 = vpack.c.bf16 (!%p8749_p11), %v1033_v1, %v1033_v1  ;;  %1222 = vst.msk [vmem:[#allocation3] sm:$0x1f] (!%p8749_p11), %vm1221_vm10, %v11601_v36  ;;  %1223 = vst.msk [vmem:[#allocation3 + $0x5] sm:$0x1f] (!%p8749_p11), %vm1221_vm10, %v11601_v36  ;;  %1289 = vmatpush1.bf16.msra.mxu0 (!%p8749_p11), %v12462_v44  ;;  %1441 = vmatpush1.bf16.msra.mxu1 (!%p8749_p11), %v12462_v44 }
 0x24a   : > { %v1055_v5 = vld [vmem:[%s14208_s5] sm:$0x3]  ;;  %v990_v10 = vpack.c.bf16 %v989_v4, %v989_v4  ;;  %1224 = vst.msk [vmem:[#allocation3 + $0xa] sm:$0x1f] %vm1221_vm10, %v11601_v36  ;;  %1225 = vst.msk [vmem:[#allocation3 + $0xf] sm:$0x1f] %vm1221_vm10, %v11601_v36  ;;  %8756 = vmatprep.subr.msk.bf16.mxu0 %vm1279_vm11, %v8755_v46 }
 0x24b   : > { %v1011_v8 = vld [vmem:[%s14208_s5] sm:$0x3]  ;;  %v1056_v11 = vpack.c.bf16 %v1055_v5, %v1055_v5  ;;  %v1042_v20 = vrot.slane %v1034_v7, %v12410_v15  ;;  %1226 = vst.msk [vmem:[#allocation3 + $0x14] sm:$0x1f] %vm1221_vm10, %v11601_v36  ;;  %1227 = vst.msk [vmem:[#allocation3 + $0x19] sm:$0x1f] %vm1221_vm10, %v11601_v36 }
 0x24c   : > { %v1012_v12 = vpack.c.bf16 %v1011_v8, %v1011_v8  ;;  %v1099_v13 = vld [vmem:[%s14208_s5] sm:$0x3]  ;;  %v998_v21 = vrot.slane %v990_v10, %v12410_v15  ;;  %1228 = vst.msk [vmem:[#allocation3 + $0x1e] sm:$0x1f] %vm1221_vm10, %v11601_v36  ;;  %1229 = vst.msk [vmem:[#allocation3 + $0x23] sm:$0x1f] %vm1221_vm10, %v11601_v36 }
 0x24d   : > { %v1077_v14 = vld [vmem:[%s14208_s5] sm:$0x3]  ;;  %v1100_v18 = vpack.c.bf16 %v1099_v13, %v1099_v13  ;;  %v1064_v22 = vrot.slane %v1056_v11, %v12410_v15  ;;  %v1049_v24 = vrot.slane %v1042_v20, %v12410_v15  ;;  %1230 = vst.msk [vmem:[#allocation3 + $0x28] sm:$0x1f] %vm1221_vm10, %v11601_v36  ;;  %1231 = vst.msk [vmem:[#allocation3 + $0x2d] sm:$0x1f] %vm1221_vm10, %v11601_v36 }
 0x24e   : > { %v1187_v16 = vld [vmem:[%s14208_s5] sm:$0x3]  ;;  %v1078_v19 = vpack.c.bf16 %v1077_v14, %v1077_v14  ;;  %v1020_v23 = vrot.slane %v1012_v12, %v12410_v15  ;;  %v1005_v25 = vrot.slane %v998_v21, %v12410_v15  ;;  %v1281_v52 = vsel %vm1279_vm11, %v8754_v47, 0  ;;  %s11608_s13 = smov 27   ;;  %s11609_s18 = smov 29  }
 0x24f   : > { %v1121_v17 = vld [vmem:[%s14208_s5] sm:$0x3]  ;;  %v1108_v28 = vrot.slane %v1100_v18, %v12410_v15  ;;  %v1188_v29 = vpack.c.bf16 %v1187_v16, %v1187_v16  ;;  %1050 = vrot.lane.b32.xlu1 %v1049_v24, %s11599_s4  ;;  %v1071_v32 = vrot.slane %v1064_v22, %v12410_v15  ;;  %1291 = vmatpush1.bf16.msra.mxu0 %v1281_v52  ;;  %vm1097_vm0 = vcmask 573928   ;;  %v1374_v2 = vld [vmem:[#allocation7 + $0x20] sm:$0x33]  ;;  %s11610_s9 = smov 80  }
 0x250   : > { %v12427_v26 = vld [vmem:[%s14208_s5] sm:$0x3]  ;;  %v1122_v30 = vpack.c.bf16 %v1121_v17, %v1121_v17  ;;  %1006 = vrot.lane.b32.xlu0 %v1005_v25, %s11600_s7  ;;  %v1027_v33 = vrot.slane %v1020_v23, %v12410_v15  ;;  %v1086_v34 = vrot.slane %v1078_v19, %v12410_v15  ;;  %1583 = vmatprep.subr.bf16.mxu0 %v12435_v31  ;;  %vm1119_vm1 = vcmask 672328   ;;  %v1519_v8 = vld [vmem:[#allocation7 + $0x20] sm:$0x33]  ;;  %s11611_s27 = smov 104  }
 0x251   : > { %v12432_v27 = vld [vmem:[%s14208_s5] sm:$0x3]  ;;  %v1196_v37 = vrot.slane %v1188_v29, %v12410_v15  ;;  %v1144_v38 = vpack.c.bf16 %v12427_v26, %v12427_v26  ;;  %v1115_v41 = vrot.slane %v1108_v28, %v12410_v15  ;;  %vm1141_vm2 = vcmask 770728   ;;  %s11612_s4 = smov 32   ;;  %s11613_s7 = smov 56  }
 0x252   : > { %v1166_v39 = vpack.c.bf16 %v12432_v27, %v12432_v27  ;;  %v1093_v42 = vrot.slane %v1086_v34, %v12410_v15  ;;  %v1130_v43 = vrot.slane %v1122_v30, %v12410_v15  ;;  %vm1210_vm3 = vcmask 1041352   ;;  %v1809_v22 = vld [vmem:[#allocation7 + $0x20] sm:$0x33] }
 0x253   : > { %1072 = vrot.lane.b32.xlu1 %v1071_v32, %s11602_s11  ;;  %v1203_v48 = vrot.slane %v1196_v37, %v12410_v15  ;;  %v1152_v50 = vrot.slane %v1144_v38, %v12410_v15  ;;  %vm1211_vm4 = vcmask 17409   ;;  %vm1163_vm5 = vcmask 869128   ;;  %s11614_s11 = smov 116   ;;  %v1664_v29 = vld [vmem:[#allocation7 + $0x20] sm:$0x33] }
 0x254   : > { %1028 = vrot.lane.b32.xlu0 %v1027_v33, %s11603_s10  ;;  %v1137_v49 = vrot.slane %v1130_v43, %v12410_v15  ;;  %v1174_v51 = vrot.slane %v1166_v39, %v12410_v15  ;;  %vm1207_vm6 = vcmask 252928   ;;  %vm1185_vm7 = vcmask 967528   ;;  %vm1212_vm8 = vmor %vm1211_vm4, %vm1210_vm3  ;;  %s11615_s10 = smov 92   ;;  %v2099_v33 = vld [vmem:[#allocation7 + $0x20] sm:$0x33] }
 0x255   : > { %v1159_v53 = vrot.slane %v1152_v50, %v12410_v15  ;;  %v8765_v4 = vcombine.high %v1374_v2, %v1374_v2  ;;  %v8764_v5 = vcombine.low %v1374_v2, %v1374_v2  ;;  %vm1275_vm9 = vcmask 293888   ;;  %v1954_v43 = vld [vmem:[#allocation7 + $0x20] sm:$0x33] }
 0x256   : > { %v1181_v54 = vrot.slane %v1174_v51, %v12410_v15  ;;  %v8774_v13 = vcombine.low %v1519_v8, %v1519_v8  ;;  %v8775_v14 = vcombine.high %v1519_v8, %v1519_v8  ;;  %v8795_v23 = vcombine.high %v1809_v22, %v1809_v22  ;;  %v2389_v47 = vld [vmem:[#allocation7 + $0x20] sm:$0x33]  ;;  %v10049_v8 = vld [vmem:[#allocation15 + $0x24] ss:$16 sps:$4 sm:$0xff]  }
 0x257   : > { %1116 = vrot.lane.b32.xlu1 %v1115_v41, %s11604_s16  ;;  %8766 = vmatprep.subr.msk.bf16.mxu1 %vm1279_vm11, %v8765_v4  ;;  %v1433_v7 = vsel %vm1279_vm11, %v8764_v5, 0  ;;  %s11616_s16 = smov 68   ;;  %v8794_v24 = vcombine.low %v1809_v22, %v1809_v22  ;;  %v8785_v30 = vcombine.high %v1664_v29, %v1664_v29  ;;  %v8784_v32 = vcombine.low %v1664_v29, %v1664_v29  ;;  %v10041_v4 = vld [vmem:[#allocation15] ss:$16 sps:$4 sm:$0xff]   ;;  %v10044_v22 = vld [vmem:[#allocation15 + $0x8] ss:$16 sps:$4 sm:$0xff]  }
 0x258   : > { %1094 = vrot.lane.b32.xlu0 %v1093_v42, %s11605_s22  ;;  %1443 = vmatpush1.bf16.msra.mxu1 %v1433_v7  ;;  %v1578_v18 = vsel %vm1279_vm11, %v8774_v13, 0  ;;  %s11617_s22 = smov 44   ;;  %v8815_v38 = vcombine.high %v2099_v33, %v2099_v33  ;;  %v8814_v39 = vcombine.low %v2099_v33, %v2099_v33  ;;  %vm2744_vm10 = vcmask 1045504   ;;  %v2546_v7 = vld [vmem:[#allocation7 + $0x20] sm:$0x33] }
 0x259   : > { %1728 = vmatprep.subr.bf16.mxu1 %v12435_v31  ;;  %v1868_v26 = vsel %vm1279_vm11, %v8794_v24, 0  ;;  %v1723_v37 = vsel %vm1279_vm11, %v8784_v32, 0  ;;  %v8805_v45 = vcombine.high %v1954_v43, %v1954_v43  ;;  %v8804_v46 = vcombine.low %v1954_v43, %v1954_v43  ;;  %v10038_v13 = vld [vmem:[#allocation12 + $0x8] ss:$16 sps:$4 sm:$0x7f]  }
 0x25a   : > { %v2158_v41 = vsel %vm1279_vm11, %v8814_v39, 0  ;;  %v8835_v51 = vcombine.high %v2389_v47, %v2389_v47  ;;  %v8834_v52 = vcombine.low %v2389_v47, %v2389_v47  ;;  %v10050_v24 = vld [vmem:[#allocation15 + $0x28] ss:$16 sps:$4 sm:$0xff]   ;;  %v10067_v29 = vld [vmem:[#allocation15 + $0x84] ss:$16 sps:$4 sm:$0xff]   ;;  %vm1351_vm3 = vcmask 654336  }
 0x25b   : > { %1204 = vrot.lane.b32.xlu1 %v1203_v48, %s11606_s28  ;;  %s11618_s28 = smov 20   ;;  %v11619_v48 = vmov 65535   ;;  %v2013_v50 = vsel %vm1279_vm11, %v8804_v46, 0  ;;  %v10065_v32 = vld [vmem:[#allocation15 + $0x80] ss:$16 sps:$4 sm:$0xff]   ;;  %vm1361_vm4 = vcmask 130048  }
 0x25c   : > { %1138 = vrot.lane.b32.xlu0 %v1137_v49, %s11607_s21  ;;  %v2746_v49 = vsel %vm2744_vm10, 4294967295, %v11619_v48  ;;  %v10068_v33 = vld [vmem:[#allocation15 + $0x88] ss:$16 sps:$4 sm:$0xff]   ;;  %v10073_v39 = vld [vmem:[#allocation15 + $0xa4] ss:$16 sps:$4 sm:$0xff]   ;;  %s11620_s21 = smov 16  }
 0x25d   : > { %v10074_v43 = vld [vmem:[#allocation15 + $0xa8] ss:$16 sps:$4 sm:$0xff]   ;;  %v10079_v47 = vld [vmem:[#allocation15 + $0xc4] ss:$16 sps:$4 sm:$0xff]   ;;  %v10082_v48 = vld [vmem:[#allocation15 + $0xcc] ss:$16 sps:$4 sm:$0xff]  }
 0x25f   : > { %1182 = vrot.lane.b32.xlu1 %v1181_v54, %s11609_s18 }
 0x260   : > { %1160 = vrot.lane.b32.xlu0 %v1159_v53, %s11608_s13  ;;  %v10033_v53 = vld [vmem:[#allocation12 + $0x4] ss:$16 sps:$4 sm:$0x7f]  }
 0x2c1   : > { %v1051_v55 = vpop.permute.xlu1 %1050 }
 0x2c2   : > { %v1007_v56 = vpop.permute.xlu0 %1006 }
 0x2c3   : > { %1010 = vst.msk [vmem:[#allocation2] sm:$0x1] %vm1009_vm12, %v1007_v56  ;;  %vm2745_vm12 = vcmask 1046528   ;;  %v2460_v56 = vsel %vm1279_vm11, %v8834_v52, 0 }
 0x2c4   : > { %v12540_v54 = vsel %vm2745_vm12, %v2746_v49, 0 }
 0x2c5   : > { %v1073_v57 = vpop.permute.xlu1 %1072 }
 0x2c6   : > { %v1029_v58 = vpop.permute.xlu0 %1028 }
 0x2c7   : > { %1032 = vst.msk [vmem:[#allocation2] sm:$0x1] %vm1031_vm13, %v1029_v58  ;;  %vm2429_vm13 = vcmask 261120  }
 0x2c8   : > { %1054 = vst.msk [vmem:[#allocation2] sm:$0x1] %vm1053_vm14, %v1051_v55  ;;  %v10031_v55 = vld [vmem:[#allocation12] ss:$16 sps:$4 sm:$0x7f]   ;;  %vm2740_vm14 = vcmask 105472  }
 0x2c9   : > { %1076 = vst.msk [vmem:[#allocation2] sm:$0x1] %vm1075_vm15, %v1073_v57  ;;  %v1117_v59 = vpop.permute.xlu1 %1116  ;;  %v2752_v57 = vand.u32 %v10033_v53, %v12540_v54  ;;  %vm2586_vm15 = vcmask 162816  }
 0x2ca   : > { %v1095_v60 = vpop.permute.xlu0 %1094 }
 0x2cb   : > { %1098 = vst.msk [vmem:[#allocation2] sm:$0x1] %vm1097_vm0, %v1095_v60  ;;  %v2749_v60 = vand.u32 %v10031_v55, %v12540_v54  ;;  %vm1355_vm0 = vcmask 910337  }
 0x2cc   : > { %1120 = vst.msk [vmem:[#allocation2] sm:$0x1] %vm1119_vm1, %v1117_v59  ;;  %v2244_v59 = vld [vmem:[#allocation7 + $0x20] sm:$0x33]  ;;  %vm1365_vm1 = vcmask 1040512  }
 0x2cd   : > { %v1205_v61 = vpop.permute.xlu1 %1204 }
 0x2ce   : > { %v1139_v62 = vpop.permute.xlu0 %1138  ;;  %v1206_v63 = vrot.slane %v1205_v61, 7 }
 0x2cf   : > { %1142 = vst.msk [vmem:[#allocation2] sm:$0x1] %vm1141_vm2, %v1139_v62  ;;  %v8824_v62 = vcombine.low %v2244_v59, %v2244_v59  ;;  %vm1366_vm2 = vcmask 386049  }
 0x2d0   : > { %v1208_v3 = vsel %vm1207_vm6, %v1206_v63, %v1205_v61  ;;  %v8825_v61 = vcombine.high %v2244_v59, %v2244_v59  ;;  %v10088_v59 = vld [vmem:[#allocation15 + $0xec] ss:$16 sps:$4 sm:$0xff]   ;;  %vm12598_vm6 = vmor %vm1366_vm2, %vm1365_vm1 }
 0x2d1   : > { %v1183_v1 = vpop.permute.xlu1 %1182  ;;  %v2303_v2 = vsel %vm1279_vm11, %v8824_v62, 0  ;;  %v10086_v62 = vld [vmem:[#allocation15 + $0xe8] ss:$16 sps:$4 sm:$0xff]  }
 0x2d2   : > { %v1161_v0 = vpop.permute.xlu0 %1160 }
 0x2d3   : > { %1164 = vst.msk [vmem:[#allocation2] sm:$0x1] %vm1163_vm5, %v1161_v0  ;;  %v10043_v0 = vld [vmem:[#allocation15 + $0x4] ss:$16 sps:$4 sm:$0xff]  }
 0x2d4   : > { %1186 = vst.msk [vmem:[#allocation2] sm:$0x1] %vm1185_vm7, %v1183_v1  ;;  %v2696_v1 = vld [vmem:[#allocation5] sm:$0x3]  ;;  %vm4275_vm7 = vcmask 523264  }
 0x2d5   : > { %1213 = vst.msk [vmem:[#allocation2] sm:$0x3] %vm1212_vm8, %v1208_v3  ;;  %v2697_v3 = vpack.c.bf16 %v2696_v1, %v2696_v1  ;;  %v10094_v1 = vld [vmem:[#allocation15 + $0x10c] ss:$16 sps:$4 sm:$0xff]  }
 0x2dc   : > { %v1232_v9 = vld [vmem:[#allocation2] sm:$0x1] }
 0x2dd   : > { %v8789_v10 = vld.sshfl [vmem:[#allocation2] sm:$0x1 pattern:$0x75316420]  ;;  %8757 = vmatmul.mubr.msk.bf16.vlgmr.msra.gmra.mrb[0].mxu0 %vm1275_vm9, %v1232_v9  ;;  %v8845_v9 = vcombine.high %v2546_v7, %v2546_v7 }
 0x2de   : > { %v1836_v11 = vrot.slane %v8789_v10, %v12410_v15  ;;  %v8829_v12 = vld.sshfl [vmem:[#allocation2] sm:$0x11 pattern:$0x75316420]  ;;  %1584 = vmatpush1.bf16.msra.mxu0 %v12440_v35  ;;  %1615 = vmatprep.mubr.bf16.mxu0 %v11601_v36  ;;  %v8844_v10 = vcombine.low %v2546_v7, %v2546_v7  ;;  %v10097_v7 = vld [vmem:[#allocation15 + $0x124] ss:$16 sps:$4 sm:$0xff]  }
 0x2df   : > { %1585 = vmatprep.subr.bf16.mxu0 %v12454_v40  ;;  %v2417_v16 = vrot.slane %v8829_v12, %v12410_v15  ;;  %v2410_v17 = vcombine.high %v8829_v12, %v8829_v12  ;;  %v10047_v12 = vld [vmem:[#allocation15 + $0x20] ss:$16 sps:$4 sm:$0xff]  }
 0x2e0   : > { %1837 = vrot.lane.b32.xlu1 %v1836_v11, %s11610_s9  ;;  %1547 = vrot.lane.b32.xlu0 %v1836_v11, %s11611_s27 }
 0x2e1   : > { %v2424_v19 = vrot.slane %v2410_v17, %v12410_v15 }
 0x2e2   : > { %1586 = vmatpush1.bf16.msra.mxu0 %v12462_v44 }
 0x2e3   : > { %8776 = vmatprep.subr.msk.bf16.mxu0 %vm1279_vm11, %v8775_v14  ;;  %v2617_v14 = vsel %vm1279_vm11, %v8844_v10, 0  ;;  %v10098_v10 = vld [vmem:[#allocation15 + $0x128] ss:$16 sps:$4 sm:$0xff]  }
 0x2e4   : > { %2425 = vrot.lane.b32.xlu1 %v2417_v16, %s11612_s4  ;;  %2127 = vrot.lane.b32.xlu0 %v1836_v11, %s11613_s7 }
 0x2e6   : > { %1588 = vmatpush1.bf16.msra.mxu0 %v1578_v18  ;;  %v2755_v18 = vand.u32 %v10038_v13, %v12540_v54  ;;  %v10104_v13 = vld [vmem:[#allocation15 + $0x148] ss:$16 sps:$4 sm:$0xff]  }
 0x2e7   : > { %1873 = vmatprep.subr.bf16.mxu0 %v12435_v31 }
 0x2e8   : > { %2427 = vrot.lane.b32.xlu0 %v2424_v19, %s11612_s4  ;;  %1402 = vrot.lane.b32.xlu1 %v1836_v11, %s11614_s11 }
 0x2ec   : > { %1692 = vrot.lane.b32.xlu0 %v1836_v11, %s11615_s10  ;;  %1982 = vrot.lane.b32.xlu1 %v1836_v11, %s11616_s16 }
 0x2f0   : > { %2272 = vrot.lane.b32.xlu0 %v1836_v11, %s11617_s22  ;;  %2582 = vrot.lane.b32.xlu1 %v2417_v16, %s11618_s28  ;;  %v10040_v11 = vld [vmem:[#allocation12 + $0xc] ss:$16 sps:$4 sm:$0x7f]   ;;  %v10053_v16 = vld [vmem:[#allocation15 + $0x40] ss:$16 sps:$4 sm:$0xff]  }
 0x2f4   : > { %2584 = vrot.lane.b32.xlu0 %v2424_v19, %s11618_s28 }
 0x352   : > { %v1838_v20 = vpop.permute.xlu1 %1837  ;;  %v1548_v21 = vpop.permute.xlu0 %1547 }
 0x353   : > { %8777 = vmatmul.mubr.msk.bf16.vlgmr.msra.gmra.mrb[4].mxu0 %vm1275_vm9, %v1548_v21 }
 0x354   : > { %1874 = vmatpush1.bf16.msra.mxu0 %v12440_v35  ;;  %1905 = vmatprep.mubr.bf16.mxu0 %v11601_v36 }
 0x355   : > { %1875 = vmatprep.subr.bf16.mxu0 %v12454_v40 }
 0x356   : > { %v12507_v25 = vpop.permute.xlu1 %2425  ;;  %v2128_v27 = vpop.permute.xlu0 %2127 }
 0x358   : > { %1876 = vmatpush1.bf16.msra.mxu0 %v12462_v44 }
 0x359   : > { %8796 = vmatprep.subr.msk.bf16.mxu0 %vm1279_vm11, %v8795_v23  ;;  %v10052_v23 = vld [vmem:[#allocation15 + $0x2c] ss:$16 sps:$4 sm:$0xff]  }
 0x35a   : > { %v1403_v28 = vpop.permute.xlu1 %1402  ;;  %v2428_v34 = vpop.permute.xlu0 %2427 }
 0x35b   : > { %8767 = vmatmul.mubr.msk.bf16.vlgmr.msra.gmra.mrb[0].mxu1 %vm1275_vm9, %v1403_v28  ;;  %v2430_v63 = vsel %vm2429_vm13, %v12507_v25, %v2428_v34  ;;  %v10058_v25 = vld [vmem:[#allocation15 + $0x4c] ss:$16 sps:$4 sm:$0xff]   ;;  %v10062_v28 = vld [vmem:[#allocation15 + $0x68] ss:$16 sps:$4 sm:$0xff]   ;;  %v12573_v34 = vsub.s32 0, %v12398_v6 }
 0x35c   : > { %1729 = vmatpush1.bf16.msra.mxu1 %v12440_v35  ;;  %1878 = vmatpush1.bf16.msra.mxu0 %v1868_v26  ;;  %v10056_v26 = vld [vmem:[#allocation15 + $0x48] ss:$16 sps:$4 sm:$0xff]  }
 0x35d   : > { %1730 = vmatprep.subr.bf16.mxu1 %v12454_v40  ;;  %2163 = vmatprep.subr.bf16.mxu0 %v12435_v31 }
 0x35e   : > { %1760 = vmatprep.mubr.bf16.mxu1 %v11601_v36  ;;  %v1693_v42 = vpop.permute.xlu0 %1692  ;;  %v1983_v58 = vpop.permute.xlu1 %1982 }
 0x35f   : > { %8797 = vmatmul.mubr.msk.bf16.vlgmr.msra.gmra.mrb[8].mxu0 %vm1275_vm9, %v1838_v20  ;;  %v10046_v20 = vld [vmem:[#allocation15 + $0xc] ss:$16 sps:$4 sm:$0xff]  }
 0x360   : > { %1731 = vmatpush1.bf16.msra.mxu1 %v12462_v44  ;;  %2164 = vmatpush1.bf16.msra.mxu0 %v12440_v35 }
 0x361   : > { %8786 = vmatprep.subr.msk.bf16.mxu1 %vm1279_vm11, %v8785_v30  ;;  %2165 = vmatprep.subr.bf16.mxu0 %v12454_v40  ;;  %v10070_v30 = vld [vmem:[#allocation15 + $0x8c] ss:$16 sps:$4 sm:$0xff]  }
 0x362   : > { %2195 = vmatprep.mubr.bf16.mxu0 %v11601_v36  ;;  %v2273_v5 = vpop.permute.xlu0 %2272  ;;  %v2583_v19 = vpop.permute.xlu1 %2582 }
 0x364   : > { %1733 = vmatpush1.bf16.msra.mxu1 %v1723_v37  ;;  %2166 = vmatpush1.bf16.msra.mxu0 %v12462_v44  ;;  %v1238_v37 = vld [vmem:[#allocation9] sm:$0x3] }
 0x365   : > { %2018 = vmatprep.subr.bf16.mxu1 %v12435_v31  ;;  %8816 = vmatprep.subr.msk.bf16.mxu0 %vm1279_vm11, %v8815_v38  ;;  %v12576_v38 = vsub.s32 1, %v12398_v6 }
 0x366   : > { %v2585_v17 = vpop.permute.xlu0 %2584 }
 0x367   : > { %8787 = vmatmul.mubr.msk.bf16.vlgmr.msra.gmra.mrb[4].mxu1 %vm1275_vm9, %v1693_v42  ;;  %v2587_v21 = vsel %vm2586_vm15, %v2583_v19, %v2585_v17  ;;  %v10071_v42 = vld [vmem:[#allocation15 + $0xa0] ss:$16 sps:$4 sm:$0xff]   ;;  %v1247_v46 = vrot.slane %v1238_v37, %v12576_v38  ;;  %v10115_v17 = vld [vmem:[#allocation15 + $0x184] ss:$16 sps:$4 sm:$0xff]  }
 0x368   : > { %2019 = vmatpush1.bf16.msra.mxu1 %v12440_v35  ;;  %2168 = vmatpush1.bf16.msra.mxu0 %v2158_v41  ;;  %v10076_v41 = vld [vmem:[#allocation15 + $0xac] ss:$16 sps:$4 sm:$0xff]   ;;  %v10113_v19 = vld [vmem:[#allocation15 + $0x180] ss:$16 sps:$4 sm:$0xff]  }
 0x369   : > { %2020 = vmatprep.subr.bf16.mxu1 %v12454_v40  ;;  %2465 = vmatprep.subr.bf16.mxu0 %v12435_v31 }
 0x36a   : > { %2050 = vmatprep.mubr.bf16.mxu1 %v11601_v36 }
 0x36b   : > { %8817 = vmatmul.mubr.msk.bf16.vlgmr.msra.gmra.mrb[12].mxu0 %vm1275_vm9, %v2128_v27  ;;  %v10064_v27 = vld [vmem:[#allocation15 + $0x6c] ss:$16 sps:$4 sm:$0xff]  }
 0x36c   : > { %2021 = vmatpush1.bf16.msra.mxu1 %v12462_v44  ;;  %2466 = vmatpush1.bf16.msra.mxu0 %v12440_v35 }
 0x36d   : > { %8806 = vmatprep.subr.msk.bf16.mxu1 %vm1279_vm11, %v8805_v45  ;;  %2467 = vmatprep.subr.bf16.mxu0 %v12454_v40  ;;  %v1243_v45 = vrot.slane %v1238_v37, %v12573_v34  ;;  %v10142_v37 = vld [vmem:[#allocation15 + $0x20c] ss:$16 sps:$4 sm:$0xff]  }
 0x36e   : > { %2497 = vmatprep.mubr.bf16.mxu0 %v11601_v36 }
 0x370   : > { %2023 = vmatpush1.bf16.msra.mxu1 %v2013_v50  ;;  %2468 = vmatpush1.bf16.msra.mxu0 %v12462_v44  ;;  %v10077_v50 = vld [vmem:[#allocation15 + $0xc0] ss:$16 sps:$4 sm:$0xff]  }
 0x371   : > { %2308 = vmatprep.subr.bf16.mxu1 %v12435_v31  ;;  %8836 = vmatprep.subr.msk.bf16.mxu0 %vm1279_vm11, %v8835_v51  ;;  %v10080_v51 = vld [vmem:[#allocation15 + $0xc8] ss:$16 sps:$4 sm:$0xff]  }
 0x373   : > { %8807 = vmatmul.mubr.msk.bf16.vlgmr.msra.gmra.mrb[8].mxu1 %vm1275_vm9, %v1983_v58  ;;  %v10085_v58 = vld [vmem:[#allocation15 + $0xe4] ss:$16 sps:$4 sm:$0xff]  }
 0x374   : > { %2309 = vmatpush1.bf16.msra.mxu1 %v12440_v35  ;;  %2470 = vmatpush1.bf16.msra.mxu0 %v2460_v56 }
 0x375   : > { %2310 = vmatprep.subr.bf16.mxu1 %v12454_v40  ;;  %2760 = vmatprep.subr.bf16.mxu0 %v2752_v57 }
 0x376   : > { %2340 = vmatprep.mubr.bf16.mxu1 %v11601_v36 }
 0x377   : > { %8837 = vmatmul.mubr.msk.bf16.vlgmr.msra.gmra.mrb[16].mxu0 %vm1275_vm9, %v2430_v63 }
 0x378   : > { %2311 = vmatpush1.bf16.msra.mxu1 %v12462_v44  ;;  %2761 = vmatpush1.bf16.msra.mxu0 %v2749_v60 }
 0x379   : > { %8826 = vmatprep.subr.msk.bf16.mxu1 %vm1279_vm11, %v8825_v61  ;;  %2792 = vmatprep.mubr.bf16.mxu0 %v11601_v36  ;;  %v10083_v61 = vld [vmem:[#allocation15 + $0xe0] ss:$16 sps:$4 sm:$0xff]  }
 0x37a   : > { %3640 = vmatprep.subr.bf16.mxu0 %v10043_v0  ;;  %v10091_v0 = vld [vmem:[#allocation15 + $0x104] ss:$16 sps:$4 sm:$0xff]  }
 0x37c   : > { %2313 = vmatpush1.bf16.msra.mxu1 %v2303_v2 }
 0x37d   : > { %2622 = vmatprep.subr.bf16.mxu1 %v12435_v31  ;;  %v10055_v31 = vld [vmem:[#allocation15 + $0x44] ss:$16 sps:$4 sm:$0xff]  }
 0x37f   : > { %8827 = vmatmul.mubr.msk.bf16.vlgmr.msra.gmra.mrb[12].mxu1 %vm1275_vm9, %v2273_v5  ;;  %8853 = vmatmul.mubr.msk.bf16.vlgmr.msra.gmra.mrb[20].mxu0 %vm2740_vm14, %v2697_v3 }
 0x380   : > { %2623 = vmatpush1.bf16.msra.mxu1 %v12440_v35  ;;  %2654 = vmatprep.mubr.bf16.mxu1 %v11601_v36  ;;  %v2758_v35 = vand.u32 %v10040_v11, %v12540_v54  ;;  %v10103_v11 = vld [vmem:[#allocation15 + $0x144] ss:$16 sps:$4 sm:$0xff]  }
 0x381   : > { %2624 = vmatprep.subr.bf16.mxu1 %v12454_v40  ;;  %3641 = vmatpush1.bf16.msra.mxu0 %v10041_v4  ;;  %v10061_v40 = vld [vmem:[#allocation15 + $0x64] ss:$16 sps:$4 sm:$0xff]   ;;  %v10092_v4 = vld [vmem:[#allocation15 + $0x108] ss:$16 sps:$4 sm:$0xff]  }
 0x382   : > { %3642 = vmatprep.subr.bf16.mxu0 %v10049_v8  ;;  %v10100_v8 = vld [vmem:[#allocation15 + $0x12c] ss:$16 sps:$4 sm:$0xff]  }
 0x384   : > { %2625 = vmatpush1.bf16.msra.mxu1 %v12462_v44  ;;  %v10059_v44 = vld [vmem:[#allocation15 + $0x60] ss:$16 sps:$4 sm:$0xff]  }
 0x385   : > { %8846 = vmatprep.subr.msk.bf16.mxu1 %vm1279_vm11, %v8845_v9  ;;  %3643 = vmatpush1.bf16.msra.mxu0 %v10047_v12  ;;  %v10095_v9 = vld [vmem:[#allocation15 + $0x120] ss:$16 sps:$4 sm:$0xff]   ;;  %v10106_v12 = vld [vmem:[#allocation15 + $0x14c] ss:$16 sps:$4 sm:$0xff]   ;;  %vm1354_vm11 = vcmask 1041024  }
 0x386   : > { %3644 = vmatprep.subr.bf16.mxu0 %v10055_v31  ;;  %v10101_v31 = vld [vmem:[#allocation15 + $0x140] ss:$16 sps:$4 sm:$0xff]   ;;  %vm12590_vm5 = vmor %vm1355_vm0, %vm1354_vm11 }
 0x388   : > { %2627 = vmatpush1.bf16.msra.mxu1 %v2617_v14  ;;  %v10109_v14 = vld [vmem:[#allocation15 + $0x164] ss:$16 sps:$4 sm:$0xff]  }
 0x389   : > { %2801 = vmatprep.subr.bf16.mxu1 %v2758_v35  ;;  %3645 = vmatpush1.bf16.msra.mxu0 %v10053_v16  ;;  %v10112_v35 = vld [vmem:[#allocation15 + $0x16c] ss:$16 sps:$4 sm:$0xff]   ;;  %v10107_v16 = vld [vmem:[#allocation15 + $0x160] ss:$16 sps:$4 sm:$0xff]  }
 0x38a   : > { %3646 = vmatprep.subr.bf16.mxu0 %v10061_v40  ;;  %v10110_v40 = vld [vmem:[#allocation15 + $0x168] ss:$16 sps:$4 sm:$0xff]  }
 0x38b   : > { %8847 = vmatmul.mubr.msk.bf16.vlgmr.msra.gmra.mrb[16].mxu1 %vm1275_vm9, %v2587_v21  ;;  %v10124_v21 = vld [vmem:[#allocation15 + $0x1ac] ss:$16 sps:$4 sm:$0xff]  }
 0x38c   : > { %2802 = vmatpush1.bf16.msra.mxu1 %v2755_v18  ;;  %2833 = vmatprep.mubr.bf16.mxu1 %v11601_v36  ;;  %v10118_v18 = vld [vmem:[#allocation15 + $0x18c] ss:$16 sps:$4 sm:$0xff]  }
 0x38d   : > { %3722 = vmatprep.subr.bf16.mxu1 %v10046_v20  ;;  %3647 = vmatpush1.bf16.msra.mxu0 %v10059_v44  ;;  %v10116_v20 = vld [vmem:[#allocation15 + $0x188] ss:$16 sps:$4 sm:$0xff]   ;;  %v10121_v44 = vld [vmem:[#allocation15 + $0x1a4] ss:$16 sps:$4 sm:$0xff]  }
 0x38e   : > { %3648 = vmatprep.subr.bf16.mxu0 %v10067_v29  ;;  %v10136_v29 = vld [vmem:[#allocation15 + $0x1ec] ss:$16 sps:$4 sm:$0xff]  }
 0x391   : > { %3649 = vmatpush1.bf16.msra.mxu0 %v10065_v32  ;;  %v10134_v32 = vld [vmem:[#allocation15 + $0x1e8] ss:$16 sps:$4 sm:$0xff]  }
 0x392   : > { %3650 = vmatprep.subr.bf16.mxu0 %v10073_v39  ;;  %v1520_v39 = vld [vmem:[#allocation9] sm:$0x3] }
 0x393   : > { %8854 = vmatmul.mubr.msk.bf16.vlgmr.msra.gmra.mrb[20].mxu1 %vm2740_vm14, %v2697_v3  ;;  %v10089_v3 = vld [vmem:[#allocation15 + $0x100] ss:$16 sps:$4 sm:$0xff]  }
 0x394   : > { %3723 = vmatpush1.bf16.msra.mxu1 %v10044_v22  ;;  %v10119_v22 = vld [vmem:[#allocation15 + $0x1a0] ss:$16 sps:$4 sm:$0xff]  }
 0x395   : > { %3724 = vmatprep.subr.bf16.mxu1 %v10052_v23  ;;  %3651 = vmatpush1.bf16.msra.mxu0 %v10071_v42  ;;  %v10122_v23 = vld [vmem:[#allocation15 + $0x1a8] ss:$16 sps:$4 sm:$0xff]   ;;  %v1529_v42 = vrot.slane %v1520_v39, %v12576_v38 }
 0x396   : > { %3652 = vmatprep.subr.bf16.mxu0 %v10079_v47 }
 0x398   : > { %3725 = vmatpush1.bf16.msra.mxu1 %v10050_v24  ;;  %v10127_v24 = vld [vmem:[#allocation15 + $0x1c4] ss:$16 sps:$4 sm:$0xff]  }
 0x399   : > { %3726 = vmatprep.subr.bf16.mxu1 %v10058_v25  ;;  %3653 = vmatpush1.bf16.msra.mxu0 %v10077_v50  ;;  %v10125_v25 = vld [vmem:[#allocation15 + $0x1c0] ss:$16 sps:$4 sm:$0xff]  }
 0x39a   : > { %3654 = vmatprep.subr.bf16.mxu0 %v10085_v58 }
 0x39c   : > { %3727 = vmatpush1.bf16.msra.mxu1 %v10056_v26  ;;  %v10128_v26 = vld [vmem:[#allocation15 + $0x1c8] ss:$16 sps:$4 sm:$0xff]  }
 0x39d   : > { %3728 = vmatprep.subr.bf16.mxu1 %v10064_v27  ;;  %3655 = vmatpush1.bf16.msra.mxu0 %v10083_v61  ;;  %v10130_v27 = vld [vmem:[#allocation15 + $0x1cc] ss:$16 sps:$4 sm:$0xff]  }
 0x39e   : > { %3656 = vmatprep.subr.bf16.mxu0 %v10091_v0 }
 0x3a0   : > { %3729 = vmatpush1.bf16.msra.mxu1 %v10062_v28  ;;  %v10133_v28 = vld [vmem:[#allocation15 + $0x1e4] ss:$16 sps:$4 sm:$0xff]  }
 0x3a1   : > { %3730 = vmatprep.subr.bf16.mxu1 %v10070_v30  ;;  %3657 = vmatpush1.bf16.msra.mxu0 %v10089_v3  ;;  %v10131_v30 = vld [vmem:[#allocation15 + $0x1e0] ss:$16 sps:$4 sm:$0xff]  }
 0x3a2   : > { %3658 = vmatprep.subr.bf16.mxu0 %v10097_v7 }
 0x3a4   : > { %3731 = vmatpush1.bf16.msra.mxu1 %v10068_v33  ;;  %v10139_v33 = vld [vmem:[#allocation15 + $0x204] ss:$16 sps:$4 sm:$0xff]  }
 0x3a5   : > { %3732 = vmatprep.subr.bf16.mxu1 %v10076_v41  ;;  %3659 = vmatpush1.bf16.msra.mxu0 %v10095_v9  ;;  %v1525_v41 = vrot.slane %v1520_v39, %v12573_v34 }
 0x3a6   : > { %3660 = vmatprep.subr.bf16.mxu0 %v10103_v11 }
 0x3a8   : > { %3733 = vmatpush1.bf16.msra.mxu1 %v10074_v43 }
 0x3a9   : > { %3734 = vmatprep.subr.bf16.mxu1 %v10082_v48  ;;  %3661 = vmatpush1.bf16.msra.mxu0 %v10101_v31 }
 0x3aa   : > { %3662 = vmatprep.subr.bf16.mxu0 %v10109_v14 }
 0x3ac   : > { %3735 = vmatpush1.bf16.msra.mxu1 %v10080_v51 }
 0x3ad   : > { %3736 = vmatprep.subr.bf16.mxu1 %v10088_v59  ;;  %3663 = vmatpush1.bf16.msra.mxu0 %v10107_v16 }
 0x3ae   : > { %3664 = vmatprep.subr.bf16.mxu0 %v10115_v17 }
 0x3b0   : > { %v1320_v49 = vpop.f32.mrb[0].mxu0  ;;  %3737 = vmatpush1.bf16.msra.mxu1 %v10086_v62 }
 0x3b1   : > { %v1321_v52 = vadd.f32 %v1320_v49, %v1243_v45  ;;  %v1322_v53 = vpop.f32.mrb[1].mxu0  ;;  %3738 = vmatprep.subr.bf16.mxu1 %v10094_v1  ;;  %3665 = vmatpush1.bf16.msra.mxu0 %v10113_v19  ;;  %v1375_v49 = vld [vmem:[#allocation9] sm:$0x3] }
 0x3b2   : > { %v1323_v54 = vadd.f32 %v1322_v53, %v1247_v46  ;;  %v1324_v55 = vpop.f32.mrb[2].mxu0  ;;  %3666 = vmatprep.subr.bf16.mxu0 %v10121_v44  ;;  %v1380_v53 = vrot.slane %v1375_v49, %v12573_v34 }
 0x3b3   : > { %v1327_v56 = vmax.f32 %v1321_v52, 0.0  ;;  %v1325_v57 = vpop.f32.mrb[3].mxu0  ;;  %v1384_v55 = vrot.slane %v1375_v49, %v12576_v38 }
 0x3b4   : > { %v1328_v60 = vmax.f32 %v1323_v54, 0.0  ;;  %3739 = vmatpush1.bf16.msra.mxu1 %v10092_v4 }
 0x3b5   : > { %3740 = vmatprep.subr.bf16.mxu1 %v10100_v8  ;;  %3667 = vmatpush1.bf16.msra.mxu0 %v10119_v22 }
 0x3b6   : > { %v8758_v63 = vpack.c.bf16 %v1328_v60, %v1327_v56  ;;  %3668 = vmatprep.subr.bf16.mxu0 %v10127_v24  ;;  %v1810_v56 = vld [vmem:[#allocation9] sm:$0x3] }
 0x3b7   : > { %v1815_v62 = vrot.slane %v1810_v56, %v12573_v34  ;;  %v1819_v4 = vrot.slane %v1810_v56, %v12576_v38 }
 0x3b8   : > { %v1340_v2 = vrot.slane %v8758_v63, %v12410_v15  ;;  %3741 = vmatpush1.bf16.msra.mxu1 %v10098_v10 }
 0x3b9   : > { %3742 = vmatprep.subr.bf16.mxu1 %v10106_v12  ;;  %3669 = vmatpush1.bf16.msra.mxu0 %v10125_v25 }
 0x3ba   : > { %v1347_v5 = vrot.slane %v1340_v2, %v12410_v15  ;;  %3670 = vmatprep.subr.bf16.mxu0 %v10133_v28 }
 0x3bc   : > { %1348 = vrot.lane.b32.xlu0 %v1347_v5, %s11610_s9  ;;  %1358 = vrot.lane.b32.xlu1 %v1347_v5, %s11620_s21 }
 0x3bd   : > { %3743 = vmatpush1.bf16.msra.mxu1 %v10104_v13  ;;  %3671 = vmatpush1.bf16.msra.mxu0 %v10131_v30 }
 0x3be   : > { %3744 = vmatprep.subr.bf16.mxu1 %v10112_v35  ;;  %3681 = vmatprep.subr.bf16.mxu0 %v10139_v33 }
 0x3c1   : > { %3745 = vmatpush1.bf16.msra.mxu1 %v10110_v40 }
 0x3c2   : > { %3746 = vmatprep.subr.bf16.mxu1 %v10118_v18  ;;  %v1665_v18 = vld [vmem:[#allocation9] sm:$0x3] }
 0x3c3   : > { %v1670_v22 = vrot.slane %v1665_v18, %v12573_v34  ;;  %v1674_v24 = vrot.slane %v1665_v18, %v12576_v38  ;;  %v12633_v18 = vld [vmem:[#allocation13] sm:$0xf] }
 0x3c5   : > { %3747 = vmatpush1.bf16.msra.mxu1 %v10116_v20 }
 0x3c6   : > { %3748 = vmatprep.subr.bf16.mxu1 %v10124_v21 }
 0x3c9   : > { %3749 = vmatpush1.bf16.msra.mxu1 %v10122_v23 }
 0x3ca   : > { %3750 = vmatprep.subr.bf16.mxu1 %v10130_v27 }
 0x3cd   : > { %3751 = vmatpush1.bf16.msra.mxu1 %v10128_v26  ;;  %v2100_v26 = vld [vmem:[#allocation9] sm:$0x3] }
 0x3ce   : > { %3752 = vmatprep.subr.bf16.mxu1 %v10136_v29  ;;  %v2109_v39 = vrot.slane %v2100_v26, %v12576_v38 }
 0x3d1   : > { %3753 = vmatpush1.bf16.msra.mxu1 %v10134_v32  ;;  %v2105_v32 = vrot.slane %v2100_v26, %v12573_v34 }
 0x3d2   : > { %3763 = vmatprep.subr.bf16.mxu1 %v10142_v37 }
 0x426   : > { %v1617_v43 = vpop.f32.mrb[4].mxu0 }
 0x427   : > { %v1618_v45 = vadd.f32 %v1617_v43, %v1525_v41  ;;  %v1619_v46 = vpop.f32.mrb[5].mxu0 }
 0x428   : > { %v1620_v47 = vadd.f32 %v1619_v46, %v1529_v42  ;;  %v1621_v48 = vpop.f32.mrb[6].mxu0 }
 0x429   : > { %v1624_v50 = vmax.f32 %v1618_v45, 0.0  ;;  %v1622_v51 = vpop.f32.mrb[7].mxu0 }
 0x42a   : > { %v1625_v52 = vmax.f32 %v1620_v47, 0.0 }
 0x42c   : > { %v8778_v54 = vpack.c.bf16 %v1625_v52, %v1624_v50  ;;  %v1955_v52 = vld [vmem:[#allocation9] sm:$0x3] }
 0x42e   : > { %v1637_v57 = vrot.slane %v8778_v54, %v12410_v15  ;;  %v1472_v58 = vpop.f32.mrb[0].mxu1  ;;  %v1349_v61 = vpop.permute.xlu0 %1348 }
 0x42f   : > { %v1473_v59 = vadd.f32 %v1472_v58, %v1380_v53  ;;  %v1474_v60 = vpop.f32.mrb[1].mxu1  ;;  %v1350_v1 = vrot.slane %v1349_v61, 7  ;;  %v1359_v2 = vpop.permute.xlu1 %1358 }
 0x430   : > { %v1475_v63 = vadd.f32 %v1474_v60, %v1384_v55  ;;  %v1476_v3 = vpop.f32.mrb[2].mxu1  ;;  %v1644_v5 = vrot.slane %v1637_v57, %v12410_v15  ;;  %v1360_v9 = vrot.slane %v1359_v2, 7  ;;  %v1960_v57 = vrot.slane %v1955_v52, %v12573_v34 }
 0x431   : > { %v1479_v7 = vmax.f32 %v1473_v59, 0.0  ;;  %v1477_v10 = vpop.f32.mrb[3].mxu1  ;;  %v1352_v12 = vsel %vm1351_vm3, %v1350_v1, %v1349_v61  ;;  %v1964_v60 = vrot.slane %v1955_v52, %v12576_v38  ;;  %v2390_v61 = vld [vmem:[#allocation9] sm:$0x3] }
 0x432   : > { %v1480_v11 = vmax.f32 %v1475_v63, 0.0  ;;  %v1907_v31 = vpop.f32.mrb[8].mxu0  ;;  %1645 = vrot.lane.b32.xlu1 %v1644_v5, %s11620_s21  ;;  %1357 = vst.msk [vmem:[#allocation3 + $0x1] sm:$0x3] %vm12590_vm5, %v1352_v12  ;;  %v1362_v13 = vsel %vm1361_vm4, %v1360_v9, %v1359_v2  ;;  %v2395_v3 = vrot.slane %v2390_v61, %v12573_v34  ;;  %v2399_v9 = vrot.slane %v2390_v61, %v12576_v38 }
 0x433   : > { %v1908_v14 = vadd.f32 %v1907_v31, %v1815_v62  ;;  %v1909_v35 = vpop.f32.mrb[9].mxu0  ;;  %1368 = vst.msk [vmem:[#allocation3 + $0x5] sm:$0x3] %vm12598_vm6, %v1362_v13 }
 0x434   : > { %v8768_v16 = vpack.c.bf16 %v1480_v11, %v1479_v7  ;;  %v1910_v40 = vadd.f32 %v1909_v35, %v1819_v4  ;;  %v1911_v17 = vpop.f32.mrb[10].mxu0 }
 0x435   : > { %v1914_v19 = vmax.f32 %v1908_v14, 0.0  ;;  %v1912_v20 = vpop.f32.mrb[11].mxu0  ;;  %v2245_v17 = vld [vmem:[#allocation9] sm:$0x3] }
 0x436   : > { %v1492_v44 = vrot.slane %v8768_v16, %v12410_v15  ;;  %v1915_v21 = vmax.f32 %v1910_v40, 0.0  ;;  %v2254_v26 = vrot.slane %v2245_v17, %v12576_v38 }
 0x438   : > { %v8798_v23 = vpack.c.bf16 %v1915_v21, %v1914_v19  ;;  %v1499_v25 = vrot.slane %v1492_v44, %v12410_v15 }
 0x43a   : > { %v1927_v27 = vrot.slane %v8798_v23, %v12410_v15  ;;  %v1762_v28 = vpop.f32.mrb[4].mxu1  ;;  %1500 = vrot.lane.b32.xlu0 %v1499_v25, %s11620_s21  ;;  %1506 = vrot.lane.b32.xlu1 %v1499_v25, %s11610_s9  ;;  %v2707_v23 = vrot.slane %v12633_v18, %v12573_v34 }
 0x43b   : > { %v1763_v29 = vadd.f32 %v1762_v28, %v1670_v22  ;;  %v1764_v30 = vpop.f32.mrb[5].mxu1  ;;  %v2250_v22 = vrot.slane %v2245_v17, %v12573_v34  ;;  %v10157_v17 = vld [vmem:[#allocation15 + $0x264] ss:$16 sps:$4 sm:$0xff]  }
 0x43c   : > { %v1765_v33 = vadd.f32 %v1764_v30, %v1674_v24  ;;  %v1766_v37 = vpop.f32.mrb[6].mxu1  ;;  %v1934_v41 = vrot.slane %v1927_v27, %v12410_v15  ;;  %v2711_v27 = vrot.slane %v12633_v18, %v12576_v38 }
 0x43d   : > { %v1769_v42 = vmax.f32 %v1763_v29, 0.0  ;;  %v1767_v43 = vpop.f32.mrb[7].mxu1 }
 0x43e   : > { %v1770_v45 = vmax.f32 %v1765_v33, 0.0  ;;  %v2197_v46 = vpop.f32.mrb[12].mxu0  ;;  %1651 = vrot.lane.b32.xlu0 %v1644_v5, %s11610_s9  ;;  %1935 = vrot.lane.b32.xlu1 %v1934_v41, %s11620_s21 }
 0x43f   : > { %v2198_v47 = vadd.f32 %v2197_v46, %v2105_v32  ;;  %v2199_v48 = vpop.f32.mrb[13].mxu0 }
 0x440   : > { %v8788_v49 = vpack.c.bf16 %v1770_v45, %v1769_v42  ;;  %v2200_v50 = vadd.f32 %v2199_v48, %v2109_v39  ;;  %v2201_v51 = vpop.f32.mrb[14].mxu0 }
 0x441   : > { %v2204_v53 = vmax.f32 %v2198_v47, 0.0  ;;  %v2202_v54 = vpop.f32.mrb[15].mxu0 }
 0x442   : > { %v1782_v55 = vrot.slane %v8788_v49, %v12410_v15  ;;  %v2205_v56 = vmax.f32 %v2200_v50, 0.0 }
 0x444   : > { %v8818_v58 = vpack.c.bf16 %v2205_v56, %v2204_v53  ;;  %v1789_v59 = vrot.slane %v1782_v55, %v12410_v15  ;;  %v10137_v55 = vld [vmem:[#allocation15 + $0x200] ss:$16 sps:$4 sm:$0xff]   ;;  %v10140_v56 = vld [vmem:[#allocation15 + $0x208] ss:$16 sps:$4 sm:$0xff]  }
 0x446   : > { %v2217_v62 = vrot.slane %v8818_v58, %v12410_v15  ;;  %v2052_v63 = vpop.f32.mrb[8].mxu1  ;;  %1790 = vrot.lane.b32.xlu0 %v1789_v59, %s11620_s21  ;;  %1796 = vrot.lane.b32.xlu1 %v1789_v59, %s11610_s9  ;;  %v10145_v59 = vld [vmem:[#allocation15 + $0x224] ss:$16 sps:$4 sm:$0xff]  }
 0x447   : > { %v2053_v1 = vadd.f32 %v2052_v63, %v1960_v57  ;;  %v2054_v2 = vpop.f32.mrb[9].mxu1  ;;  %v2547_v57 = vld [vmem:[#allocation9] sm:$0x3]  ;;  %v10143_v63 = vld [vmem:[#allocation15 + $0x220] ss:$16 sps:$4 sm:$0xff]  }
 0x448   : > { %v2055_v4 = vadd.f32 %v2054_v2, %v1964_v60  ;;  %v2056_v5 = vpop.f32.mrb[10].mxu1  ;;  %v2224_v7 = vrot.slane %v2217_v62, %v12410_v15  ;;  %v10148_v60 = vld [vmem:[#allocation15 + $0x22c] ss:$16 sps:$4 sm:$0xff]   ;;  %v2552_v62 = vrot.slane %v2547_v57, %v12573_v34 }
 0x449   : > { %v2059_v10 = vmax.f32 %v2053_v1, 0.0  ;;  %v2057_v11 = vpop.f32.mrb[11].mxu1  ;;  %v10146_v1 = vld [vmem:[#allocation15 + $0x228] ss:$16 sps:$4 sm:$0xff]   ;;  %v10154_v5 = vld [vmem:[#allocation15 + $0x24c] ss:$16 sps:$4 sm:$0xff]  }
 0x44a   : > { %v2060_v12 = vmax.f32 %v2055_v4, 0.0  ;;  %v2499_v31 = vpop.f32.mrb[16].mxu0  ;;  %1941 = vrot.lane.b32.xlu0 %v1934_v41, %s11610_s9  ;;  %2225 = vrot.lane.b32.xlu1 %v2224_v7, %s11620_s21  ;;  %v10151_v4 = vld [vmem:[#allocation15 + $0x244] ss:$16 sps:$4 sm:$0xff]   ;;  %v12656_v11 = vsub.s32 2, %v12398_v6 }
 0x44b   : > { %v2500_v13 = vadd.f32 %v2499_v31, %v2395_v3  ;;  %v2501_v14 = vpop.f32.mrb[17].mxu0  ;;  %v2556_v3 = vrot.slane %v2547_v57, %v12576_v38  ;;  %v10190_v57 = vld [vmem:[#allocation15 + $0x30c] ss:$16 sps:$4 sm:$0xff]  }
 0x44c   : > { %v8808_v35 = vpack.c.bf16 %v2060_v12, %v2059_v10  ;;  %v2502_v16 = vadd.f32 %v2501_v14, %v2399_v9  ;;  %v2503_v40 = vpop.f32.mrb[18].mxu0  ;;  %v10152_v14 = vld [vmem:[#allocation15 + $0x248] ss:$16 sps:$4 sm:$0xff]  }
 0x44d   : > { %v2506_v19 = vmax.f32 %v2500_v13, 0.0  ;;  %v2504_v20 = vpop.f32.mrb[19].mxu0  ;;  %v10149_v13 = vld [vmem:[#allocation15 + $0x240] ss:$16 sps:$4 sm:$0xff]  }
 0x44e   : > { %v2072_v44 = vrot.slane %v8808_v35, %v12410_v15  ;;  %v2507_v21 = vmax.f32 %v2502_v16, 0.0  ;;  %v12659_v35 = vsub.s32 3, %v12398_v6 }
 0x450   : > { %v8838_v24 = vpack.c.bf16 %v2507_v21, %v2506_v19  ;;  %v2079_v25 = vrot.slane %v2072_v44, %v12410_v15  ;;  %v10160_v19 = vld [vmem:[#allocation15 + $0x26c] ss:$16 sps:$4 sm:$0xff]   ;;  %v2715_v44 = vrot.slane %v12633_v18, %v12656_v11 }
 0x452   : > { %v2519_v28 = vrot.slane %v8838_v24, %v12410_v15  ;;  %v2342_v29 = vpop.f32.mrb[12].mxu1  ;;  %v2794_v30 = vpop.f32.mrb[20].mxu0  ;;  %2080 = vrot.lane.b32.xlu0 %v2079_v25, %s11620_s21  ;;  %2086 = vrot.lane.b32.xlu1 %v2079_v25, %s11610_s9  ;;  %v2719_v24 = vrot.slane %v12633_v18, %v12659_v35  ;;  %v10163_v25 = vld [vmem:[#allocation15 + $0x284] ss:$16 sps:$4 sm:$0xff]  }
 0x453   : > { %v2343_v32 = vadd.f32 %v2342_v29, %v2250_v22  ;;  %v2795_v33 = vadd.f32 %v2794_v30, %v2707_v23  ;;  %v2344_v37 = vpop.f32.mrb[13].mxu1  ;;  %v2796_v39 = vpop.f32.mrb[21].mxu0  ;;  %v10155_v22 = vld [vmem:[#allocation15 + $0x260] ss:$16 sps:$4 sm:$0xff]   ;;  %v10158_v23 = vld [vmem:[#allocation15 + $0x268] ss:$16 sps:$4 sm:$0xff]  }
 0x454   : > { %v2345_v41 = vadd.f32 %v2344_v37, %v2254_v26  ;;  %v2797_v42 = vadd.f32 %v2796_v39, %v2711_v27  ;;  %v2346_v43 = vpop.f32.mrb[14].mxu1  ;;  %v2798_v45 = vpop.f32.mrb[22].mxu0  ;;  %v2526_v46 = vrot.slane %v2519_v28, %v12410_v15  ;;  %v10166_v26 = vld [vmem:[#allocation15 + $0x28c] ss:$16 sps:$4 sm:$0xff]   ;;  %v10169_v18 = vld [vmem:[#allocation15 + $0x2a4] ss:$16 sps:$4 sm:$0xff]  }
 0x455   : > { %v2349_v47 = vmax.f32 %v2343_v32, 0.0  ;;  %v2842_v48 = vmax.f32 %v2795_v33, 0.0  ;;  %v2347_v49 = vpop.f32.mrb[15].mxu1  ;;  %v2799_v50 = vpop.f32.mrb[23].mxu0  ;;  %v10161_v32 = vld [vmem:[#allocation15 + $0x280] ss:$16 sps:$4 sm:$0xff]  }
 0x456   : > { %v2350_v51 = vmax.f32 %v2345_v41, 0.0  ;;  %v2843_v52 = vmax.f32 %v2797_v42, 0.0  ;;  %2231 = vrot.lane.b32.xlu0 %v2224_v7, %s11610_s9  ;;  %2527 = vrot.lane.b32.xlu1 %v2526_v46, %s11620_s21  ;;  %v10164_v33 = vld [vmem:[#allocation15 + $0x288] ss:$16 sps:$4 sm:$0xff]   ;;  %v10172_v42 = vld [vmem:[#allocation15 + $0x2ac] ss:$16 sps:$4 sm:$0xff]  }
 0x457   : > { %v2846_v58 = vpack.c.bf16 %v2842_v48, %v2842_v48  ;;  %v10178_v49 = vld [vmem:[#allocation15 + $0x2cc] ss:$16 sps:$4 sm:$0xff]   ;;  %v10173_v50 = vld [vmem:[#allocation15 + $0x2c0] ss:$16 sps:$4 sm:$0xff]  }
 0x458   : > { %v8828_v53 = vpack.c.bf16 %v2350_v51, %v2349_v47  ;;  %v2847_v54 = vpack.c.bf16 %v2843_v52, %v2843_v52  ;;  %v10170_v47 = vld [vmem:[#allocation15 + $0x2a8] ss:$16 sps:$4 sm:$0xff]   ;;  %v10181_v52 = vld [vmem:[#allocation15 + $0x2e4] ss:$16 sps:$4 sm:$0xff]  }
 0x459   : > { %v10176_v51 = vld [vmem:[#allocation15 + $0x2c8] ss:$16 sps:$4 sm:$0xff]  }
 0x45a   : > { %v2362_v61 = vrot.slane %v8828_v53, %v12410_v15  ;;  %3672 = vmatprep.mubr.bf16.mxu0 %v2847_v54  ;;  %3754 = vmatprep.mubr.bf16.mxu1 %v2847_v54  ;;  %v10184_v53 = vld [vmem:[#allocation15 + $0x2ec] ss:$16 sps:$4 sm:$0xff]   ;;  %v10179_v54 = vld [vmem:[#allocation15 + $0x2e0] ss:$16 sps:$4 sm:$0xff]  }
 0x45b   : > { %3673 = vmatmul.mubr.bf16.vlgmr.msra.gmra.mrb[24].mxu0 %v2846_v58  ;;  %3755 = vmatmul.mubr.bf16.vlgmr.msra.gmra.mrb[24].mxu1 %v2846_v58  ;;  %v10185_v58 = vld [vmem:[#allocation15 + $0x300] ss:$16 sps:$4 sm:$0xff]  }
 0x45c   : > { %3682 = vmatpush1.bf16.msra.mxu0 %v10137_v55  ;;  %3764 = vmatpush1.bf16.msra.mxu1 %v10140_v56  ;;  %v2369_v2 = vrot.slane %v2362_v61, %v12410_v15  ;;  %v10182_v55 = vld [vmem:[#allocation15 + $0x2e8] ss:$16 sps:$4 sm:$0xff]   ;;  %v10187_v56 = vld [vmem:[#allocation15 + $0x304] ss:$16 sps:$4 sm:$0xff]   ;;  %v10196_v61 = vld [vmem:[#allocation15 + $0x32c] ss:$16 sps:$4 sm:$0xff]  }
 0x45d   : > { %3683 = vmatprep.subr.bf16.mxu0 %v10145_v59  ;;  %3765 = vmatprep.subr.bf16.mxu1 %v10148_v60  ;;  %v10188_v59 = vld [vmem:[#allocation15 + $0x308] ss:$16 sps:$4 sm:$0xff]   ;;  %v10193_v60 = vld [vmem:[#allocation15 + $0x324] ss:$16 sps:$4 sm:$0xff]  }
 0x45e   : > { %v2656_v7 = vpop.f32.mrb[16].mxu1  ;;  %2370 = vrot.lane.b32.xlu0 %v2369_v2, %s11620_s21  ;;  %2376 = vrot.lane.b32.xlu1 %v2369_v2, %s11610_s9  ;;  %v10202_v2 = vld [vmem:[#allocation15 + $0x34c] ss:$16 sps:$4 sm:$0xff]  }
 0x45f   : > { %v2657_v9 = vadd.f32 %v2656_v7, %v2552_v62  ;;  %v2658_v10 = vpop.f32.mrb[17].mxu1  ;;  %v10191_v62 = vld [vmem:[#allocation15 + $0x320] ss:$16 sps:$4 sm:$0xff]   ;;  %v10208_v7 = vld [vmem:[#allocation15 + $0x36c] ss:$16 sps:$4 sm:$0xff]  }
 0x460   : > { %v2659_v12 = vadd.f32 %v2658_v10, %v2556_v3  ;;  %3684 = vmatpush1.bf16.msra.mxu0 %v10143_v63  ;;  %3766 = vmatpush1.bf16.msra.mxu1 %v10146_v1  ;;  %v2660_v31 = vpop.f32.mrb[18].mxu1  ;;  %v10194_v63 = vld [vmem:[#allocation15 + $0x328] ss:$16 sps:$4 sm:$0xff]   ;;  %v10199_v1 = vld [vmem:[#allocation15 + $0x344] ss:$16 sps:$4 sm:$0xff]  }
 0x461   : > { %v2663_v16 = vmax.f32 %v2657_v9, 0.0  ;;  %v2661_v40 = vpop.f32.mrb[19].mxu1  ;;  %3685 = vmatprep.subr.bf16.mxu0 %v10151_v4  ;;  %3767 = vmatprep.subr.bf16.mxu1 %v10154_v5  ;;  %v10197_v3 = vld [vmem:[#allocation15 + $0x340] ss:$16 sps:$4 sm:$0xff]   ;;  %v10200_v4 = vld [vmem:[#allocation15 + $0x348] ss:$16 sps:$4 sm:$0xff]  }
 0x462   : > { %v2664_v20 = vmax.f32 %v2659_v12, 0.0  ;;  %2533 = vrot.lane.b32.xlu0 %v2526_v46, %s11610_s9  ;;  %v10167_v46 = vld [vmem:[#allocation15 + $0x2a0] ss:$16 sps:$4 sm:$0xff]   ;;  %v10205_v5 = vld [vmem:[#allocation15 + $0x364] ss:$16 sps:$4 sm:$0xff]  }
 0x463   : > { %v10203_v9 = vld [vmem:[#allocation15 + $0x360] ss:$16 sps:$4 sm:$0xff]   ;;  %v10206_v10 = vld [vmem:[#allocation15 + $0x368] ss:$16 sps:$4 sm:$0xff]   ;;  %v10211_v12 = vld [vmem:[#allocation15 + $0x384] ss:$16 sps:$4 sm:$0xff]  }
 0x464   : > { %v8848_v21 = vpack.c.bf16 %v2664_v20, %v2663_v16  ;;  %3686 = vmatpush1.bf16.msra.mxu0 %v10149_v13  ;;  %3768 = vmatpush1.bf16.msra.mxu1 %v10152_v14  ;;  %v10214_v31 = vld [vmem:[#allocation15 + $0x38c] ss:$16 sps:$4 sm:$0xff]   ;;  %v10209_v13 = vld [vmem:[#allocation15 + $0x380] ss:$16 sps:$4 sm:$0xff]   ;;  %v10212_v14 = vld [vmem:[#allocation15 + $0x388] ss:$16 sps:$4 sm:$0xff]  }
 0x465   : > { %3687 = vmatprep.subr.bf16.mxu0 %v10157_v17  ;;  %3769 = vmatprep.subr.bf16.mxu1 %v10160_v19  ;;  %v10217_v16 = vld [vmem:[#allocation15 + $0x3a4] ss:$16 sps:$4 sm:$0xff]   ;;  %v10220_v40 = vld [vmem:[#allocation15 + $0x3ac] ss:$16 sps:$4 sm:$0xff]   ;;  %v10215_v17 = vld [vmem:[#allocation15 + $0x3a0] ss:$16 sps:$4 sm:$0xff]  }
 0x466   : > { %v2676_v27 = vrot.slane %v8848_v21, %v12410_v15  ;;  %v2835_v28 = vpop.f32.mrb[20].mxu1  ;;  %v10218_v19 = vld [vmem:[#allocation15 + $0x3a8] ss:$16 sps:$4 sm:$0xff]   ;;  %v10223_v20 = vld [vmem:[#allocation15 + $0x3c4] ss:$16 sps:$4 sm:$0xff]  }
 0x467   : > { %v12667_v29 = vadd.f32 %v2835_v28, %v2715_v44  ;;  %v2837_v30 = vpop.f32.mrb[21].mxu1  ;;  %v10226_v44 = vld [vmem:[#allocation15 + $0x3cc] ss:$16 sps:$4 sm:$0xff]   ;;  %v10221_v21 = vld [vmem:[#allocation15 + $0x3c0] ss:$16 sps:$4 sm:$0xff]  }
 0x468   : > { %3688 = vmatpush1.bf16.msra.mxu0 %v10155_v22  ;;  %3770 = vmatpush1.bf16.msra.mxu1 %v10158_v23  ;;  %v2683_v37 = vrot.slane %v2676_v27, %v12410_v15  ;;  %v2838_v39 = vadd.f32 %v2837_v30, %v2719_v24  ;;  %v2839_v41 = vpop.f32.mrb[22].mxu1  ;;  %v10175_v15 = vld [vmem:[#allocation15 + $0x2c4] ss:$16 sps:$4 sm:$0xff]   ;;  %v10224_v22 = vld [vmem:[#allocation15 + $0x3c8] ss:$16 sps:$4 sm:$0xff]  }
 0x469   : > { %3689 = vmatprep.subr.bf16.mxu0 %v10163_v25  ;;  %3771 = vmatprep.subr.bf16.mxu1 %v10166_v26  ;;  %v2840_v43 = vpop.f32.mrb[23].mxu1  ;;  %v10229_v23 = vld [vmem:[#allocation15 + $0x3e4] ss:$16 sps:$4 sm:$0xff]   ;;  %v10232_v24 = vld [vmem:[#allocation15 + $0x3ec] ss:$16 sps:$4 sm:$0xff]   ;;  %v2844_v27 = vmax.f32 %v12667_v29, 0.0 }
 0x46a   : > { %2690 = vrot.lane.b32.xlu0 %v2683_v37, %s11610_s9  ;;  %2684 = vrot.lane.b32.xlu1 %v2683_v37, %s11620_s21  ;;  %v2845_v45 = vmax.f32 %v2838_v39, 0.0  ;;  %v10227_v25 = vld [vmem:[#allocation15 + $0x3e0] ss:$16 sps:$4 sm:$0xff]   ;;  %v10230_v26 = vld [vmem:[#allocation15 + $0x3e8] ss:$16 sps:$4 sm:$0xff]   ;;  %s14213_s9 = sld [smem:[#allocation58_spill]] }
 0x46c   : > { %3690 = vmatpush1.bf16.msra.mxu0 %v10161_v32  ;;  %3772 = vmatpush1.bf16.msra.mxu1 %v10164_v33  ;;  %v2849_v48 = vpack.c.bf16 %v2845_v45, %v2845_v45  ;;  %v2848_v33 = vpack.c.bf16 %v2844_v27, %v2844_v27 }
 0x46d   : > { %3691 = vmatprep.subr.bf16.mxu0 %v10169_v18  ;;  %3773 = vmatprep.subr.bf16.mxu1 %v10172_v42 }
 0x46e   : > { %3713 = vmatprep.mubr.bf16.mxu0 %v2849_v48  ;;  %3795 = vmatprep.mubr.bf16.mxu1 %v2849_v48 }
 0x470   : > { %3692 = vmatpush1.bf16.msra.mxu0 %v10167_v46  ;;  %3774 = vmatpush1.bf16.msra.mxu1 %v10170_v47  ;;  %v10233_v28 = vld [vmem:[%s14213_s9 + $0x40] sm:$0xff]   ;;  %v10237_v37 = vld [vmem:[%s14213_s9 + $0x48] sm:$0xff]   ;;  %v10241_v42 = vld [vmem:[%s14213_s9 + $0x50] sm:$0xff]  }
 0x471   : > { %3693 = vmatprep.subr.bf16.mxu0 %v10175_v15  ;;  %3775 = vmatprep.subr.bf16.mxu1 %v10178_v49  ;;  %v10234_v30 = vld [vmem:[%s14213_s9 + $0xc0] sm:$0xff]   ;;  %v10238_v39 = vld [vmem:[%s14213_s9 + $0xc8] sm:$0xff]   ;;  %v10242_v43 = vld [vmem:[%s14213_s9 + $0xd0] sm:$0xff]  }
 0x472   : > { %v10235_v32 = vld [vmem:[%s14213_s9] sm:$0xff]   ;;  %v10239_v41 = vld [vmem:[%s14213_s9 + $0x8] sm:$0xff]   ;;  %v10243_v45 = vld [vmem:[%s14213_s9 + $0x10] sm:$0xff]  }
 0x473   : > { %v10236_v29 = vld [vmem:[%s14213_s9 + $0x80] sm:$0xff]   ;;  %v10240_v18 = vld [vmem:[%s14213_s9 + $0x88] sm:$0xff]   ;;  %v10244_v46 = vld [vmem:[%s14213_s9 + $0x90] sm:$0xff]  }
 0x474   : > { %3694 = vmatpush1.bf16.msra.mxu0 %v10173_v50  ;;  %3776 = vmatpush1.bf16.msra.mxu1 %v10176_v51  ;;  %v10245_v47 = vld [vmem:[%s14213_s9 + $0x58] sm:$0xff]   ;;  %v10260_v0 = vld [vmem:[%s14213_s9 + $0xb0] sm:$0xff]  }
 0x475   : > { %3695 = vmatprep.subr.bf16.mxu0 %v10181_v52  ;;  %3777 = vmatprep.subr.bf16.mxu1 %v10184_v53  ;;  %v10246_v48 = vld [vmem:[%s14213_s9 + $0xd8] sm:$0xff]   ;;  %v10249_v52 = vld [vmem:[%s14213_s9 + $0x60] sm:$0xff]  }
 0x476   : > { %v10247_v49 = vld [vmem:[%s14213_s9 + $0x18] sm:$0xff]   ;;  %v10250_v53 = vld [vmem:[%s14213_s9 + $0xe0] sm:$0xff]  }
 0x477   : > { %v10248_v50 = vld [vmem:[%s14213_s9 + $0x98] sm:$0xff]  }
 0x478   : > { %3696 = vmatpush1.bf16.msra.mxu0 %v10179_v54  ;;  %3778 = vmatpush1.bf16.msra.mxu1 %v10182_v55  ;;  %v10251_v55 = vld [vmem:[%s14213_s9 + $0x20] sm:$0xff]   ;;  %v10261_v8 = vld [vmem:[%s14213_s9 + $0x78] sm:$0xff]  }
 0x479   : > { %3697 = vmatprep.subr.bf16.mxu0 %v10187_v56  ;;  %3779 = vmatprep.subr.bf16.mxu1 %v10190_v57  ;;  %v10252_v56 = vld [vmem:[%s14213_s9 + $0xa0] sm:$0xff]   ;;  %v10253_v57 = vld [vmem:[%s14213_s9 + $0x68] sm:$0xff]  }
 0x47c   : > { %3698 = vmatpush1.bf16.msra.mxu0 %v10185_v58  ;;  %3780 = vmatpush1.bf16.msra.mxu1 %v10188_v59  ;;  %v10254_v58 = vld [vmem:[%s14213_s9 + $0xe8] sm:$0xff]  }
 0x47d   : > { %3699 = vmatprep.subr.bf16.mxu0 %v10193_v60  ;;  %3781 = vmatprep.subr.bf16.mxu1 %v10196_v61  ;;  %v10255_v61 = vld [vmem:[%s14213_s9 + $0x28] sm:$0xff]  }
 0x480   : > { %3700 = vmatpush1.bf16.msra.mxu0 %v10191_v62  ;;  %3782 = vmatpush1.bf16.msra.mxu1 %v10194_v63  ;;  %v10256_v62 = vld [vmem:[%s14213_s9 + $0xa8] sm:$0xff]  }
 0x481   : > { %3701 = vmatprep.subr.bf16.mxu0 %v10199_v1  ;;  %3783 = vmatprep.subr.bf16.mxu1 %v10202_v2 }
 0x484   : > { %3702 = vmatpush1.bf16.msra.mxu0 %v10197_v3  ;;  %3784 = vmatpush1.bf16.msra.mxu1 %v10200_v4 }
 0x485   : > { %3703 = vmatprep.subr.bf16.mxu0 %v10205_v5  ;;  %3785 = vmatprep.subr.bf16.mxu1 %v10208_v7 }
 0x488   : > { %3704 = vmatpush1.bf16.msra.mxu0 %v10203_v9  ;;  %3786 = vmatpush1.bf16.msra.mxu1 %v10206_v10 }
 0x489   : > { %3705 = vmatprep.subr.bf16.mxu0 %v10211_v12  ;;  %3787 = vmatprep.subr.bf16.mxu1 %v10214_v31 }
 0x48c   : > { %3706 = vmatpush1.bf16.msra.mxu0 %v10209_v13  ;;  %3788 = vmatpush1.bf16.msra.mxu1 %v10212_v14 }
 0x48d   : > { %3707 = vmatprep.subr.bf16.mxu0 %v10217_v16  ;;  %3789 = vmatprep.subr.bf16.mxu1 %v10220_v40 }
 0x490   : > { %3708 = vmatpush1.bf16.msra.mxu0 %v10215_v17  ;;  %3790 = vmatpush1.bf16.msra.mxu1 %v10218_v19 }
 0x491   : > { %3709 = vmatprep.subr.bf16.mxu0 %v10223_v20  ;;  %3791 = vmatprep.subr.bf16.mxu1 %v10226_v44 }
 0x494   : > { %3710 = vmatpush1.bf16.msra.mxu0 %v10221_v21  ;;  %3792 = vmatpush1.bf16.msra.mxu1 %v10224_v22 }
 0x495   : > { %3711 = vmatprep.subr.bf16.mxu0 %v10229_v23  ;;  %3793 = vmatprep.subr.bf16.mxu1 %v10232_v24 }
 0x498   : > { %3712 = vmatpush1.bf16.msra.mxu0 %v10227_v25  ;;  %3794 = vmatpush1.bf16.msra.mxu1 %v10230_v26 }
 0x499   : > { %9485 = vmatprep.subr.bf16.mxu0 %v10233_v28  ;;  %9507 = vmatprep.subr.bf16.mxu1 %v10234_v30 }
 0x49b   : > { %3714 = vmatmul.mubr.bf16.vlgmr.msra.gmra.mrb[24].mxu0 %v2848_v33  ;;  %3796 = vmatmul.mubr.bf16.vlgmr.msra.gmra.mrb[24].mxu1 %v2848_v33 }
 0x49c   : > { %9486 = vmatpush3.bf16.msra.mxu0 %v10235_v32  ;;  %9508 = vmatpush3.bf16.msra.mxu1 %v10236_v29 }
 0x49d   : > { %9487 = vmatprep.subr.bf16.mxu0 %v10237_v37  ;;  %9509 = vmatprep.subr.bf16.mxu1 %v10238_v39 }
 0x4a0   : > { %9488 = vmatpush3.bf16.msra.mxu0 %v10239_v41  ;;  %9510 = vmatpush3.bf16.msra.mxu1 %v10240_v18 }
 0x4a1   : > { %9489 = vmatprep.subr.bf16.mxu0 %v10241_v42  ;;  %9511 = vmatprep.subr.bf16.mxu1 %v10242_v43 }
 0x4a4   : > { %v1646_v15 = vpop.permute.xlu1 %1645  ;;  %9490 = vmatpush3.bf16.msra.mxu0 %v10243_v45  ;;  %9512 = vmatpush3.bf16.msra.mxu1 %v10244_v46 }
 0x4a5   : > { %v1647_v51 = vrot.slane %v1646_v15, 7  ;;  %9491 = vmatprep.subr.bf16.mxu0 %v10245_v47  ;;  %9513 = vmatprep.subr.bf16.mxu1 %v10246_v48 }
 0x4a7   : > { %v1648_v54 = vsel %vm1361_vm4, %v1647_v51, %v1646_v15 }
 0x4a8   : > { %1650 = vst.msk [vmem:[#allocation3 + $0x8] sm:$0x3] %vm12598_vm6, %v1648_v54  ;;  %1658 = vst.msk [vmem:[#allocation3 + $0xf] sm:$0x3] %vm12598_vm6, %v1648_v54  ;;  %9492 = vmatpush3.bf16.msra.mxu0 %v10247_v49  ;;  %9514 = vmatpush3.bf16.msra.mxu1 %v10248_v50 }
 0x4a9   : > { %9493 = vmatprep.subr.bf16.mxu0 %v10249_v52  ;;  %9515 = vmatprep.subr.bf16.mxu1 %v10250_v53 }
 0x4ac   : > { %v1501_v59 = vpop.permute.xlu0 %1500  ;;  %v1507_v60 = vpop.permute.xlu1 %1506  ;;  %9494 = vmatpush3.bf16.msra.mxu0 %v10251_v55  ;;  %9516 = vmatpush3.bf16.msra.mxu1 %v10252_v56  ;;  %v10257_v56 = vld [vmem:[%s14213_s9 + $0x70] sm:$0xff]  }
 0x4ad   : > { %v1502_v63 = vrot.slane %v1501_v59, 7  ;;  %v1508_v1 = vrot.slane %v1507_v60, 7  ;;  %9495 = vmatprep.subr.bf16.mxu0 %v10253_v57  ;;  %9517 = vmatprep.subr.bf16.mxu1 %v10254_v58  ;;  %v10258_v57 = vld [vmem:[%s14213_s9 + $0xf0] sm:$0xff]  }
 0x4ae   : > { %v10259_v58 = vld [vmem:[%s14213_s9 + $0x30] sm:$0xff]  }
 0x4af   : > { %v1503_v2 = vsel %vm1361_vm4, %v1502_v63, %v1501_v59  ;;  %v1509_v3 = vsel %vm1351_vm3, %v1508_v1, %v1507_v60  ;;  %v10262_v59 = vld [vmem:[%s14213_s9 + $0xf8] sm:$0xff]   ;;  %v10270_v63 = vld [vmem:[%s12350_s15 + $0xc] ss:$16 sps:$4 sm:$0xff]  }
 0x4b0   : > { %1505 = vst.msk [vmem:[#allocation3 + $0x3] sm:$0x3] %vm12598_vm6, %v1503_v2  ;;  %1513 = vst.msk [vmem:[#allocation3 + $0xa] sm:$0x3] %vm12598_vm6, %v1503_v2  ;;  %v1652_v4 = vpop.permute.xlu0 %1651  ;;  %v1936_v5 = vpop.permute.xlu1 %1935  ;;  %9496 = vmatpush3.bf16.msra.mxu0 %v10255_v61  ;;  %9518 = vmatpush3.bf16.msra.mxu1 %v10256_v62  ;;  %v10263_v60 = vld [vmem:[%s14213_s9 + $0x38] sm:$0xff]  }
 0x4b1   : > { %1511 = vst.msk [vmem:[#allocation3 + $0x6] sm:$0x3] %vm12590_vm5, %v1509_v3  ;;  %v1653_v7 = vrot.slane %v1652_v4, 7  ;;  %v1937_v9 = vrot.slane %v1936_v5, 7  ;;  %9497 = vmatprep.subr.bf16.mxu0 %v10257_v56  ;;  %9519 = vmatprep.subr.bf16.mxu1 %v10258_v57  ;;  %v10264_v61 = vld [vmem:[%s14213_s9 + $0xb8] sm:$0xff]  }
 0x4b2   : > { %v10267_v62 = vld [vmem:[%s12350_s15 + $0x4] ss:$16 sps:$4 sm:$0xff]   ;;  %v2978_v1 = vld [vmem:[#allocation16] sm:$0xf] }
 0x4b3   : > { %v1654_v10 = vsel %vm1351_vm3, %v1653_v7, %v1652_v4  ;;  %v1938_v12 = vsel %vm1361_vm4, %v1937_v9, %v1936_v5  ;;  %v2983_v2 = vrot.slane %v2978_v1, %v12573_v34  ;;  %v2991_v3 = vrot.slane %v2978_v1, %v12656_v11 }
 0x4b4   : > { %1656 = vst.msk [vmem:[#allocation3 + $0xb] sm:$0x3] %vm12590_vm5, %v1654_v10  ;;  %9498 = vmatpush3.bf16.msra.mxu0 %v10259_v58  ;;  %9520 = vmatpush3.bf16.msra.mxu1 %v10260_v0  ;;  %v2987_v4 = vrot.slane %v2978_v1, %v12576_v38  ;;  %v2995_v5 = vrot.slane %v2978_v1, %v12659_v35 }
 0x4b5   : > { %1940 = vst.msk [vmem:[#allocation3 + $0x12] sm:$0x3] %vm12598_vm6, %v1938_v12  ;;  %1948 = vst.msk [vmem:[#allocation3 + $0x19] sm:$0x3] %vm12598_vm6, %v1938_v12  ;;  %9499 = vmatprep.subr.bf16.mxu0 %v10261_v8  ;;  %9521 = vmatprep.subr.bf16.mxu1 %v10262_v59  ;;  %v4173_v59 = vld [vmem:[%s12357_s23] sm:$0xf] }
 0x4b6   : > { %v4182_v1 = vrot.slane %v4173_v59, %v12576_v38 }
 0x4b8   : > { %v1791_v31 = vpop.permute.xlu0 %1790  ;;  %v1797_v13 = vpop.permute.xlu1 %1796  ;;  %9500 = vmatpush3.bf16.msra.mxu0 %v10263_v60  ;;  %9522 = vmatpush3.bf16.msra.mxu1 %v10264_v61  ;;  %v11621_v60 = vmov 1983009808  }
 0x4b9   : > { %v1792_v14 = vrot.slane %v1791_v31, 7  ;;  %v1798_v16 = vrot.slane %v1797_v13, 7  ;;  %4279 = vmatprep.subr.bf16.mxu0 %v10267_v62  ;;  %4320 = vmatprep.subr.bf16.mxu1 %v10270_v63  ;;  %v4368_v61 = vunpack.c.l.s4 %v11621_v60  ;;  %v4178_v62 = vrot.slane %v4173_v59, %v12573_v34 }
 0x4ba   : > { %v4186_v63 = vrot.slane %v4173_v59, %v12656_v11 }
 0x4bb   : > { %v1793_v40 = vsel %vm1361_vm4, %v1792_v14, %v1791_v31  ;;  %v1799_v17 = vsel %vm1351_vm3, %v1798_v16, %v1797_v13 }
 0x4bc   : > { %1795 = vst.msk [vmem:[#allocation3 + $0xd] sm:$0x3] %vm12598_vm6, %v1793_v40  ;;  %1803 = vst.msk [vmem:[#allocation3 + $0x14] sm:$0x3] %vm12598_vm6, %v1793_v40  ;;  %v1942_v19 = vpop.permute.xlu0 %1941  ;;  %v2226_v20 = vpop.permute.xlu1 %2225 }
 0x4bd   : > { %1801 = vst.msk [vmem:[#allocation3 + $0x10] sm:$0x3] %vm12590_vm5, %v1799_v17  ;;  %v1943_v44 = vrot.slane %v1942_v19, 7  ;;  %v2227_v21 = vrot.slane %v2226_v20, 7 }
 0x4bf   : > { %v1944_v22 = vsel %vm1351_vm3, %v1943_v44, %v1942_v19  ;;  %v2228_v23 = vsel %vm1361_vm4, %v2227_v21, %v2226_v20 }
 0x4c0   : > { %1946 = vst.msk [vmem:[#allocation3 + $0x15] sm:$0x3] %vm12590_vm5, %v1944_v22 }
 0x4c1   : > { %2230 = vst.msk [vmem:[#allocation3 + $0x1c] sm:$0x3] %vm12598_vm6, %v2228_v23  ;;  %2238 = vst.msk [vmem:[#allocation3 + $0x23] sm:$0x3] %vm12598_vm6, %v2228_v23 }
 0x4c4   : > { %v2081_v24 = vpop.permute.xlu0 %2080  ;;  %v2087_v25 = vpop.permute.xlu1 %2086 }
 0x4c5   : > { %v2082_v26 = vrot.slane %v2081_v24, 7  ;;  %v2088_v27 = vrot.slane %v2087_v25, 7 }
 0x4c7   : > { %v2083_v28 = vsel %vm1361_vm4, %v2082_v26, %v2081_v24  ;;  %v2089_v30 = vsel %vm1351_vm3, %v2088_v27, %v2087_v25  ;;  %v10265_v26 = vld [vmem:[%s12350_s15] ss:$16 sps:$4 sm:$0xff]   ;;  %v10268_v27 = vld [vmem:[%s12350_s15 + $0x8] ss:$16 sps:$4 sm:$0xff]  }
 0x4c8   : > { %2085 = vst.msk [vmem:[#allocation3 + $0x17] sm:$0x3] %vm12598_vm6, %v2083_v28  ;;  %2093 = vst.msk [vmem:[#allocation3 + $0x1e] sm:$0x3] %vm12598_vm6, %v2083_v28  ;;  %v2232_v32 = vpop.permute.xlu0 %2231  ;;  %v2528_v29 = vpop.permute.xlu1 %2527 }
 0x4c9   : > { %2091 = vst.msk [vmem:[#allocation3 + $0x1a] sm:$0x3] %vm12590_vm5, %v2089_v30  ;;  %v2233_v33 = vrot.slane %v2232_v32, 7  ;;  %v2529_v37 = vrot.slane %v2528_v29, 7 }
 0x4cb   : > { %v2234_v39 = vsel %vm1351_vm3, %v2233_v33, %v2232_v32  ;;  %v2530_v41 = vsel %vm1361_vm4, %v2529_v37, %v2528_v29  ;;  %v10273_v32 = vld [vmem:[%s12350_s15 + $0x24] ss:$16 sps:$4 sm:$0xff]   ;;  %v10276_v29 = vld [vmem:[%s12350_s15 + $0x2c] ss:$16 sps:$4 sm:$0xff]   ;;  %v10271_v33 = vld [vmem:[%s12350_s15 + $0x20] ss:$16 sps:$4 sm:$0xff]  }
 0x4cc   : > { %2236 = vst.msk [vmem:[#allocation3 + $0x1f] sm:$0x3] %vm12590_vm5, %v2234_v39  ;;  %v10274_v37 = vld [vmem:[%s12350_s15 + $0x28] ss:$16 sps:$4 sm:$0xff]   ;;  %v10279_v39 = vld [vmem:[%s12350_s15 + $0x44] ss:$16 sps:$4 sm:$0xff]  }
 0x4cd   : > { %2532 = vst.msk [vmem:[#allocation3 + $0x26] sm:$0x3] %vm12598_vm6, %v2530_v41  ;;  %2540 = vst.msk [vmem:[#allocation3 + $0x2d] sm:$0x3] %vm12598_vm6, %v2530_v41  ;;  %v10282_v41 = vld [vmem:[%s12350_s15 + $0x4c] ss:$16 sps:$4 sm:$0xff]  }
 0x4d0   : > { %v2371_v18 = vpop.permute.xlu0 %2370  ;;  %v2377_v42 = vpop.permute.xlu1 %2376 }
 0x4d1   : > { %v2372_v43 = vrot.slane %v2371_v18, 7  ;;  %v2378_v45 = vrot.slane %v2377_v42, 7 }
 0x4d3   : > { %v2373_v46 = vsel %vm1361_vm4, %v2372_v43, %v2371_v18  ;;  %v2379_v47 = vsel %vm1351_vm3, %v2378_v45, %v2377_v42  ;;  %v10277_v18 = vld [vmem:[%s12350_s15 + $0x40] ss:$16 sps:$4 sm:$0xff]   ;;  %v10280_v42 = vld [vmem:[%s12350_s15 + $0x48] ss:$16 sps:$4 sm:$0xff]   ;;  %v10288_v43 = vld [vmem:[%s12350_s15 + $0x6c] ss:$16 sps:$4 sm:$0xff]  }
 0x4d4   : > { %2375 = vst.msk [vmem:[#allocation3 + $0x21] sm:$0x3] %vm12598_vm6, %v2373_v46  ;;  %2383 = vst.msk [vmem:[#allocation3 + $0x28] sm:$0x3] %vm12598_vm6, %v2373_v46  ;;  %v2534_v48 = vpop.permute.xlu0 %2533  ;;  %v10283_v45 = vld [vmem:[%s12350_s15 + $0x60] ss:$16 sps:$4 sm:$0xff]  }
 0x4d5   : > { %2381 = vst.msk [vmem:[#allocation3 + $0x24] sm:$0x3] %vm12590_vm5, %v2379_v47  ;;  %v2535_v15 = vrot.slane %v2534_v48, 7  ;;  %v10286_v46 = vld [vmem:[%s12350_s15 + $0x68] ss:$16 sps:$4 sm:$0xff]  }
 0x4d7   : > { %v2536_v49 = vsel %vm1351_vm3, %v2535_v15, %v2534_v48  ;;  %v8983_v15 = vld [vmem:[#allocation18] ss:$0 sm:$0xff] }
 0x4d8   : > { %2538 = vst.msk [vmem:[#allocation3 + $0x29] sm:$0x3] %vm12590_vm5, %v2536_v49 }
 0x4dc   : > { %v2691_v50 = vpop.permute.xlu0 %2690  ;;  %v2685_v51 = vpop.permute.xlu1 %2684 }
 0x4dd   : > { %v2692_v52 = vrot.slane %v2691_v50, 7  ;;  %v2686_v53 = vrot.slane %v2685_v51, 7 }
 0x4df   : > { %v2693_v54 = vsel %vm1351_vm3, %v2692_v52, %v2691_v50  ;;  %v2687_v55 = vsel %vm1361_vm4, %v2686_v53, %v2685_v51 }
 0x4e0   : > { %2695 = vst.msk [vmem:[#allocation3 + $0x2e] sm:$0x3] %vm12590_vm5, %v2693_v54 }
 0x4e1   : > { %2689 = vst.msk [vmem:[#allocation3 + $0x2b] sm:$0x3] %vm12598_vm6, %v2687_v55 }
 0x56e   : > { %v3715_v7 = vpop.f32.mrb[24].mxu0  ;;  %v3797_v9 = vpop.f32.mrb[24].mxu1 }
 0x56f   : > { %v9695_v10 = vadd.f32 %v3715_v7, %v2983_v2  ;;  %v9697_v12 = vadd.f32 %v3797_v9, %v2991_v3  ;;  %v3717_v31 = vpop.f32.mrb[25].mxu0  ;;  %v3799_v13 = vpop.f32.mrb[25].mxu1  ;;  %v4369_v2 = vunpack.c.0.s8 %v4368_v61  ;;  %v4190_v3 = vrot.slane %v4173_v59, %v12659_v35 }
 0x570   : > { %v9696_v14 = vadd.f32 %v3717_v31, %v2987_v4  ;;  %v9698_v16 = vadd.f32 %v3799_v13, %v2995_v5  ;;  %v3719_v40 = vpop.f32.mrb[26].mxu0  ;;  %v3801_v17 = vpop.f32.mrb[26].mxu1 }
 0x571   : > { %v3804_v19 = vmax.f32 %v9695_v10, 0.0  ;;  %v3806_v20 = vmax.f32 %v9697_v12, 0.0  ;;  %v3720_v44 = vpop.f32.mrb[27].mxu0  ;;  %v3802_v21 = vpop.f32.mrb[27].mxu1  ;;  %v4372_v13 = vsub.s32 %v4369_v2, %v12398_v6 }
 0x572   : > { %v3805_v22 = vmax.f32 %v9696_v14, 0.0  ;;  %v3807_v23 = vmax.f32 %v9698_v16, 0.0 }
 0x573   : > { %v3808_v28 = vpack.c.bf16 %v3804_v19, %v3804_v19  ;;  %v3810_v30 = vpack.c.bf16 %v3806_v20, %v3806_v20 }
 0x574   : > { %v3809_v24 = vpack.c.bf16 %v3805_v22, %v3805_v22  ;;  %v3811_v25 = vpack.c.bf16 %v3807_v23, %v3807_v23 }
 0x576   : > { %4107 = vmatprep.mubr.bf16.mxu0 %v3809_v24  ;;  %4147 = vmatprep.mubr.bf16.mxu1 %v3811_v25 }
 0x577   : > { %4108 = vmatmul.mubr.bf16.vlgmr.msra.gmra.mrb[28].mxu0 %v3808_v28  ;;  %4148 = vmatmul.mubr.bf16.vlgmr.msra.gmra.mrb[28].mxu1 %v3810_v30 }
 0x578   : > { %4280 = vmatpush1.bf16.msra.mxu0 %v10265_v26  ;;  %4321 = vmatpush1.bf16.msra.mxu1 %v10268_v27 }
 0x579   : > { %4311 = vmatprep.mubr.bf16.mxu0 %v11601_v36  ;;  %4352 = vmatprep.mubr.bf16.mxu1 %v11601_v36  ;;  %v10285_v36 = vld [vmem:[%s12350_s15 + $0x64] ss:$16 sps:$4 sm:$0xff]  }
 0x57a   : > { %4281 = vmatprep.subr.bf16.mxu0 %v10273_v32  ;;  %4322 = vmatprep.subr.bf16.mxu1 %v10276_v29 }
 0x57c   : > { %4282 = vmatpush1.bf16.msra.mxu0 %v10271_v33  ;;  %4323 = vmatpush1.bf16.msra.mxu1 %v10274_v37 }
 0x57d   : > { %4283 = vmatprep.subr.bf16.mxu0 %v10279_v39  ;;  %4324 = vmatprep.subr.bf16.mxu1 %v10282_v41 }
 0x580   : > { %4284 = vmatpush1.bf16.msra.mxu0 %v10277_v18  ;;  %4325 = vmatpush1.bf16.msra.mxu1 %v10280_v42 }
 0x581   : > { %4285 = vmatprep.subr.bf16.mxu0 %v10285_v36  ;;  %4326 = vmatprep.subr.bf16.mxu1 %v10288_v43 }
 0x584   : > { %4286 = vmatpush1.bf16.msra.mxu0 %v10283_v45  ;;  %4327 = vmatpush1.bf16.msra.mxu1 %v10286_v46 }
 0x64a   : > { %v9501_v47 = vpop.f32.mrb[28].mxu0  ;;  %v9523_v48 = vpop.f32.mrb[28].mxu1 }
 0x64b   : > { %v9502_v49 = vpop.f32.mrb[29].mxu0  ;;  %v9524_v50 = vpop.f32.mrb[29].mxu1 }
 0x64c   : > { %v9503_v51 = vadd.f32 %v9502_v49, %v9501_v47  ;;  %v9525_v52 = vadd.f32 %v9524_v50, %v9523_v48  ;;  %v9504_v53 = vpop.f32.mrb[30].mxu0  ;;  %v9526_v54 = vpop.f32.mrb[30].mxu1 }
 0x64d   : > { %v9505_v55 = vpop.f32.mrb[31].mxu0  ;;  %v9527_v56 = vpop.f32.mrb[31].mxu1 }
 0x64e   : > { %v4110_v57 = vadd.f32 %v9503_v51, %v8983_v15 }
 0x650   : > { %v4150_v58 = vadd.f32 %v9525_v52, %v4110_v57 }
 0x652   : > { %v4155_v0 = vmax.f32 %v4150_v58, 0.0 }
 0x654   : > { %v4156_v8 = vpack.c.bf16 %v4155_v0, %v4155_v0 }
 0x656   : > { %9032 = vmatmul.mubr.msk.bf16.vlgmr.msra.gmra.mrb[32].mxu0 %vm4275_vm7, %v4156_v8  ;;  %9033 = vmatmul.mubr.msk.bf16.vlgmr.msra.gmra.mrb[32].mxu1 %vm4275_vm7, %v4156_v8 }
 0x729   : > { %v4313_v4 = vpop.f32.mrb[32].mxu0  ;;  %v4354_v5 = vpop.f32.mrb[32].mxu1 }
 0x72a   : > { %v4314_v7 = vadd.f32 %v4313_v4, %v4178_v62  ;;  %v4355_v9 = vadd.f32 %v4354_v5, %v4186_v63  ;;  %v4315_v10 = vpop.f32.mrb[33].mxu0  ;;  %v4356_v12 = vpop.f32.mrb[33].mxu1 }
 0x72b   : > { %v4316_v31 = vadd.f32 %v4315_v10, %v4182_v1  ;;  %v4357_v14 = vadd.f32 %v4356_v12, %v4190_v3  ;;  %v4317_v16 = vpop.f32.mrb[34].mxu0  ;;  %v4358_v40 = vpop.f32.mrb[34].mxu1 }
 0x72c   : > { %v4318_v34 = vpop.f32.mrb[35].mxu0  ;;  %v4359_v17 = vpop.f32.mrb[35].mxu1 }
 0x72d   : > { %v4365_v11 = vcombine.low %v4314_v7, %v4316_v31  ;;  %v4366_v19 = vcombine.low %v4355_v9, %v4357_v14 }
 0x72f   : > { %v4373_v38 = vrot.slane %v4365_v11, %v4372_v13  ;;  %v4380_v20 = vrot.slane %v4366_v19, %v4372_v13 }
 0x731   : > { %v4381_v44 = vcombine.low %v4373_v38, %v4380_v20 }
 0x733   : > { %4383 = vst [vmem:[#allocation4] sm:$0xff] %v4381_v44 }
 0x734 PF: > { %s14214_s28 = sld [smem:[#allocation52_spill]]  ;;  %s14215_s11 = sld [smem:[#allocation41_spill]]  ;;  %v4535_v36 = vlaneseq  ;;  %v11622_v43 = vmov 1966171168   ;;  %vm11624_vm8 = vmmov 0   ;;  %vm5170_vm9 = vcmask 523264  }
 0x735   : > { %v4553_v45 = vunpack.c.l.s4 %v11622_v43 }
 0x736   : > { %v12937_v49 = vshrl.u32 %v4535_v36, 7 }
 0x737   : > { %v4554_v50 = vunpack.c.0.s8 %v4553_v45 }
 0x739   : > { %v12955_v56 = vsub.s32 %v4554_v50, %v12937_v49 }
 0x73a   : > { %v10289_v35 = vld [vmem:[%s14214_s28 + $0x4] ss:$12 sps:$4 sm:$0xff]   ;;  %v10291_v6 = vld [vmem:[%s14214_s28] ss:$12 sps:$4 sm:$0xff]   ;;  %v10292_v21 = vld [vmem:[%s14214_s28 + $0x1c] ss:$12 sps:$4 sm:$0xff]  }
 0x73b   : > { %5174 = vmatprep.subr.bf16.mxu0 %v10289_v35  ;;  %v10294_v22 = vld [vmem:[%s14214_s28 + $0x18] ss:$12 sps:$4 sm:$0xff]   ;;  %v10295_v23 = vld [vmem:[%s14214_s28 + $0x34] ss:$12 sps:$4 sm:$0xff]   ;;  %v10297_v24 = vld [vmem:[%s14214_s28 + $0x30] ss:$12 sps:$4 sm:$0xff]  }
 0x73c   : > { %5175 = vmatpush1.bf16.msra.mxu0 %v10291_v6  ;;  %v10298_v25 = vld [vmem:[%s14214_s28 + $0x4c] ss:$12 sps:$4 sm:$0xff]   ;;  %v10300_v26 = vld [vmem:[%s14214_s28 + $0x48] ss:$12 sps:$4 sm:$0xff]   ;;  %v10301_v27 = vld [vmem:[%s14214_s28 + $0x64] ss:$12 sps:$4 sm:$0xff]  }
 0x73d   : > { %5176 = vmatprep.subr.bf16.mxu0 %v10292_v21  ;;  %v10303_v28 = vld [vmem:[%s14214_s28 + $0x60] ss:$12 sps:$4 sm:$0xff]   ;;  %v10304_v30 = vld [vmem:[%s14214_s28 + $0x7c] ss:$12 sps:$4 sm:$0xff]   ;;  %v10306_v33 = vld [vmem:[%s14214_s28 + $0x78] ss:$12 sps:$4 sm:$0xff]  }
 0x73e   : > { %v10322_v32 = vld [vmem:[%s14214_s28 + $0xc8] ss:$12 sps:$4 sm:$0xff]   ;;  %v10327_v37 = vld [vmem:[%s14214_s28 + $0xe0] ss:$12 sps:$4 sm:$0xff]   ;;  %v10309_v18 = vld [vmem:[%s14214_s28 + $0x90] ss:$12 sps:$4 sm:$0xff]  }
 0x73f   : > { %v10323_v29 = vld [vmem:[%s14214_s28 + $0x8] ss:$12 sps:$4 sm:$0xff]   ;;  %9529 = vmatprep.subr.bf16.mxu1 %v10322_v32  ;;  %v10328_v39 = vld [vmem:[%s14214_s28 + $0x20] ss:$12 sps:$4 sm:$0xff]   ;;  %v10332_v42 = vld [vmem:[%s14214_s28 + $0xf8] ss:$12 sps:$4 sm:$0xff]  }
 0x740   : > { %5177 = vmatpush1.bf16.msra.mxu0 %v10294_v22  ;;  %9530 = vmatpush3.bf16.msra.mxu1 %v10323_v29  ;;  %v10307_v41 = vld [vmem:[%s14214_s28 + $0x94] ss:$12 sps:$4 sm:$0xff]   ;;  %v10333_v46 = vld [vmem:[%s14214_s28 + $0x38] ss:$12 sps:$4 sm:$0xff]   ;;  %s9035_s7 = smul.u32 10, %s14215_s11  ;;  %p9315_p6 = scmp.ne.s32.totalorder %s14215_s11, 4 }
 0x741   : > { %5178 = vmatprep.subr.bf16.mxu0 %v10295_v23  ;;  %9531 = vmatprep.subr.bf16.mxu1 %v10327_v37  ;;  %v10310_v47 = vld [vmem:[%s14214_s28 + $0xac] ss:$12 sps:$4 sm:$0xff]   ;;  %v10337_v48 = vld [vmem:[%s14214_s28 + $0x110] ss:$12 sps:$4 sm:$0xff]   ;;  %v10312_v51 = vld [vmem:[%s14214_s28 + $0xa8] ss:$12 sps:$4 sm:$0xff]  }
 0x742   : > { %v10338_v15 = vld [vmem:[%s14214_s28 + $0x50] ss:$12 sps:$4 sm:$0xff]   ;;  %v10342_v53 = vld [vmem:[%s14214_s28 + $0x128] ss:$12 sps:$4 sm:$0xff]   ;;  %v10315_v54 = vld [vmem:[%s14214_s28 + $0xc0] ss:$12 sps:$4 sm:$0xff]  }
 0x743   : > { %v10313_v52 = vld [vmem:[%s14214_s28 + $0xc4] ss:$12 sps:$4 sm:$0xff]   ;;  %v10343_v55 = vld [vmem:[%s14214_s28 + $0x68] ss:$12 sps:$4 sm:$0xff]   ;;  %v10347_v58 = vld [vmem:[%s14214_s28 + $0x140] ss:$12 sps:$4 sm:$0xff]  }
 0x744   : > { %5179 = vmatpush1.bf16.msra.mxu0 %v10297_v24  ;;  %9532 = vmatpush3.bf16.msra.mxu1 %v10328_v39  ;;  %v10316_v57 = vld [vmem:[%s14214_s28 + $0xdc] ss:$12 sps:$4 sm:$0xff]   ;;  %s12963_s27 = scalar_lea.vmem [#allocation3], %s9035_s7  ;;  %v10318_v8 = vld [vmem:[%s14214_s28 + $0xd8] ss:$12 sps:$4 sm:$0xff]  }
 0x745   : > { %5180 = vmatprep.subr.bf16.mxu0 %v10298_v25  ;;  %9533 = vmatprep.subr.bf16.mxu1 %v10332_v42  ;;  %v12966_v0 = vld [vmem:[%s12963_s27] sm:$0x1f]  ;;  %v10321_v1 = vld [vmem:[%s14214_s28 + $0xf0] ss:$12 sps:$4 sm:$0xff]   ;;  %v10324_v5 = vld [vmem:[%s14214_s28 + $0x10c] ss:$12 sps:$4 sm:$0xff]  }
 0x746   : > { %v10348_v59 = vld [vmem:[%s14214_s28 + $0x80] ss:$12 sps:$4 sm:$0xff]   ;;  %v4558_v60 = vrot.slane %v12966_v0, %v12955_v56  ;;  %v10353_v61 = vld [vmem:[%s14214_s28 + $0x158] ss:$12 sps:$4 sm:$0xff]   ;;  %v10358_v4 = vld [vmem:[%s14214_s28 + $0x170] ss:$12 sps:$4 sm:$0xff]  }
 0x747   : > { %v10319_v62 = vld [vmem:[%s14214_s28 + $0xf4] ss:$12 sps:$4 sm:$0xff]   ;;  %v10354_v3 = vld [vmem:[%s14214_s28 + $0x98] ss:$12 sps:$4 sm:$0xff]   ;;  %v10359_v9 = vld [vmem:[%s14214_s28 + $0xb0] ss:$12 sps:$4 sm:$0xff]  }
 0x748   : > { %5181 = vmatpush1.bf16.msra.mxu0 %v10300_v26  ;;  %9534 = vmatpush3.bf16.msra.mxu1 %v10333_v46  ;;  %v4566_v63 = vcombine.high %v4558_v60, %v4558_v60  ;;  %v10326_v7 = vld [vmem:[%s14214_s28 + $0x108] ss:$12 sps:$4 sm:$0xff]   ;;  %v10329_v12 = vld [vmem:[%s14214_s28 + $0x124] ss:$12 sps:$4 sm:$0xff]   ;;  %v10331_v31 = vld [vmem:[%s14214_s28 + $0x120] ss:$12 sps:$4 sm:$0xff]   ;;  %v13014_v16 = vrot.slane %v4558_v60, %v12955_v56 }
 0x749   : > { %5182 = vmatprep.subr.bf16.mxu0 %v10301_v27  ;;  %9535 = vmatprep.subr.bf16.mxu1 %v10337_v48  ;;  %v10363_v10 = vld [vmem:[%s14214_s28 + $0x248] ss:$12 sps:$4 sm:$0xff]   ;;  %v10368_v40 = vld [vmem:[%s14214_s28 + $0x260] ss:$12 sps:$4 sm:$0xff]   ;;  %v10336_v11 = vld [vmem:[%s14214_s28 + $0x138] ss:$12 sps:$4 sm:$0xff]  }
 0x74a   : > { %v4587_v2 = vrot.slane %v4566_v63, %v12955_v56  ;;  %v10364_v13 = vld [vmem:[%s14214_s28 + $0x188] ss:$12 sps:$4 sm:$0xff]   ;;  %v10369_v17 = vld [vmem:[%s14214_s28 + $0x1a0] ss:$12 sps:$4 sm:$0xff]   ;;  %v10373_v19 = vld [vmem:[%s14214_s28 + $0x278] ss:$12 sps:$4 sm:$0xff]   ;;  %v13107_v45 = vcombine.high %v13014_v16, %v13014_v16 }
 0x74b   : > { %v10334_v34 = vld [vmem:[%s14214_s28 + $0x13c] ss:$12 sps:$4 sm:$0xff]   ;;  %v10339_v38 = vld [vmem:[%s14214_s28 + $0x154] ss:$12 sps:$4 sm:$0xff]   ;;  %v10374_v44 = vld [vmem:[%s14214_s28 + $0x1b8] ss:$12 sps:$4 sm:$0xff]  }
 0x74c   : > { %5183 = vmatpush1.bf16.msra.mxu0 %v10303_v28  ;;  %9536 = vmatpush3.bf16.msra.mxu1 %v10338_v15  ;;  %v4589_v14 = vcombine.high %v4587_v2, %v4587_v2  ;;  %v10341_v20 = vld [vmem:[%s14214_s28 + $0x150] ss:$12 sps:$4 sm:$0xff]   ;;  %v10344_v6 = vld [vmem:[%s14214_s28 + $0x16c] ss:$12 sps:$4 sm:$0xff]   ;;  %v10346_v21 = vld [vmem:[%s14214_s28 + $0x168] ss:$12 sps:$4 sm:$0xff]  }
 0x74d   : > { %5184 = vmatprep.subr.bf16.mxu0 %v10304_v30  ;;  %9537 = vmatprep.subr.bf16.mxu1 %v10342_v53  ;;  %v10378_v35 = vld [vmem:[%s14214_s28 + $0x290] ss:$12 sps:$4 sm:$0xff]   ;;  %v10383_v23 = vld [vmem:[%s14214_s28 + $0x2a8] ss:$12 sps:$4 sm:$0xff]   ;;  %v10350_v25 = vld [vmem:[%s14214_s28 + $0x180] ss:$12 sps:$4 sm:$0xff]   ;;  %v4551_v53 = vcombine.high %v12966_v0, %v12966_v0 }
 0x74e   : > { %5206 = vmatprep.mubr.bf16.mxu0 %v4587_v2  ;;  %5329 = vmatprep.mubr.bf16.mxu1 %v4587_v2  ;;  %v10379_v22 = vld [vmem:[%s14214_s28 + $0x1d0] ss:$12 sps:$4 sm:$0xff]   ;;  %v10384_v26 = vld [vmem:[%s14214_s28 + $0x1e8] ss:$12 sps:$4 sm:$0xff]   ;;  %v10388_v27 = vld [vmem:[%s14214_s28 + $0x2c0] ss:$12 sps:$4 sm:$0xff]  }
 0x74f   : > { %v10352_v24 = vld [vmem:[%s14214_s28 + $0x184] ss:$12 sps:$4 sm:$0xff]   ;;  %v10357_v28 = vld [vmem:[%s14214_s28 + $0x19c] ss:$12 sps:$4 sm:$0xff]   ;;  %v10389_v32 = vld [vmem:[%s14214_s28 + $0x200] ss:$12 sps:$4 sm:$0xff]  }
 0x750   : > { %5185 = vmatpush1.bf16.msra.mxu0 %v10306_v33  ;;  %9538 = vmatpush3.bf16.msra.mxu1 %v10343_v55  ;;  %v10355_v30 = vld [vmem:[%s14214_s28 + $0x198] ss:$12 sps:$4 sm:$0xff]   ;;  %v10362_v33 = vld [vmem:[%s14214_s28 + $0x1b4] ss:$12 sps:$4 sm:$0xff]   ;;  %v10360_v37 = vld [vmem:[%s14214_s28 + $0x1b0] ss:$12 sps:$4 sm:$0xff]  }
 0x751   : > { %5186 = vmatprep.subr.bf16.mxu0 %v10307_v41  ;;  %9539 = vmatprep.subr.bf16.mxu1 %v10347_v58  ;;  %v10393_v29 = vld [vmem:[%s14214_s28 + $0x2d8] ss:$12 sps:$4 sm:$0xff]   ;;  %v10398_v41 = vld [vmem:[%s14214_s28 + $0x2f0] ss:$12 sps:$4 sm:$0xff]   ;;  %v10365_v36 = vld [vmem:[%s14214_s28 + $0x1c8] ss:$12 sps:$4 sm:$0xff]   ;;  %v4565_v58 = vrot.slane %v4551_v53, %v12955_v56 }
 0x752   : > { %v10394_v39 = vld [vmem:[%s14214_s28 + $0x218] ss:$12 sps:$4 sm:$0xff]   ;;  %v10399_v42 = vld [vmem:[%s14214_s28 + $0x230] ss:$12 sps:$4 sm:$0xff]   ;;  %v10403_v46 = vld [vmem:[%s14214_s28 + $0x308] ss:$12 sps:$4 sm:$0xff]  }
 0x753   : > { %v10372_v43 = vld [vmem:[%s14214_s28 + $0x1e4] ss:$12 sps:$4 sm:$0xff]   ;;  %v11623_v48 = vmov 0.0   ;;  %v10377_v15 = vld [vmem:[%s14214_s28 + $0x1fc] ss:$12 sps:$4 sm:$0xff]  }
 0x754   : > { %5187 = vmatpush1.bf16.msra.mxu0 %v10309_v18  ;;  %9540 = vmatpush3.bf16.msra.mxu1 %v10348_v59  ;;  %v10367_v18 = vld [vmem:[%s14214_s28 + $0x1cc] ss:$12 sps:$4 sm:$0xff]   ;;  %v10380_v55 = vld [vmem:[%s14214_s28 + $0x210] ss:$12 sps:$4 sm:$0xff]   ;;  %v10385_v0 = vld [vmem:[%s14214_s28 + $0x228] ss:$12 sps:$4 sm:$0xff]  }
 0x755   : > { %5188 = vmatprep.subr.bf16.mxu0 %v10310_v47  ;;  %9541 = vmatprep.subr.bf16.mxu1 %v10353_v61  ;;  %v10370_v47 = vld [vmem:[%s14214_s28 + $0x1e0] ss:$12 sps:$4 sm:$0xff]   ;;  %v10392_v60 = vld [vmem:[%s14214_s28 + $0x244] ss:$12 sps:$4 sm:$0xff]   ;;  %v13157_v61 = vrot.slane %v4565_v58, %v12955_v56  ;;  %v13167_v2 = vld [vmem:[%s14214_s28 + $0x25c] ss:$12 sps:$4 sm:$0xff]  }
 0x756   : > { %v10407_v50 = vld [vmem:[%s14214_s28 + $0x320] ss:$12 sps:$4 sm:$0xff]   ;;  %v10434_v63 = vld [vmem:[%s12340_s0] ss:$16 sps:$4 sm:$0xff]  }
 0x757   : > { %v10436_v59 = vld [vmem:[%s12340_s0 + $0x4] ss:$16 sps:$4 sm:$0xff]   ;;  %v10481_v58 = vld [vmem:[%s12340_s0 + $0xec] ss:$16 sps:$4 sm:$0xff]  }
 0x758   : > { %5189 = vmatpush1.bf16.msra.mxu0 %v10312_v51  ;;  %9542 = vmatpush3.bf16.msra.mxu1 %v10354_v3  ;;  %v10375_v51 = vld [vmem:[%s14214_s28 + $0x1f8] ss:$12 sps:$4 sm:$0xff]  }
 0x759   : > { %5190 = vmatprep.subr.bf16.mxu0 %v10313_v52  ;;  %9543 = vmatprep.subr.bf16.mxu1 %v10358_v4  ;;  %v10382_v52 = vld [vmem:[%s14214_s28 + $0x214] ss:$12 sps:$4 sm:$0xff]   ;;  %v13172_v3 = vld [vmem:[%s14214_s28 + $0x258] ss:$12 sps:$4 sm:$0xff]  }
 0x75a   : > { %v13179_v4 = vld [vmem:[%s14214_s28 + $0x274] ss:$12 sps:$4 sm:$0xff]   ;;  %v10478_v53 = vld [vmem:[%s12340_s0 + $0xe4] ss:$16 sps:$4 sm:$0xff]  }
 0x75c   : > { %5191 = vmatpush1.bf16.msra.mxu0 %v10315_v54  ;;  %9544 = vmatpush3.bf16.msra.mxu1 %v10359_v9  ;;  %v10411_v54 = vld [vmem:[%s14214_s28 + $0x338] ss:$12 sps:$4 sm:$0xff]  }
 0x75d   : > { %5192 = vmatprep.subr.bf16.mxu0 %v10316_v57  ;;  %9551 = vmatprep.subr.bf16.mxu1 %v10363_v10  ;;  %v10387_v57 = vld [vmem:[%s14214_s28 + $0x22c] ss:$12 sps:$4 sm:$0xff]   ;;  %v13188_v10 = vld [vmem:[%s14214_s28 + $0x270] ss:$12 sps:$4 sm:$0xff]  }
 0x75e   : > { %v10446_v9 = vld [vmem:[%s12340_s0 + $0x40] ss:$16 sps:$4 sm:$0xff]  }
 0x75f   : > { %5330 = vmatmul.mubr.bf16.vlgmr.msra.gmra.mrb[0].mxu1 %v13014_v16 }
 0x760   : > { %5193 = vmatpush1.bf16.msra.mxu0 %v10318_v8  ;;  %9552 = vmatpush3.bf16.msra.mxu1 %v10364_v13  ;;  %v10415_v8 = vld [vmem:[%s14214_s28 + $0x350] ss:$12 sps:$4 sm:$0xff]   ;;  %v10452_v13 = vld [vmem:[%s12340_s0 + $0x60] ss:$16 sps:$4 sm:$0xff]  }
 0x761   : > { %5194 = vmatprep.subr.bf16.mxu0 %v10319_v62  ;;  %5369 = vmatprep.mubr.bf16.mxu1 %v4589_v14  ;;  %v10390_v62 = vld [vmem:[%s14214_s28 + $0x240] ss:$12 sps:$4 sm:$0xff]  }
 0x762   : > { %9553 = vmatprep.subr.bf16.mxu1 %v10368_v40  ;;  %v13208_v40 = vld [vmem:[%s14214_s28 + $0x2a4] ss:$12 sps:$4 sm:$0xff]  }
 0x764   : > { %5195 = vmatpush1.bf16.msra.mxu0 %v10321_v1  ;;  %9554 = vmatpush3.bf16.msra.mxu1 %v10369_v17  ;;  %v10442_v1 = vld [vmem:[%s12340_s0 + $0x24] ss:$16 sps:$4 sm:$0xff]  }
 0x765   : > { %5196 = vmatprep.subr.bf16.mxu0 %v10324_v5  ;;  %9555 = vmatprep.subr.bf16.mxu1 %v10373_v19  ;;  %v10440_v5 = vld [vmem:[%s12340_s0 + $0x20] ss:$16 sps:$4 sm:$0xff]   ;;  %v13216_v17 = vld [vmem:[%s14214_s28 + $0x2a0] ss:$12 sps:$4 sm:$0xff]  }
 0x766   : > { %v13222_v19 = vld [vmem:[%s14214_s28 + $0x2bc] ss:$12 sps:$4 sm:$0xff]  }
 0x768   : > { %5197 = vmatpush1.bf16.msra.mxu0 %v10326_v7  ;;  %9556 = vmatpush3.bf16.msra.mxu1 %v10374_v44  ;;  %v10448_v7 = vld [vmem:[%s12340_s0 + $0x44] ss:$16 sps:$4 sm:$0xff]   ;;  %v13235_v44 = vld [vmem:[%s14214_s28 + $0x2d4] ss:$12 sps:$4 sm:$0xff]  }
 0x769   : > { %5198 = vmatprep.subr.bf16.mxu0 %v10329_v12  ;;  %9557 = vmatprep.subr.bf16.mxu1 %v10378_v35  ;;  %v10454_v12 = vld [vmem:[%s12340_s0 + $0x64] ss:$16 sps:$4 sm:$0xff]  }
 0x76a   : > { %v13242_v35 = vld [vmem:[%s14214_s28 + $0x2d0] ss:$12 sps:$4 sm:$0xff]  }
 0x76c   : > { %5199 = vmatpush1.bf16.msra.mxu0 %v10331_v31  ;;  %9558 = vmatpush3.bf16.msra.mxu1 %v10379_v22  ;;  %v13194_v31 = vld [vmem:[%s14214_s28 + $0x28c] ss:$12 sps:$4 sm:$0xff]   ;;  %v13259_v22 = vld [vmem:[%s14214_s28 + $0x304] ss:$12 sps:$4 sm:$0xff]  }
 0x76d   : > { %5200 = vmatprep.subr.bf16.mxu0 %v10334_v34  ;;  %9559 = vmatprep.subr.bf16.mxu1 %v10383_v23  ;;  %v10458_v34 = vld [vmem:[%s12340_s0 + $0x80] ss:$16 sps:$4 sm:$0xff]   ;;  %v13266_v23 = vld [vmem:[%s14214_s28 + $0x300] ss:$12 sps:$4 sm:$0xff]  }
 0x770   : > { %5201 = vmatpush1.bf16.msra.mxu0 %v10336_v11  ;;  %9560 = vmatpush3.bf16.msra.mxu1 %v10384_v26  ;;  %v10466_v11 = vld [vmem:[%s12340_s0 + $0xa4] ss:$16 sps:$4 sm:$0xff]   ;;  %v11625_v26 = vmov 0  }
 0x771   : > { %5202 = vmatprep.subr.bf16.mxu0 %v10339_v38  ;;  %9561 = vmatprep.subr.bf16.mxu1 %v10388_v27  ;;  %v10464_v38 = vld [vmem:[%s12340_s0 + $0xa0] ss:$16 sps:$4 sm:$0xff]  }
 0x772   : > { %v13287_v27 = vld [vmem:[%s14214_s28 + $0x334] ss:$12 sps:$4 sm:$0xff]  }
 0x774   : > { %5203 = vmatpush1.bf16.msra.mxu0 %v10341_v20  ;;  %9562 = vmatpush3.bf16.msra.mxu1 %v10389_v32  ;;  %v13230_v20 = vld [vmem:[%s14214_s28 + $0x2b8] ss:$12 sps:$4 sm:$0xff]   ;;  %v13294_v32 = vld [vmem:[%s14214_s28 + $0x330] ss:$12 sps:$4 sm:$0xff]  }
 0x775   : > { %5204 = vmatprep.subr.bf16.mxu0 %v10344_v6  ;;  %9563 = vmatprep.subr.bf16.mxu1 %v10393_v29  ;;  %v13247_v6 = vld [vmem:[%s14214_s28 + $0x2ec] ss:$12 sps:$4 sm:$0xff]  }
 0x776   : > { %v13299_v29 = vld [vmem:[%s14214_s28 + $0x34c] ss:$12 sps:$4 sm:$0xff]  }
 0x778   : > { %5205 = vmatpush1.bf16.msra.mxu0 %v10346_v21  ;;  %9564 = vmatpush3.bf16.msra.mxu1 %v10394_v39  ;;  %v13254_v21 = vld [vmem:[%s14214_s28 + $0x2e8] ss:$12 sps:$4 sm:$0xff]   ;;  %v10437_v39 = vld [vmem:[%s12340_s0 + $0x8] ss:$16 sps:$4 sm:$0xff]  }
 0x779   : > { %5215 = vmatprep.subr.bf16.mxu0 %v10352_v24  ;;  %9565 = vmatprep.subr.bf16.mxu1 %v10398_v41  ;;  %v13271_v24 = vld [vmem:[%s14214_s28 + $0x31c] ss:$12 sps:$4 sm:$0xff]   ;;  %v10445_v41 = vld [vmem:[%s12340_s0 + $0x2c] ss:$16 sps:$4 sm:$0xff]  }
 0x77b   : > { %5207 = vmatmul.mubr.bf16.vlgmr.msra.gmra.mrb[0].mxu0 %v13014_v16  ;;  %v10460_v16 = vld [vmem:[%s12340_s0 + $0x84] ss:$16 sps:$4 sm:$0xff]  }
 0x77c   : > { %5216 = vmatpush1.bf16.msra.mxu0 %v10350_v25  ;;  %5247 = vmatprep.mubr.bf16.mxu0 %v4589_v14  ;;  %v13202_v14 = vld [vmem:[%s14214_s28 + $0x288] ss:$12 sps:$4 sm:$0xff]   ;;  %v13278_v25 = vld [vmem:[%s14214_s28 + $0x318] ss:$12 sps:$4 sm:$0xff]  }
 0x77d   : > { %5217 = vmatprep.subr.bf16.mxu0 %v10357_v28  ;;  %9566 = vmatpush3.bf16.msra.mxu1 %v10399_v42  ;;  %v10470_v28 = vld [vmem:[%s12340_s0 + $0xc0] ss:$16 sps:$4 sm:$0xff]   ;;  %v10451_v42 = vld [vmem:[%s12340_s0 + $0x4c] ss:$16 sps:$4 sm:$0xff]  }
 0x77e   : > { %9671 = vmatprep.subr.bf16.mxu1 %v11623_v48 }
 0x780   : > { %5218 = vmatpush1.bf16.msra.mxu0 %v10355_v30  ;;  %5370 = vmatmul.mubr.bf16.vlgmr.msra.gmra.mrb[4].mxu1 %v13107_v45  ;;  %v10472_v30 = vld [vmem:[%s12340_s0 + $0xc4] ss:$16 sps:$4 sm:$0xff]  }
 0x781   : > { %5219 = vmatprep.subr.bf16.mxu0 %v10362_v33  ;;  %9672 = vmatpush3.bf16.msra.mxu1 %v10403_v46  ;;  %v13306_v33 = vld [vmem:[%s14214_s28 + $0x348] ss:$12 sps:$4 sm:$0xff]  }
 0x782   : > { %9679 = vmatprep.mubr.msk.bf16.mxu1 %vm11624_vm8, %v11623_v48  ;;  %9673 = vmatprep.subr.bf16.mxu1 %v11623_v48  ;;  %v10463_v46 = vld [vmem:[%s12340_s0 + $0x8c] ss:$16 sps:$4 sm:$0xff]  }
 0x784   : > { %5220 = vmatpush1.bf16.msra.mxu0 %v10360_v37  ;;  %v10439_v37 = vld [vmem:[%s12340_s0 + $0xc] ss:$16 sps:$4 sm:$0xff]  }
 0x785   : > { %5221 = vmatprep.subr.bf16.mxu0 %v10367_v18  ;;  %9674 = vmatpush3.bf16.msra.mxu1 %v10407_v50  ;;  %v10443_v18 = vld [vmem:[%s12340_s0 + $0x28] ss:$16 sps:$4 sm:$0xff]  }
 0x786   : > { %9675 = vmatprep.subr.bf16.mxu1 %v11623_v48  ;;  %v10467_v50 = vld [vmem:[%s12340_s0 + $0xa8] ss:$16 sps:$4 sm:$0xff]  }
 0x788   : > { %5222 = vmatpush1.bf16.msra.mxu0 %v10365_v36  ;;  %v10449_v36 = vld [vmem:[%s12340_s0 + $0x48] ss:$16 sps:$4 sm:$0xff]  }
 0x789   : > { %5223 = vmatprep.subr.bf16.mxu0 %v10372_v43  ;;  %9676 = vmatpush3.bf16.msra.mxu1 %v10411_v54  ;;  %v10457_v43 = vld [vmem:[%s12340_s0 + $0x6c] ss:$16 sps:$4 sm:$0xff]   ;;  %v10473_v54 = vld [vmem:[%s12340_s0 + $0xc8] ss:$16 sps:$4 sm:$0xff]  }
 0x78a   : > { %9677 = vmatprep.subr.bf16.mxu1 %v11623_v48 }
 0x78c   : > { %5224 = vmatpush1.bf16.msra.mxu0 %v10370_v47  ;;  %v10461_v47 = vld [vmem:[%s12340_s0 + $0x88] ss:$16 sps:$4 sm:$0xff]  }
 0x78d   : > { %5225 = vmatprep.subr.bf16.mxu0 %v10377_v15  ;;  %9678 = vmatpush3.bf16.msra.mxu1 %v10415_v8  ;;  %v10469_v15 = vld [vmem:[%s12340_s0 + $0xac] ss:$16 sps:$4 sm:$0xff]  }
 0x78e   : > { %5906 = vmatprep.subr.bf16.mxu1 %v10436_v59  ;;  %v10487_v8 = vld [vmem:[%s12340_s0 + $0x10c] ss:$16 sps:$4 sm:$0xff]   ;;  %v10485_v59 = vld [vmem:[%s12340_s0 + $0x108] ss:$16 sps:$4 sm:$0xff]  }
 0x790   : > { %5226 = vmatpush1.bf16.msra.mxu0 %v10375_v51  ;;  %9680 = vmatmul.mubr.msk.bf16.vlgmr.msra.gmra.mrb[8].mxu1 %vm5170_vm9, %v13157_v61  ;;  %v10475_v51 = vld [vmem:[%s12340_s0 + $0xcc] ss:$16 sps:$4 sm:$0xff]  }
 0x791   : > { %5227 = vmatprep.subr.bf16.mxu0 %v10382_v52  ;;  %5907 = vmatpush1.bf16.msra.mxu1 %v10434_v63  ;;  %v10476_v52 = vld [vmem:[%s12340_s0 + $0xe0] ss:$16 sps:$4 sm:$0xff]   ;;  %v10493_v63 = vld [vmem:[%s12340_s0 + $0x12c] ss:$16 sps:$4 sm:$0xff]  }
 0x792   : > { %5908 = vmatprep.subr.bf16.mxu1 %v10442_v1  ;;  %v10496_v1 = vld [vmem:[%s12340_s0 + $0x144] ss:$16 sps:$4 sm:$0xff]  }
 0x794   : > { %5228 = vmatpush1.bf16.msra.mxu0 %v10380_v55  ;;  %v10482_v55 = vld [vmem:[%s12340_s0 + $0x100] ss:$16 sps:$4 sm:$0xff]  }
 0x795   : > { %5229 = vmatprep.subr.bf16.mxu0 %v10387_v57  ;;  %5909 = vmatpush1.bf16.msra.mxu1 %v10440_v5  ;;  %v10484_v57 = vld [vmem:[%s12340_s0 + $0x104] ss:$16 sps:$4 sm:$0xff]   ;;  %v10499_v5 = vld [vmem:[%s12340_s0 + $0x14c] ss:$16 sps:$4 sm:$0xff]  }
 0x796   : > { %5910 = vmatprep.subr.bf16.mxu1 %v10448_v7  ;;  %v10494_v7 = vld [vmem:[%s12340_s0 + $0x140] ss:$16 sps:$4 sm:$0xff]  }
 0x798   : > { %5230 = vmatpush1.bf16.msra.mxu0 %v10385_v0  ;;  %v10479_v0 = vld [vmem:[%s12340_s0 + $0xe8] ss:$16 sps:$4 sm:$0xff]  }
 0x799   : > { %5231 = vmatprep.subr.bf16.mxu0 %v10392_v60  ;;  %5911 = vmatpush1.bf16.msra.mxu1 %v10446_v9  ;;  %v10488_v60 = vld [vmem:[%s12340_s0 + $0x120] ss:$16 sps:$4 sm:$0xff]   ;;  %v10497_v9 = vld [vmem:[%s12340_s0 + $0x148] ss:$16 sps:$4 sm:$0xff]  }
 0x79a   : > { %5912 = vmatprep.subr.bf16.mxu1 %v10454_v12  ;;  %v10502_v12 = vld [vmem:[%s12340_s0 + $0x164] ss:$16 sps:$4 sm:$0xff]  }
 0x79c   : > { %5232 = vmatpush1.bf16.msra.mxu0 %v10390_v62  ;;  %v10491_v62 = vld [vmem:[%s12340_s0 + $0x128] ss:$16 sps:$4 sm:$0xff]  }
 0x79d   : > { %5233 = vmatprep.subr.bf16.mxu0 %v13167_v2  ;;  %5913 = vmatpush1.bf16.msra.mxu1 %v10452_v13  ;;  %v10505_v13 = vld [vmem:[%s12340_s0 + $0x16c] ss:$16 sps:$4 sm:$0xff]  }
 0x79e   : > { %5914 = vmatprep.subr.bf16.mxu1 %v10460_v16  ;;  %v10500_v16 = vld [vmem:[%s12340_s0 + $0x160] ss:$16 sps:$4 sm:$0xff]  }
 0x7a0   : > { %5234 = vmatpush1.bf16.msra.mxu0 %v13172_v3 }
 0x7a1   : > { %5235 = vmatprep.subr.bf16.mxu0 %v13179_v4  ;;  %5915 = vmatpush1.bf16.msra.mxu1 %v10458_v34  ;;  %v10503_v34 = vld [vmem:[%s12340_s0 + $0x168] ss:$16 sps:$4 sm:$0xff]  }
 0x7a2   : > { %5916 = vmatprep.subr.bf16.mxu1 %v10466_v11  ;;  %v10508_v11 = vld [vmem:[%s12340_s0 + $0x184] ss:$16 sps:$4 sm:$0xff]  }
 0x7a4   : > { %5236 = vmatpush1.bf16.msra.mxu0 %v13188_v10 }
 0x7a5   : > { %5237 = vmatprep.subr.bf16.mxu0 %v13194_v31  ;;  %5917 = vmatpush1.bf16.msra.mxu1 %v10464_v38  ;;  %v10511_v38 = vld [vmem:[%s12340_s0 + $0x18c] ss:$16 sps:$4 sm:$0xff]  }
 0x7a6   : > { %5918 = vmatprep.subr.bf16.mxu1 %v10472_v30  ;;  %v10509_v30 = vld [vmem:[%s12340_s0 + $0x188] ss:$16 sps:$4 sm:$0xff]  }
 0x7a8   : > { %5238 = vmatpush1.bf16.msra.mxu0 %v13202_v14 }
 0x7a9   : > { %5239 = vmatprep.subr.bf16.mxu0 %v13208_v40  ;;  %5919 = vmatpush1.bf16.msra.mxu1 %v10470_v28  ;;  %v10506_v28 = vld [vmem:[%s12340_s0 + $0x180] ss:$16 sps:$4 sm:$0xff]  }
 0x7aa   : > { %5920 = vmatprep.subr.bf16.mxu1 %v10478_v53 }
 0x7ac   : > { %5240 = vmatpush1.bf16.msra.mxu0 %v13216_v17 }
 0x7ad   : > { %5241 = vmatprep.subr.bf16.mxu0 %v13222_v19  ;;  %5921 = vmatpush1.bf16.msra.mxu1 %v10476_v52  ;;  %v10535_v52 = vld [vmem:[%s12340_s0 + $0x20c] ss:$16 sps:$4 sm:$0xff]  }
 0x7ae   : > { %5922 = vmatprep.subr.bf16.mxu1 %v10484_v57 }
 0x7b0   : > { %5242 = vmatpush1.bf16.msra.mxu0 %v13230_v20 }
 0x7b1   : > { %5243 = vmatprep.subr.bf16.mxu0 %v13235_v44  ;;  %5923 = vmatpush1.bf16.msra.mxu1 %v10482_v55 }
 0x7b4   : > { %5244 = vmatpush1.bf16.msra.mxu0 %v13242_v35 }
 0x7b5   : > { %5245 = vmatprep.subr.bf16.mxu0 %v13247_v6 }
 0x7b8   : > { %5246 = vmatpush1.bf16.msra.mxu0 %v13254_v21 }
 0x7b9   : > { %5256 = vmatprep.subr.bf16.mxu0 %v13259_v22 }
 0x7bb   : > { %5248 = vmatmul.mubr.bf16.vlgmr.msra.gmra.mrb[0].mxu0 %v13107_v45  ;;  %v10455_v45 = vld [vmem:[%s12340_s0 + $0x68] ss:$16 sps:$4 sm:$0xff]  }
 0x7bc   : > { %5257 = vmatpush1.bf16.msra.mxu0 %v13266_v23  ;;  %5288 = vmatprep.mubr.bf16.mxu0 %v11625_v26 }
 0x7bd   : > { %5258 = vmatprep.subr.bf16.mxu0 %v13271_v24 }
 0x7c0   : > { %5259 = vmatpush1.bf16.msra.mxu0 %v13278_v25 }
 0x7c1   : > { %5260 = vmatprep.subr.bf16.mxu0 %v13287_v27 }
 0x7c4   : > { %5261 = vmatpush1.bf16.msra.mxu0 %v13294_v32 }
 0x7c5   : > { %5262 = vmatprep.subr.bf16.mxu0 %v13299_v29 }
 0x7c8   : > { %5263 = vmatpush1.bf16.msra.mxu0 %v13306_v33 }
 0x7c9   : > { %5988 = vmatprep.subr.bf16.mxu0 %v10439_v37  ;;  %v10514_v37 = vld [vmem:[%s12340_s0 + $0x1a4] ss:$16 sps:$4 sm:$0xff]  }
 0x7cb   : > { %9144 = vmatmul.mubr.msk.bf16.vlgmr.msra.gmra.mrb[0].mxu0 %vm5170_vm9, %v13157_v61  ;;  %v10490_v61 = vld [vmem:[%s12340_s0 + $0x124] ss:$16 sps:$4 sm:$0xff]  }
 0x7cc   : > { %5989 = vmatpush1.bf16.msra.mxu0 %v10437_v39  ;;  %5924 = vmatprep.subr.bf16.mxu1 %v10490_v61  ;;  %v10517_v39 = vld [vmem:[%s12340_s0 + $0x1ac] ss:$16 sps:$4 sm:$0xff]  }
 0x7cd   : > { %5990 = vmatprep.subr.bf16.mxu0 %v10445_v41  ;;  %5925 = vmatpush1.bf16.msra.mxu1 %v10488_v60  ;;  %v10512_v41 = vld [vmem:[%s12340_s0 + $0x1a0] ss:$16 sps:$4 sm:$0xff]  }
 0x7ce   : > { %5926 = vmatprep.subr.bf16.mxu1 %v10496_v1 }
 0x7d0   : > { %5991 = vmatpush1.bf16.msra.mxu0 %v10443_v18  ;;  %v10515_v18 = vld [vmem:[%s12340_s0 + $0x1a8] ss:$16 sps:$4 sm:$0xff]  }
 0x7d1   : > { %5992 = vmatprep.subr.bf16.mxu0 %v10451_v42  ;;  %5927 = vmatpush1.bf16.msra.mxu1 %v10494_v7  ;;  %v10520_v42 = vld [vmem:[%s12340_s0 + $0x1c4] ss:$16 sps:$4 sm:$0xff]  }
 0x7d2   : > { %5928 = vmatprep.subr.bf16.mxu1 %v10502_v12 }
 0x7d4   : > { %5993 = vmatpush1.bf16.msra.mxu0 %v10449_v36  ;;  %v10523_v36 = vld [vmem:[%s12340_s0 + $0x1cc] ss:$16 sps:$4 sm:$0xff]  }
 0x7d5   : > { %5994 = vmatprep.subr.bf16.mxu0 %v10457_v43  ;;  %5929 = vmatpush1.bf16.msra.mxu1 %v10500_v16  ;;  %v10518_v43 = vld [vmem:[%s12340_s0 + $0x1c0] ss:$16 sps:$4 sm:$0xff]  }
 0x7d6   : > { %5930 = vmatprep.subr.bf16.mxu1 %v10508_v11  ;;  %v4537_v11 = vsub.s32 0, %v12937_v49 }
 0x7d8   : > { %5995 = vmatpush1.bf16.msra.mxu0 %v10455_v45  ;;  %v10521_v45 = vld [vmem:[%s12340_s0 + $0x1c8] ss:$16 sps:$4 sm:$0xff]  }
 0x7d9   : > { %5996 = vmatprep.subr.bf16.mxu0 %v10463_v46  ;;  %5931 = vmatpush1.bf16.msra.mxu1 %v10506_v28  ;;  %v10526_v46 = vld [vmem:[%s12340_s0 + $0x1e4] ss:$16 sps:$4 sm:$0xff]  }
 0x7da   : > { %5932 = vmatprep.subr.bf16.mxu1 %v10514_v37 }
 0x7dc   : > { %5997 = vmatpush1.bf16.msra.mxu0 %v10461_v47  ;;  %v10529_v47 = vld [vmem:[%s12340_s0 + $0x1ec] ss:$16 sps:$4 sm:$0xff]  }
 0x7dd   : > { %5998 = vmatprep.subr.bf16.mxu0 %v10469_v15  ;;  %5933 = vmatpush1.bf16.msra.mxu1 %v10512_v41  ;;  %v10524_v15 = vld [vmem:[%s12340_s0 + $0x1e0] ss:$16 sps:$4 sm:$0xff]  }
 0x7de   : > { %5934 = vmatprep.subr.bf16.mxu1 %v10520_v42 }
 0x7e0   : > { %5999 = vmatpush1.bf16.msra.mxu0 %v10467_v50  ;;  %v10527_v50 = vld [vmem:[%s12340_s0 + $0x1e8] ss:$16 sps:$4 sm:$0xff]  }
 0x7e1   : > { %6000 = vmatprep.subr.bf16.mxu0 %v10475_v51  ;;  %5935 = vmatpush1.bf16.msra.mxu1 %v10518_v43  ;;  %v10532_v51 = vld [vmem:[%s12340_s0 + $0x204] ss:$16 sps:$4 sm:$0xff]  }
 0x7e2   : > { %5936 = vmatprep.subr.bf16.mxu1 %v10526_v46 }
 0x7e4   : > { %6001 = vmatpush1.bf16.msra.mxu0 %v10473_v54 }
 0x7e5   : > { %6002 = vmatprep.subr.bf16.mxu0 %v10481_v58  ;;  %5937 = vmatpush1.bf16.msra.mxu1 %v10524_v15  ;;  %v10533_v15 = vld [vmem:[%s12340_s0 + $0x208] ss:$16 sps:$4 sm:$0xff]  }
 0x7e6   : > { %5947 = vmatprep.subr.bf16.mxu1 %v10532_v51  ;;  %v10538_v51 = vld [vmem:[%s12340_s0 + $0x224] ss:$16 sps:$4 sm:$0xff]  }
 0x7e8   : > { %6003 = vmatpush1.bf16.msra.mxu0 %v10479_v0  ;;  %v4545_v0 = vsub.s32 2, %v12937_v49 }
 0x7e9   : > { %6004 = vmatprep.subr.bf16.mxu0 %v10487_v8  ;;  %v4533_v8 = vld [vmem:[#allocation10] sm:$0x7] }
 0x7ea   : > { %v13375_v28 = vrot.slane %v4533_v8, %v4537_v11 }
 0x7ec   : > { %6005 = vmatpush1.bf16.msra.mxu0 %v10485_v59  ;;  %v13368_v59 = vrot.slane %v4533_v8, %v4545_v0 }
 0x7ed   : > { %6006 = vmatprep.subr.bf16.mxu0 %v10493_v63 }
 0x7f0   : > { %6007 = vmatpush1.bf16.msra.mxu0 %v10491_v62 }
 0x7f1   : > { %6008 = vmatprep.subr.bf16.mxu0 %v10499_v5 }
 0x7f4   : > { %6009 = vmatpush1.bf16.msra.mxu0 %v10497_v9 }
 0x7f5   : > { %6010 = vmatprep.subr.bf16.mxu0 %v10505_v13 }
 0x7f8   : > { %6011 = vmatpush1.bf16.msra.mxu0 %v10503_v34 }
 0x7f9   : > { %6012 = vmatprep.subr.bf16.mxu0 %v10511_v38  ;;  %v4541_v38 = vsub.s32 1, %v12937_v49 }
 0x7fc   : > { %6013 = vmatpush1.bf16.msra.mxu0 %v10509_v30  ;;  %v13379_v30 = vrot.slane %v4533_v8, %v4541_v38  ;;  %v10542_v8 = vld [vmem:[%s12340_s0 + $0x240] ss:$16 sps:$4 sm:$0xff]  }
 0x7fd   : > { %6014 = vmatprep.subr.bf16.mxu0 %v10517_v39 }
 0x800   : > { %6015 = vmatpush1.bf16.msra.mxu0 %v10515_v18 }
 0x801   : > { %6016 = vmatprep.subr.bf16.mxu0 %v10523_v36 }
 0x804   : > { %6017 = vmatpush1.bf16.msra.mxu0 %v10521_v45 }
 0x805   : > { %6018 = vmatprep.subr.bf16.mxu0 %v10529_v47  ;;  %v10530_v47 = vld [vmem:[%s12340_s0 + $0x200] ss:$16 sps:$4 sm:$0xff]  }
 0x808   : > { %6019 = vmatpush1.bf16.msra.mxu0 %v10527_v50 }
 0x809   : > { %6029 = vmatprep.subr.bf16.mxu0 %v10535_v52  ;;  %v10541_v52 = vld [vmem:[%s12340_s0 + $0x22c] ss:$16 sps:$4 sm:$0xff]  }
 0x832   : > { %v9545_v53 = vpop.f32.mrb[0].mxu1 }
 0x833   : > { %v9546_v54 = vpop.f32.mrb[1].mxu1 }
 0x834   : > { %v9547_v55 = vadd.f32 %v9546_v54, %v9545_v53  ;;  %v9548_v57 = vpop.f32.mrb[2].mxu1  ;;  %v10536_v53 = vld [vmem:[%s12340_s0 + $0x220] ss:$16 sps:$4 sm:$0xff]   ;;  %v10539_v54 = vld [vmem:[%s12340_s0 + $0x228] ss:$16 sps:$4 sm:$0xff]  }
 0x835   : > { %v9549_v58 = vpop.f32.mrb[3].mxu1  ;;  %v10547_v57 = vld [vmem:[%s12340_s0 + $0x24c] ss:$16 sps:$4 sm:$0xff]  }
 0x836   : > { %v5332_v60 = vadd.f32 %v9547_v55, %v13368_v59  ;;  %v10544_v55 = vld [vmem:[%s12340_s0 + $0x244] ss:$16 sps:$4 sm:$0xff]   ;;  %v13394_v58 = vld [vmem:[%s12963_s27 + $0x5] sm:$0x1f] }
 0x853   : > { %v9567_v61 = vpop.f32.mrb[4].mxu1 }
 0x854   : > { %v9568_v62 = vpop.f32.mrb[5].mxu1 }
 0x855   : > { %v9569_v63 = vadd.f32 %v9568_v62, %v9567_v61  ;;  %v9570_v1 = vpop.f32.mrb[6].mxu1  ;;  %v10550_v61 = vld [vmem:[%s12340_s0 + $0x264] ss:$16 sps:$4 sm:$0xff]   ;;  %v10553_v62 = vld [vmem:[%s12340_s0 + $0x26c] ss:$16 sps:$4 sm:$0xff]  }
 0x856   : > { %v9571_v5 = vpop.f32.mrb[7].mxu1  ;;  %v10548_v1 = vld [vmem:[%s12340_s0 + $0x260] ss:$16 sps:$4 sm:$0xff]  }
 0x857   : > { %v5372_v7 = vadd.f32 %v9569_v63, %v5332_v60  ;;  %v10545_v60 = vld [vmem:[%s12340_s0 + $0x248] ss:$16 sps:$4 sm:$0xff]   ;;  %v13402_v63 = vrot.slane %v13394_v58, %v12955_v56 }
 0x858   : > { %v10551_v5 = vld [vmem:[%s12340_s0 + $0x268] ss:$16 sps:$4 sm:$0xff]  }
 0x863   : > { %v5411_v9 = vpop.f32.mrb[8].mxu1 }
 0x864   : > { %v5412_v12 = vadd.f32 %v5411_v9, %v5372_v7  ;;  %v9681_v13 = vpop.f32.mrb[9].mxu1  ;;  %v6113_v9 = vcombine.high %v13402_v63, %v13402_v63 }
 0x865   : > { %v5414_v16 = vpop.f32.mrb[10].mxu1 }
 0x866   : > { %v9682_v34 = vpop.f32.mrb[11].mxu1  ;;  %v5419_v7 = vmax.f32 %v5412_v12, 0.0  ;;  %v10675_v16 = vld [vmem:[%s14214_s28 + $0x4] ss:$12 sps:$4 sm:$0xff]   ;;  %v13415_v12 = vrot.slane %v6113_v9, %v12955_v56 }
 0x867   : > { %v10676_v34 = vld [vmem:[%s14214_s28 + $0xc8] ss:$12 sps:$4 sm:$0xff]   ;;  %v10702_v9 = vld [vmem:[%s14214_s28 + $0x98] ss:$12 sps:$4 sm:$0xff]  }
 0x868   : > { %v5422_v13 = vpack.c.bf16 %v5419_v7, %v5419_v7  ;;  %v10701_v7 = vld [vmem:[%s14214_s28 + $0x90] ss:$12 sps:$4 sm:$0xff]  }
 0x89e   : > { %v5290_v37 = vpop.f32.mrb[0].mxu0 }
 0x89f   : > { %v9707_v39 = vadd.f32 %v5290_v37, %v13375_v28  ;;  %v5292_v41 = vpop.f32.mrb[1].mxu0  ;;  %v10677_v37 = vld [vmem:[%s14214_s28] ss:$12 sps:$4 sm:$0xff]  }
 0x8a0   : > { %v9708_v18 = vadd.f32 %v5292_v41, %v13379_v30  ;;  %v5294_v42 = vpop.f32.mrb[2].mxu0  ;;  %v10679_v41 = vld [vmem:[%s14214_s28 + $0x1c] ss:$12 sps:$4 sm:$0xff]  }
 0x8a1   : > { %v5417_v36 = vmax.f32 %v9707_v39, 0.0  ;;  %v5295_v43 = vpop.f32.mrb[3].mxu0  ;;  %v10678_v39 = vld [vmem:[%s14214_s28 + $0x8] ss:$12 sps:$4 sm:$0xff]   ;;  %v10681_v42 = vld [vmem:[%s14214_s28 + $0x18] ss:$12 sps:$4 sm:$0xff]  }
 0x8a2   : > { %v5418_v45 = vmax.f32 %v9708_v18, 0.0  ;;  %v10680_v18 = vld [vmem:[%s14214_s28 + $0xe0] ss:$12 sps:$4 sm:$0xff]  }
 0x8a3   : > { %v5420_v50 = vpack.c.bf16 %v5417_v36, %v5417_v36  ;;  %v10682_v36 = vld [vmem:[%s14214_s28 + $0x20] ss:$12 sps:$4 sm:$0xff]  }
 0x8a4   : > { %v5421_v46 = vpack.c.bf16 %v5418_v45, %v5418_v45  ;;  %v10683_v43 = vld [vmem:[%s14214_s28 + $0x34] ss:$12 sps:$4 sm:$0xff]   ;;  %v10684_v45 = vld [vmem:[%s14214_s28 + $0xf8] ss:$12 sps:$4 sm:$0xff]  }
 0x8a6   : > { %5938 = vmatprep.mubr.bf16.mxu1 %v5421_v46  ;;  %6020 = vmatprep.mubr.bf16.mxu0 %v5421_v46  ;;  %v10685_v46 = vld [vmem:[%s14214_s28 + $0x30] ss:$12 sps:$4 sm:$0xff]  }
 0x8a7   : > { %5939 = vmatmul.mubr.bf16.vlgmr.msra.gmra.mrb[12].mxu1 %v5420_v50  ;;  %6021 = vmatmul.mubr.bf16.vlgmr.msra.gmra.mrb[4].mxu0 %v5420_v50  ;;  %v10688_v50 = vld [vmem:[%s14214_s28 + $0x110] ss:$12 sps:$4 sm:$0xff]  }
 0x8a8   : > { %5948 = vmatpush1.bf16.msra.mxu1 %v10530_v47  ;;  %6030 = vmatpush1.bf16.msra.mxu0 %v10533_v15  ;;  %v10686_v47 = vld [vmem:[%s14214_s28 + $0x38] ss:$12 sps:$4 sm:$0xff]  }
 0x8a9   : > { %5949 = vmatprep.subr.bf16.mxu1 %v10538_v51  ;;  %6031 = vmatprep.subr.bf16.mxu0 %v10541_v52  ;;  %v10687_v15 = vld [vmem:[%s14214_s28 + $0x4c] ss:$12 sps:$4 sm:$0xff]   ;;  %v10689_v51 = vld [vmem:[%s14214_s28 + $0x48] ss:$12 sps:$4 sm:$0xff]   ;;  %v10690_v52 = vld [vmem:[%s14214_s28 + $0x50] ss:$12 sps:$4 sm:$0xff]  }
 0x8aa   : > { %5979 = vmatprep.mubr.bf16.mxu1 %v11625_v26  ;;  %6061 = vmatprep.mubr.bf16.mxu0 %v11625_v26 }
 0x8ac   : > { %5950 = vmatpush1.bf16.msra.mxu1 %v10536_v53  ;;  %6032 = vmatpush1.bf16.msra.mxu0 %v10539_v54  ;;  %v10691_v53 = vld [vmem:[%s14214_s28 + $0x64] ss:$12 sps:$4 sm:$0xff]   ;;  %v10692_v54 = vld [vmem:[%s14214_s28 + $0x128] ss:$12 sps:$4 sm:$0xff]  }
 0x8ad   : > { %5951 = vmatprep.subr.bf16.mxu1 %v10544_v55  ;;  %6033 = vmatprep.subr.bf16.mxu0 %v10547_v57  ;;  %v10693_v55 = vld [vmem:[%s14214_s28 + $0x60] ss:$12 sps:$4 sm:$0xff]   ;;  %v10694_v57 = vld [vmem:[%s14214_s28 + $0x68] ss:$12 sps:$4 sm:$0xff]  }
 0x8b0   : > { %5952 = vmatpush1.bf16.msra.mxu1 %v10542_v8  ;;  %6034 = vmatpush1.bf16.msra.mxu0 %v10545_v60  ;;  %v10695_v8 = vld [vmem:[%s14214_s28 + $0x7c] ss:$12 sps:$4 sm:$0xff]   ;;  %v10696_v60 = vld [vmem:[%s14214_s28 + $0x140] ss:$12 sps:$4 sm:$0xff]  }
 0x8b1   : > { %5953 = vmatprep.subr.bf16.mxu1 %v10550_v61  ;;  %6035 = vmatprep.subr.bf16.mxu0 %v10553_v62  ;;  %v10697_v61 = vld [vmem:[%s14214_s28 + $0x78] ss:$12 sps:$4 sm:$0xff]   ;;  %v10698_v62 = vld [vmem:[%s14214_s28 + $0x80] ss:$12 sps:$4 sm:$0xff]  }
 0x8b4   : > { %5954 = vmatpush1.bf16.msra.mxu1 %v10548_v1  ;;  %6036 = vmatpush1.bf16.msra.mxu0 %v10551_v5  ;;  %v10699_v1 = vld [vmem:[%s14214_s28 + $0x94] ss:$12 sps:$4 sm:$0xff]   ;;  %v10700_v5 = vld [vmem:[%s14214_s28 + $0x158] ss:$12 sps:$4 sm:$0xff]  }
 0x8b5   : > { %6144 = vmatprep.subr.bf16.mxu1 %v10675_v16  ;;  %9578 = vmatprep.subr.bf16.mxu0 %v10676_v34  ;;  %v10704_v16 = vld [vmem:[%s14214_s28 + $0x170] ss:$12 sps:$4 sm:$0xff]   ;;  %v10705_v34 = vld [vmem:[%s14214_s28 + $0xa8] ss:$12 sps:$4 sm:$0xff]  }
 0x8b7   : > { %9226 = vmatmul.mubr.msk.bf16.vlgmr.msra.gmra.mrb[12].mxu1 %vm5170_vm9, %v5422_v13  ;;  %9227 = vmatmul.mubr.msk.bf16.vlgmr.msra.gmra.mrb[4].mxu0 %vm5170_vm9, %v5422_v13  ;;  %v10703_v13 = vld [vmem:[%s14214_s28 + $0xac] ss:$12 sps:$4 sm:$0xff]  }
 0x8b8   : > { %6145 = vmatpush1.bf16.msra.mxu1 %v10677_v37  ;;  %9579 = vmatpush3.bf16.msra.mxu0 %v10678_v39  ;;  %v10706_v37 = vld [vmem:[%s14214_s28 + $0xb0] ss:$12 sps:$4 sm:$0xff]  }
 0x8b9   : > { %6146 = vmatprep.subr.bf16.mxu1 %v10679_v41  ;;  %9580 = vmatprep.subr.bf16.mxu0 %v10680_v18  ;;  %v10707_v39 = vld [vmem:[%s14214_s28 + $0xc4] ss:$12 sps:$4 sm:$0xff]   ;;  %v13516_v41 = vrot.slane %v13402_v63, %v12955_v56  ;;  %v10708_v18 = vld [vmem:[%s14214_s28 + $0x248] ss:$12 sps:$4 sm:$0xff]  }
 0x8ba   : > { %6176 = vmatprep.mubr.bf16.mxu1 %v13415_v12  ;;  %6299 = vmatprep.mubr.bf16.mxu0 %v13415_v12  ;;  %v10710_v63 = vld [vmem:[%s14214_s28 + $0x188] ss:$12 sps:$4 sm:$0xff]  }
 0x8bc   : > { %6147 = vmatpush1.bf16.msra.mxu1 %v10681_v42  ;;  %9581 = vmatpush3.bf16.msra.mxu0 %v10682_v36  ;;  %v13523_v42 = vcombine.high %v13415_v12, %v13415_v12  ;;  %v10709_v36 = vld [vmem:[%s14214_s28 + $0xc0] ss:$12 sps:$4 sm:$0xff]  }
 0x8bd   : > { %6148 = vmatprep.subr.bf16.mxu1 %v10683_v43  ;;  %9582 = vmatprep.subr.bf16.mxu0 %v10684_v45  ;;  %v10711_v43 = vld [vmem:[%s14214_s28 + $0xdc] ss:$12 sps:$4 sm:$0xff]   ;;  %v10712_v12 = vld [vmem:[%s14214_s28 + $0x260] ss:$12 sps:$4 sm:$0xff]   ;;  %v10713_v45 = vld [vmem:[%s14214_s28 + $0xd8] ss:$12 sps:$4 sm:$0xff]  }
 0x8c0   : > { %6149 = vmatpush1.bf16.msra.mxu1 %v10685_v46  ;;  %9583 = vmatpush3.bf16.msra.mxu0 %v10686_v47  ;;  %v10714_v46 = vld [vmem:[%s14214_s28 + $0x1a0] ss:$12 sps:$4 sm:$0xff]  }
 0x8c1   : > { %6150 = vmatprep.subr.bf16.mxu1 %v10687_v15  ;;  %9584 = vmatprep.subr.bf16.mxu0 %v10688_v50  ;;  %v10715_v47 = vld [vmem:[%s14214_s28 + $0xf4] ss:$12 sps:$4 sm:$0xff]   ;;  %v10716_v15 = vld [vmem:[%s14214_s28 + $0x278] ss:$12 sps:$4 sm:$0xff]   ;;  %v10717_v50 = vld [vmem:[%s14214_s28 + $0xf0] ss:$12 sps:$4 sm:$0xff]  }
 0x8c4   : > { %6151 = vmatpush1.bf16.msra.mxu1 %v10689_v51  ;;  %9585 = vmatpush3.bf16.msra.mxu0 %v10690_v52  ;;  %v10718_v51 = vld [vmem:[%s14214_s28 + $0x1b8] ss:$12 sps:$4 sm:$0xff]  }
 0x8c5   : > { %6152 = vmatprep.subr.bf16.mxu1 %v10691_v53  ;;  %9586 = vmatprep.subr.bf16.mxu0 %v10692_v54  ;;  %v10719_v52 = vld [vmem:[%s14214_s28 + $0x10c] ss:$12 sps:$4 sm:$0xff]   ;;  %v10720_v53 = vld [vmem:[%s14214_s28 + $0x290] ss:$12 sps:$4 sm:$0xff]   ;;  %v10721_v54 = vld [vmem:[%s14214_s28 + $0x108] ss:$12 sps:$4 sm:$0xff]  }
 0x8c8   : > { %6153 = vmatpush1.bf16.msra.mxu1 %v10693_v55  ;;  %9587 = vmatpush3.bf16.msra.mxu0 %v10694_v57  ;;  %v10722_v55 = vld [vmem:[%s14214_s28 + $0x1d0] ss:$12 sps:$4 sm:$0xff]  }
 0x8c9   : > { %6154 = vmatprep.subr.bf16.mxu1 %v10695_v8  ;;  %9588 = vmatprep.subr.bf16.mxu0 %v10696_v60  ;;  %v10723_v57 = vld [vmem:[%s14214_s28 + $0x124] ss:$12 sps:$4 sm:$0xff]   ;;  %v10724_v8 = vld [vmem:[%s14214_s28 + $0x2a8] ss:$12 sps:$4 sm:$0xff]   ;;  %v10725_v60 = vld [vmem:[%s14214_s28 + $0x120] ss:$12 sps:$4 sm:$0xff]  }
 0x8cc   : > { %6155 = vmatpush1.bf16.msra.mxu1 %v10697_v61  ;;  %9589 = vmatpush3.bf16.msra.mxu0 %v10698_v62  ;;  %v10726_v61 = vld [vmem:[%s14214_s28 + $0x1e8] ss:$12 sps:$4 sm:$0xff]  }
 0x8cd   : > { %6156 = vmatprep.subr.bf16.mxu1 %v10699_v1  ;;  %9590 = vmatprep.subr.bf16.mxu0 %v10700_v5  ;;  %v10727_v62 = vld [vmem:[%s14214_s28 + $0x13c] ss:$12 sps:$4 sm:$0xff]   ;;  %v10728_v1 = vld [vmem:[%s14214_s28 + $0x2c0] ss:$12 sps:$4 sm:$0xff]   ;;  %v10729_v5 = vld [vmem:[%s14214_s28 + $0x138] ss:$12 sps:$4 sm:$0xff]  }
 0x8d0   : > { %6157 = vmatpush1.bf16.msra.mxu1 %v10701_v7  ;;  %9591 = vmatpush3.bf16.msra.mxu0 %v10702_v9  ;;  %v10730_v7 = vld [vmem:[%s14214_s28 + $0x200] ss:$12 sps:$4 sm:$0xff]  }
 0x8d1   : > { %6158 = vmatprep.subr.bf16.mxu1 %v10703_v13  ;;  %9592 = vmatprep.subr.bf16.mxu0 %v10704_v16  ;;  %v10731_v9 = vld [vmem:[%s14214_s28 + $0x154] ss:$12 sps:$4 sm:$0xff]   ;;  %v10732_v13 = vld [vmem:[%s14214_s28 + $0x2d8] ss:$12 sps:$4 sm:$0xff]   ;;  %v10733_v16 = vld [vmem:[%s14214_s28 + $0x150] ss:$12 sps:$4 sm:$0xff]  }
 0x8d4   : > { %6159 = vmatpush1.bf16.msra.mxu1 %v10705_v34  ;;  %9593 = vmatpush3.bf16.msra.mxu0 %v10706_v37  ;;  %v10734_v34 = vld [vmem:[%s14214_s28 + $0x218] ss:$12 sps:$4 sm:$0xff]  }
 0x8d5   : > { %6160 = vmatprep.subr.bf16.mxu1 %v10707_v39  ;;  %9600 = vmatprep.subr.bf16.mxu0 %v10708_v18  ;;  %v10735_v37 = vld [vmem:[%s14214_s28 + $0x16c] ss:$12 sps:$4 sm:$0xff]   ;;  %v10736_v39 = vld [vmem:[%s14214_s28 + $0x2f0] ss:$12 sps:$4 sm:$0xff]   ;;  %v13613_v18 = vcombine.high %v13516_v41, %v13516_v41 }
 0x8d7   : > { %6300 = vmatmul.mubr.bf16.vlgmr.msra.gmra.mrb[8].mxu0 %v13516_v41 }
 0x8d8   : > { %6161 = vmatpush1.bf16.msra.mxu1 %v10709_v36  ;;  %9601 = vmatpush3.bf16.msra.mxu0 %v10710_v63  ;;  %v10737_v36 = vld [vmem:[%s14214_s28 + $0x168] ss:$12 sps:$4 sm:$0xff]   ;;  %v10738_v63 = vld [vmem:[%s14214_s28 + $0x230] ss:$12 sps:$4 sm:$0xff]  }
 0x8d9   : > { %6162 = vmatprep.subr.bf16.mxu1 %v10711_v43  ;;  %9602 = vmatprep.subr.bf16.mxu0 %v10712_v12  ;;  %v10739_v43 = vld [vmem:[%s14214_s28 + $0x184] ss:$12 sps:$4 sm:$0xff]   ;;  %v10740_v12 = vld [vmem:[%s14214_s28 + $0x180] ss:$12 sps:$4 sm:$0xff]  }
 0x8da   : > { %6339 = vmatprep.mubr.bf16.mxu0 %v13523_v42 }
 0x8dc   : > { %6163 = vmatpush1.bf16.msra.mxu1 %v10713_v45  ;;  %9603 = vmatpush3.bf16.msra.mxu0 %v10714_v46  ;;  %v10741_v45 = vld [vmem:[%s14214_s28 + $0x308] ss:$12 sps:$4 sm:$0xff]  }
 0x8dd   : > { %6164 = vmatprep.subr.bf16.mxu1 %v10715_v47  ;;  %9604 = vmatprep.subr.bf16.mxu0 %v10716_v15  ;;  %v10742_v46 = vld [vmem:[%s14214_s28 + $0x19c] ss:$12 sps:$4 sm:$0xff]   ;;  %v10743_v47 = vld [vmem:[%s14214_s28 + $0x198] ss:$12 sps:$4 sm:$0xff]   ;;  %v10744_v15 = vld [vmem:[%s14214_s28 + $0x320] ss:$12 sps:$4 sm:$0xff]  }
 0x8e0   : > { %6165 = vmatpush1.bf16.msra.mxu1 %v10717_v50  ;;  %9605 = vmatpush3.bf16.msra.mxu0 %v10718_v51  ;;  %v10745_v50 = vld [vmem:[%s14214_s28 + $0x1b4] ss:$12 sps:$4 sm:$0xff]   ;;  %v10747_v51 = vld [vmem:[%s14214_s28 + $0x338] ss:$12 sps:$4 sm:$0xff]  }
 0x8e1   : > { %6166 = vmatprep.subr.bf16.mxu1 %v10719_v52  ;;  %9606 = vmatprep.subr.bf16.mxu0 %v10720_v53  ;;  %v10748_v52 = vld [vmem:[%s14214_s28 + $0x1cc] ss:$12 sps:$4 sm:$0xff]  }
 0x8e4   : > { %6167 = vmatpush1.bf16.msra.mxu1 %v10721_v54  ;;  %9607 = vmatpush3.bf16.msra.mxu0 %v10722_v55  ;;  %v10749_v54 = vld [vmem:[%s14214_s28 + $0x1c8] ss:$12 sps:$4 sm:$0xff]   ;;  %v10750_v55 = vld [vmem:[%s14214_s28 + $0x350] ss:$12 sps:$4 sm:$0xff]  }
 0x8e5   : > { %6168 = vmatprep.subr.bf16.mxu1 %v10723_v57  ;;  %9608 = vmatprep.subr.bf16.mxu0 %v10724_v8  ;;  %v10751_v57 = vld [vmem:[%s14214_s28 + $0x1e4] ss:$12 sps:$4 sm:$0xff]  }
 0x8e6   : > { %v10754_v8 = vld [vmem:[%s14214_s28 + $0x1f8] ss:$12 sps:$4 sm:$0xff]  }
 0x8e8   : > { %6169 = vmatpush1.bf16.msra.mxu1 %v10725_v60  ;;  %9609 = vmatpush3.bf16.msra.mxu0 %v10726_v61  ;;  %v10755_v60 = vld [vmem:[%s14214_s28 + $0x214] ss:$12 sps:$4 sm:$0xff]   ;;  %v10756_v61 = vld [vmem:[%s14214_s28 + $0x210] ss:$12 sps:$4 sm:$0xff]  }
 0x8e9   : > { %6170 = vmatprep.subr.bf16.mxu1 %v10727_v62  ;;  %9610 = vmatprep.subr.bf16.mxu0 %v10728_v1  ;;  %v10757_v62 = vld [vmem:[%s14214_s28 + $0x22c] ss:$12 sps:$4 sm:$0xff]  }
 0x8ea   : > { %v10555_v1 = vld [vmem:[%s12340_s0 + $0x280] ss:$16 sps:$4 sm:$0xff]  }
 0x8ec   : > { %6171 = vmatpush1.bf16.msra.mxu1 %v10729_v5  ;;  %9611 = vmatpush3.bf16.msra.mxu0 %v10730_v7  ;;  %v10557_v5 = vld [vmem:[%s12340_s0 + $0x284] ss:$16 sps:$4 sm:$0xff]  }
 0x8ed   : > { %6172 = vmatprep.subr.bf16.mxu1 %v10731_v9  ;;  %9612 = vmatprep.subr.bf16.mxu0 %v10732_v13  ;;  %v10563_v7 = vld [vmem:[%s12340_s0 + $0x2a4] ss:$16 sps:$4 sm:$0xff]   ;;  %v10759_v13 = vld [vmem:[%s14214_s28 + $0x244] ss:$12 sps:$4 sm:$0xff]  }
 0x8ee   : > { %v10758_v9 = vld [vmem:[%s14214_s28 + $0x228] ss:$12 sps:$4 sm:$0xff]  }
 0x8f0   : > { %6173 = vmatpush1.bf16.msra.mxu1 %v10733_v16  ;;  %9613 = vmatpush3.bf16.msra.mxu0 %v10734_v34  ;;  %v10561_v16 = vld [vmem:[%s12340_s0 + $0x2a0] ss:$16 sps:$4 sm:$0xff]   ;;  %v10569_v34 = vld [vmem:[%s12340_s0 + $0x2c4] ss:$16 sps:$4 sm:$0xff]  }
 0x8f1   : > { %6174 = vmatprep.subr.bf16.mxu1 %v10735_v37  ;;  %9614 = vmatprep.subr.bf16.mxu0 %v10736_v39  ;;  %v10760_v37 = vld [vmem:[%s14214_s28 + $0x240] ss:$12 sps:$4 sm:$0xff]   ;;  %v10567_v39 = vld [vmem:[%s12340_s0 + $0x2c0] ss:$16 sps:$4 sm:$0xff]  }
 0x8f4   : > { %6175 = vmatpush1.bf16.msra.mxu1 %v10737_v36  ;;  %9615 = vmatpush3.bf16.msra.mxu0 %v10738_v63  ;;  %v10575_v36 = vld [vmem:[%s12340_s0 + $0x2e4] ss:$16 sps:$4 sm:$0xff]   ;;  %v10573_v63 = vld [vmem:[%s12340_s0 + $0x2e0] ss:$16 sps:$4 sm:$0xff]  }
 0x8f5   : > { %6185 = vmatprep.subr.bf16.mxu1 %v10739_v43  ;;  %9683 = vmatprep.subr.bf16.mxu0 %v11623_v48  ;;  %v10581_v43 = vld [vmem:[%s12340_s0 + $0x304] ss:$16 sps:$4 sm:$0xff]  }
 0x8f7   : > { %6177 = vmatmul.mubr.bf16.vlgmr.msra.gmra.mrb[16].mxu1 %v13516_v41  ;;  %6340 = vmatmul.mubr.bf16.vlgmr.msra.gmra.mrb[12].mxu0 %v13613_v18  ;;  %v6098_v41 = vcombine.high %v13394_v58, %v13394_v58  ;;  %v10746_v58 = vld [vmem:[%s14214_s28 + $0x1b0] ss:$12 sps:$4 sm:$0xff]  }
 0x8f8   : > { %6186 = vmatpush1.bf16.msra.mxu1 %v10740_v12  ;;  %9684 = vmatpush3.bf16.msra.mxu0 %v10741_v45  ;;  %v10587_v12 = vld [vmem:[%s12340_s0 + $0x324] ss:$16 sps:$4 sm:$0xff]   ;;  %v10600_v45 = vld [vmem:[%s12340_s0 + $0x368] ss:$16 sps:$4 sm:$0xff]  }
 0x8f9   : > { %6187 = vmatprep.subr.bf16.mxu1 %v10742_v46  ;;  %9685 = vmatprep.subr.bf16.mxu0 %v11623_v48  ;;  %v10611_v46 = vld [vmem:[%s12340_s0 + $0x3a4] ss:$16 sps:$4 sm:$0xff]  }
 0x8fa   : > { %9691 = vmatprep.mubr.msk.bf16.mxu0 %vm11624_vm8, %v11623_v48  ;;  %6217 = vmatprep.mubr.bf16.mxu1 %v13523_v42  ;;  %v6112_v42 = vrot.slane %v6098_v41, %v12955_v56  ;;  %v10608_v41 = vld [vmem:[%s12340_s0 + $0x38c] ss:$16 sps:$4 sm:$0xff]  }
 0x8fc   : > { %6188 = vmatpush1.bf16.msra.mxu1 %v10743_v47  ;;  %9686 = vmatpush3.bf16.msra.mxu0 %v10744_v15  ;;  %v13664_v53 = vrot.slane %v6112_v42, %v12955_v56  ;;  %v10752_v56 = vld [vmem:[%s14214_s28 + $0x1e0] ss:$12 sps:$4 sm:$0xff]   ;;  %v10609_v47 = vld [vmem:[%s12340_s0 + $0x3a0] ss:$16 sps:$4 sm:$0xff]  }
 0x8fd   : > { %6189 = vmatprep.subr.bf16.mxu1 %v10745_v50  ;;  %9687 = vmatprep.subr.bf16.mxu0 %v11623_v48  ;;  %v10617_v15 = vld [vmem:[%s12340_s0 + $0x3c4] ss:$16 sps:$4 sm:$0xff]   ;;  %v10606_v50 = vld [vmem:[%s12340_s0 + $0x388] ss:$16 sps:$4 sm:$0xff]   ;;  %v10614_v42 = vld [vmem:[%s12340_s0 + $0x3ac] ss:$16 sps:$4 sm:$0xff]  }
 0x900   : > { %6190 = vmatpush1.bf16.msra.mxu1 %v10746_v58  ;;  %9688 = vmatpush3.bf16.msra.mxu0 %v10747_v51  ;;  %v10615_v58 = vld [vmem:[%s12340_s0 + $0x3c0] ss:$16 sps:$4 sm:$0xff]   ;;  %v10623_v51 = vld [vmem:[%s12340_s0 + $0x3e4] ss:$16 sps:$4 sm:$0xff]  }
 0x901   : > { %6191 = vmatprep.subr.bf16.mxu1 %v10748_v52  ;;  %9689 = vmatprep.subr.bf16.mxu0 %v11623_v48  ;;  %v10753_v48 = vld [vmem:[%s14214_s28 + $0x1fc] ss:$12 sps:$4 sm:$0xff]  }
 0x902   : > { %v10612_v52 = vld [vmem:[%s12340_s0 + $0x3a8] ss:$16 sps:$4 sm:$0xff]  }
 0x904   : > { %6192 = vmatpush1.bf16.msra.mxu1 %v10749_v54  ;;  %9690 = vmatpush3.bf16.msra.mxu0 %v10750_v55  ;;  %v10621_v54 = vld [vmem:[%s12340_s0 + $0x3e0] ss:$16 sps:$4 sm:$0xff]   ;;  %v10629_v55 = vld [vmem:[%s12340_s0 + $0x404] ss:$16 sps:$4 sm:$0xff]  }
 0x905   : > { %6193 = vmatprep.subr.bf16.mxu1 %v10751_v57  ;;  %6876 = vmatprep.subr.bf16.mxu0 %v10557_v5  ;;  %v10618_v57 = vld [vmem:[%s12340_s0 + $0x3c8] ss:$16 sps:$4 sm:$0xff]   ;;  %v10638_v5 = vld [vmem:[%s12340_s0 + $0x42c] ss:$16 sps:$4 sm:$0xff]  }
 0x907   : > { %9692 = vmatmul.mubr.msk.bf16.vlgmr.msra.gmra.mrb[16].mxu0 %vm5170_vm9, %v13664_v53 }
 0x908   : > { %6194 = vmatpush1.bf16.msra.mxu1 %v10752_v56  ;;  %6877 = vmatpush1.bf16.msra.mxu0 %v10555_v1  ;;  %v10626_v56 = vld [vmem:[%s12340_s0 + $0x3ec] ss:$16 sps:$4 sm:$0xff]   ;;  %v10630_v1 = vld [vmem:[%s12340_s0 + $0x408] ss:$16 sps:$4 sm:$0xff]  }
 0x909   : > { %6195 = vmatprep.subr.bf16.mxu1 %v10753_v48  ;;  %6878 = vmatprep.subr.bf16.mxu0 %v10563_v7  ;;  %v10627_v48 = vld [vmem:[%s12340_s0 + $0x400] ss:$16 sps:$4 sm:$0xff]   ;;  %v10636_v7 = vld [vmem:[%s12340_s0 + $0x428] ss:$16 sps:$4 sm:$0xff]  }
 0x90c   : > { %6196 = vmatpush1.bf16.msra.mxu1 %v10754_v8  ;;  %6879 = vmatpush1.bf16.msra.mxu0 %v10561_v16  ;;  %v10635_v8 = vld [vmem:[%s12340_s0 + $0x424] ss:$16 sps:$4 sm:$0xff]  }
 0x90d   : > { %6197 = vmatprep.subr.bf16.mxu1 %v10755_v60  ;;  %6880 = vmatprep.subr.bf16.mxu0 %v10569_v34  ;;  %v10624_v60 = vld [vmem:[%s12340_s0 + $0x3e8] ss:$16 sps:$4 sm:$0xff]  }
 0x910   : > { %6198 = vmatpush1.bf16.msra.mxu1 %v10756_v61  ;;  %6881 = vmatpush1.bf16.msra.mxu0 %v10567_v39  ;;  %v10632_v61 = vld [vmem:[%s12340_s0 + $0x40c] ss:$16 sps:$4 sm:$0xff]  }
 0x911   : > { %6199 = vmatprep.subr.bf16.mxu1 %v10757_v62  ;;  %6882 = vmatprep.subr.bf16.mxu0 %v10575_v36  ;;  %v10633_v62 = vld [vmem:[%s12340_s0 + $0x420] ss:$16 sps:$4 sm:$0xff]  }
 0x914   : > { %6200 = vmatpush1.bf16.msra.mxu1 %v10758_v9  ;;  %6883 = vmatpush1.bf16.msra.mxu0 %v10573_v63  ;;  %v11626_v9 = vmov 1983009808  }
 0x915   : > { %6201 = vmatprep.subr.bf16.mxu1 %v10759_v13  ;;  %6884 = vmatprep.subr.bf16.mxu0 %v10581_v43  ;;  %v6077_v13 = vunpack.c.l.s4 %v11626_v9  ;;  %v10662_v9 = vld [vmem:[%s12340_s0 + $0x4ac] ss:$16 sps:$4 sm:$0xff]  }
 0x917   : > { %v6078_v16 = vunpack.c.0.s8 %v6077_v13  ;;  %v10665_v13 = vld [vmem:[%s12340_s0 + $0x4c4] ss:$16 sps:$4 sm:$0xff]  }
 0x918   : > { %6202 = vmatpush1.bf16.msra.mxu1 %v10760_v37 }
 0x919   : > { %6203 = vmatprep.subr.bf16.mxu1 %v13167_v2  ;;  %v10579_v2 = vld [vmem:[%s12340_s0 + $0x300] ss:$16 sps:$4 sm:$0xff]   ;;  %v13787_v39 = vsub.s32 %v6078_v16, %v12937_v49  ;;  %v10668_v16 = vld [vmem:[%s12340_s0 + $0x4cc] ss:$16 sps:$4 sm:$0xff]  }
 0x91a   : > { %6885 = vmatpush1.bf16.msra.mxu0 %v10579_v2 }
 0x91b   : > { %6886 = vmatprep.subr.bf16.mxu0 %v10587_v12 }
 0x91c   : > { %6204 = vmatpush1.bf16.msra.mxu1 %v13172_v3  ;;  %v10585_v3 = vld [vmem:[%s12340_s0 + $0x320] ss:$16 sps:$4 sm:$0xff]  }
 0x91d   : > { %6205 = vmatprep.subr.bf16.mxu1 %v13179_v4  ;;  %v10591_v4 = vld [vmem:[%s12340_s0 + $0x340] ss:$16 sps:$4 sm:$0xff]  }
 0x91e   : > { %6887 = vmatpush1.bf16.msra.mxu0 %v10585_v3 }
 0x920   : > { %6206 = vmatpush1.bf16.msra.mxu1 %v13188_v10  ;;  %v10593_v10 = vld [vmem:[%s12340_s0 + $0x344] ss:$16 sps:$4 sm:$0xff]  }
 0x921   : > { %6207 = vmatprep.subr.bf16.mxu1 %v13194_v31  ;;  %6888 = vmatprep.subr.bf16.mxu0 %v10593_v10  ;;  %v10560_v31 = vld [vmem:[%s12340_s0 + $0x28c] ss:$16 sps:$4 sm:$0xff]  }
 0x922   : > { %6889 = vmatpush1.bf16.msra.mxu0 %v10591_v4 }
 0x924   : > { %6208 = vmatpush1.bf16.msra.mxu1 %v13202_v14  ;;  %v10558_v14 = vld [vmem:[%s12340_s0 + $0x288] ss:$16 sps:$4 sm:$0xff]  }
 0x925   : > { %6209 = vmatprep.subr.bf16.mxu1 %v13208_v40  ;;  %v10566_v40 = vld [vmem:[%s12340_s0 + $0x2ac] ss:$16 sps:$4 sm:$0xff]  }
 0x928   : > { %6210 = vmatpush1.bf16.msra.mxu1 %v13216_v17  ;;  %v10564_v17 = vld [vmem:[%s12340_s0 + $0x2a8] ss:$16 sps:$4 sm:$0xff]  }
 0x929   : > { %6211 = vmatprep.subr.bf16.mxu1 %v13222_v19  ;;  %v10572_v19 = vld [vmem:[%s12340_s0 + $0x2cc] ss:$16 sps:$4 sm:$0xff]  }
 0x92c   : > { %6212 = vmatpush1.bf16.msra.mxu1 %v13230_v20  ;;  %v10570_v20 = vld [vmem:[%s12340_s0 + $0x2c8] ss:$16 sps:$4 sm:$0xff]  }
 0x92d   : > { %6213 = vmatprep.subr.bf16.mxu1 %v13235_v44  ;;  %v10597_v44 = vld [vmem:[%s12340_s0 + $0x360] ss:$16 sps:$4 sm:$0xff]  }
 0x930   : > { %6214 = vmatpush1.bf16.msra.mxu1 %v13242_v35  ;;  %v10599_v35 = vld [vmem:[%s12340_s0 + $0x364] ss:$16 sps:$4 sm:$0xff]  }
 0x931   : > { %6215 = vmatprep.subr.bf16.mxu1 %v13247_v6  ;;  %v10578_v6 = vld [vmem:[%s12340_s0 + $0x2ec] ss:$16 sps:$4 sm:$0xff]   ;;  %6890 = vmatprep.subr.bf16.mxu0 %v10599_v35  ;;  %v10647_v35 = vld [vmem:[%s12340_s0 + $0x464] ss:$16 sps:$4 sm:$0xff]  }
 0x932   : > { %6891 = vmatpush1.bf16.msra.mxu0 %v10597_v44  ;;  %v10642_v44 = vld [vmem:[%s12340_s0 + $0x448] ss:$16 sps:$4 sm:$0xff]  }
 0x934   : > { %6216 = vmatpush1.bf16.msra.mxu1 %v13254_v21  ;;  %v10576_v21 = vld [vmem:[%s12340_s0 + $0x2e8] ss:$16 sps:$4 sm:$0xff]  }
 0x935   : > { %6226 = vmatprep.subr.bf16.mxu1 %v13259_v22  ;;  %v10584_v22 = vld [vmem:[%s12340_s0 + $0x30c] ss:$16 sps:$4 sm:$0xff]  }
 0x937   : > { %6218 = vmatmul.mubr.bf16.vlgmr.msra.gmra.mrb[16].mxu1 %v13613_v18  ;;  %v10605_v18 = vld [vmem:[%s12340_s0 + $0x384] ss:$16 sps:$4 sm:$0xff]  }
 0x938   : > { %6227 = vmatpush1.bf16.msra.mxu1 %v13266_v23  ;;  %6258 = vmatprep.mubr.bf16.mxu1 %v11625_v26  ;;  %v10582_v23 = vld [vmem:[%s12340_s0 + $0x308] ss:$16 sps:$4 sm:$0xff]  }
 0x939   : > { %6228 = vmatprep.subr.bf16.mxu1 %v13271_v24  ;;  %v10590_v24 = vld [vmem:[%s12340_s0 + $0x32c] ss:$16 sps:$4 sm:$0xff]   ;;  %6892 = vmatprep.subr.bf16.mxu0 %v10605_v18 }
 0x93c   : > { %6229 = vmatpush1.bf16.msra.mxu1 %v13278_v25  ;;  %v10588_v25 = vld [vmem:[%s12340_s0 + $0x328] ss:$16 sps:$4 sm:$0xff]  }
 0x93d   : > { %6230 = vmatprep.subr.bf16.mxu1 %v13287_v27  ;;  %v10596_v27 = vld [vmem:[%s12340_s0 + $0x34c] ss:$16 sps:$4 sm:$0xff]  }
 0x940   : > { %6231 = vmatpush1.bf16.msra.mxu1 %v13294_v32  ;;  %v10594_v32 = vld [vmem:[%s12340_s0 + $0x348] ss:$16 sps:$4 sm:$0xff]  }
 0x941   : > { %6232 = vmatprep.subr.bf16.mxu1 %v13299_v29  ;;  %v10602_v29 = vld [vmem:[%s12340_s0 + $0x36c] ss:$16 sps:$4 sm:$0xff]  }
 0x944   : > { %6233 = vmatpush1.bf16.msra.mxu1 %v13306_v33  ;;  %v10603_v33 = vld [vmem:[%s12340_s0 + $0x380] ss:$16 sps:$4 sm:$0xff]  }
 0x945   : > { %6958 = vmatprep.subr.bf16.mxu1 %v10560_v31  ;;  %6893 = vmatpush1.bf16.msra.mxu0 %v10603_v33 }
 0x946   : > { %6894 = vmatprep.subr.bf16.mxu0 %v10611_v46 }
 0x947   : > { %9231 = vmatmul.mubr.msk.bf16.vlgmr.msra.gmra.mrb[16].mxu1 %vm5170_vm9, %v13664_v53  ;;  %v10620_v53 = vld [vmem:[%s12340_s0 + $0x3cc] ss:$16 sps:$4 sm:$0xff]  }
 0x948   : > { %6959 = vmatpush1.bf16.msra.mxu1 %v10558_v14 }
 0x949   : > { %6960 = vmatprep.subr.bf16.mxu1 %v10566_v40  ;;  %6895 = vmatpush1.bf16.msra.mxu0 %v10609_v47 }
 0x94a   : > { %6896 = vmatprep.subr.bf16.mxu0 %v10617_v15 }
 0x94c   : > { %6961 = vmatpush1.bf16.msra.mxu1 %v10564_v17  ;;  %v10641_v17 = vld [vmem:[%s12340_s0 + $0x444] ss:$16 sps:$4 sm:$0xff]  }
 0x94d   : > { %6962 = vmatprep.subr.bf16.mxu1 %v10572_v19  ;;  %6897 = vmatpush1.bf16.msra.mxu0 %v10615_v58  ;;  %v10644_v19 = vld [vmem:[%s12340_s0 + $0x44c] ss:$16 sps:$4 sm:$0xff]  }
 0x94e   : > { %6898 = vmatprep.subr.bf16.mxu0 %v10623_v51 }
 0x950   : > { %6963 = vmatpush1.bf16.msra.mxu1 %v10570_v20  ;;  %v10639_v20 = vld [vmem:[%s12340_s0 + $0x440] ss:$16 sps:$4 sm:$0xff]  }
 0x951   : > { %6964 = vmatprep.subr.bf16.mxu1 %v10578_v6  ;;  %6899 = vmatpush1.bf16.msra.mxu0 %v10621_v54  ;;  %v10650_v6 = vld [vmem:[%s12340_s0 + $0x46c] ss:$16 sps:$4 sm:$0xff]  }
 0x952   : > { %6900 = vmatprep.subr.bf16.mxu0 %v10629_v55 }
 0x954   : > { %6965 = vmatpush1.bf16.msra.mxu1 %v10576_v21  ;;  %v10645_v21 = vld [vmem:[%s12340_s0 + $0x460] ss:$16 sps:$4 sm:$0xff]  }
 0x955   : > { %6966 = vmatprep.subr.bf16.mxu1 %v10584_v22  ;;  %6901 = vmatpush1.bf16.msra.mxu0 %v10627_v48  ;;  %v10648_v22 = vld [vmem:[%s12340_s0 + $0x468] ss:$16 sps:$4 sm:$0xff]  }
 0x956   : > { %6902 = vmatprep.subr.bf16.mxu0 %v10635_v8 }
 0x958   : > { %6967 = vmatpush1.bf16.msra.mxu1 %v10582_v23  ;;  %v10653_v23 = vld [vmem:[%s12340_s0 + $0x484] ss:$16 sps:$4 sm:$0xff]  }
 0x959   : > { %6968 = vmatprep.subr.bf16.mxu1 %v10590_v24  ;;  %6903 = vmatpush1.bf16.msra.mxu0 %v10633_v62  ;;  %v10656_v24 = vld [vmem:[%s12340_s0 + $0x48c] ss:$16 sps:$4 sm:$0xff]   ;;  %v10651_v62 = vld [vmem:[%s12340_s0 + $0x480] ss:$16 sps:$4 sm:$0xff]  }
 0x95a   : > { %6904 = vmatprep.subr.bf16.mxu0 %v10641_v17 }
 0x95c   : > { %6969 = vmatpush1.bf16.msra.mxu1 %v10588_v25 }
 0x95d   : > { %6970 = vmatprep.subr.bf16.mxu1 %v10596_v27  ;;  %6905 = vmatpush1.bf16.msra.mxu0 %v10639_v20 }
 0x95e   : > { %6906 = vmatprep.subr.bf16.mxu0 %v10647_v35 }
 0x960   : > { %6971 = vmatpush1.bf16.msra.mxu1 %v10594_v32 }
 0x961   : > { %6972 = vmatprep.subr.bf16.mxu1 %v10602_v29  ;;  %6907 = vmatpush1.bf16.msra.mxu0 %v10645_v21 }
 0x962   : > { %6917 = vmatprep.subr.bf16.mxu0 %v10653_v23 }
 0x964   : > { %6973 = vmatpush1.bf16.msra.mxu1 %v10600_v45 }
 0x965   : > { %6974 = vmatprep.subr.bf16.mxu1 %v10608_v41 }
 0x968   : > { %6975 = vmatpush1.bf16.msra.mxu1 %v10606_v50 }
 0x969   : > { %6976 = vmatprep.subr.bf16.mxu1 %v10614_v42 }
 0x96c   : > { %6977 = vmatpush1.bf16.msra.mxu1 %v10612_v52 }
 0x96d   : > { %6978 = vmatprep.subr.bf16.mxu1 %v10620_v53 }
 0x970   : > { %6979 = vmatpush1.bf16.msra.mxu1 %v10618_v57 }
 0x971   : > { %6980 = vmatprep.subr.bf16.mxu1 %v10626_v56 }
 0x974   : > { %6981 = vmatpush1.bf16.msra.mxu1 %v10624_v60 }
 0x975   : > { %6982 = vmatprep.subr.bf16.mxu1 %v10632_v61 }
 0x978   : > { %6983 = vmatpush1.bf16.msra.mxu1 %v10630_v1  ;;  %v10654_v1 = vld [vmem:[%s12340_s0 + $0x488] ss:$16 sps:$4 sm:$0xff]  }
 0x979   : > { %6984 = vmatprep.subr.bf16.mxu1 %v10638_v5 }
 0x97c   : > { %6985 = vmatpush1.bf16.msra.mxu1 %v10636_v7  ;;  %v10659_v7 = vld [vmem:[%s12340_s0 + $0x4a4] ss:$16 sps:$4 sm:$0xff]  }
 0x97d   : > { %6986 = vmatprep.subr.bf16.mxu1 %v10644_v19 }
 0x980   : > { %6987 = vmatpush1.bf16.msra.mxu1 %v10642_v44 }
 0x981   : > { %6988 = vmatprep.subr.bf16.mxu1 %v10650_v6  ;;  %v4384_v6 = vld [vmem:[#allocation4] sm:$0xff] }
 0x984   : > { %6989 = vmatpush1.bf16.msra.mxu1 %v10648_v22 }
 0x985   : > { %6999 = vmatprep.subr.bf16.mxu1 %v10656_v24 }
 0x98a   : > { %v5981_v34 = vpop.f32.mrb[12].mxu1  ;;  %v6063_v37 = vpop.f32.mrb[4].mxu0 }
 0x98b   : > { %v5983_v36 = vpop.f32.mrb[13].mxu1  ;;  %v6065_v63 = vpop.f32.mrb[5].mxu0 }
 0x98c   : > { %v6074_v43 = vcombine.low %v5981_v34, %v5983_v36  ;;  %v6075_v2 = vcombine.low %v6063_v37, %v6065_v63  ;;  %v5985_v12 = vpop.f32.mrb[14].mxu1  ;;  %v6067_v3 = vpop.f32.mrb[6].mxu0  ;;  %v10663_v34 = vld [vmem:[%s12340_s0 + $0x4c0] ss:$16 sps:$4 sm:$0xff]   ;;  %v10666_v37 = vld [vmem:[%s12340_s0 + $0x4c8] ss:$16 sps:$4 sm:$0xff]  }
 0x98d   : > { %v5986_v4 = vpop.f32.mrb[15].mxu1  ;;  %v6068_v10 = vpop.f32.mrb[7].mxu0  ;;  %v10671_v36 = vld [vmem:[%s12340_s0 + $0x4e4] ss:$16 sps:$4 sm:$0xff]   ;;  %v10674_v63 = vld [vmem:[%s12340_s0 + $0x4ec] ss:$16 sps:$4 sm:$0xff]  }
 0x98e   : > { %v13790_v31 = vrot.slane %v6074_v43, %v13787_v39  ;;  %v13793_v14 = vrot.slane %v6075_v2, %v13787_v39  ;;  %v10669_v43 = vld [vmem:[%s12340_s0 + $0x4e0] ss:$16 sps:$4 sm:$0xff]   ;;  %v10672_v2 = vld [vmem:[%s12340_s0 + $0x4e8] ss:$16 sps:$4 sm:$0xff]  }
 0x990   : > { %v6090_v40 = vcombine.low %v13790_v31, %v13793_v14  ;;  %v10763_v31 = vld [vmem:[%s12364_s2 + $0xc] ss:$16 sps:$4 sm:$0xff] (!%p9315_p6)   ;;  %v10765_v14 = vld [vmem:[%s12364_s2] ss:$16 sps:$4 sm:$0xff] (!%p9315_p6)  }
 0x9aa   : > { %v9594_v25 = vpop.f32.mrb[8].mxu0 }
 0x9ab   : > { %v9595_v27 = vpop.f32.mrb[9].mxu0 }
 0x9ac   : > { %v9596_v32 = vadd.f32 %v9595_v27, %v9594_v25  ;;  %v9597_v29 = vpop.f32.mrb[10].mxu0  ;;  %v6092_v25 = vadd.f32 %v6090_v40, %v4384_v6  ;;  %v10766_v40 = vld [vmem:[%s12364_s2 + $0x8] ss:$16 sps:$4 sm:$0xff] (!%p9315_p6)   ;;  %v10835_v6 = vld [vmem:[%s12364_s2 + $0x18c] ss:$16 sps:$4 sm:$0xff] (!%p9315_p6)  }
 0x9ad   : > { %v9598_v33 = vpop.f32.mrb[11].mxu0  ;;  %v10761_v29 = vld [vmem:[%s12364_s2 + $0x4] ss:$16 sps:$4 sm:$0xff] (!%p9315_p6)  }
 0x9ae   : > { %v6302_v18 = vadd.f32 %v9596_v32, %v13368_v59  ;;  %v10767_v33 = vld [vmem:[%s12364_s2 + $0x24] ss:$16 sps:$4 sm:$0xff] (!%p9315_p6)  }
 0x9ca   : > { %v9616_v45 = vpop.f32.mrb[12].mxu0 }
 0x9cb   : > { %v9617_v46 = vpop.f32.mrb[13].mxu0 }
 0x9cc   : > { %v9618_v41 = vadd.f32 %v9617_v46, %v9616_v45  ;;  %v9619_v47 = vpop.f32.mrb[14].mxu0  ;;  %v10771_v45 = vld [vmem:[%s12364_s2 + $0x20] ss:$16 sps:$4 sm:$0xff] (!%p9315_p6)   ;;  %v10772_v46 = vld [vmem:[%s12364_s2 + $0x28] ss:$16 sps:$4 sm:$0xff] (!%p9315_p6)  }
 0x9cd   : > { %v9620_v15 = vpop.f32.mrb[15].mxu0  ;;  %v10775_v47 = vld [vmem:[%s12364_s2 + $0x4c] ss:$16 sps:$4 sm:$0xff] (!%p9315_p6)  }
 0x9ce   : > { %v6342_v50 = vadd.f32 %v9618_v41, %v6302_v18  ;;  %v10769_v18 = vld [vmem:[%s12364_s2 + $0x2c] ss:$16 sps:$4 sm:$0xff] (!%p9315_p6)   ;;  %v10773_v41 = vld [vmem:[%s12364_s2 + $0x44] ss:$16 sps:$4 sm:$0xff] (!%p9315_p6)   ;;  %v10777_v15 = vld [vmem:[%s12364_s2 + $0x40] ss:$16 sps:$4 sm:$0xff] (!%p9315_p6)  }
 0x9da   : > { %v6381_v42 = vpop.f32.mrb[16].mxu0 }
 0x9db   : > { %v6382_v58 = vadd.f32 %v6381_v42, %v6342_v50  ;;  %v9693_v51 = vpop.f32.mrb[17].mxu0  ;;  %v10778_v50 = vld [vmem:[%s12364_s2 + $0x48] ss:$16 sps:$4 sm:$0xff] (!%p9315_p6)   ;;  %v10779_v42 = vld [vmem:[%s12364_s2 + $0x64] ss:$16 sps:$4 sm:$0xff] (!%p9315_p6)  }
 0x9dc   : > { %v6384_v52 = vpop.f32.mrb[18].mxu0  ;;  %v10783_v51 = vld [vmem:[%s12364_s2 + $0x60] ss:$16 sps:$4 sm:$0xff] (!%p9315_p6)  }
 0x9dd   : > { %v9694_v53 = vpop.f32.mrb[19].mxu0  ;;  %v6389_v12 = vmax.f32 %v6382_v58, 0.0  ;;  %v10781_v58 = vld [vmem:[%s12364_s2 + $0x6c] ss:$16 sps:$4 sm:$0xff] (!%p9315_p6)   ;;  %v10784_v52 = vld [vmem:[%s12364_s2 + $0x68] ss:$16 sps:$4 sm:$0xff] (!%p9315_p6)  }
 0x9de   : > { %v10785_v53 = vld [vmem:[%s12364_s2 + $0x84] ss:$16 sps:$4 sm:$0xff] (!%p9315_p6)  }
 0x9df   : > { %v6392_v3 = vpack.c.bf16 %v6389_v12, %v6389_v12  ;;  %v10823_v12 = vld [vmem:[%s12364_s2 + $0x14c] ss:$16 sps:$4 sm:$0xff] (!%p9315_p6)  }
 0xa1a   : > { %v6260_v54 = vpop.f32.mrb[16].mxu1 }
 0xa1b   : > { %v9709_v55 = vadd.f32 %v6260_v54, %v13375_v28  ;;  %v6262_v57 = vpop.f32.mrb[17].mxu1  ;;  %v10657_v28 = vld [vmem:[%s12340_s0 + $0x4a0] ss:$16 sps:$4 sm:$0xff]   ;;  %v10787_v54 = vld [vmem:[%s12364_s2 + $0x8c] ss:$16 sps:$4 sm:$0xff] (!%p9315_p6)  }
 0xa1c   : > { %v9710_v59 = vadd.f32 %v6262_v57, %v13379_v30  ;;  %v6264_v56 = vpop.f32.mrb[18].mxu1  ;;  %v10660_v30 = vld [vmem:[%s12340_s0 + $0x4a8] ss:$16 sps:$4 sm:$0xff]   ;;  %v10790_v57 = vld [vmem:[%s12364_s2 + $0x88] ss:$16 sps:$4 sm:$0xff] (!%p9315_p6)   ;;  %s14216_s0 = scalar_lea.vmem (!%p9315_p6), [#allocation28], %s12347_s24 }
 0xa1d   : > { %v6387_v48 = vmax.f32 %v9709_v55, 0.0  ;;  %v6265_v8 = vpop.f32.mrb[19].mxu1  ;;  %v10789_v55 = vld [vmem:[%s12364_s2 + $0x80] ss:$16 sps:$4 sm:$0xff] (!%p9315_p6)   ;;  %v10793_v56 = vld [vmem:[%s12364_s2 + $0xac] ss:$16 sps:$4 sm:$0xff] (!%p9315_p6)  }
 0xa1e   : > { %v6388_v60 = vmax.f32 %v9710_v59, 0.0  ;;  %v10791_v59 = vld [vmem:[%s12364_s2 + $0xa4] ss:$16 sps:$4 sm:$0xff] (!%p9315_p6)   ;;  %v10796_v8 = vld [vmem:[%s12364_s2 + $0xa8] ss:$16 sps:$4 sm:$0xff] (!%p9315_p6)  }
 0xa1f   : > { %v6390_v5 = vpack.c.bf16 %v6387_v48, %v6387_v48  ;;  %v10795_v48 = vld [vmem:[%s12364_s2 + $0xa0] ss:$16 sps:$4 sm:$0xff] (!%p9315_p6)  }
 0xa20   : > { %v6391_v61 = vpack.c.bf16 %v6388_v60, %v6388_v60  ;;  %v10797_v60 = vld [vmem:[%s12364_s2 + $0xc4] ss:$16 sps:$4 sm:$0xff] (!%p9315_p6)  }
 0xa22   : > { %6908 = vmatprep.mubr.bf16.mxu0 %v6391_v61  ;;  %6990 = vmatprep.mubr.bf16.mxu1 %v6391_v61  ;;  %v10799_v61 = vld [vmem:[%s12364_s2 + $0xcc] ss:$16 sps:$4 sm:$0xff] (!%p9315_p6)  }
 0xa23   : > { %6909 = vmatmul.mubr.bf16.vlgmr.msra.gmra.mrb[20].mxu0 %v6390_v5  ;;  %6991 = vmatmul.mubr.bf16.vlgmr.msra.gmra.mrb[20].mxu1 %v6390_v5  ;;  %v10803_v5 = vld [vmem:[%s12364_s2 + $0xe4] ss:$16 sps:$4 sm:$0xff] (!%p9315_p6)  }
 0xa24   : > { %6918 = vmatpush1.bf16.msra.mxu0 %v10651_v62  ;;  %7000 = vmatpush1.bf16.msra.mxu1 %v10654_v1  ;;  %v10801_v62 = vld [vmem:[%s12364_s2 + $0xc0] ss:$16 sps:$4 sm:$0xff] (!%p9315_p6)   ;;  %v10802_v1 = vld [vmem:[%s12364_s2 + $0xc8] ss:$16 sps:$4 sm:$0xff] (!%p9315_p6)  }
 0xa25   : > { %6919 = vmatprep.subr.bf16.mxu0 %v10659_v7  ;;  %7001 = vmatprep.subr.bf16.mxu1 %v10662_v9  ;;  %v10805_v7 = vld [vmem:[%s12364_s2 + $0xec] ss:$16 sps:$4 sm:$0xff] (!%p9315_p6)   ;;  %v10807_v9 = vld [vmem:[%s12364_s2 + $0xe0] ss:$16 sps:$4 sm:$0xff] (!%p9315_p6)  }
 0xa26   : > { %6949 = vmatprep.mubr.bf16.mxu0 %v11625_v26  ;;  %7031 = vmatprep.mubr.bf16.mxu1 %v11625_v26 }
 0xa28   : > { %6920 = vmatpush1.bf16.msra.mxu0 %v10657_v28  ;;  %7002 = vmatpush1.bf16.msra.mxu1 %v10660_v30  ;;  %v10808_v28 = vld [vmem:[%s12364_s2 + $0xe8] ss:$16 sps:$4 sm:$0xff] (!%p9315_p6)   ;;  %v10809_v30 = vld [vmem:[%s12364_s2 + $0x104] ss:$16 sps:$4 sm:$0xff] (!%p9315_p6)  }
 0xa29   : > { %6921 = vmatprep.subr.bf16.mxu0 %v10665_v13  ;;  %7003 = vmatprep.subr.bf16.mxu1 %v10668_v16  ;;  %v10811_v13 = vld [vmem:[%s12364_s2 + $0x10c] ss:$16 sps:$4 sm:$0xff] (!%p9315_p6)   ;;  %v10813_v16 = vld [vmem:[%s12364_s2 + $0x100] ss:$16 sps:$4 sm:$0xff] (!%p9315_p6)  }
 0xa2c   : > { %6922 = vmatpush1.bf16.msra.mxu0 %v10663_v34  ;;  %7004 = vmatpush1.bf16.msra.mxu1 %v10666_v37  ;;  %v10814_v34 = vld [vmem:[%s12364_s2 + $0x108] ss:$16 sps:$4 sm:$0xff] (!%p9315_p6)   ;;  %v10815_v37 = vld [vmem:[%s12364_s2 + $0x124] ss:$16 sps:$4 sm:$0xff] (!%p9315_p6)  }
 0xa2d   : > { %6923 = vmatprep.subr.bf16.mxu0 %v10671_v36  ;;  %7005 = vmatprep.subr.bf16.mxu1 %v10674_v63  ;;  %v10817_v36 = vld [vmem:[%s12364_s2 + $0x12c] ss:$16 sps:$4 sm:$0xff] (!%p9315_p6)   ;;  %v10819_v63 = vld [vmem:[%s12364_s2 + $0x120] ss:$16 sps:$4 sm:$0xff] (!%p9315_p6)  }
 0xa30   : > { %6924 = vmatpush1.bf16.msra.mxu0 %v10669_v43  ;;  %7006 = vmatpush1.bf16.msra.mxu1 %v10672_v2  ;;  %v10820_v43 = vld [vmem:[%s12364_s2 + $0x128] ss:$16 sps:$4 sm:$0xff] (!%p9315_p6)   ;;  %v10821_v2 = vld [vmem:[%s12364_s2 + $0x144] ss:$16 sps:$4 sm:$0xff] (!%p9315_p6)  }
 0xa31   : > { %7886 = vmatprep.subr.bf16.mxu0 (!%p9315_p6), %v10761_v29  ;;  %7968 = vmatprep.subr.bf16.mxu1 (!%p9315_p6), %v10763_v31  ;;  %v10843_v29 = vld [vmem:[%s12364_s2 + $0x1a0] ss:$16 sps:$4 sm:$0xff] (!%p9315_p6)   ;;  %v10844_v31 = vld [vmem:[%s12364_s2 + $0x1a8] ss:$16 sps:$4 sm:$0xff] (!%p9315_p6)  }
 0xa33   : > { %9313 = vmatmul.mubr.msk.bf16.vlgmr.msra.gmra.mrb[20].mxu0 %vm5170_vm9, %v6392_v3  ;;  %9314 = vmatmul.mubr.msk.bf16.vlgmr.msra.gmra.mrb[20].mxu1 %vm5170_vm9, %v6392_v3  ;;  %v10825_v3 = vld [vmem:[%s12364_s2 + $0x140] ss:$16 sps:$4 sm:$0xff] (!%p9315_p6)  }
 0xa34   : > { %7887 = vmatpush1.bf16.msra.mxu0 (!%p9315_p6), %v10765_v14  ;;  %7969 = vmatpush1.bf16.msra.mxu1 (!%p9315_p6), %v10766_v40  ;;  %v10845_v14 = vld [vmem:[%s12364_s2 + $0x1c4] ss:$16 sps:$4 sm:$0xff] (!%p9315_p6)   ;;  %v10847_v40 = vld [vmem:[%s12364_s2 + $0x1cc] ss:$16 sps:$4 sm:$0xff] (!%p9315_p6)  }
 0xa35   : > { %7888 = vmatprep.subr.bf16.mxu0 (!%p9315_p6), %v10767_v33  ;;  %7970 = vmatprep.subr.bf16.mxu1 (!%p9315_p6), %v10769_v18  ;;  %v10849_v18 = vld [vmem:[%s12364_s2 + $0x1c0] ss:$16 sps:$4 sm:$0xff] (!%p9315_p6)  }
 0xa38   : > { %7889 = vmatpush1.bf16.msra.mxu0 (!%p9315_p6), %v10771_v45  ;;  %7971 = vmatpush1.bf16.msra.mxu1 (!%p9315_p6), %v10772_v46  ;;  %v10850_v45 = vld [vmem:[%s12364_s2 + $0x1c8] ss:$16 sps:$4 sm:$0xff] (!%p9315_p6)   ;;  %v10851_v46 = vld [vmem:[%s12364_s2 + $0x1e4] ss:$16 sps:$4 sm:$0xff] (!%p9315_p6)  }
 0xa39   : > { %7890 = vmatprep.subr.bf16.mxu0 (!%p9315_p6), %v10773_v41  ;;  %7972 = vmatprep.subr.bf16.mxu1 (!%p9315_p6), %v10775_v47  ;;  %v10853_v41 = vld [vmem:[%s12364_s2 + $0x1ec] ss:$16 sps:$4 sm:$0xff] (!%p9315_p6)  }
 0xa3c   : > { %7891 = vmatpush1.bf16.msra.mxu0 (!%p9315_p6), %v10777_v15  ;;  %7973 = vmatpush1.bf16.msra.mxu1 (!%p9315_p6), %v10778_v50  ;;  %v10855_v15 = vld [vmem:[%s12364_s2 + $0x1e0] ss:$16 sps:$4 sm:$0xff] (!%p9315_p6)   ;;  %v10856_v50 = vld [vmem:[%s12364_s2 + $0x1e8] ss:$16 sps:$4 sm:$0xff] (!%p9315_p6)  }
 0xa3d   : > { %7892 = vmatprep.subr.bf16.mxu0 (!%p9315_p6), %v10779_v42  ;;  %7974 = vmatprep.subr.bf16.mxu1 (!%p9315_p6), %v10781_v58  ;;  %v10859_v42 = vld [vmem:[%s12364_s2 + $0x204] ss:$16 sps:$4 sm:$0xff] (!%p9315_p6)   ;;  %v10862_v58 = vld [vmem:[%s12364_s2 + $0x20c] ss:$16 sps:$4 sm:$0xff] (!%p9315_p6)  }
 0xa40   : > { %7893 = vmatpush1.bf16.msra.mxu0 (!%p9315_p6), %v10783_v51  ;;  %7975 = vmatpush1.bf16.msra.mxu1 (!%p9315_p6), %v10784_v52  ;;  %v10857_v52 = vld [vmem:[%s12364_s2 + $0x200] ss:$16 sps:$4 sm:$0xff] (!%p9315_p6)  }
 0xa41   : > { %7894 = vmatprep.subr.bf16.mxu0 (!%p9315_p6), %v10785_v53  ;;  %7976 = vmatprep.subr.bf16.mxu1 (!%p9315_p6), %v10787_v54  ;;  %v10865_v54 = vld [vmem:[%s12364_s2 + $0x224] ss:$16 sps:$4 sm:$0xff] (!%p9315_p6)  }
 0xa44   : > { %7895 = vmatpush1.bf16.msra.mxu0 (!%p9315_p6), %v10789_v55  ;;  %7977 = vmatpush1.bf16.msra.mxu1 (!%p9315_p6), %v10790_v57  ;;  %v10868_v55 = vld [vmem:[%s12364_s2 + $0x22c] ss:$16 sps:$4 sm:$0xff] (!%p9315_p6)  }
 0xa45   : > { %7896 = vmatprep.subr.bf16.mxu0 (!%p9315_p6), %v10791_v59  ;;  %7978 = vmatprep.subr.bf16.mxu1 (!%p9315_p6), %v10793_v56  ;;  %v10863_v59 = vld [vmem:[%s12364_s2 + $0x220] ss:$16 sps:$4 sm:$0xff] (!%p9315_p6)   ;;  %v10866_v56 = vld [vmem:[%s12364_s2 + $0x228] ss:$16 sps:$4 sm:$0xff] (!%p9315_p6)  }
 0xa48   : > { %7897 = vmatpush1.bf16.msra.mxu0 (!%p9315_p6), %v10795_v48  ;;  %7979 = vmatpush1.bf16.msra.mxu1 (!%p9315_p6), %v10796_v8  ;;  %v10871_v48 = vld [vmem:[%s12364_s2 + $0x244] ss:$16 sps:$4 sm:$0xff] (!%p9315_p6)   ;;  %v10874_v8 = vld [vmem:[%s12364_s2 + $0x24c] ss:$16 sps:$4 sm:$0xff] (!%p9315_p6)  }
 0xa49   : > { %7898 = vmatprep.subr.bf16.mxu0 (!%p9315_p6), %v10797_v60  ;;  %7980 = vmatprep.subr.bf16.mxu1 (!%p9315_p6), %v10799_v61  ;;  %v10869_v60 = vld [vmem:[%s12364_s2 + $0x240] ss:$16 sps:$4 sm:$0xff] (!%p9315_p6)   ;;  %v10872_v61 = vld [vmem:[%s12364_s2 + $0x248] ss:$16 sps:$4 sm:$0xff] (!%p9315_p6)  }
 0xa4c   : > { %7899 = vmatpush1.bf16.msra.mxu0 (!%p9315_p6), %v10801_v62  ;;  %7981 = vmatpush1.bf16.msra.mxu1 (!%p9315_p6), %v10802_v1  ;;  %v10877_v62 = vld [vmem:[%s12364_s2 + $0x264] ss:$16 sps:$4 sm:$0xff] (!%p9315_p6)   ;;  %v10880_v1 = vld [vmem:[%s12364_s2 + $0x26c] ss:$16 sps:$4 sm:$0xff] (!%p9315_p6)  }
 0xa4d   : > { %7900 = vmatprep.subr.bf16.mxu0 (!%p9315_p6), %v10803_v5  ;;  %7982 = vmatprep.subr.bf16.mxu1 (!%p9315_p6), %v10805_v7  ;;  %v10875_v5 = vld [vmem:[%s12364_s2 + $0x260] ss:$16 sps:$4 sm:$0xff] (!%p9315_p6)   ;;  %v10878_v7 = vld [vmem:[%s12364_s2 + $0x268] ss:$16 sps:$4 sm:$0xff] (!%p9315_p6)  }
 0xa50   : > { %7901 = vmatpush1.bf16.msra.mxu0 (!%p9315_p6), %v10807_v9  ;;  %7983 = vmatpush1.bf16.msra.mxu1 (!%p9315_p6), %v10808_v28  ;;  %v10883_v9 = vld [vmem:[%s12364_s2 + $0x284] ss:$16 sps:$4 sm:$0xff] (!%p9315_p6)   ;;  %v10886_v28 = vld [vmem:[%s12364_s2 + $0x28c] ss:$16 sps:$4 sm:$0xff] (!%p9315_p6)  }
 0xa51   : > { %7902 = vmatprep.subr.bf16.mxu0 (!%p9315_p6), %v10809_v30  ;;  %7984 = vmatprep.subr.bf16.mxu1 (!%p9315_p6), %v10811_v13  ;;  %v10881_v30 = vld [vmem:[%s12364_s2 + $0x280] ss:$16 sps:$4 sm:$0xff] (!%p9315_p6)   ;;  %v10884_v13 = vld [vmem:[%s12364_s2 + $0x288] ss:$16 sps:$4 sm:$0xff] (!%p9315_p6)  }
 0xa54   : > { %7903 = vmatpush1.bf16.msra.mxu0 (!%p9315_p6), %v10813_v16  ;;  %7985 = vmatpush1.bf16.msra.mxu1 (!%p9315_p6), %v10814_v34  ;;  %v10889_v16 = vld [vmem:[%s12364_s2 + $0x2a4] ss:$16 sps:$4 sm:$0xff] (!%p9315_p6)   ;;  %v10892_v34 = vld [vmem:[%s12364_s2 + $0x2ac] ss:$16 sps:$4 sm:$0xff] (!%p9315_p6)  }
 0xa55   : > { %7904 = vmatprep.subr.bf16.mxu0 (!%p9315_p6), %v10815_v37  ;;  %7986 = vmatprep.subr.bf16.mxu1 (!%p9315_p6), %v10817_v36  ;;  %v10887_v37 = vld [vmem:[%s12364_s2 + $0x2a0] ss:$16 sps:$4 sm:$0xff] (!%p9315_p6)   ;;  %v10890_v36 = vld [vmem:[%s12364_s2 + $0x2a8] ss:$16 sps:$4 sm:$0xff] (!%p9315_p6)  }
 0xa58   : > { %7905 = vmatpush1.bf16.msra.mxu0 (!%p9315_p6), %v10819_v63  ;;  %7987 = vmatpush1.bf16.msra.mxu1 (!%p9315_p6), %v10820_v43  ;;  %v10895_v63 = vld [vmem:[%s12364_s2 + $0x2c4] ss:$16 sps:$4 sm:$0xff] (!%p9315_p6)   ;;  %v10898_v43 = vld [vmem:[%s12364_s2 + $0x2cc] ss:$16 sps:$4 sm:$0xff] (!%p9315_p6)  }
 0xa59   : > { %7906 = vmatprep.subr.bf16.mxu0 (!%p9315_p6), %v10821_v2  ;;  %7988 = vmatprep.subr.bf16.mxu1 (!%p9315_p6), %v10823_v12  ;;  %v10893_v2 = vld [vmem:[%s12364_s2 + $0x2c0] ss:$16 sps:$4 sm:$0xff] (!%p9315_p6)   ;;  %v10896_v12 = vld [vmem:[%s12364_s2 + $0x2c8] ss:$16 sps:$4 sm:$0xff] (!%p9315_p6)  }
 0xa5c   : > { %7907 = vmatpush1.bf16.msra.mxu0 (!%p9315_p6), %v10825_v3  ;;  %v10901_v3 = vld [vmem:[%s12364_s2 + $0x2e4] ss:$16 sps:$4 sm:$0xff] (!%p9315_p6)  }
 0xb06   : > { %v6951_v26 = vpop.f32.mrb[20].mxu0  ;;  %v7033_v4 = vpop.f32.mrb[20].mxu1 }
 0xb07   : > { %v6953_v10 = vpop.f32.mrb[21].mxu0  ;;  %v7035_v17 = vpop.f32.mrb[21].mxu1 }
 0xb08   : > { %v7044_v19 = vcombine.low %v6951_v26, %v6953_v10  ;;  %v7045_v20 = vcombine.low %v7033_v4, %v7035_v17  ;;  %v6955_v44 = vpop.f32.mrb[22].mxu0  ;;  %v7037_v35 = vpop.f32.mrb[22].mxu1  ;;  %v10826_v26 = vld [vmem:[%s12364_s2 + $0x148] ss:$16 sps:$4 sm:$0xff] (!%p9315_p6)   ;;  %v10827_v4 = vld [vmem:[%s12364_s2 + $0x164] ss:$16 sps:$4 sm:$0xff] (!%p9315_p6)  }
 0xb09   : > { %v6956_v21 = vpop.f32.mrb[23].mxu0  ;;  %v7038_v22 = vpop.f32.mrb[23].mxu1  ;;  %v10829_v10 = vld [vmem:[%s12364_s2 + $0x16c] ss:$16 sps:$4 sm:$0xff] (!%p9315_p6)   ;;  %7989 = vmatpush1.bf16.msra.mxu1 (!%p9315_p6), %v10826_v26  ;;  %v10832_v44 = vld [vmem:[%s12364_s2 + $0x168] ss:$16 sps:$4 sm:$0xff] (!%p9315_p6)   ;;  %7908 = vmatprep.subr.bf16.mxu0 (!%p9315_p6), %v10827_v4 }
 0xb0a   : > { %v7052_v23 = vrot.slane %v7044_v19, %v13787_v39  ;;  %v7059_v24 = vrot.slane %v7045_v20, %v13787_v39  ;;  %7067 = sbr.rel (%p9315_p6) target bundleno = 3353 (0xd19), region = 168  ;;  %v10831_v19 = vld [vmem:[%s12364_s2 + $0x160] ss:$16 sps:$4 sm:$0xff] (!%p9315_p6)   ;;  %7990 = vmatprep.subr.bf16.mxu1 (!%p9315_p6), %v10829_v10  ;;  %v10833_v35 = vld [vmem:[%s12364_s2 + $0x184] ss:$16 sps:$4 sm:$0xff] (!%p9315_p6)  }
 0xb0b   : > { %v10837_v22 = vld [vmem:[%s12364_s2 + $0x180] ss:$16 sps:$4 sm:$0xff] (!%p9315_p6)   ;;  %7909 = vmatpush1.bf16.msra.mxu0 (!%p9315_p6), %v10831_v19  ;;  %v10904_v26 = vld [vmem:[%s12364_s2 + $0x2ec] ss:$16 sps:$4 sm:$0xff] (!%p9315_p6)   ;;  %v10902_v10 = vld [vmem:[%s12364_s2 + $0x2e8] ss:$16 sps:$4 sm:$0xff] (!%p9315_p6)  }
 0xb0c   : > { %v7060_v27 = vcombine.low %v7052_v23, %v7059_v24  ;;  %v10838_v24 = vld [vmem:[%s12364_s2 + $0x188] ss:$16 sps:$4 sm:$0xff] (!%p9315_p6)   ;;  %7910 = vmatprep.subr.bf16.mxu0 (!%p9315_p6), %v10833_v35  ;;  %v10899_v4 = vld [vmem:[%s12364_s2 + $0x2e0] ss:$16 sps:$4 sm:$0xff] (!%p9315_p6)   ;;  %v10910_v19 = vld [vmem:[%s12364_s2 + $0x30c] ss:$16 sps:$4 sm:$0xff] (!%p9315_p6)  }
 0xb0d   : > { %7991 = vmatpush1.bf16.msra.mxu1 (!%p9315_p6), %v10832_v44  ;;  %v10908_v44 = vld [vmem:[%s12364_s2 + $0x308] ss:$16 sps:$4 sm:$0xff] (!%p9315_p6)   ;;  %v10913_v35 = vld [vmem:[%s12364_s2 + $0x324] ss:$16 sps:$4 sm:$0xff] (!%p9315_p6)  }
 0xb0e   : > { %v7062_v32 = vadd.f32 %v7060_v27, %v6092_v25  ;;  %7992 = vmatprep.subr.bf16.mxu1 (!%p9315_p6), %v10835_v6  ;;  %v10839_v25 = vld [vmem:[%s12364_s2 + $0x1a4] ss:$16 sps:$4 sm:$0xff] (!%p9315_p6)   ;;  %v10841_v27 = vld [vmem:[%s12364_s2 + $0x1ac] ss:$16 sps:$4 sm:$0xff] (!%p9315_p6)  }
 0xb0f   : > { %7911 = vmatpush1.bf16.msra.mxu0 (!%p9315_p6), %v10837_v22  ;;  %v10916_v6 = vld [vmem:[%s12364_s2 + $0x32c] ss:$16 sps:$4 sm:$0xff] (!%p9315_p6)   ;;  %v10914_v22 = vld [vmem:[%s12364_s2 + $0x328] ss:$16 sps:$4 sm:$0xff] (!%p9315_p6)  }
 0xb10   : > { %7063 = vst [vmem:[#allocation4] sm:$0xff] %v7062_v32  ;;  %7912 = vmatprep.subr.bf16.mxu0 (!%p9315_p6), %v10839_v25  ;;  %v10917_v25 = vld [vmem:[%s12364_s2 + $0x340] ss:$16 sps:$4 sm:$0xff] (!%p9315_p6)  }
 0xb11   : > { %7993 = vmatpush1.bf16.msra.mxu1 %v10838_v24  ;;  %v10922_v24 = vld [vmem:[%s12364_s2 + $0x34c] ss:$16 sps:$4 sm:$0xff]  }
 0xb12   : > { %7994 = vmatprep.subr.bf16.mxu1 %v10841_v27  ;;  %v10920_v27 = vld [vmem:[%s12364_s2 + $0x348] ss:$16 sps:$4 sm:$0xff]  }
 0xb13   : > { %7913 = vmatpush1.bf16.msra.mxu0 %v10843_v29  ;;  %v10928_v29 = vld [vmem:[%s12364_s2 + $0x36c] ss:$16 sps:$4 sm:$0xff]  }
 0xb14   : > { %7914 = vmatprep.subr.bf16.mxu0 %v10845_v14  ;;  %v10926_v14 = vld [vmem:[%s12364_s2 + $0x368] ss:$16 sps:$4 sm:$0xff]  }
 0xb15   : > { %7995 = vmatpush1.bf16.msra.mxu1 %v10844_v31  ;;  %v10923_v31 = vld [vmem:[%s12364_s2 + $0x360] ss:$16 sps:$4 sm:$0xff]  }
 0xb16   : > { %7996 = vmatprep.subr.bf16.mxu1 %v10847_v40  ;;  %v10931_v40 = vld [vmem:[%s12364_s2 + $0x384] ss:$16 sps:$4 sm:$0xff]  }
 0xb17   : > { %v7068_v17 = vld [vmem:[#allocation4] sm:$0xff]  ;;  %7915 = vmatpush1.bf16.msra.mxu0 %v10849_v18  ;;  %v10929_v18 = vld [vmem:[%s12364_s2 + $0x380] ss:$16 sps:$4 sm:$0xff]  }
 0xb18   : > { %v7069_v20 = vmax.f32 %v7068_v17, 0.0  ;;  %7916 = vmatprep.subr.bf16.mxu0 %v10851_v46  ;;  %v10907_v17 = vld [vmem:[%s12364_s2 + $0x304] ss:$16 sps:$4 sm:$0xff]  }
 0xb19   : > { %7997 = vmatpush1.bf16.msra.mxu1 %v10850_v45  ;;  %v10932_v45 = vld [vmem:[%s12364_s2 + $0x388] ss:$16 sps:$4 sm:$0xff]   ;;  %v10937_v46 = vld [vmem:[%s12364_s2 + $0x3a4] ss:$16 sps:$4 sm:$0xff]  }
 0xb1a   : > { %v7078_v21 = vrot.slane %v7069_v20, %v13787_v39  ;;  %v7071_v33 = vcombine.high %v7069_v20, %v7069_v20  ;;  %7998 = vmatprep.subr.bf16.mxu1 %v10853_v41  ;;  %v10905_v20 = vld [vmem:[%s12364_s2 + $0x300] ss:$16 sps:$4 sm:$0xff]   ;;  %v10940_v41 = vld [vmem:[%s12364_s2 + $0x3ac] ss:$16 sps:$4 sm:$0xff]  }
 0xb1b   : > { %7917 = vmatpush1.bf16.msra.mxu0 %v10855_v15  ;;  %v10935_v15 = vld [vmem:[%s12364_s2 + $0x3a0] ss:$16 sps:$4 sm:$0xff]  }
 0xb1c   : > { %v7086_v23 = vcombine.high %v7078_v21, %v7078_v21  ;;  %v13898_v47 = vrot.slane %v7071_v33, %v13787_v39  ;;  %v7092_v53 = vpack.c.bf16 %v7078_v21, %v7078_v21  ;;  %v10860_v39 = vld [vmem:[%s12364_s2 + $0x208] ss:$16 sps:$4 sm:$0xff]   ;;  %7927 = vmatprep.subr.bf16.mxu0 %v10859_v42  ;;  %v10911_v21 = vld [vmem:[%s12364_s2 + $0x320] ss:$16 sps:$4 sm:$0xff]   ;;  %v10934_v33 = vld [vmem:[%s12364_s2 + $0x38c] ss:$16 sps:$4 sm:$0xff]  }
 0xb1d   : > { %7999 = vmatpush1.bf16.msra.mxu1 %v10856_v50  ;;  %v10938_v50 = vld [vmem:[%s12364_s2 + $0x3a8] ss:$16 sps:$4 sm:$0xff]   ;;  %v10943_v42 = vld [vmem:[%s12364_s2 + $0x3c4] ss:$16 sps:$4 sm:$0xff]  }
 0xb1e   : > { %v7093_v32 = vpack.c.bf16 %v7086_v23, %v7086_v23  ;;  %v7087_v51 = vcombine.high %v13898_v47, %v13898_v47  ;;  %8009 = vmatprep.subr.bf16.mxu1 %v10862_v58  ;;  %v10919_v23 = vld [vmem:[%s12364_s2 + $0x344] ss:$16 sps:$4 sm:$0xff]   ;;  %v10946_v58 = vld [vmem:[%s12364_s2 + $0x3cc] ss:$16 sps:$4 sm:$0xff]  }
 0xb20   : > { %7918 = vmatprep.mubr.bf16.mxu0 %v7093_v32  ;;  %8000 = vmatprep.mubr.bf16.mxu1 %v7093_v32  ;;  %v7095_v57 = vpack.c.bf16 %v7087_v51, %v7087_v51  ;;  %v10925_v32 = vld [vmem:[%s12364_s2 + $0x364] ss:$16 sps:$4 sm:$0xff]   ;;  %v10941_v51 = vld [vmem:[%s12364_s2 + $0x3c0] ss:$16 sps:$4 sm:$0xff]  }
 0xb21   : > { %7919 = vmatmul.mubr.bf16.vlgmr.msra.gmra.mrb[0].mxu0 %v7092_v53  ;;  %8001 = vmatmul.mubr.bf16.vlgmr.msra.gmra.mrb[0].mxu1 %v7092_v53  ;;  %v10949_v53 = vld [vmem:[%s12364_s2 + $0x3e4] ss:$16 sps:$4 sm:$0xff]  }
 0xb22   : > { %7928 = vmatpush1.bf16.msra.mxu0 %v10857_v52  ;;  %8010 = vmatpush1.bf16.msra.mxu1 %v10860_v39  ;;  %v10944_v52 = vld [vmem:[%s12364_s2 + $0x3c8] ss:$16 sps:$4 sm:$0xff]   ;;  %v10952_v39 = vld [vmem:[%s12364_s2 + $0x3ec] ss:$16 sps:$4 sm:$0xff]  }
 0xb23   : > { %7929 = vmatprep.subr.bf16.mxu0 %v10865_v54  ;;  %8011 = vmatprep.subr.bf16.mxu1 %v10868_v55  ;;  %v10947_v54 = vld [vmem:[%s12364_s2 + $0x3e0] ss:$16 sps:$4 sm:$0xff]   ;;  %v10950_v55 = vld [vmem:[%s12364_s2 + $0x3e8] ss:$16 sps:$4 sm:$0xff]  }
 0xb24   : > { %7959 = vmatprep.mubr.bf16.mxu0 %v7095_v57  ;;  %8041 = vmatprep.mubr.bf16.mxu1 %v7095_v57  ;;  %v10953_v57 = vld [vmem:[%s12373_s6 + $0x40] sm:$0xff]  }
 0xb26   : > { %7930 = vmatpush1.bf16.msra.mxu0 %v10863_v59  ;;  %8012 = vmatpush1.bf16.msra.mxu1 %v10866_v56  ;;  %v10954_v59 = vld [vmem:[%s12373_s6 + $0xc0] sm:$0xff]   ;;  %v7094_v56 = vpack.c.bf16 %v13898_v47, %v13898_v47  ;;  %v10960_v47 = vld [vmem:[%s12373_s6 + $0x88] sm:$0xff]  }
 0xb27   : > { %7931 = vmatprep.subr.bf16.mxu0 %v10871_v48  ;;  %8013 = vmatprep.subr.bf16.mxu1 %v10874_v8  ;;  %v10955_v48 = vld [vmem:[%s12373_s6] sm:$0xff]  }
 0xb28   : > { %v10956_v8 = vld [vmem:[%s12373_s6 + $0x80] sm:$0xff]  }
 0xb2a   : > { %7932 = vmatpush1.bf16.msra.mxu0 %v10869_v60  ;;  %8014 = vmatpush1.bf16.msra.mxu1 %v10872_v61  ;;  %v10957_v60 = vld [vmem:[%s12373_s6 + $0x48] sm:$0xff]  }
 0xb2b   : > { %7933 = vmatprep.subr.bf16.mxu0 %v10877_v62  ;;  %8015 = vmatprep.subr.bf16.mxu1 %v10880_v1  ;;  %v10958_v61 = vld [vmem:[%s12373_s6 + $0xc8] sm:$0xff]   ;;  %v10961_v1 = vld [vmem:[%s12373_s6 + $0x50] sm:$0xff]  }
 0xb2c   : > { %v10959_v62 = vld [vmem:[%s12373_s6 + $0x8] sm:$0xff]  }
 0xb2e   : > { %7934 = vmatpush1.bf16.msra.mxu0 %v10875_v5  ;;  %8016 = vmatpush1.bf16.msra.mxu1 %v10878_v7  ;;  %v10962_v5 = vld [vmem:[%s12373_s6 + $0xd0] sm:$0xff]  }
 0xb2f   : > { %7935 = vmatprep.subr.bf16.mxu0 %v10883_v9  ;;  %8017 = vmatprep.subr.bf16.mxu1 %v10886_v28  ;;  %v10963_v7 = vld [vmem:[%s12373_s6 + $0x10] sm:$0xff]   ;;  %v10965_v28 = vld [vmem:[%s12373_s6 + $0x58] sm:$0xff]  }
 0xb30   : > { %v10964_v9 = vld [vmem:[%s12373_s6 + $0x90] sm:$0xff]  }
 0xb32   : > { %7936 = vmatpush1.bf16.msra.mxu0 %v10881_v30  ;;  %8018 = vmatpush1.bf16.msra.mxu1 %v10884_v13  ;;  %v10966_v30 = vld [vmem:[%s12373_s6 + $0xd8] sm:$0xff]  }
 0xb33   : > { %7937 = vmatprep.subr.bf16.mxu0 %v10889_v16  ;;  %8019 = vmatprep.subr.bf16.mxu1 %v10892_v34  ;;  %v10967_v13 = vld [vmem:[%s12373_s6 + $0x18] sm:$0xff]   ;;  %v10969_v34 = vld [vmem:[%s12373_s6 + $0x60] sm:$0xff]  }
 0xb34   : > { %v10968_v16 = vld [vmem:[%s12373_s6 + $0x98] sm:$0xff]  }
 0xb36   : > { %7938 = vmatpush1.bf16.msra.mxu0 %v10887_v37  ;;  %8020 = vmatpush1.bf16.msra.mxu1 %v10890_v36  ;;  %v10970_v37 = vld [vmem:[%s12373_s6 + $0xe0] sm:$0xff]  }
 0xb37   : > { %7939 = vmatprep.subr.bf16.mxu0 %v10895_v63  ;;  %8021 = vmatprep.subr.bf16.mxu1 %v10898_v43  ;;  %v10971_v36 = vld [vmem:[%s12373_s6 + $0x20] sm:$0xff]   ;;  %v10973_v43 = vld [vmem:[%s12373_s6 + $0x68] sm:$0xff]  }
 0xb38   : > { %v10972_v63 = vld [vmem:[%s12373_s6 + $0xa0] sm:$0xff]  }
 0xb3a   : > { %7940 = vmatpush1.bf16.msra.mxu0 %v10893_v2  ;;  %8022 = vmatpush1.bf16.msra.mxu1 %v10896_v12  ;;  %v10974_v2 = vld [vmem:[%s12373_s6 + $0xe8] sm:$0xff]  }
 0xb3b   : > { %7941 = vmatprep.subr.bf16.mxu0 %v10901_v3  ;;  %8023 = vmatprep.subr.bf16.mxu1 %v10904_v26  ;;  %v10975_v12 = vld [vmem:[%s12373_s6 + $0x28] sm:$0xff]   ;;  %v10977_v26 = vld [vmem:[%s12373_s6 + $0x70] sm:$0xff]  }
 0xb3c   : > { %v10976_v3 = vld [vmem:[%s12373_s6 + $0xa8] sm:$0xff]  }
 0xb3e   : > { %7942 = vmatpush1.bf16.msra.mxu0 %v10899_v4  ;;  %8024 = vmatpush1.bf16.msra.mxu1 %v10902_v10  ;;  %v10978_v4 = vld [vmem:[%s12373_s6 + $0xf0] sm:$0xff]  }
 0xb3f   : > { %7943 = vmatprep.subr.bf16.mxu0 %v10907_v17  ;;  %8025 = vmatprep.subr.bf16.mxu1 %v10910_v19  ;;  %v10979_v10 = vld [vmem:[%s12373_s6 + $0x30] sm:$0xff]   ;;  %v10981_v19 = vld [vmem:[%s12373_s6 + $0x78] sm:$0xff]  }
 0xb40   : > { %v10980_v17 = vld [vmem:[%s12373_s6 + $0xb0] sm:$0xff]  }
 0xb42   : > { %7944 = vmatpush1.bf16.msra.mxu0 %v10905_v20  ;;  %8026 = vmatpush1.bf16.msra.mxu1 %v10908_v44  ;;  %v10982_v20 = vld [vmem:[%s12373_s6 + $0xf8] sm:$0xff]  }
 0xb43   : > { %7945 = vmatprep.subr.bf16.mxu0 %v10913_v35  ;;  %8027 = vmatprep.subr.bf16.mxu1 %v10916_v6  ;;  %v10983_v44 = vld [vmem:[%s12373_s6 + $0x38] sm:$0xff]  }
 0xb44   : > { %v10984_v35 = vld [vmem:[%s12373_s6 + $0xb8] sm:$0xff]  }
 0xb45   : > { %v7224_v6 = vld [vmem:[%s12366_s26] sm:$0xf] }
 0xb46   : > { %7946 = vmatpush1.bf16.msra.mxu0 %v10911_v21  ;;  %8028 = vmatpush1.bf16.msra.mxu1 %v10914_v22  ;;  %v7240_v21 = vsub.s32 3, %v12937_v49  ;;  %v7229_v22 = vrot.slane %v7224_v6, %v4537_v11 }
 0xb47   : > { %7947 = vmatprep.subr.bf16.mxu0 %v10919_v23  ;;  %8029 = vmatprep.subr.bf16.mxu1 %v10922_v24  ;;  %v7237_v23 = vrot.slane %v7224_v6, %v4545_v0  ;;  %v7233_v24 = vrot.slane %v7224_v6, %v4541_v38 }
 0xb4a   : > { %7948 = vmatpush1.bf16.msra.mxu0 %v10917_v25  ;;  %8030 = vmatpush1.bf16.msra.mxu1 %v10920_v27  ;;  %v7241_v25 = vrot.slane %v7224_v6, %v7240_v21 }
 0xb4b   : > { %7949 = vmatprep.subr.bf16.mxu0 %v10925_v32  ;;  %8031 = vmatprep.subr.bf16.mxu1 %v10928_v29 }
 0xb4e   : > { %7950 = vmatpush1.bf16.msra.mxu0 %v10923_v31  ;;  %8032 = vmatpush1.bf16.msra.mxu1 %v10926_v14 }
 0xb4f   : > { %7951 = vmatprep.subr.bf16.mxu0 %v10931_v40  ;;  %8033 = vmatprep.subr.bf16.mxu1 %v10934_v33 }
 0xb52   : > { %7952 = vmatpush1.bf16.msra.mxu0 %v10929_v18  ;;  %8034 = vmatpush1.bf16.msra.mxu1 %v10932_v45 }
 0xb53   : > { %7953 = vmatprep.subr.bf16.mxu0 %v10937_v46  ;;  %8035 = vmatprep.subr.bf16.mxu1 %v10940_v41 }
 0xb56   : > { %7954 = vmatpush1.bf16.msra.mxu0 %v10935_v15  ;;  %8036 = vmatpush1.bf16.msra.mxu1 %v10938_v50 }
 0xb57   : > { %7955 = vmatprep.subr.bf16.mxu0 %v10943_v42  ;;  %8037 = vmatprep.subr.bf16.mxu1 %v10946_v58 }
 0xb5a   : > { %7956 = vmatpush1.bf16.msra.mxu0 %v10941_v51  ;;  %8038 = vmatpush1.bf16.msra.mxu1 %v10944_v52 }
 0xb5b   : > { %7957 = vmatprep.subr.bf16.mxu0 %v10949_v53  ;;  %8039 = vmatprep.subr.bf16.mxu1 %v10952_v39  ;;  %v9444_v39 = vld [vmem:[%s14216_s0] ss:$0 sm:$0xff] }
 0xb5e   : > { %7958 = vmatpush1.bf16.msra.mxu0 %v10947_v54  ;;  %8040 = vmatpush1.bf16.msra.mxu1 %v10950_v55 }
 0xb5f   : > { %9627 = vmatprep.subr.bf16.mxu0 %v10953_v57  ;;  %9649 = vmatprep.subr.bf16.mxu1 %v10954_v59 }
 0xb61   : > { %7960 = vmatmul.mubr.bf16.vlgmr.msra.gmra.mrb[0].mxu0 %v7094_v56  ;;  %8042 = vmatmul.mubr.bf16.vlgmr.msra.gmra.mrb[0].mxu1 %v7094_v56 }
 0xb62   : > { %9628 = vmatpush3.bf16.msra.mxu0 %v10955_v48  ;;  %9650 = vmatpush3.bf16.msra.mxu1 %v10956_v8 }
 0xb63   : > { %9629 = vmatprep.subr.bf16.mxu0 %v10957_v60  ;;  %9651 = vmatprep.subr.bf16.mxu1 %v10958_v61 }
 0xb66   : > { %9630 = vmatpush3.bf16.msra.mxu0 %v10959_v62  ;;  %9652 = vmatpush3.bf16.msra.mxu1 %v10960_v47 }
 0xb67   : > { %9631 = vmatprep.subr.bf16.mxu0 %v10961_v1  ;;  %9653 = vmatprep.subr.bf16.mxu1 %v10962_v5 }
 0xb6a   : > { %9632 = vmatpush3.bf16.msra.mxu0 %v10963_v7  ;;  %9654 = vmatpush3.bf16.msra.mxu1 %v10964_v9 }
 0xb6b   : > { %9633 = vmatprep.subr.bf16.mxu0 %v10965_v28  ;;  %9655 = vmatprep.subr.bf16.mxu1 %v10966_v30 }
 0xb6e   : > { %9634 = vmatpush3.bf16.msra.mxu0 %v10967_v13  ;;  %9656 = vmatpush3.bf16.msra.mxu1 %v10968_v16 }
 0xb6f   : > { %9635 = vmatprep.subr.bf16.mxu0 %v10969_v34  ;;  %9657 = vmatprep.subr.bf16.mxu1 %v10970_v37 }
 0xb72   : > { %9636 = vmatpush3.bf16.msra.mxu0 %v10971_v36  ;;  %9658 = vmatpush3.bf16.msra.mxu1 %v10972_v63 }
 0xb73   : > { %9637 = vmatprep.subr.bf16.mxu0 %v10973_v43  ;;  %9659 = vmatprep.subr.bf16.mxu1 %v10974_v2 }
 0xb76   : > { %9638 = vmatpush3.bf16.msra.mxu0 %v10975_v12  ;;  %9660 = vmatpush3.bf16.msra.mxu1 %v10976_v3 }
 0xb77   : > { %9639 = vmatprep.subr.bf16.mxu0 %v10977_v26  ;;  %9661 = vmatprep.subr.bf16.mxu1 %v10978_v4 }
 0xb7a   : > { %9640 = vmatpush3.bf16.msra.mxu0 %v10979_v10  ;;  %9662 = vmatpush3.bf16.msra.mxu1 %v10980_v17 }
 0xb7b   : > { %9641 = vmatprep.subr.bf16.mxu0 %v10981_v19  ;;  %9663 = vmatprep.subr.bf16.mxu1 %v10982_v20 }
 0xb7e   : > { %9642 = vmatpush3.bf16.msra.mxu0 %v10983_v44  ;;  %9664 = vmatpush3.bf16.msra.mxu1 %v10984_v35 }
 0xc34   : > { %v7961_v27 = vpop.f32.mrb[0].mxu0  ;;  %v8043_v32 = vpop.f32.mrb[0].mxu1 }
 0xc35   : > { %v9743_v29 = vadd.f32 %v7961_v27, %v7229_v22  ;;  %v9745_v31 = vadd.f32 %v8043_v32, %v7237_v23  ;;  %v7963_v14 = vpop.f32.mrb[1].mxu0  ;;  %v8045_v40 = vpop.f32.mrb[1].mxu1 }
 0xc36   : > { %v9744_v33 = vadd.f32 %v7963_v14, %v7233_v24  ;;  %v9746_v18 = vadd.f32 %v8045_v40, %v7241_v25  ;;  %v7965_v45 = vpop.f32.mrb[2].mxu0  ;;  %v8047_v46 = vpop.f32.mrb[2].mxu1 }
 0xc37   : > { %v8050_v41 = vmax.f32 %v9743_v29, 0.0  ;;  %v8052_v11 = vmax.f32 %v9745_v31, 0.0  ;;  %v7966_v15 = vpop.f32.mrb[3].mxu0  ;;  %v8048_v50 = vpop.f32.mrb[3].mxu1 }
 0xc38   : > { %v8051_v0 = vmax.f32 %v9744_v33, 0.0  ;;  %v8053_v42 = vmax.f32 %v9746_v18, 0.0 }
 0xc39   : > { %v8054_v58 = vpack.c.bf16 %v8050_v41, %v8050_v41  ;;  %v8056_v51 = vpack.c.bf16 %v8052_v11, %v8052_v11 }
 0xc3a   : > { %v8055_v49 = vpack.c.bf16 %v8051_v0, %v8051_v0  ;;  %v8057_v38 = vpack.c.bf16 %v8053_v42, %v8053_v42 }
 0xc3c   : > { %8353 = vmatprep.mubr.bf16.mxu0 %v8055_v49  ;;  %8393 = vmatprep.mubr.bf16.mxu1 %v8057_v38 }
 0xc3d   : > { %8354 = vmatmul.mubr.bf16.vlgmr.msra.gmra.mrb[4].mxu0 %v8054_v58  ;;  %8394 = vmatmul.mubr.bf16.vlgmr.msra.gmra.mrb[4].mxu1 %v8056_v51 }
 0xd10   : > { %v9643_v52 = vpop.f32.mrb[4].mxu0  ;;  %v9665_v53 = vpop.f32.mrb[4].mxu1 }
 0xd11   : > { %v9644_v54 = vpop.f32.mrb[5].mxu0  ;;  %v9666_v55 = vpop.f32.mrb[5].mxu1 }
 0xd12   : > { %v9645_v57 = vadd.f32 %v9644_v54, %v9643_v52  ;;  %v9667_v59 = vadd.f32 %v9666_v55, %v9665_v53  ;;  %v9646_v56 = vpop.f32.mrb[6].mxu0  ;;  %v9668_v48 = vpop.f32.mrb[6].mxu1 }
 0xd13   : > { %v9647_v8 = vpop.f32.mrb[7].mxu0  ;;  %v9669_v60 = vpop.f32.mrb[7].mxu1 }
 0xd14   : > { %v8356_v61 = vadd.f32 %v9645_v57, %v9444_v39 }
 0xd16   : > { %v8396_v62 = vadd.f32 %v9667_v59, %v8356_v61 }
 0xd18   : > { %8401 = vst [vmem:[%s12386_s29] sm:$0x3] %v8396_v62 }
 0xd19 PF: > { %s46_s3 = sadd.s32 1, %s11573_s3   ;;  %s14217_s24 = sld [smem:[#allocation40_spill]] }
 0xd1a   : > { %p43_p13 = scmp.ge.s32.totalorder %s46_s3, 12   ;;  %s14218_s22 = sld [smem:[#allocation47_spill]] }
 0xd1b   : > { %s14219_s2 = sld [smem:[#allocation43_spill]]  ;;  %s14220_s26 = sld [smem:[#allocation45_spill]] }
 0xd1c   : > { %s14221_s6 = sld [smem:[#allocation46_spill]]  ;;  %s14222_s0 = smov %s11537_s30 }
 0xd1d   : > { %s14223_s30 = smov %s11541_s20  ;;  %s14224_s20 = smov %s11995_s19 }
 0xd1e   : > { %s14225_s21 = smov %s11549_s1  ;;  %s14227_s23 = smov %s11569_s25 }
 0xd1f   : > { %s14226_s1 = smov %s14217_s24  ;;  %45 = sbr.rel (!%p43_p13) target bundleno = 39 (0x27), region = 264 }
 0xd21   : > { %s14228_s24 = smov %s14220_s26 }
 0xd22   : > { %s14229_s25 = smov %s14221_s6 }
 0xd26   :  { %8421 = vsyncpa [#allocation6], 1 }
 0xd27   :  { %8423 = vsyncpa [#allocation6 + $0x1], 1 }
 0xd28   :  { %8424 = vsyncpa [#allocation8], 1 }
 0xd29   :  { %8425 = vsyncpa [#allocation11], 1 }
 0xd2a   :  { %8426 = vsyncpa [#allocation14], 1 }
 0xd2b   :  { %8427 = vsyncpa [#allocation17], 1 }
 0xd2c   :  { %8428 = vsyncpa [#allocation20], 1 }
 0xd2d   :  { %8430 = vsyncpa [#allocation20 + $0x1], 1 }
 0xd2e   :  { %8431 = vsyncpa [#allocation23], 1 }
 0xd2f   :  { %8433 = vsyncpa [#allocation23 + $0x1], 1 }
 0xd30   :  { %8434 = vsyncpa [#allocation26], 1 }
 0xd31   :  { %8436 = vsyncpa [#allocation26 + $0x1], 1 }
 0xd32   :  { %8437 = vsyncpa [#allocation29], 1 }
 0xd33   :  { %8439 = vsyncpa [#allocation29 + $0x1], 1 }

</bundles_post_ra>
